<compile_context>
chip_gen: v7x
topology: tpu7x:2x2x1
jax: 0.10.0
libtpu: 0.0.40
codegen_flags: <defaults>
</compile_context>

<pallas_src>
import numpy as np
import jax
import jax.numpy as jnp
from jax.experimental import pallas as pl
from jax.experimental.pallas import tpu as pltpu


# ------------- static gather tables for the fused conv1+conv2 pipeline ---------
# conv1: Conv2d(2, 32, 5, stride=2, pad=2)  : (B,2,32,32) -> 16x16
# conv2: Conv2d(32, 64, 5, stride=2, pad=2) : 16x16       -> 8x8
# For conv2 tap t=(kh,kw) and output position p=(ph,pw) we need conv1's output at
# (ih,iw) = (2ph+kh-2, 2pw+kw-2).  We gather the corresponding conv1 *input
# patches* (static flat indices into the zero-padded NCHW input) and recompute
# conv1 on them, so the conv1->conv2 handoff never leaves VMEM.  Out-of-range
# taps read index 0 (a zero pad element), i.e. an all-zero patch.

def _build_conv_gather_tables():
    t = np.arange(25)
    kh, kw = t // 5, t % 5                              # conv2 taps
    p = np.arange(64)
    ph, pw = p // 8, p % 8                              # conv2 output positions
    ih = 2 * ph[None, :] + kh[:, None] - 2              # (25, 64) conv1-output coords
    iw = 2 * pw[None, :] + kw[:, None] - 2
    valid = (ih >= 0) & (ih < 16) & (iw >= 0) & (iw < 16)
    ihc, iwc = np.clip(ih, 0, 15), np.clip(iw, 0, 15)
    f = np.arange(50)                                   # conv1 patch feature index
    k1, k2, ci = f // 10, (f // 2) % 5, f % 2           # feature order (kh1, kw1, ci)
    hh = 2 * ihc[:, :, None] + k1[None, None, :]        # coords in 36x36 padded input
    ww = 2 * iwc[:, :, None] + k2[None, None, :]
    idx = ci[None, None, :] * 36 * 36 + hh * 36 + ww    # (25, 64, 50) per-sample flat idx
    idx = np.where(valid[:, :, None], idx, 0).astype(np.int32)
    return jnp.asarray(idx), jnp.asarray(valid.astype(np.float32))


_CONV_IDX, _CONV_VALID = _build_conv_gather_tables()    # (25,64,50) int32, (25,64) f32

# Packed-bias layout (all offsets multiples of 128 -> cheap lane-aligned slices).
_BIAS_LAYOUT = {
    "subj": (0, 256), "obj": (256, 256), "lang1": (512, 256), "lang2": (768, 128),
    "c3": (896, 128), "d1": (1024, 256), "d2": (1280, 128), "d3": (1408, 128),
    "s1": (1536, 128), "s2": (1664, 128),
}
_BIAS_TOTAL = 1792


# ----------------------------- Pallas kernel ------------------------------------

def _attention_fused_kernel(p1g_ref, subj_ref, obj_ref, delta_ref, b2_ref,
                            w1_ref, b1_ref, w2_ref, wc3_hbm_ref,
                            wso_ref, wl1_ref, wl2_ref,
                            wd1_ref, wd2_ref, wd3_ref,
                            ws1_ref, ws2_ref, ball_ref,
                            o_ref,
                            wc3_vmem, y2_vmem, dma_sem):
    """Whole AttentionLayer forward in a single kernel.

    p1g_ref : (25*64*B, 50) bf16  conv1 input patches, rows ordered (tap, pos, b)
    b2_ref  : (64*B, 64)    f32   conv2 bias with zero-padding correction, rows (pos, b)
    wc3_hbm_ref : (4096,128) bf16 conv3 weight left in HBM, streamed manually
    """
    batch = subj_ref.shape[0]
    rows = 64 * batch                      # rows per conv2 tap block (multiple of 8)
    bf16 = jnp.bfloat16
    relu = lambda v: jnp.maximum(v, 0.0)
    dot = lambda a, w: jnp.dot(a, w, preferred_element_type=jnp.float32)

    def bias(name):
        off, size = _BIAS_LAYOUT[name]
        return ball_ref[:, off:off + size]             # (1, size) f32, lane-aligned

    # Stream the 1 MiB conv3 weight HBM -> VMEM while conv1/conv2 and the
    # language / delta branches run (hides the dominant DMA behind compute).
    wc3_copy = pltpu.make_async_copy(wc3_hbm_ref, wc3_vmem, dma_sem)
    wc3_copy.start()

    # ---- mask_net conv1: ONE (25*64*B, 50) @ (50, 32) matmul -------------------
    z = relu(dot(p1g_ref[...], w1_ref[...]) + b1_ref[...])          # f32
    zb = z.astype(bf16)

    # ---- mask_net conv2: relayout tap blocks to lanes, ONE K=800 matmul --------
    z800 = jnp.concatenate(
        [zb[t * rows:(t + 1) * rows, :] for t in range(25)], axis=1)  # (rows, 800)
    y2 = relu(dot(z800, w2_ref[...]) + b2_ref[...])                   # (rows, 64) f32
    y2_vmem[...] = y2                                                 # rows = (pos, b)

    # ---- language branch: fc_subject, fc_object, cat, fc_lang ------------------
    s = relu(dot(subj_ref[...].astype(bf16), wso_ref[:, 0:256]) + bias("subj"))
    o = relu(dot(obj_ref[...].astype(bf16), wso_ref[:, 256:512]) + bias("obj"))
    lang = jnp.concatenate([s, o], axis=1).astype(bf16)               # cat(subj, obj)
    lang = relu(dot(lang, wl1_ref[...]) + bias("lang1"))
    lang = relu(dot(lang.astype(bf16), wl2_ref[...]) + bias("lang2"))

    # ---- fc_delta ---------------------------------------------------------------
    d = relu(dot(delta_ref[...].astype(bf16), wd1_ref[...]) + bias("d1"))
    d = relu(dot(d.astype(bf16), wd2_ref[...]) + bias("d2"))
    d = relu(dot(d.astype(bf16), wd3_ref[...]) + bias("d3"))

    # ---- mask_net conv3: 8x8 kernel on an 8x8 input == Linear on flat (B, 4096) --
    wc3_copy.wait()
    mask_flat = jnp.concatenate(
        [y2_vmem[p * batch:(p + 1) * batch, :] for p in range(64)], axis=1)  # (B,4096)
    mask_feat = relu(dot(mask_flat.astype(bf16), wc3_vmem[...]) + bias("c3"))

    # ---- fc_spatial on cat((mask_feat, delta_feat), dim=1) ---------------------
    sp = jnp.concatenate([mask_feat, d], axis=1).astype(bf16)
    sp = relu(dot(sp, ws1_ref[...]) + bias("s1"))
    sp = relu(dot(sp.astype(bf16), ws2_ref[...]) + bias("s2"))

    o_ref[...] = lang + sp


# ------------------------------ kernel wrapper ----------------------------------

def attention_fused(subj, obj, deltas, p1g, b2rows, prep):
    b = subj.shape[0]
    vmem = pl.BlockSpec(memory_space=pltpu.MemorySpace.VMEM)
    in_specs = ([vmem] * 8
                + [pl.BlockSpec(memory_space=pl.ANY)]      # w_c3m stays in HBM
                + [vmem] * 9)
    return pl.pallas_call(
        _attention_fused_kernel,
        out_shape=jax.ShapeDtypeStruct((b, 128), jnp.float32),
        in_specs=in_specs,
        out_specs=pl.BlockSpec(memory_space=pltpu.MemorySpace.VMEM),
        scratch_shapes=[
            pltpu.VMEM((4096, 128), jnp.bfloat16),   # conv3 weight landing buffer
            pltpu.VMEM((64 * b, 64), jnp.float32),   # conv2 output, rows (pos, b)
            pltpu.SemaphoreType.DMA,
        ],
    )(p1g, subj, obj, deltas, b2rows,
      prep["w_c1m"], prep["b_c1"], prep["w_c2m"], prep["w_c3m"],
      prep["w_so"], prep["w_l1"], prep["w_l2"],
      prep["w_d1"], prep["w_d2"], prep["w_d3"],
      prep["w_s1"], prep["w_s2"], prep["b_all"])


# --------------------------- parameters & forward -------------------------------

def init_params(key):
    def lin(k, fan_in, fan_out, scale=0.05):
        kw, kb = jax.random.split(k)
        return (jax.random.normal(kw, (fan_in, fan_out), jnp.float32) * scale,
                jax.random.normal(kb, (fan_out,), jnp.float32) * scale)

    def conv(k, cout, cin, ksz, scale=0.05):
        kw, kb = jax.random.split(k)
        return (jax.random.normal(kw, (cout, cin, ksz, ksz), jnp.float32) * scale,
                jax.random.normal(kb, (cout,), jnp.float32) * scale)

    keys = jax.random.split(key, 12)
    p = {}
    p["w_subj"], p["b_subj"] = lin(keys[0], 300, 256)     # fc_subject
    p["w_obj"], p["b_obj"] = lin(keys[1], 300, 256)       # fc_object
    p["w_lang1"], p["b_lang1"] = lin(keys[2], 512, 256)   # fc_lang[0]
    p["w_lang2"], p["b_lang2"] = lin(keys[3], 256, 128)   # fc_lang[2]
    p["w_c1"], p["b_c1"] = conv(keys[4], 32, 2, 5)        # mask_net conv1
    p["w_c2"], p["b_c2"] = conv(keys[5], 64, 32, 5)       # mask_net conv2
    p["w_c3"], p["b_c3"] = conv(keys[6], 128, 64, 8)      # mask_net conv3
    p["w_d1"], p["b_d1"] = lin(keys[7], 38, 256)          # fc_delta[0]
    p["w_d2"], p["b_d2"] = lin(keys[8], 256, 128)         # fc_delta[2]
    p["w_d3"], p["b_d3"] = lin(keys[9], 128, 128)         # fc_delta[4]
    p["w_s1"], p["b_s1"] = lin(keys[10], 256, 128)        # fc_spatial[0]
    p["w_s2"], p["b_s2"] = lin(keys[11], 128, 128)        # fc_spatial[2]
    return p


def prepare_params(p):
    """One-time prep (run eagerly, outside jit): matmul-ready conv weights, bf16
    weight casts, conv2 padding folded into a positional bias, packed biases."""
    # Linear weights must be (in_features, out_features); PyTorch stores (out, in).
    assert p["w_subj"].shape == (300, 256) and p["w_c1"].shape == (32, 2, 5, 5)
    r = lambda v: v.reshape(1, -1)
    bf = lambda v: v.astype(jnp.bfloat16)

    # conv weights as matmul weights, patch feature order (kh, kw, cin)
    w_c1m = p["w_c1"].transpose(2, 3, 1, 0).reshape(50, 32)
    w_c2t = p["w_c2"].transpose(2, 3, 1, 0).reshape(25, 32, 64)       # (tap, cin, cout)
    w_c2m = w_c2t.reshape(800, 64)
    w_c3m = p["w_c3"].transpose(2, 3, 1, 0).reshape(4096, 128)

    # conv2 zero-padding folded into a per-output-position bias: out-of-range taps
    # see an all-zero patch, so their constant relu(b1) @ w2[tap] is subtracted.
    relu_b1 = jnp.maximum(p["b_c1"], 0.0)                             # (32,)
    tap_const = jnp.einsum("c,tcd->td", relu_b1, w_c2t)               # (25, 64)
    corr = jnp.einsum("tp,td->pd", 1.0 - _CONV_VALID, tap_const)      # (64, 64)
    b2pos = p["b_c2"][None, :] - corr                                 # (64, 64) f32

    b_all = jnp.concatenate([p["b_subj"], p["b_obj"], p["b_lang1"], p["b_lang2"],
                             p["b_c3"], p["b_d1"], p["b_d2"], p["b_d3"],
                             p["b_s1"], p["b_s2"]]).reshape(1, -1)
    assert b_all.shape[1] == _BIAS_TOTAL

    return {
        "conv_idx": _CONV_IDX,                 # (25, 64, 50) int32
        "b2pos": b2pos,                        # f32 (64, 64)
        "w_c1m": bf(w_c1m), "b_c1": r(p["b_c1"]),
        "w_c2m": bf(w_c2m), "w_c3m": bf(w_c3m),
        "w_so": bf(jnp.concatenate([p["w_subj"], p["w_obj"]], axis=1)),  # (300, 512)
        "w_l1": bf(p["w_lang1"]), "w_l2": bf(p["w_lang2"]),
        "w_d1": bf(p["w_d1"]), "w_d2": bf(p["w_d2"]), "w_d3": bf(p["w_d3"]),
        "w_s1": bf(p["w_s1"]), "w_s2": bf(p["w_s2"]),
        "b_all": b_all,                        # (1, 1792) f32
    }


def attention_layer_forward(prep, subj_embs, obj_embs, deltas, masks):
    """use_language=True, use_spatial=True path of AttentionLayer.forward."""
    b = masks.shape[0]

    # glue (XLA): zero-pad + one flat gather builds conv1 input patches already
    # arranged for the fused kernel, rows ordered (tap, pos, batch) -- no transpose.
    xflat = jnp.pad(masks, ((0, 0), (0, 0), (2, 2), (2, 2))).reshape(b * 2 * 36 * 36)
    offs = jnp.arange(b, dtype=jnp.int32) * (2 * 36 * 36)
    idx = prep["conv_idx"][:, :, None, :] + offs[None, None, :, None]  # (25,64,B,50)
    p1g = xflat[idx].reshape(25 * 64 * b, 50).astype(jnp.bfloat16)

    # conv2 positional bias expanded to rows (pos, batch)
    b2rows = jnp.repeat(prep["b2pos"], b, axis=0)                      # (64*B, 64)

    return attention_fused(subj_embs, obj_embs, deltas, p1g, b2rows, prep)


if __name__ == "__main__":
    key = jax.random.PRNGKey(0)
    pkey, dkey = jax.random.split(key)
    params = init_params(pkey)
    prep = prepare_params(params)          # hoisted one-time weight prep

    B = 2
    k1, k2, k3, k4 = jax.random.split(dkey, 4)
    subj_embs = jax.random.normal(k1, (B, 300), jnp.float32)
    obj_embs = jax.random.normal(k2, (B, 300), jnp.float32)
    deltas = jax.random.normal(k3, (B, 38), jnp.float32)
    masks = jax.random.normal(k4, (B, 2, 32, 32), jnp.float32)   # NCHW

    out = jax.jit(attention_layer_forward)(prep, subj_embs, obj_embs, deltas, masks)
    out = jax.block_until_ready(out)
    assert out.shape == (B, 128) and out.dtype == jnp.float32
    print("KERNEL_OK")
</pallas_src>

<mosaic_0001>
module attributes {stable_mosaic.version = 11 : i64} {
  func.func @_attention_fused_kernel(%arg0: memref<3200x50xbf16, #tpu.memory_space<vmem>>, %arg1: memref<2x300xf32, #tpu.memory_space<vmem>>, %arg2: memref<2x300xf32, #tpu.memory_space<vmem>>, %arg3: memref<2x38xf32, #tpu.memory_space<vmem>>, %arg4: memref<128x64xf32, #tpu.memory_space<vmem>>, %arg5: memref<50x32xbf16, #tpu.memory_space<vmem>>, %arg6: memref<1x32xf32, #tpu.memory_space<vmem>>, %arg7: memref<800x64xbf16, #tpu.memory_space<vmem>>, %arg8: memref<4096x128xbf16, #tpu.memory_space<any>>, %arg9: memref<300x512xbf16, #tpu.memory_space<vmem>>, %arg10: memref<512x256xbf16, #tpu.memory_space<vmem>>, %arg11: memref<256x128xbf16, #tpu.memory_space<vmem>>, %arg12: memref<38x256xbf16, #tpu.memory_space<vmem>>, %arg13: memref<256x128xbf16, #tpu.memory_space<vmem>>, %arg14: memref<128x128xbf16, #tpu.memory_space<vmem>>, %arg15: memref<256x128xbf16, #tpu.memory_space<vmem>>, %arg16: memref<128x128xbf16, #tpu.memory_space<vmem>>, %arg17: memref<1x1792xf32, #tpu.memory_space<vmem>>, %arg18: memref<2x128xf32, #tpu.memory_space<vmem>>, %arg19: memref<4096x128xbf16, #tpu.memory_space<vmem>>, %arg20: memref<128x64xf32, #tpu.memory_space<vmem>>, %arg21: memref<!tpu.dma_semaphore, #tpu.memory_space<semaphore_mem>>) attributes {dimension_semantics = [], scalar_prefetch = 0 : i64, scratch_operands = 3 : i64, tpu.core_type = #tpu.core_type<tc>} {
    tpu.enqueue_dma source(%arg8 : memref<4096x128xbf16, #tpu.memory_space<any>>) target(%arg19 : memref<4096x128xbf16, #tpu.memory_space<vmem>>) target_semaphore(%arg21 : memref<!tpu.dma_semaphore, #tpu.memory_space<semaphore_mem>>)
    %c0 = arith.constant 0 : index
    %c0_0 = arith.constant 0 : index
    %0 = vector.load %arg0[%c0, %c0_0] : memref<3200x50xbf16, #tpu.memory_space<vmem>>, vector<3200x50xbf16>
    %c0_1 = arith.constant 0 : index
    %c0_2 = arith.constant 0 : index
    %1 = vector.load %arg5[%c0_1, %c0_2] : memref<50x32xbf16, #tpu.memory_space<vmem>>, vector<50x32xbf16>
    %cst = arith.constant dense<0.000000e+00> : vector<3200x32xf32>
    %2 = tpu.matmul %0, %1, %cst {dimension_numbers = #tpu.dot_dimension_numbers<[1], [0], [0], [1], [0, 0, 1, 1], [], []>} : vector<3200x50xbf16>, vector<50x32xbf16>, vector<3200x32xf32> -> vector<3200x32xf32>
    %c0_3 = arith.constant 0 : index
    %c0_4 = arith.constant 0 : index
    %3 = vector.load %arg6[%c0_3, %c0_4] : memref<1x32xf32, #tpu.memory_space<vmem>>, vector<1x32xf32>
    %4 = vector.broadcast %3 : vector<1x32xf32> to vector<3200x32xf32>
    %5 = arith.addf %2, %4 : vector<3200x32xf32>
    %cst_5 = arith.constant 0.000000e+00 : f32
    %6 = vector.broadcast %cst_5 : f32 to vector<3200x32xf32>
    %7 = arith.maximumf %5, %6 : vector<3200x32xf32>
    %8 = arith.truncf %7 : vector<3200x32xf32> to vector<3200x32xbf16>
    %9 = vector.extract_strided_slice %8 {offsets = [0, 0], sizes = [128, 32], strides = [1, 1]} : vector<3200x32xbf16> to vector<128x32xbf16>
    %10 = vector.extract_strided_slice %8 {offsets = [128, 0], sizes = [128, 32], strides = [1, 1]} : vector<3200x32xbf16> to vector<128x32xbf16>
    %11 = vector.extract_strided_slice %8 {offsets = [256, 0], sizes = [128, 32], strides = [1, 1]} : vector<3200x32xbf16> to vector<128x32xbf16>
    %12 = vector.extract_strided_slice %8 {offsets = [384, 0], sizes = [128, 32], strides = [1, 1]} : vector<3200x32xbf16> to vector<128x32xbf16>
    %13 = vector.extract_strided_slice %8 {offsets = [512, 0], sizes = [128, 32], strides = [1, 1]} : vector<3200x32xbf16> to vector<128x32xbf16>
    %14 = vector.extract_strided_slice %8 {offsets = [640, 0], sizes = [128, 32], strides = [1, 1]} : vector<3200x32xbf16> to vector<128x32xbf16>
    %15 = vector.extract_strided_slice %8 {offsets = [768, 0], sizes = [128, 32], strides = [1, 1]} : vector<3200x32xbf16> to vector<128x32xbf16>
    %16 = vector.extract_strided_slice %8 {offsets = [896, 0], sizes = [128, 32], strides = [1, 1]} : vector<3200x32xbf16> to vector<128x32xbf16>
    %17 = vector.extract_strided_slice %8 {offsets = [1024, 0], sizes = [128, 32], strides = [1, 1]} : vector<3200x32xbf16> to vector<128x32xbf16>
    %18 = vector.extract_strided_slice %8 {offsets = [1152, 0], sizes = [128, 32], strides = [1, 1]} : vector<3200x32xbf16> to vector<128x32xbf16>
    %19 = vector.extract_strided_slice %8 {offsets = [1280, 0], sizes = [128, 32], strides = [1, 1]} : vector<3200x32xbf16> to vector<128x32xbf16>
    %20 = vector.extract_strided_slice %8 {offsets = [1408, 0], sizes = [128, 32], strides = [1, 1]} : vector<3200x32xbf16> to vector<128x32xbf16>
    %21 = vector.extract_strided_slice %8 {offsets = [1536, 0], sizes = [128, 32], strides = [1, 1]} : vector<3200x32xbf16> to vector<128x32xbf16>
    %22 = vector.extract_strided_slice %8 {offsets = [1664, 0], sizes = [128, 32], strides = [1, 1]} : vector<3200x32xbf16> to vector<128x32xbf16>
    %23 = vector.extract_strided_slice %8 {offsets = [1792, 0], sizes = [128, 32], strides = [1, 1]} : vector<3200x32xbf16> to vector<128x32xbf16>
    %24 = vector.extract_strided_slice %8 {offsets = [1920, 0], sizes = [128, 32], strides = [1, 1]} : vector<3200x32xbf16> to vector<128x32xbf16>
    %25 = vector.extract_strided_slice %8 {offsets = [2048, 0], sizes = [128, 32], strides = [1, 1]} : vector<3200x32xbf16> to vector<128x32xbf16>
    %26 = vector.extract_strided_slice %8 {offsets = [2176, 0], sizes = [128, 32], strides = [1, 1]} : vector<3200x32xbf16> to vector<128x32xbf16>
    %27 = vector.extract_strided_slice %8 {offsets = [2304, 0], sizes = [128, 32], strides = [1, 1]} : vector<3200x32xbf16> to vector<128x32xbf16>
    %28 = vector.extract_strided_slice %8 {offsets = [2432, 0], sizes = [128, 32], strides = [1, 1]} : vector<3200x32xbf16> to vector<128x32xbf16>
    %29 = vector.extract_strided_slice %8 {offsets = [2560, 0], sizes = [128, 32], strides = [1, 1]} : vector<3200x32xbf16> to vector<128x32xbf16>
    %30 = vector.extract_strided_slice %8 {offsets = [2688, 0], sizes = [128, 32], strides = [1, 1]} : vector<3200x32xbf16> to vector<128x32xbf16>
    %31 = vector.extract_strided_slice %8 {offsets = [2816, 0], sizes = [128, 32], strides = [1, 1]} : vector<3200x32xbf16> to vector<128x32xbf16>
    %32 = vector.extract_strided_slice %8 {offsets = [2944, 0], sizes = [128, 32], strides = [1, 1]} : vector<3200x32xbf16> to vector<128x32xbf16>
    %33 = vector.extract_strided_slice %8 {offsets = [3072, 0], sizes = [128, 32], strides = [1, 1]} : vector<3200x32xbf16> to vector<128x32xbf16>
    %34 = tpu.concatenate %9, %10, %11, %12, %13, %14, %15, %16, %17, %18, %19, %20, %21, %22, %23, %24 in 1 : vector<128x32xbf16>, vector<128x32xbf16>, vector<128x32xbf16>, vector<128x32xbf16>, vector<128x32xbf16>, vector<128x32xbf16>, vector<128x32xbf16>, vector<128x32xbf16>, vector<128x32xbf16>, vector<128x32xbf16>, vector<128x32xbf16>, vector<128x32xbf16>, vector<128x32xbf16>, vector<128x32xbf16>, vector<128x32xbf16>, vector<128x32xbf16> -> vector<128x512xbf16>
    %35 = tpu.concatenate %25, %26, %27, %28, %29, %30, %31, %32, %33 in 1 : vector<128x32xbf16>, vector<128x32xbf16>, vector<128x32xbf16>, vector<128x32xbf16>, vector<128x32xbf16>, vector<128x32xbf16>, vector<128x32xbf16>, vector<128x32xbf16>, vector<128x32xbf16> -> vector<128x288xbf16>
    %36 = tpu.concatenate %34, %35 in 1 : vector<128x512xbf16>, vector<128x288xbf16> -> vector<128x800xbf16>
    %c0_6 = arith.constant 0 : index
    %c0_7 = arith.constant 0 : index
    %37 = vector.load %arg7[%c0_6, %c0_7] : memref<800x64xbf16, #tpu.memory_space<vmem>>, vector<800x64xbf16>
    %cst_8 = arith.constant dense<0.000000e+00> : vector<128x64xf32>
    %38 = tpu.matmul %36, %37, %cst_8 {dimension_numbers = #tpu.dot_dimension_numbers<[1], [0], [0], [1], [0, 0, 1, 1], [], []>} : vector<128x800xbf16>, vector<800x64xbf16>, vector<128x64xf32> -> vector<128x64xf32>
    %c0_9 = arith.constant 0 : index
    %c0_10 = arith.constant 0 : index
    %39 = vector.load %arg4[%c0_9, %c0_10] : memref<128x64xf32, #tpu.memory_space<vmem>>, vector<128x64xf32>
    %40 = arith.addf %38, %39 : vector<128x64xf32>
    %cst_11 = arith.constant 0.000000e+00 : f32
    %41 = vector.broadcast %cst_11 : f32 to vector<128x64xf32>
    %42 = arith.maximumf %40, %41 : vector<128x64xf32>
    %c0_12 = arith.constant 0 : index
    %c0_13 = arith.constant 0 : index
    %43 = vector.load %arg20[%c0_12, %c0_13] : memref<128x64xf32, #tpu.memory_space<vmem>>, vector<128x64xf32>
    tpu.vector_store %arg20[%c0_12, %c0_13], %42 {strides = array<i32>} : memref<128x64xf32, #tpu.memory_space<vmem>>, vector<128x64xf32>,
    %c0_14 = arith.constant 0 : index
    %c0_15 = arith.constant 0 : index
    %44 = vector.load %arg1[%c0_14, %c0_15] : memref<2x300xf32, #tpu.memory_space<vmem>>, vector<2x300xf32>
    %45 = arith.truncf %44 : vector<2x300xf32> to vector<2x300xbf16>
    %c0_16 = arith.constant 0 : index
    %c0_17 = arith.constant 0 : index
    %46 = vector.load %arg9[%c0_16, %c0_17] : memref<300x512xbf16, #tpu.memory_space<vmem>>, vector<300x256xbf16>
    %cst_18 = arith.constant dense<0.000000e+00> : vector<2x256xf32>
    %47 = tpu.matmul %45, %46, %cst_18 {dimension_numbers = #tpu.dot_dimension_numbers<[1], [0], [0], [1], [0, 0, 1, 1], [], []>} : vector<2x300xbf16>, vector<300x256xbf16>, vector<2x256xf32> -> vector<2x256xf32>
    %c0_19 = arith.constant 0 : index
    %c0_20 = arith.constant 0 : index
    %48 = vector.load %arg17[%c0_19, %c0_20] : memref<1x1792xf32, #tpu.memory_space<vmem>>, vector<1x256xf32>
    %49 = vector.broadcast %48 : vector<1x256xf32> to vector<2x256xf32>
    %50 = arith.addf %47, %49 : vector<2x256xf32>
    %cst_21 = arith.constant 0.000000e+00 : f32
    %51 = vector.broadcast %cst_21 : f32 to vector<2x256xf32>
    %52 = arith.maximumf %50, %51 : vector<2x256xf32>
    %c0_22 = arith.constant 0 : index
    %c0_23 = arith.constant 0 : index
    %53 = vector.load %arg2[%c0_22, %c0_23] : memref<2x300xf32, #tpu.memory_space<vmem>>, vector<2x300xf32>
    %54 = arith.truncf %53 : vector<2x300xf32> to vector<2x300xbf16>
    %c0_24 = arith.constant 0 : index
    %c256 = arith.constant 256 : index
    %55 = vector.load %arg9[%c0_24, %c256] : memref<300x512xbf16, #tpu.memory_space<vmem>>, vector<300x256xbf16>
    %cst_25 = arith.constant dense<0.000000e+00> : vector<2x256xf32>
    %56 = tpu.matmul %54, %55, %cst_25 {dimension_numbers = #tpu.dot_dimension_numbers<[1], [0], [0], [1], [0, 0, 1, 1], [], []>} : vector<2x300xbf16>, vector<300x256xbf16>, vector<2x256xf32> -> vector<2x256xf32>
    %c0_26 = arith.constant 0 : index
    %c256_27 = arith.constant 256 : index
    %57 = vector.load %arg17[%c0_26, %c256_27] : memref<1x1792xf32, #tpu.memory_space<vmem>>, vector<1x256xf32>
    %58 = vector.broadcast %57 : vector<1x256xf32> to vector<2x256xf32>
    %59 = arith.addf %56, %58 : vector<2x256xf32>
    %cst_28 = arith.constant 0.000000e+00 : f32
    %60 = vector.broadcast %cst_28 : f32 to vector<2x256xf32>
    %61 = arith.maximumf %59, %60 : vector<2x256xf32>
    %62 = tpu.concatenate %52, %61 in 1 : vector<2x256xf32>, vector<2x256xf32> -> vector<2x512xf32>
    %63 = arith.truncf %62 : vector<2x512xf32> to vector<2x512xbf16>
    %c0_29 = arith.constant 0 : index
    %c0_30 = arith.constant 0 : index
    %64 = vector.load %arg10[%c0_29, %c0_30] : memref<512x256xbf16, #tpu.memory_space<vmem>>, vector<512x256xbf16>
    %cst_31 = arith.constant dense<0.000000e+00> : vector<2x256xf32>
    %65 = tpu.matmul %63, %64, %cst_31 {dimension_numbers = #tpu.dot_dimension_numbers<[1], [0], [0], [1], [0, 0, 1, 1], [], []>} : vector<2x512xbf16>, vector<512x256xbf16>, vector<2x256xf32> -> vector<2x256xf32>
    %c0_32 = arith.constant 0 : index
    %c512 = arith.constant 512 : index
    %66 = vector.load %arg17[%c0_32, %c512] : memref<1x1792xf32, #tpu.memory_space<vmem>>, vector<1x256xf32>
    %67 = vector.broadcast %66 : vector<1x256xf32> to vector<2x256xf32>
    %68 = arith.addf %65, %67 : vector<2x256xf32>
    %cst_33 = arith.constant 0.000000e+00 : f32
    %69 = vector.broadcast %cst_33 : f32 to vector<2x256xf32>
    %70 = arith.maximumf %68, %69 : vector<2x256xf32>
    %71 = arith.truncf %70 : vector<2x256xf32> to vector<2x256xbf16>
    %c0_34 = arith.constant 0 : index
    %c0_35 = arith.constant 0 : index
    %72 = vector.load %arg11[%c0_34, %c0_35] : memref<256x128xbf16, #tpu.memory_space<vmem>>, vector<256x128xbf16>
    %cst_36 = arith.constant dense<0.000000e+00> : vector<2x128xf32>
    %73 = tpu.matmul %71, %72, %cst_36 {dimension_numbers = #tpu.dot_dimension_numbers<[1], [0], [0], [1], [0, 0, 1, 1], [], []>} : vector<2x256xbf16>, vector<256x128xbf16>, vector<2x128xf32> -> vector<2x128xf32>
    %c0_37 = arith.constant 0 : index
    %c768 = arith.constant 768 : index
    %74 = vector.load %arg17[%c0_37, %c768] : memref<1x1792xf32, #tpu.memory_space<vmem>>, vector<1x128xf32>
    %75 = vector.broadcast %74 : vector<1x128xf32> to vector<2x128xf32>
    %76 = arith.addf %73, %75 : vector<2x128xf32>
    %cst_38 = arith.constant 0.000000e+00 : f32
    %77 = vector.broadcast %cst_38 : f32 to vector<2x128xf32>
    %78 = arith.maximumf %76, %77 : vector<2x128xf32>
    %c0_39 = arith.constant 0 : index
    %c0_40 = arith.constant 0 : index
    %79 = vector.load %arg3[%c0_39, %c0_40] : memref<2x38xf32, #tpu.memory_space<vmem>>, vector<2x38xf32>
    %80 = arith.truncf %79 : vector<2x38xf32> to vector<2x38xbf16>
    %c0_41 = arith.constant 0 : index
    %c0_42 = arith.constant 0 : index
    %81 = vector.load %arg12[%c0_41, %c0_42] : memref<38x256xbf16, #tpu.memory_space<vmem>>, vector<38x256xbf16>
    %cst_43 = arith.constant dense<0.000000e+00> : vector<2x256xf32>
    %82 = tpu.matmul %80, %81, %cst_43 {dimension_numbers = #tpu.dot_dimension_numbers<[1], [0], [0], [1], [0, 0, 1, 1], [], []>} : vector<2x38xbf16>, vector<38x256xbf16>, vector<2x256xf32> -> vector<2x256xf32>
    %c0_44 = arith.constant 0 : index
    %c1024 = arith.constant 1024 : index
    %83 = vector.load %arg17[%c0_44, %c1024] : memref<1x1792xf32, #tpu.memory_space<vmem>>, vector<1x256xf32>
    %84 = vector.broadcast %83 : vector<1x256xf32> to vector<2x256xf32>
    %85 = arith.addf %82, %84 : vector<2x256xf32>
    %cst_45 = arith.constant 0.000000e+00 : f32
    %86 = vector.broadcast %cst_45 : f32 to vector<2x256xf32>
    %87 = arith.maximumf %85, %86 : vector<2x256xf32>
    %88 = arith.truncf %87 : vector<2x256xf32> to vector<2x256xbf16>
    %c0_46 = arith.constant 0 : index
    %c0_47 = arith.constant 0 : index
    %89 = vector.load %arg13[%c0_46, %c0_47] : memref<256x128xbf16, #tpu.memory_space<vmem>>, vector<256x128xbf16>
    %cst_48 = arith.constant dense<0.000000e+00> : vector<2x128xf32>
    %90 = tpu.matmul %88, %89, %cst_48 {dimension_numbers = #tpu.dot_dimension_numbers<[1], [0], [0], [1], [0, 0, 1, 1], [], []>} : vector<2x256xbf16>, vector<256x128xbf16>, vector<2x128xf32> -> vector<2x128xf32>
    %c0_49 = arith.constant 0 : index
    %c1280 = arith.constant 1280 : index
    %91 = vector.load %arg17[%c0_49, %c1280] : memref<1x1792xf32, #tpu.memory_space<vmem>>, vector<1x128xf32>
    %92 = vector.broadcast %91 : vector<1x128xf32> to vector<2x128xf32>
    %93 = arith.addf %90, %92 : vector<2x128xf32>
    %cst_50 = arith.constant 0.000000e+00 : f32
    %94 = vector.broadcast %cst_50 : f32 to vector<2x128xf32>
    %95 = arith.maximumf %93, %94 : vector<2x128xf32>
    %96 = arith.truncf %95 : vector<2x128xf32> to vector<2x128xbf16>
    %c0_51 = arith.constant 0 : index
    %c0_52 = arith.constant 0 : index
    %97 = vector.load %arg14[%c0_51, %c0_52] : memref<128x128xbf16, #tpu.memory_space<vmem>>, vector<128x128xbf16>
    %cst_53 = arith.constant dense<0.000000e+00> : vector<2x128xf32>
    %98 = tpu.matmul %96, %97, %cst_53 {dimension_numbers = #tpu.dot_dimension_numbers<[1], [0], [0], [1], [0, 0, 1, 1], [], []>} : vector<2x128xbf16>, vector<128x128xbf16>, vector<2x128xf32> -> vector<2x128xf32>
    %c0_54 = arith.constant 0 : index
    %c1408 = arith.constant 1408 : index
    %99 = vector.load %arg17[%c0_54, %c1408] : memref<1x1792xf32, #tpu.memory_space<vmem>>, vector<1x128xf32>
    %100 = vector.broadcast %99 : vector<1x128xf32> to vector<2x128xf32>
    %101 = arith.addf %98, %100 : vector<2x128xf32>
    %cst_55 = arith.constant 0.000000e+00 : f32
    %102 = vector.broadcast %cst_55 : f32 to vector<2x128xf32>
    %103 = arith.maximumf %101, %102 : vector<2x128xf32>
    tpu.wait_dma2 semaphore(%arg21 : memref<!tpu.dma_semaphore, #tpu.memory_space<semaphore_mem>>) src(%arg8 : memref<4096x128xbf16, #tpu.memory_space<any>>) dst(%arg19 : memref<4096x128xbf16, #tpu.memory_space<vmem>>)
    %c0_56 = arith.constant 0 : index
    %c0_57 = arith.constant 0 : index
    %104 = vector.load %arg20[%c0_56, %c0_57] : memref<128x64xf32, #tpu.memory_space<vmem>>, vector<2x64xf32>
    %c2 = arith.constant 2 : index
    %c0_58 = arith.constant 0 : index
    %105 = vector.load %arg20[%c2, %c0_58] : memref<128x64xf32, #tpu.memory_space<vmem>>, vector<2x64xf32>
    %c4 = arith.constant 4 : index
    %c0_59 = arith.constant 0 : index
    %106 = vector.load %arg20[%c4, %c0_59] : memref<128x64xf32, #tpu.memory_space<vmem>>, vector<2x64xf32>
    %c6 = arith.constant 6 : index
    %c0_60 = arith.constant 0 : index
    %107 = vector.load %arg20[%c6, %c0_60] : memref<128x64xf32, #tpu.memory_space<vmem>>, vector<2x64xf32>
    %c8 = arith.constant 8 : index
    %c0_61 = arith.constant 0 : index
    %108 = vector.load %arg20[%c8, %c0_61] : memref<128x64xf32, #tpu.memory_space<vmem>>, vector<2x64xf32>
    %c10 = arith.constant 10 : index
    %c0_62 = arith.constant 0 : index
    %109 = vector.load %arg20[%c10, %c0_62] : memref<128x64xf32, #tpu.memory_space<vmem>>, vector<2x64xf32>
    %c12 = arith.constant 12 : index
    %c0_63 = arith.constant 0 : index
    %110 = vector.load %arg20[%c12, %c0_63] : memref<128x64xf32, #tpu.memory_space<vmem>>, vector<2x64xf32>
    %c14 = arith.constant 14 : index
    %c0_64 = arith.constant 0 : index
    %111 = vector.load %arg20[%c14, %c0_64] : memref<128x64xf32, #tpu.memory_space<vmem>>, vector<2x64xf32>
    %c16 = arith.constant 16 : index
    %c0_65 = arith.constant 0 : index
    %112 = vector.load %arg20[%c16, %c0_65] : memref<128x64xf32, #tpu.memory_space<vmem>>, vector<2x64xf32>
    %c18 = arith.constant 18 : index
    %c0_66 = arith.constant 0 : index
    %113 = vector.load %arg20[%c18, %c0_66] : memref<128x64xf32, #tpu.memory_space<vmem>>, vector<2x64xf32>
    %c20 = arith.constant 20 : index
    %c0_67 = arith.constant 0 : index
    %114 = vector.load %arg20[%c20, %c0_67] : memref<128x64xf32, #tpu.memory_space<vmem>>, vector<2x64xf32>
    %c22 = arith.constant 22 : index
    %c0_68 = arith.constant 0 : index
    %115 = vector.load %arg20[%c22, %c0_68] : memref<128x64xf32, #tpu.memory_space<vmem>>, vector<2x64xf32>
    %c24 = arith.constant 24 : index
    %c0_69 = arith.constant 0 : index
    %116 = vector.load %arg20[%c24, %c0_69] : memref<128x64xf32, #tpu.memory_space<vmem>>, vector<2x64xf32>
    %c26 = arith.constant 26 : index
    %c0_70 = arith.constant 0 : index
    %117 = vector.load %arg20[%c26, %c0_70] : memref<128x64xf32, #tpu.memory_space<vmem>>, vector<2x64xf32>
    %c28 = arith.constant 28 : index
    %c0_71 = arith.constant 0 : index
    %118 = vector.load %arg20[%c28, %c0_71] : memref<128x64xf32, #tpu.memory_space<vmem>>, vector<2x64xf32>
    %c30 = arith.constant 30 : index
    %c0_72 = arith.constant 0 : index
    %119 = vector.load %arg20[%c30, %c0_72] : memref<128x64xf32, #tpu.memory_space<vmem>>, vector<2x64xf32>
    %c32 = arith.constant 32 : index
    %c0_73 = arith.constant 0 : index
    %120 = vector.load %arg20[%c32, %c0_73] : memref<128x64xf32, #tpu.memory_space<vmem>>, vector<2x64xf32>
    %c34 = arith.constant 34 : index
    %c0_74 = arith.constant 0 : index
    %121 = vector.load %arg20[%c34, %c0_74] : memref<128x64xf32, #tpu.memory_space<vmem>>, vector<2x64xf32>
    %c36 = arith.constant 36 : index
    %c0_75 = arith.constant 0 : index
    %122 = vector.load %arg20[%c36, %c0_75] : memref<128x64xf32, #tpu.memory_space<vmem>>, vector<2x64xf32>
    %c38 = arith.constant 38 : index
    %c0_76 = arith.constant 0 : index
    %123 = vector.load %arg20[%c38, %c0_76] : memref<128x64xf32, #tpu.memory_space<vmem>>, vector<2x64xf32>
    %c40 = arith.constant 40 : index
    %c0_77 = arith.constant 0 : index
    %124 = vector.load %arg20[%c40, %c0_77] : memref<128x64xf32, #tpu.memory_space<vmem>>, vector<2x64xf32>
    %c42 = arith.constant 42 : index
    %c0_78 = arith.constant 0 : index
    %125 = vector.load %arg20[%c42, %c0_78] : memref<128x64xf32, #tpu.memory_space<vmem>>, vector<2x64xf32>
    %c44 = arith.constant 44 : index
    %c0_79 = arith.constant 0 : index
    %126 = vector.load %arg20[%c44, %c0_79] : memref<128x64xf32, #tpu.memory_space<vmem>>, vector<2x64xf32>
    %c46 = arith.constant 46 : index
    %c0_80 = arith.constant 0 : index
    %127 = vector.load %arg20[%c46, %c0_80] : memref<128x64xf32, #tpu.memory_space<vmem>>, vector<2x64xf32>
    %c48 = arith.constant 48 : index
    %c0_81 = arith.constant 0 : index
    %128 = vector.load %arg20[%c48, %c0_81] : memref<128x64xf32, #tpu.memory_space<vmem>>, vector<2x64xf32>
    %c50 = arith.constant 50 : index
    %c0_82 = arith.constant 0 : index
    %129 = vector.load %arg20[%c50, %c0_82] : memref<128x64xf32, #tpu.memory_space<vmem>>, vector<2x64xf32>
    %c52 = arith.constant 52 : index
    %c0_83 = arith.constant 0 : index
    %130 = vector.load %arg20[%c52, %c0_83] : memref<128x64xf32, #tpu.memory_space<vmem>>, vector<2x64xf32>
    %c54 = arith.constant 54 : index
    %c0_84 = arith.constant 0 : index
    %131 = vector.load %arg20[%c54, %c0_84] : memref<128x64xf32, #tpu.memory_space<vmem>>, vector<2x64xf32>
    %c56 = arith.constant 56 : index
    %c0_85 = arith.constant 0 : index
    %132 = vector.load %arg20[%c56, %c0_85] : memref<128x64xf32, #tpu.memory_space<vmem>>, vector<2x64xf32>
    %c58 = arith.constant 58 : index
    %c0_86 = arith.constant 0 : index
    %133 = vector.load %arg20[%c58, %c0_86] : memref<128x64xf32, #tpu.memory_space<vmem>>, vector<2x64xf32>
    %c60 = arith.constant 60 : index
    %c0_87 = arith.constant 0 : index
    %134 = vector.load %arg20[%c60, %c0_87] : memref<128x64xf32, #tpu.memory_space<vmem>>, vector<2x64xf32>
    %c62 = arith.constant 62 : index
    %c0_88 = arith.constant 0 : index
    %135 = vector.load %arg20[%c62, %c0_88] : memref<128x64xf32, #tpu.memory_space<vmem>>, vector<2x64xf32>
    %c64 = arith.constant 64 : index
    %c0_89 = arith.constant 0 : index
    %136 = vector.load %arg20[%c64, %c0_89] : memref<128x64xf32, #tpu.memory_space<vmem>>, vector<2x64xf32>
    %c66 = arith.constant 66 : index
    %c0_90 = arith.constant 0 : index
    %137 = vector.load %arg20[%c66, %c0_90] : memref<128x64xf32, #tpu.memory_space<vmem>>, vector<2x64xf32>
    %c68 = arith.constant 68 : index
    %c0_91 = arith.constant 0 : index
    %138 = vector.load %arg20[%c68, %c0_91] : memref<128x64xf32, #tpu.memory_space<vmem>>, vector<2x64xf32>
    %c70 = arith.constant 70 : index
    %c0_92 = arith.constant 0 : index
    %139 = vector.load %arg20[%c70, %c0_92] : memref<128x64xf32, #tpu.memory_space<vmem>>, vector<2x64xf32>
    %c72 = arith.constant 72 : index
    %c0_93 = arith.constant 0 : index
    %140 = vector.load %arg20[%c72, %c0_93] : memref<128x64xf32, #tpu.memory_space<vmem>>, vector<2x64xf32>
    %c74 = arith.constant 74 : index
    %c0_94 = arith.constant 0 : index
    %141 = vector.load %arg20[%c74, %c0_94] : memref<128x64xf32, #tpu.memory_space<vmem>>, vector<2x64xf32>
    %c76 = arith.constant 76 : index
    %c0_95 = arith.constant 0 : index
    %142 = vector.load %arg20[%c76, %c0_95] : memref<128x64xf32, #tpu.memory_space<vmem>>, vector<2x64xf32>
    %c78 = arith.constant 78 : index
    %c0_96 = arith.constant 0 : index
    %143 = vector.load %arg20[%c78, %c0_96] : memref<128x64xf32, #tpu.memory_space<vmem>>, vector<2x64xf32>
    %c80 = arith.constant 80 : index
    %c0_97 = arith.constant 0 : index
    %144 = vector.load %arg20[%c80, %c0_97] : memref<128x64xf32, #tpu.memory_space<vmem>>, vector<2x64xf32>
    %c82 = arith.constant 82 : index
    %c0_98 = arith.constant 0 : index
    %145 = vector.load %arg20[%c82, %c0_98] : memref<128x64xf32, #tpu.memory_space<vmem>>, vector<2x64xf32>
    %c84 = arith.constant 84 : index
    %c0_99 = arith.constant 0 : index
    %146 = vector.load %arg20[%c84, %c0_99] : memref<128x64xf32, #tpu.memory_space<vmem>>, vector<2x64xf32>
    %c86 = arith.constant 86 : index
    %c0_100 = arith.constant 0 : index
    %147 = vector.load %arg20[%c86, %c0_100] : memref<128x64xf32, #tpu.memory_space<vmem>>, vector<2x64xf32>
    %c88 = arith.constant 88 : index
    %c0_101 = arith.constant 0 : index
    %148 = vector.load %arg20[%c88, %c0_101] : memref<128x64xf32, #tpu.memory_space<vmem>>, vector<2x64xf32>
    %c90 = arith.constant 90 : index
    %c0_102 = arith.constant 0 : index
    %149 = vector.load %arg20[%c90, %c0_102] : memref<128x64xf32, #tpu.memory_space<vmem>>, vector<2x64xf32>
    %c92 = arith.constant 92 : index
    %c0_103 = arith.constant 0 : index
    %150 = vector.load %arg20[%c92, %c0_103] : memref<128x64xf32, #tpu.memory_space<vmem>>, vector<2x64xf32>
    %c94 = arith.constant 94 : index
    %c0_104 = arith.constant 0 : index
    %151 = vector.load %arg20[%c94, %c0_104] : memref<128x64xf32, #tpu.memory_space<vmem>>, vector<2x64xf32>
    %c96 = arith.constant 96 : index
    %c0_105 = arith.constant 0 : index
    %152 = vector.load %arg20[%c96, %c0_105] : memref<128x64xf32, #tpu.memory_space<vmem>>, vector<2x64xf32>
    %c98 = arith.constant 98 : index
    %c0_106 = arith.constant 0 : index
    %153 = vector.load %arg20[%c98, %c0_106] : memref<128x64xf32, #tpu.memory_space<vmem>>, vector<2x64xf32>
    %c100 = arith.constant 100 : index
    %c0_107 = arith.constant 0 : index
    %154 = vector.load %arg20[%c100, %c0_107] : memref<128x64xf32, #tpu.memory_space<vmem>>, vector<2x64xf32>
    %c102 = arith.constant 102 : index
    %c0_108 = arith.constant 0 : index
    %155 = vector.load %arg20[%c102, %c0_108] : memref<128x64xf32, #tpu.memory_space<vmem>>, vector<2x64xf32>
    %c104 = arith.constant 104 : index
    %c0_109 = arith.constant 0 : index
    %156 = vector.load %arg20[%c104, %c0_109] : memref<128x64xf32, #tpu.memory_space<vmem>>, vector<2x64xf32>
    %c106 = arith.constant 106 : index
    %c0_110 = arith.constant 0 : index
    %157 = vector.load %arg20[%c106, %c0_110] : memref<128x64xf32, #tpu.memory_space<vmem>>, vector<2x64xf32>
    %c108 = arith.constant 108 : index
    %c0_111 = arith.constant 0 : index
    %158 = vector.load %arg20[%c108, %c0_111] : memref<128x64xf32, #tpu.memory_space<vmem>>, vector<2x64xf32>
    %c110 = arith.constant 110 : index
    %c0_112 = arith.constant 0 : index
    %159 = vector.load %arg20[%c110, %c0_112] : memref<128x64xf32, #tpu.memory_space<vmem>>, vector<2x64xf32>
    %c112 = arith.constant 112 : index
    %c0_113 = arith.constant 0 : index
    %160 = vector.load %arg20[%c112, %c0_113] : memref<128x64xf32, #tpu.memory_space<vmem>>, vector<2x64xf32>
    %c114 = arith.constant 114 : index
    %c0_114 = arith.constant 0 : index
    %161 = vector.load %arg20[%c114, %c0_114] : memref<128x64xf32, #tpu.memory_space<vmem>>, vector<2x64xf32>
    %c116 = arith.constant 116 : index
    %c0_115 = arith.constant 0 : index
    %162 = vector.load %arg20[%c116, %c0_115] : memref<128x64xf32, #tpu.memory_space<vmem>>, vector<2x64xf32>
    %c118 = arith.constant 118 : index
    %c0_116 = arith.constant 0 : index
    %163 = vector.load %arg20[%c118, %c0_116] : memref<128x64xf32, #tpu.memory_space<vmem>>, vector<2x64xf32>
    %c120 = arith.constant 120 : index
    %c0_117 = arith.constant 0 : index
    %164 = vector.load %arg20[%c120, %c0_117] : memref<128x64xf32, #tpu.memory_space<vmem>>, vector<2x64xf32>
    %c122 = arith.constant 122 : index
    %c0_118 = arith.constant 0 : index
    %165 = vector.load %arg20[%c122, %c0_118] : memref<128x64xf32, #tpu.memory_space<vmem>>, vector<2x64xf32>
    %c124 = arith.constant 124 : index
    %c0_119 = arith.constant 0 : index
    %166 = vector.load %arg20[%c124, %c0_119] : memref<128x64xf32, #tpu.memory_space<vmem>>, vector<2x64xf32>
    %c126 = arith.constant 126 : index
    %c0_120 = arith.constant 0 : index
    %167 = vector.load %arg20[%c126, %c0_120] : memref<128x64xf32, #tpu.memory_space<vmem>>, vector<2x64xf32>
    %168 = tpu.concatenate %104, %105, %106, %107, %108, %109, %110, %111, %112, %113, %114, %115, %116, %117, %118, %119 in 1 : vector<2x64xf32>, vector<2x64xf32>, vector<2x64xf32>, vector<2x64xf32>, vector<2x64xf32>, vector<2x64xf32>, vector<2x64xf32>, vector<2x64xf32>, vector<2x64xf32>, vector<2x64xf32>, vector<2x64xf32>, vector<2x64xf32>, vector<2x64xf32>, vector<2x64xf32>, vector<2x64xf32>, vector<2x64xf32> -> vector<2x1024xf32>
    %169 = tpu.concatenate %120, %121, %122, %123, %124, %125, %126, %127, %128, %129, %130, %131, %132, %133, %134, %135 in 1 : vector<2x64xf32>, vector<2x64xf32>, vector<2x64xf32>, vector<2x64xf32>, vector<2x64xf32>, vector<2x64xf32>, vector<2x64xf32>, vector<2x64xf32>, vector<2x64xf32>, vector<2x64xf32>, vector<2x64xf32>, vector<2x64xf32>, vector<2x64xf32>, vector<2x64xf32>, vector<2x64xf32>, vector<2x64xf32> -> vector<2x1024xf32>
    %170 = tpu.concatenate %136, %137, %138, %139, %140, %141, %142, %143, %144, %145, %146, %147, %148, %149, %150, %151 in 1 : vector<2x64xf32>, vector<2x64xf32>, vector<2x64xf32>, vector<2x64xf32>, vector<2x64xf32>, vector<2x64xf32>, vector<2x64xf32>, vector<2x64xf32>, vector<2x64xf32>, vector<2x64xf32>, vector<2x64xf32>, vector<2x64xf32>, vector<2x64xf32>, vector<2x64xf32>, vector<2x64xf32>, vector<2x64xf32> -> vector<2x1024xf32>
    %171 = tpu.concatenate %152, %153, %154, %155, %156, %157, %158, %159, %160, %161, %162, %163, %164, %165, %166, %167 in 1 : vector<2x64xf32>, vector<2x64xf32>, vector<2x64xf32>, vector<2x64xf32>, vector<2x64xf32>, vector<2x64xf32>, vector<2x64xf32>, vector<2x64xf32>, vector<2x64xf32>, vector<2x64xf32>, vector<2x64xf32>, vector<2x64xf32>, vector<2x64xf32>, vector<2x64xf32>, vector<2x64xf32>, vector<2x64xf32> -> vector<2x1024xf32>
    %172 = tpu.concatenate %168, %169, %170, %171 in 1 : vector<2x1024xf32>, vector<2x1024xf32>, vector<2x1024xf32>, vector<2x1024xf32> -> vector<2x4096xf32>
    %173 = arith.truncf %172 : vector<2x4096xf32> to vector<2x4096xbf16>
    %c0_121 = arith.constant 0 : index
    %c0_122 = arith.constant 0 : index
    %174 = vector.load %arg19[%c0_121, %c0_122] : memref<4096x128xbf16, #tpu.memory_space<vmem>>, vector<4096x128xbf16>
    %cst_123 = arith.constant dense<0.000000e+00> : vector<2x128xf32>
    %175 = tpu.matmul %173, %174, %cst_123 {dimension_numbers = #tpu.dot_dimension_numbers<[1], [0], [0], [1], [0, 0, 1, 1], [], []>} : vector<2x4096xbf16>, vector<4096x128xbf16>, vector<2x128xf32> -> vector<2x128xf32>
    %c0_124 = arith.constant 0 : index
    %c896 = arith.constant 896 : index
    %176 = vector.load %arg17[%c0_124, %c896] : memref<1x1792xf32, #tpu.memory_space<vmem>>, vector<1x128xf32>
    %177 = vector.broadcast %176 : vector<1x128xf32> to vector<2x128xf32>
    %178 = arith.addf %175, %177 : vector<2x128xf32>
    %cst_125 = arith.constant 0.000000e+00 : f32
    %179 = vector.broadcast %cst_125 : f32 to vector<2x128xf32>
    %180 = arith.maximumf %178, %179 : vector<2x128xf32>
    %181 = tpu.concatenate %180, %103 in 1 : vector<2x128xf32>, vector<2x128xf32> -> vector<2x256xf32>
    %182 = arith.truncf %181 : vector<2x256xf32> to vector<2x256xbf16>
    %c0_126 = arith.constant 0 : index
    %c0_127 = arith.constant 0 : index
    %183 = vector.load %arg15[%c0_126, %c0_127] : memref<256x128xbf16, #tpu.memory_space<vmem>>, vector<256x128xbf16>
    %cst_128 = arith.constant dense<0.000000e+00> : vector<2x128xf32>
    %184 = tpu.matmul %182, %183, %cst_128 {dimension_numbers = #tpu.dot_dimension_numbers<[1], [0], [0], [1], [0, 0, 1, 1], [], []>} : vector<2x256xbf16>, vector<256x128xbf16>, vector<2x128xf32> -> vector<2x128xf32>
    %c0_129 = arith.constant 0 : index
    %c1536 = arith.constant 1536 : index
    %185 = vector.load %arg17[%c0_129, %c1536] : memref<1x1792xf32, #tpu.memory_space<vmem>>, vector<1x128xf32>
    %186 = vector.broadcast %185 : vector<1x128xf32> to vector<2x128xf32>
    %187 = arith.addf %184, %186 : vector<2x128xf32>
    %cst_130 = arith.constant 0.000000e+00 : f32
    %188 = vector.broadcast %cst_130 : f32 to vector<2x128xf32>
    %189 = arith.maximumf %187, %188 : vector<2x128xf32>
    %190 = arith.truncf %189 : vector<2x128xf32> to vector<2x128xbf16>
    %c0_131 = arith.constant 0 : index
    %c0_132 = arith.constant 0 : index
    %191 = vector.load %arg16[%c0_131, %c0_132] : memref<128x128xbf16, #tpu.memory_space<vmem>>, vector<128x128xbf16>
    %cst_133 = arith.constant dense<0.000000e+00> : vector<2x128xf32>
    %192 = tpu.matmul %190, %191, %cst_133 {dimension_numbers = #tpu.dot_dimension_numbers<[1], [0], [0], [1], [0, 0, 1, 1], [], []>} : vector<2x128xbf16>, vector<128x128xbf16>, vector<2x128xf32> -> vector<2x128xf32>
    %c0_134 = arith.constant 0 : index
    %c1664 = arith.constant 1664 : index
    %193 = vector.load %arg17[%c0_134, %c1664] : memref<1x1792xf32, #tpu.memory_space<vmem>>, vector<1x128xf32>
    %194 = vector.broadcast %193 : vector<1x128xf32> to vector<2x128xf32>
    %195 = arith.addf %192, %194 : vector<2x128xf32>
    %cst_135 = arith.constant 0.000000e+00 : f32
    %196 = vector.broadcast %cst_135 : f32 to vector<2x128xf32>
    %197 = arith.maximumf %195, %196 : vector<2x128xf32>
    %198 = arith.addf %78, %197 : vector<2x128xf32>
    %c0_136 = arith.constant 0 : index
    %c0_137 = arith.constant 0 : index
    %199 = vector.load %arg18[%c0_136, %c0_137] : memref<2x128xf32, #tpu.memory_space<vmem>>, vector<2x128xf32>
    tpu.vector_store %arg18[%c0_136, %c0_137], %198 {strides = array<i32>} : memref<2x128xf32, #tpu.memory_space<vmem>>, vector<2x128xf32>,
    return
  }
}

</mosaic_0001>

<bundles_post_ra>
// kernel: attention_layer_forward.1
= control target key start
LH: loop header
LB: loop body
LE: loop exit
PB: predicated region body
PF: predicated region fallthrough
CT: control target
= control target key end

     0   :  { %s17230_s0 = inlined_call_operand.vmem [shape: bf16[3200,50], index: 0, kind: input, shape index: {}]   ;;  %s17231_s1 = inlined_call_operand.vmem [shape: f32[2,300], index: 1, kind: input, shape index: {}]   ;;  %s17232_s2 = inlined_call_operand.vmem [shape: f32[2,300], index: 2, kind: input, shape index: {}]   ;;  %s17233_s3 = inlined_call_operand.vmem [shape: f32[2,38], index: 3, kind: input, shape index: {}]   ;;  %s17234_s4 = inlined_call_operand.vmem [shape: f32[128,64], index: 4, kind: input, shape index: {}]   ;;  %s17235_s5 = inlined_call_operand.vmem [shape: bf16[50,32], index: 5, kind: input, shape index: {}]   ;;  %s17236_s6 = inlined_call_operand.vmem [shape: f32[1,32], index: 6, kind: input, shape index: {}]   ;;  %s17237_s7 = inlined_call_operand.vmem [shape: bf16[800,64], index: 7, kind: input, shape index: {}]   ;;  %s17238_s8 = inlined_call_operand.vmem [shape: bf16[4096,128], index: 8, kind: input, shape index: {}]   ;;  %s17239_s9 = inlined_call_operand.vmem [shape: bf16[300,512], index: 9, kind: input, shape index: {}]   ;;  %s17240_s10 = inlined_call_operand.hbm [shape: bf16[512,256], index: 10, kind: input, shape index: {}]   ;;  %s17241_s11 = inlined_call_operand.vmem [shape: bf16[256,128], index: 11, kind: input, shape index: {}]   ;;  %s17242_s12 = inlined_call_operand.vmem [shape: bf16[38,256], index: 12, kind: input, shape index: {}]   ;;  %s17243_s13 = inlined_call_operand.vmem [shape: bf16[256,128], index: 13, kind: input, shape index: {}]   ;;  %s17244_s14 = inlined_call_operand.vmem [shape: bf16[128,128], index: 14, kind: input, shape index: {}]   ;;  %s17245_s15 = inlined_call_operand.vmem [shape: bf16[256,128], index: 15, kind: input, shape index: {}]   ;;  %s17246_s16 = inlined_call_operand.vmem [shape: bf16[128,128], index: 16, kind: input, shape index: {}]   ;;  %s17247_s17 = inlined_call_operand.vmem [shape: f32[1,1792], index: 17, kind: input, shape index: {}]   ;;  %s17248_s18 = inlined_call_operand.hbm [shape: f32[2,128], index: 18, kind: output, shape index: {}]  }
   0x1   :  { %17250 = sst [smem:[#allocation285_spill]] %s17230_s0 }
   0x2   :  { %17251 = sst [smem:[#allocation286_spill]] %s17231_s1 }
   0x3   :  { %17252 = sst [smem:[#allocation287_spill]] %s17232_s2 }
   0x4   :  { %23 = vsyncpa [#allocation6], 0 }
   0x5   :  { %24 = vsyncpa [#allocation7], 0  ;;  %s12524_s27 = smov [#allocation5]   ;;  %s12474_s0 = scalar_lea.hbm %s17240_s10, 8192 }
   0x6   :  { %s48_s28 = sshll.u32 %s12524_s27, 4  ;;  %p12475_p0 = scmp.ne.s32.totalorder %s17240_s10, %s12474_s0  ;;  %s49_s28 = int_to_ptr.vmem [resolvable:$true] %s48_s28 }
   0x7   :  { %p12478_p1 = scmp.lt.u32.totalorder %s12474_s0, %s17240_s10 }
   0x9   :  { %p12480_p2 = pnand %p12478_p1, %p12475_p0 }
   0xb   :  { %12483 = shalt.err (!%p12480_p2)
}
   0xc   :  { %s12484_s22 = scalar_lea.vmem %s49_s28, 8192  ;;  %p12489_p4 = scmp.lt.s32.totalorder %s49_s28, %s49_s28 }
   0xd   :  { %p12485_p3 = scmp.ne.s32.totalorder %s49_s28, %s12484_s22  ;;  %p12490_p5 = scmp.lt.s32.totalorder %s12484_s22, %s12484_s22 }
   0xf   :  { %p12491_p6 = por %p12490_p5, %p12489_p4 }
  0x11   :  { %p12492_p7 = pnand %p12491_p6, %p12485_p3 }
  0x13   :  { %12495 = shalt.err (!%p12492_p7)
}
  0x14   :  { %s12525_s2 = smov 128   ;;  %s12526_s23 = smov 8  }
  0x15   :  { %54 = dma.hbm_to_vmem [thread:$0]  %s17240_s10, 8192, %s49_s28, [#allocation6], %s12525_s2, %s12525_s2, %s12526_s23  }
  0x16   :  { %12518 = dma.done.wait [#allocation6], 8192  }
  0x17   :  { %12519 = vsyncadd [#allocation6], 4294959104  ;;  %v12645_v0 = vld [vmem:[%s17238_s8] sm:$0xff]  ;;  %v12650_v1 = vld [vmem:[%s17238_s8 + $0x8] sm:$0xff] }
  0x18   :  { %17253 = vst [vmem:[#allocation13_spill] sm:$0xff] %v12645_v0  ;;  %17254 = vst [vmem:[#allocation14_spill] sm:$0xff] %v12650_v1  ;;  %v12655_v2 = vld [vmem:[%s17238_s8 + $0x10] sm:$0xff]  ;;  %v12660_v3 = vld [vmem:[%s17238_s8 + $0x18] sm:$0xff] }
  0x19   :  { %17255 = vst [vmem:[#allocation15_spill] sm:$0xff] %v12655_v2  ;;  %17256 = vst [vmem:[#allocation16_spill] sm:$0xff] %v12660_v3  ;;  %v12665_v4 = vld [vmem:[%s17238_s8 + $0x20] sm:$0xff]  ;;  %v12670_v5 = vld [vmem:[%s17238_s8 + $0x28] sm:$0xff] }
  0x1a   :  { %17257 = vst [vmem:[#allocation17_spill] sm:$0xff] %v12665_v4  ;;  %17258 = vst [vmem:[#allocation18_spill] sm:$0xff] %v12670_v5  ;;  %v12675_v6 = vld [vmem:[%s17238_s8 + $0x30] sm:$0xff]  ;;  %v12680_v7 = vld [vmem:[%s17238_s8 + $0x38] sm:$0xff] }
  0x1b   :  { %17259 = vst [vmem:[#allocation19_spill] sm:$0xff] %v12675_v6  ;;  %17260 = vst [vmem:[#allocation20_spill] sm:$0xff] %v12680_v7  ;;  %v12685_v8 = vld [vmem:[%s17238_s8 + $0x40] sm:$0xff]  ;;  %v12690_v9 = vld [vmem:[%s17238_s8 + $0x48] sm:$0xff] }
  0x1c   :  { %17261 = vst [vmem:[#allocation21_spill] sm:$0xff] %v12685_v8  ;;  %17262 = vst [vmem:[#allocation22_spill] sm:$0xff] %v12690_v9  ;;  %v12695_v10 = vld [vmem:[%s17238_s8 + $0x50] sm:$0xff]  ;;  %v12700_v11 = vld [vmem:[%s17238_s8 + $0x58] sm:$0xff] }
  0x1d   :  { %17263 = vst [vmem:[#allocation23_spill] sm:$0xff] %v12695_v10  ;;  %17264 = vst [vmem:[#allocation24_spill] sm:$0xff] %v12700_v11  ;;  %v12705_v12 = vld [vmem:[%s17238_s8 + $0x60] sm:$0xff]  ;;  %v12710_v13 = vld [vmem:[%s17238_s8 + $0x68] sm:$0xff] }
  0x1e   :  { %17265 = vst [vmem:[#allocation25_spill] sm:$0xff] %v12705_v12  ;;  %17266 = vst [vmem:[#allocation26_spill] sm:$0xff] %v12710_v13  ;;  %v12715_v14 = vld [vmem:[%s17238_s8 + $0x70] sm:$0xff]  ;;  %v12720_v15 = vld [vmem:[%s17238_s8 + $0x78] sm:$0xff] }
  0x1f   :  { %17267 = vst [vmem:[#allocation27_spill] sm:$0xff] %v12715_v14  ;;  %17268 = vst [vmem:[#allocation28_spill] sm:$0xff] %v12720_v15  ;;  %v12725_v16 = vld [vmem:[%s17238_s8 + $0x80] sm:$0xff]  ;;  %v12730_v17 = vld [vmem:[%s17238_s8 + $0x88] sm:$0xff] }
  0x20   :  { %17269 = vst [vmem:[#allocation29_spill] sm:$0xff] %v12725_v16  ;;  %17270 = vst [vmem:[#allocation30_spill] sm:$0xff] %v12730_v17  ;;  %v12735_v18 = vld [vmem:[%s17238_s8 + $0x90] sm:$0xff]  ;;  %v12740_v19 = vld [vmem:[%s17238_s8 + $0x98] sm:$0xff] }
  0x21   :  { %17271 = vst [vmem:[#allocation31_spill] sm:$0xff] %v12735_v18  ;;  %17272 = vst [vmem:[#allocation32_spill] sm:$0xff] %v12740_v19  ;;  %v12745_v20 = vld [vmem:[%s17238_s8 + $0xa0] sm:$0xff]  ;;  %v12750_v21 = vld [vmem:[%s17238_s8 + $0xa8] sm:$0xff] }
  0x22   :  { %17273 = vst [vmem:[#allocation33_spill] sm:$0xff] %v12745_v20  ;;  %17274 = vst [vmem:[#allocation34_spill] sm:$0xff] %v12750_v21  ;;  %v12755_v22 = vld [vmem:[%s17238_s8 + $0xb0] sm:$0xff]  ;;  %v12760_v23 = vld [vmem:[%s17238_s8 + $0xb8] sm:$0xff] }
  0x23   :  { %17275 = vst [vmem:[#allocation35_spill] sm:$0xff] %v12755_v22  ;;  %17276 = vst [vmem:[#allocation36_spill] sm:$0xff] %v12760_v23  ;;  %v12765_v24 = vld [vmem:[%s17238_s8 + $0xc0] sm:$0xff]  ;;  %v12770_v25 = vld [vmem:[%s17238_s8 + $0xc8] sm:$0xff] }
  0x24   :  { %17277 = vst [vmem:[#allocation37_spill] sm:$0xff] %v12765_v24  ;;  %17278 = vst [vmem:[#allocation38_spill] sm:$0xff] %v12770_v25  ;;  %v12775_v26 = vld [vmem:[%s17238_s8 + $0xd0] sm:$0xff]  ;;  %v12780_v27 = vld [vmem:[%s17238_s8 + $0xd8] sm:$0xff] }
  0x25   :  { %17279 = vst [vmem:[#allocation39_spill] sm:$0xff] %v12775_v26  ;;  %17280 = vst [vmem:[#allocation40_spill] sm:$0xff] %v12780_v27  ;;  %v12785_v28 = vld [vmem:[%s17238_s8 + $0xe0] sm:$0xff]  ;;  %v12790_v29 = vld [vmem:[%s17238_s8 + $0xe8] sm:$0xff] }
  0x26   :  { %17281 = vst [vmem:[#allocation41_spill] sm:$0xff] %v12785_v28  ;;  %17282 = vst [vmem:[#allocation42_spill] sm:$0xff] %v12790_v29  ;;  %v12795_v30 = vld [vmem:[%s17238_s8 + $0xf0] sm:$0xff]  ;;  %v12800_v31 = vld [vmem:[%s17238_s8 + $0xf8] sm:$0xff] }
  0x27   :  { %17283 = vst [vmem:[#allocation43_spill] sm:$0xff] %v12795_v30  ;;  %17284 = vst [vmem:[#allocation44_spill] sm:$0xff] %v12800_v31  ;;  %v12805_v32 = vld [vmem:[%s17238_s8 + $0x100] sm:$0xff]  ;;  %v12810_v33 = vld [vmem:[%s17238_s8 + $0x108] sm:$0xff] }
  0x28   :  { %17285 = vst [vmem:[#allocation45_spill] sm:$0xff] %v12805_v32  ;;  %17286 = vst [vmem:[#allocation46_spill] sm:$0xff] %v12810_v33  ;;  %v12815_v34 = vld [vmem:[%s17238_s8 + $0x110] sm:$0xff]  ;;  %v12820_v35 = vld [vmem:[%s17238_s8 + $0x118] sm:$0xff] }
  0x29   :  { %17287 = vst [vmem:[#allocation47_spill] sm:$0xff] %v12815_v34  ;;  %17288 = vst [vmem:[#allocation48_spill] sm:$0xff] %v12820_v35  ;;  %v12825_v36 = vld [vmem:[%s17238_s8 + $0x120] sm:$0xff]  ;;  %v12830_v37 = vld [vmem:[%s17238_s8 + $0x128] sm:$0xff] }
  0x2a   :  { %17289 = vst [vmem:[#allocation49_spill] sm:$0xff] %v12825_v36  ;;  %17290 = vst [vmem:[#allocation50_spill] sm:$0xff] %v12830_v37  ;;  %v12835_v38 = vld [vmem:[%s17238_s8 + $0x130] sm:$0xff]  ;;  %v12840_v39 = vld [vmem:[%s17238_s8 + $0x138] sm:$0xff] }
  0x2b   :  { %17291 = vst [vmem:[#allocation51_spill] sm:$0xff] %v12835_v38  ;;  %17292 = vst [vmem:[#allocation52_spill] sm:$0xff] %v12840_v39  ;;  %v12845_v40 = vld [vmem:[%s17238_s8 + $0x140] sm:$0xff]  ;;  %v12850_v41 = vld [vmem:[%s17238_s8 + $0x148] sm:$0xff] }
  0x2c   :  { %17293 = vst [vmem:[#allocation53_spill] sm:$0xff] %v12845_v40  ;;  %17294 = vst [vmem:[#allocation54_spill] sm:$0xff] %v12850_v41  ;;  %v12855_v42 = vld [vmem:[%s17238_s8 + $0x150] sm:$0xff]  ;;  %v12860_v43 = vld [vmem:[%s17238_s8 + $0x158] sm:$0xff] }
  0x2d   :  { %17295 = vst [vmem:[#allocation55_spill] sm:$0xff] %v12855_v42  ;;  %17296 = vst [vmem:[#allocation56_spill] sm:$0xff] %v12860_v43  ;;  %v12865_v44 = vld [vmem:[%s17238_s8 + $0x160] sm:$0xff]  ;;  %v12870_v45 = vld [vmem:[%s17238_s8 + $0x168] sm:$0xff] }
  0x2e   :  { %17297 = vst [vmem:[#allocation57_spill] sm:$0xff] %v12865_v44  ;;  %17298 = vst [vmem:[#allocation58_spill] sm:$0xff] %v12870_v45  ;;  %v12875_v46 = vld [vmem:[%s17238_s8 + $0x170] sm:$0xff]  ;;  %v12880_v47 = vld [vmem:[%s17238_s8 + $0x178] sm:$0xff] }
  0x2f   :  { %17299 = vst [vmem:[#allocation59_spill] sm:$0xff] %v12875_v46  ;;  %17300 = vst [vmem:[#allocation60_spill] sm:$0xff] %v12880_v47  ;;  %v12885_v48 = vld [vmem:[%s17238_s8 + $0x180] sm:$0xff]  ;;  %v12890_v49 = vld [vmem:[%s17238_s8 + $0x188] sm:$0xff] }
  0x30   :  { %17301 = vst [vmem:[#allocation61_spill] sm:$0xff] %v12885_v48  ;;  %17302 = vst [vmem:[#allocation62_spill] sm:$0xff] %v12890_v49  ;;  %v12895_v50 = vld [vmem:[%s17238_s8 + $0x190] sm:$0xff]  ;;  %v12900_v51 = vld [vmem:[%s17238_s8 + $0x198] sm:$0xff] }
  0x31   :  { %17303 = vst [vmem:[#allocation63_spill] sm:$0xff] %v12895_v50  ;;  %17304 = vst [vmem:[#allocation64_spill] sm:$0xff] %v12900_v51  ;;  %v12905_v52 = vld [vmem:[%s17238_s8 + $0x1a0] sm:$0xff]  ;;  %v12910_v53 = vld [vmem:[%s17238_s8 + $0x1a8] sm:$0xff] }
  0x32   :  { %17305 = vst [vmem:[#allocation65_spill] sm:$0xff] %v12905_v52  ;;  %17306 = vst [vmem:[#allocation66_spill] sm:$0xff] %v12910_v53  ;;  %v12915_v54 = vld [vmem:[%s17238_s8 + $0x1b0] sm:$0xff]  ;;  %v12920_v55 = vld [vmem:[%s17238_s8 + $0x1b8] sm:$0xff] }
  0x33   :  { %17307 = vst [vmem:[#allocation67_spill] sm:$0xff] %v12915_v54  ;;  %17308 = vst [vmem:[#allocation68_spill] sm:$0xff] %v12920_v55  ;;  %v12925_v56 = vld [vmem:[%s17238_s8 + $0x1c0] sm:$0xff]  ;;  %v12930_v57 = vld [vmem:[%s17238_s8 + $0x1c8] sm:$0xff] }
  0x34   :  { %17309 = vst [vmem:[#allocation69_spill] sm:$0xff] %v12925_v56  ;;  %17310 = vst [vmem:[#allocation70_spill] sm:$0xff] %v12930_v57  ;;  %v12935_v58 = vld [vmem:[%s17238_s8 + $0x1d0] sm:$0xff]  ;;  %v12940_v59 = vld [vmem:[%s17238_s8 + $0x1d8] sm:$0xff] }
  0x35   :  { %17311 = vst [vmem:[#allocation71_spill] sm:$0xff] %v12935_v58  ;;  %17312 = vst [vmem:[#allocation72_spill] sm:$0xff] %v12940_v59  ;;  %v12945_v60 = vld [vmem:[%s17238_s8 + $0x1e0] sm:$0xff]  ;;  %v12950_v61 = vld [vmem:[%s17238_s8 + $0x1e8] sm:$0xff] }
  0x36   :  { %17313 = vst [vmem:[#allocation73_spill] sm:$0xff] %v12945_v60  ;;  %17314 = vst [vmem:[#allocation74_spill] sm:$0xff] %v12950_v61  ;;  %v12955_v62 = vld [vmem:[%s17238_s8 + $0x1f0] sm:$0xff]  ;;  %v12960_v63 = vld [vmem:[%s17238_s8 + $0x1f8] sm:$0xff] }
  0x37   :  { %17315 = vst [vmem:[#allocation75_spill] sm:$0xff] %v12955_v62  ;;  %17316 = vst [vmem:[#allocation76_spill] sm:$0xff] %v12960_v63  ;;  %v12965_v55 = vld [vmem:[%s17238_s8 + $0x200] sm:$0xff]  ;;  %v12970_v54 = vld [vmem:[%s17238_s8 + $0x208] sm:$0xff] }
  0x38   :  { %17317 = vst [vmem:[#allocation77_spill] sm:$0xff] %v12965_v55  ;;  %17318 = vst [vmem:[#allocation78_spill] sm:$0xff] %v12970_v54  ;;  %v12975_v53 = vld [vmem:[%s17238_s8 + $0x210] sm:$0xff]  ;;  %v12980_v62 = vld [vmem:[%s17238_s8 + $0x218] sm:$0xff] }
  0x39   :  { %17319 = vst [vmem:[#allocation79_spill] sm:$0xff] %v12975_v53  ;;  %17320 = vst [vmem:[#allocation80_spill] sm:$0xff] %v12980_v62  ;;  %v12985_v63 = vld [vmem:[%s17238_s8 + $0x220] sm:$0xff]  ;;  %v12990_v55 = vld [vmem:[%s17238_s8 + $0x228] sm:$0xff] }
  0x3a   :  { %17321 = vst [vmem:[#allocation81_spill] sm:$0xff] %v12985_v63  ;;  %17322 = vst [vmem:[#allocation82_spill] sm:$0xff] %v12990_v55  ;;  %v12995_v54 = vld [vmem:[%s17238_s8 + $0x230] sm:$0xff]  ;;  %v13000_v53 = vld [vmem:[%s17238_s8 + $0x238] sm:$0xff] }
  0x3b   :  { %17323 = vst [vmem:[#allocation83_spill] sm:$0xff] %v12995_v54  ;;  %17324 = vst [vmem:[#allocation84_spill] sm:$0xff] %v13000_v53  ;;  %v13005_v62 = vld [vmem:[%s17238_s8 + $0x240] sm:$0xff]  ;;  %v13010_v63 = vld [vmem:[%s17238_s8 + $0x248] sm:$0xff] }
  0x3c   :  { %17325 = vst [vmem:[#allocation85_spill] sm:$0xff] %v13005_v62  ;;  %17326 = vst [vmem:[#allocation86_spill] sm:$0xff] %v13010_v63  ;;  %v13015_v55 = vld [vmem:[%s17238_s8 + $0x250] sm:$0xff]  ;;  %v13020_v54 = vld [vmem:[%s17238_s8 + $0x258] sm:$0xff] }
  0x3d   :  { %17327 = vst [vmem:[#allocation87_spill] sm:$0xff] %v13015_v55  ;;  %17328 = vst [vmem:[#allocation88_spill] sm:$0xff] %v13020_v54  ;;  %v13025_v53 = vld [vmem:[%s17238_s8 + $0x260] sm:$0xff]  ;;  %v13030_v62 = vld [vmem:[%s17238_s8 + $0x268] sm:$0xff] }
  0x3e   :  { %17329 = vst [vmem:[#allocation89_spill] sm:$0xff] %v13025_v53  ;;  %17330 = vst [vmem:[#allocation90_spill] sm:$0xff] %v13030_v62  ;;  %v13035_v63 = vld [vmem:[%s17238_s8 + $0x270] sm:$0xff]  ;;  %v13040_v55 = vld [vmem:[%s17238_s8 + $0x278] sm:$0xff] }
  0x3f   :  { %17331 = vst [vmem:[#allocation91_spill] sm:$0xff] %v13035_v63  ;;  %17332 = vst [vmem:[#allocation92_spill] sm:$0xff] %v13040_v55  ;;  %v13045_v54 = vld [vmem:[%s17238_s8 + $0x280] sm:$0xff]  ;;  %v13050_v53 = vld [vmem:[%s17238_s8 + $0x288] sm:$0xff] }
  0x40   :  { %17333 = vst [vmem:[#allocation93_spill] sm:$0xff] %v13045_v54  ;;  %17334 = vst [vmem:[#allocation94_spill] sm:$0xff] %v13050_v53  ;;  %v13055_v62 = vld [vmem:[%s17238_s8 + $0x290] sm:$0xff]  ;;  %v13060_v63 = vld [vmem:[%s17238_s8 + $0x298] sm:$0xff] }
  0x41   :  { %17335 = vst [vmem:[#allocation95_spill] sm:$0xff] %v13055_v62  ;;  %17336 = vst [vmem:[#allocation96_spill] sm:$0xff] %v13060_v63  ;;  %v13065_v55 = vld [vmem:[%s17238_s8 + $0x2a0] sm:$0xff]  ;;  %v13070_v54 = vld [vmem:[%s17238_s8 + $0x2a8] sm:$0xff] }
  0x42   :  { %17337 = vst [vmem:[#allocation97_spill] sm:$0xff] %v13065_v55  ;;  %17338 = vst [vmem:[#allocation98_spill] sm:$0xff] %v13070_v54  ;;  %v13075_v53 = vld [vmem:[%s17238_s8 + $0x2b0] sm:$0xff]  ;;  %v13080_v62 = vld [vmem:[%s17238_s8 + $0x2b8] sm:$0xff] }
  0x43   :  { %17339 = vst [vmem:[#allocation99_spill] sm:$0xff] %v13075_v53  ;;  %17340 = vst [vmem:[#allocation100_spill] sm:$0xff] %v13080_v62  ;;  %v13085_v63 = vld [vmem:[%s17238_s8 + $0x2c0] sm:$0xff]  ;;  %v13090_v55 = vld [vmem:[%s17238_s8 + $0x2c8] sm:$0xff] }
  0x44   :  { %17341 = vst [vmem:[#allocation101_spill] sm:$0xff] %v13085_v63  ;;  %17342 = vst [vmem:[#allocation102_spill] sm:$0xff] %v13090_v55  ;;  %v13095_v54 = vld [vmem:[%s17238_s8 + $0x2d0] sm:$0xff]  ;;  %v13100_v53 = vld [vmem:[%s17238_s8 + $0x2d8] sm:$0xff] }
  0x45   :  { %17343 = vst [vmem:[#allocation103_spill] sm:$0xff] %v13095_v54  ;;  %17344 = vst [vmem:[#allocation104_spill] sm:$0xff] %v13100_v53  ;;  %v13105_v62 = vld [vmem:[%s17238_s8 + $0x2e0] sm:$0xff]  ;;  %v13110_v63 = vld [vmem:[%s17238_s8 + $0x2e8] sm:$0xff] }
  0x46   :  { %17345 = vst [vmem:[#allocation105_spill] sm:$0xff] %v13105_v62  ;;  %17346 = vst [vmem:[#allocation106_spill] sm:$0xff] %v13110_v63  ;;  %v13115_v55 = vld [vmem:[%s17238_s8 + $0x2f0] sm:$0xff]  ;;  %v13120_v54 = vld [vmem:[%s17238_s8 + $0x2f8] sm:$0xff] }
  0x47   :  { %17347 = vst [vmem:[#allocation107_spill] sm:$0xff] %v13115_v55  ;;  %17348 = vst [vmem:[#allocation108_spill] sm:$0xff] %v13120_v54  ;;  %v13125_v53 = vld [vmem:[%s17238_s8 + $0x300] sm:$0xff]  ;;  %v13130_v62 = vld [vmem:[%s17238_s8 + $0x308] sm:$0xff] }
  0x48   :  { %17349 = vst [vmem:[#allocation109_spill] sm:$0xff] %v13125_v53  ;;  %17350 = vst [vmem:[#allocation110_spill] sm:$0xff] %v13130_v62  ;;  %v13135_v63 = vld [vmem:[%s17238_s8 + $0x310] sm:$0xff]  ;;  %v13140_v55 = vld [vmem:[%s17238_s8 + $0x318] sm:$0xff] }
  0x49   :  { %17351 = vst [vmem:[#allocation111_spill] sm:$0xff] %v13135_v63  ;;  %17352 = vst [vmem:[#allocation112_spill] sm:$0xff] %v13140_v55  ;;  %v13145_v54 = vld [vmem:[%s17238_s8 + $0x320] sm:$0xff]  ;;  %v13150_v61 = vld [vmem:[%s17238_s8 + $0x328] sm:$0xff] }
  0x4a   :  { %17353 = vst [vmem:[#allocation113_spill] sm:$0xff] %v13145_v54  ;;  %17354 = vst [vmem:[#allocation114_spill] sm:$0xff] %v13150_v61  ;;  %v13155_v52 = vld [vmem:[%s17238_s8 + $0x330] sm:$0xff]  ;;  %v13160_v60 = vld [vmem:[%s17238_s8 + $0x338] sm:$0xff] }
  0x4b   :  { %17355 = vst [vmem:[#allocation115_spill] sm:$0xff] %v13155_v52  ;;  %17356 = vst [vmem:[#allocation116_spill] sm:$0xff] %v13160_v60  ;;  %v13165_v51 = vld [vmem:[%s17238_s8 + $0x340] sm:$0xff]  ;;  %v13170_v59 = vld [vmem:[%s17238_s8 + $0x348] sm:$0xff] }
  0x4c   :  { %17357 = vst [vmem:[#allocation117_spill] sm:$0xff] %v13165_v51  ;;  %17358 = vst [vmem:[#allocation118_spill] sm:$0xff] %v13170_v59  ;;  %v13175_v50 = vld [vmem:[%s17238_s8 + $0x350] sm:$0xff]  ;;  %v13180_v58 = vld [vmem:[%s17238_s8 + $0x358] sm:$0xff] }
  0x4d   :  { %17359 = vst [vmem:[#allocation119_spill] sm:$0xff] %v13175_v50  ;;  %17360 = vst [vmem:[#allocation120_spill] sm:$0xff] %v13180_v58  ;;  %v13185_v49 = vld [vmem:[%s17238_s8 + $0x360] sm:$0xff]  ;;  %v13190_v57 = vld [vmem:[%s17238_s8 + $0x368] sm:$0xff] }
  0x4e   :  { %17361 = vst [vmem:[#allocation121_spill] sm:$0xff] %v13185_v49  ;;  %17362 = vst [vmem:[#allocation122_spill] sm:$0xff] %v13190_v57  ;;  %v13195_v48 = vld [vmem:[%s17238_s8 + $0x370] sm:$0xff]  ;;  %v13200_v56 = vld [vmem:[%s17238_s8 + $0x378] sm:$0xff] }
  0x4f   :  { %17363 = vst [vmem:[#allocation123_spill] sm:$0xff] %v13195_v48  ;;  %17364 = vst [vmem:[#allocation124_spill] sm:$0xff] %v13200_v56  ;;  %v13205_v39 = vld [vmem:[%s17238_s8 + $0x380] sm:$0xff]  ;;  %v13210_v47 = vld [vmem:[%s17238_s8 + $0x388] sm:$0xff] }
  0x50   :  { %17365 = vst [vmem:[#allocation125_spill] sm:$0xff] %v13205_v39  ;;  %17366 = vst [vmem:[#allocation126_spill] sm:$0xff] %v13210_v47  ;;  %v13215_v38 = vld [vmem:[%s17238_s8 + $0x390] sm:$0xff]  ;;  %v13220_v46 = vld [vmem:[%s17238_s8 + $0x398] sm:$0xff] }
  0x51   :  { %17367 = vst [vmem:[#allocation127_spill] sm:$0xff] %v13215_v38  ;;  %17368 = vst [vmem:[#allocation128_spill] sm:$0xff] %v13220_v46  ;;  %v13225_v37 = vld [vmem:[%s17238_s8 + $0x3a0] sm:$0xff]  ;;  %v13230_v39 = vld [vmem:[%s17238_s8 + $0x3a8] sm:$0xff] }
  0x52   :  { %17369 = vst [vmem:[#allocation129_spill] sm:$0xff] %v13225_v37  ;;  %17370 = vst [vmem:[#allocation130_spill] sm:$0xff] %v13230_v39  ;;  %v13235_v47 = vld [vmem:[%s17238_s8 + $0x3b0] sm:$0xff]  ;;  %v13240_v38 = vld [vmem:[%s17238_s8 + $0x3b8] sm:$0xff] }
  0x53   :  { %17371 = vst [vmem:[#allocation131_spill] sm:$0xff] %v13235_v47  ;;  %17372 = vst [vmem:[#allocation132_spill] sm:$0xff] %v13240_v38  ;;  %v13245_v46 = vld [vmem:[%s17238_s8 + $0x3c0] sm:$0xff]  ;;  %v13250_v37 = vld [vmem:[%s17238_s8 + $0x3c8] sm:$0xff] }
  0x54   :  { %17373 = vst [vmem:[#allocation133_spill] sm:$0xff] %v13245_v46  ;;  %17374 = vst [vmem:[#allocation134_spill] sm:$0xff] %v13250_v37  ;;  %v13255_v39 = vld [vmem:[%s17238_s8 + $0x3d0] sm:$0xff]  ;;  %v13260_v47 = vld [vmem:[%s17238_s8 + $0x3d8] sm:$0xff] }
  0x55   :  { %17375 = vst [vmem:[#allocation135_spill] sm:$0xff] %v13255_v39  ;;  %17376 = vst [vmem:[#allocation136_spill] sm:$0xff] %v13260_v47  ;;  %v13265_v38 = vld [vmem:[%s17238_s8 + $0x3e0] sm:$0xff]  ;;  %v13270_v46 = vld [vmem:[%s17238_s8 + $0x3e8] sm:$0xff] }
  0x56   :  { %17377 = vst [vmem:[#allocation137_spill] sm:$0xff] %v13265_v38  ;;  %17378 = vst [vmem:[#allocation138_spill] sm:$0xff] %v13270_v46  ;;  %v13275_v37 = vld [vmem:[%s17238_s8 + $0x3f0] sm:$0xff]  ;;  %v13280_v39 = vld [vmem:[%s17238_s8 + $0x3f8] sm:$0xff] }
  0x57   :  { %17379 = vst [vmem:[#allocation139_spill] sm:$0xff] %v13275_v37  ;;  %17380 = vst [vmem:[#allocation140_spill] sm:$0xff] %v13280_v39  ;;  %v13285_v47 = vld [vmem:[%s17238_s8 + $0x400] sm:$0xff]  ;;  %v13290_v38 = vld [vmem:[%s17238_s8 + $0x408] sm:$0xff] }
  0x58   :  { %17381 = vst [vmem:[#allocation141_spill] sm:$0xff] %v13285_v47  ;;  %17382 = vst [vmem:[#allocation142_spill] sm:$0xff] %v13290_v38  ;;  %v13295_v46 = vld [vmem:[%s17238_s8 + $0x410] sm:$0xff]  ;;  %v13300_v37 = vld [vmem:[%s17238_s8 + $0x418] sm:$0xff] }
  0x59   :  { %17383 = vst [vmem:[#allocation143_spill] sm:$0xff] %v13295_v46  ;;  %17384 = vst [vmem:[#allocation144_spill] sm:$0xff] %v13300_v37  ;;  %v13305_v39 = vld [vmem:[%s17238_s8 + $0x420] sm:$0xff]  ;;  %v13310_v45 = vld [vmem:[%s17238_s8 + $0x428] sm:$0xff] }
  0x5a   :  { %17385 = vst [vmem:[#allocation145_spill] sm:$0xff] %v13305_v39  ;;  %17386 = vst [vmem:[#allocation146_spill] sm:$0xff] %v13310_v45  ;;  %v13315_v36 = vld [vmem:[%s17238_s8 + $0x430] sm:$0xff]  ;;  %v13320_v44 = vld [vmem:[%s17238_s8 + $0x438] sm:$0xff] }
  0x5b   :  { %17387 = vst [vmem:[#allocation147_spill] sm:$0xff] %v13315_v36  ;;  %17388 = vst [vmem:[#allocation148_spill] sm:$0xff] %v13320_v44  ;;  %v13325_v37 = vld [vmem:[%s17238_s8 + $0x440] sm:$0xff]  ;;  %v13330_v39 = vld [vmem:[%s17238_s8 + $0x448] sm:$0xff] }
  0x5c   :  { %17389 = vst [vmem:[#allocation149_spill] sm:$0xff] %v13325_v37  ;;  %17390 = vst [vmem:[#allocation150_spill] sm:$0xff] %v13330_v39  ;;  %v13335_v45 = vld [vmem:[%s17238_s8 + $0x450] sm:$0xff]  ;;  %v13340_v36 = vld [vmem:[%s17238_s8 + $0x458] sm:$0xff] }
  0x5d   :  { %17391 = vst [vmem:[#allocation151_spill] sm:$0xff] %v13335_v45  ;;  %17392 = vst [vmem:[#allocation152_spill] sm:$0xff] %v13340_v36  ;;  %v13345_v44 = vld [vmem:[%s17238_s8 + $0x460] sm:$0xff]  ;;  %v13350_v35 = vld [vmem:[%s17238_s8 + $0x468] sm:$0xff] }
  0x5e   :  { %17393 = vst [vmem:[#allocation153_spill] sm:$0xff] %v13345_v44  ;;  %17394 = vst [vmem:[#allocation154_spill] sm:$0xff] %v13350_v35  ;;  %v13355_v46 = vld [vmem:[%s17238_s8 + $0x470] sm:$0xff]  ;;  %v13360_v45 = vld [vmem:[%s17238_s8 + $0x478] sm:$0xff] }
  0x5f   :  { %17395 = vst [vmem:[#allocation155_spill] sm:$0xff] %v13355_v46  ;;  %17396 = vst [vmem:[#allocation156_spill] sm:$0xff] %v13360_v45  ;;  %v13365_v36 = vld [vmem:[%s17238_s8 + $0x480] sm:$0xff]  ;;  %v13370_v44 = vld [vmem:[%s17238_s8 + $0x488] sm:$0xff] }
  0x60   :  { %17397 = vst [vmem:[#allocation157_spill] sm:$0xff] %v13365_v36  ;;  %17398 = vst [vmem:[#allocation158_spill] sm:$0xff] %v13370_v44  ;;  %v13375_v35 = vld [vmem:[%s17238_s8 + $0x490] sm:$0xff]  ;;  %v13380_v46 = vld [vmem:[%s17238_s8 + $0x498] sm:$0xff] }
  0x61   :  { %17399 = vst [vmem:[#allocation159_spill] sm:$0xff] %v13375_v35  ;;  %17400 = vst [vmem:[#allocation160_spill] sm:$0xff] %v13380_v46  ;;  %v13385_v45 = vld [vmem:[%s17238_s8 + $0x4a0] sm:$0xff]  ;;  %v13390_v36 = vld [vmem:[%s17238_s8 + $0x4a8] sm:$0xff] }
  0x62   :  { %17401 = vst [vmem:[#allocation161_spill] sm:$0xff] %v13385_v45  ;;  %17402 = vst [vmem:[#allocation162_spill] sm:$0xff] %v13390_v36  ;;  %v13395_v44 = vld [vmem:[%s17238_s8 + $0x4b0] sm:$0xff]  ;;  %v13400_v35 = vld [vmem:[%s17238_s8 + $0x4b8] sm:$0xff] }
  0x63   :  { %17403 = vst [vmem:[#allocation163_spill] sm:$0xff] %v13395_v44  ;;  %17404 = vst [vmem:[#allocation164_spill] sm:$0xff] %v13400_v35  ;;  %v13405_v46 = vld [vmem:[%s17238_s8 + $0x4c0] sm:$0xff]  ;;  %v13410_v45 = vld [vmem:[%s17238_s8 + $0x4c8] sm:$0xff] }
  0x64   :  { %17405 = vst [vmem:[#allocation165_spill] sm:$0xff] %v13405_v46  ;;  %17406 = vst [vmem:[#allocation166_spill] sm:$0xff] %v13410_v45  ;;  %v13415_v36 = vld [vmem:[%s17238_s8 + $0x4d0] sm:$0xff]  ;;  %v13420_v44 = vld [vmem:[%s17238_s8 + $0x4d8] sm:$0xff] }
  0x65   :  { %17407 = vst [vmem:[#allocation167_spill] sm:$0xff] %v13415_v36  ;;  %17408 = vst [vmem:[#allocation168_spill] sm:$0xff] %v13420_v44  ;;  %v13425_v35 = vld [vmem:[%s17238_s8 + $0x4e0] sm:$0xff]  ;;  %v13430_v46 = vld [vmem:[%s17238_s8 + $0x4e8] sm:$0xff] }
  0x66   :  { %17409 = vst [vmem:[#allocation169_spill] sm:$0xff] %v13425_v35  ;;  %17410 = vst [vmem:[#allocation170_spill] sm:$0xff] %v13430_v46  ;;  %v13435_v45 = vld [vmem:[%s17238_s8 + $0x4f0] sm:$0xff]  ;;  %v13440_v36 = vld [vmem:[%s17238_s8 + $0x4f8] sm:$0xff] }
  0x67   :  { %17411 = vst [vmem:[#allocation171_spill] sm:$0xff] %v13435_v45  ;;  %17412 = vst [vmem:[#allocation172_spill] sm:$0xff] %v13440_v36  ;;  %v13445_v44 = vld [vmem:[%s17238_s8 + $0x500] sm:$0xff]  ;;  %v13450_v35 = vld [vmem:[%s17238_s8 + $0x508] sm:$0xff] }
  0x68   :  { %17413 = vst [vmem:[#allocation173_spill] sm:$0xff] %v13445_v44  ;;  %17414 = vst [vmem:[#allocation174_spill] sm:$0xff] %v13450_v35  ;;  %v13455_v46 = vld [vmem:[%s17238_s8 + $0x510] sm:$0xff]  ;;  %v13460_v45 = vld [vmem:[%s17238_s8 + $0x518] sm:$0xff] }
  0x69   :  { %17415 = vst [vmem:[#allocation175_spill] sm:$0xff] %v13455_v46  ;;  %17416 = vst [vmem:[#allocation176_spill] sm:$0xff] %v13460_v45  ;;  %v13465_v36 = vld [vmem:[%s17238_s8 + $0x520] sm:$0xff]  ;;  %v13470_v44 = vld [vmem:[%s17238_s8 + $0x528] sm:$0xff] }
  0x6a   :  { %17417 = vst [vmem:[#allocation177_spill] sm:$0xff] %v13465_v36  ;;  %17418 = vst [vmem:[#allocation178_spill] sm:$0xff] %v13470_v44  ;;  %v13475_v35 = vld [vmem:[%s17238_s8 + $0x530] sm:$0xff]  ;;  %v13480_v46 = vld [vmem:[%s17238_s8 + $0x538] sm:$0xff] }
  0x6b   :  { %17419 = vst [vmem:[#allocation179_spill] sm:$0xff] %v13475_v35  ;;  %17420 = vst [vmem:[#allocation180_spill] sm:$0xff] %v13480_v46  ;;  %v13485_v45 = vld [vmem:[%s17238_s8 + $0x540] sm:$0xff]  ;;  %v13490_v36 = vld [vmem:[%s17238_s8 + $0x548] sm:$0xff] }
  0x6c   :  { %17421 = vst [vmem:[#allocation181_spill] sm:$0xff] %v13485_v45  ;;  %17422 = vst [vmem:[#allocation182_spill] sm:$0xff] %v13490_v36  ;;  %v13495_v44 = vld [vmem:[%s17238_s8 + $0x550] sm:$0xff]  ;;  %v13500_v35 = vld [vmem:[%s17238_s8 + $0x558] sm:$0xff] }
  0x6d   :  { %17423 = vst [vmem:[#allocation183_spill] sm:$0xff] %v13495_v44  ;;  %17424 = vst [vmem:[#allocation184_spill] sm:$0xff] %v13500_v35  ;;  %v13505_v46 = vld [vmem:[%s17238_s8 + $0x560] sm:$0xff]  ;;  %v13510_v45 = vld [vmem:[%s17238_s8 + $0x568] sm:$0xff] }
  0x6e   :  { %17425 = vst [vmem:[#allocation185_spill] sm:$0xff] %v13505_v46  ;;  %17426 = vst [vmem:[#allocation186_spill] sm:$0xff] %v13510_v45  ;;  %v13515_v36 = vld [vmem:[%s17238_s8 + $0x570] sm:$0xff]  ;;  %v13520_v44 = vld [vmem:[%s17238_s8 + $0x578] sm:$0xff] }
  0x6f   :  { %17427 = vst [vmem:[#allocation187_spill] sm:$0xff] %v13515_v36  ;;  %17428 = vst [vmem:[#allocation188_spill] sm:$0xff] %v13520_v44  ;;  %v13525_v35 = vld [vmem:[%s17238_s8 + $0x580] sm:$0xff]  ;;  %v13530_v46 = vld [vmem:[%s17238_s8 + $0x588] sm:$0xff] }
  0x70   :  { %17429 = vst [vmem:[#allocation189_spill] sm:$0xff] %v13525_v35  ;;  %17430 = vst [vmem:[#allocation190_spill] sm:$0xff] %v13530_v46  ;;  %v13535_v45 = vld [vmem:[%s17238_s8 + $0x590] sm:$0xff]  ;;  %v13540_v36 = vld [vmem:[%s17238_s8 + $0x598] sm:$0xff] }
  0x71   :  { %17431 = vst [vmem:[#allocation191_spill] sm:$0xff] %v13535_v45  ;;  %17432 = vst [vmem:[#allocation192_spill] sm:$0xff] %v13540_v36  ;;  %v13545_v44 = vld [vmem:[%s17238_s8 + $0x5a0] sm:$0xff]  ;;  %v13550_v35 = vld [vmem:[%s17238_s8 + $0x5a8] sm:$0xff] }
  0x72   :  { %17433 = vst [vmem:[#allocation193_spill] sm:$0xff] %v13545_v44  ;;  %17434 = vst [vmem:[#allocation194_spill] sm:$0xff] %v13550_v35  ;;  %v13555_v46 = vld [vmem:[%s17238_s8 + $0x5b0] sm:$0xff]  ;;  %v13560_v45 = vld [vmem:[%s17238_s8 + $0x5b8] sm:$0xff] }
  0x73   :  { %17435 = vst [vmem:[#allocation195_spill] sm:$0xff] %v13555_v46  ;;  %17436 = vst [vmem:[#allocation196_spill] sm:$0xff] %v13560_v45  ;;  %v13565_v36 = vld [vmem:[%s17238_s8 + $0x5c0] sm:$0xff]  ;;  %v13570_v44 = vld [vmem:[%s17238_s8 + $0x5c8] sm:$0xff] }
  0x74   :  { %17437 = vst [vmem:[#allocation197_spill] sm:$0xff] %v13565_v36  ;;  %17438 = vst [vmem:[#allocation198_spill] sm:$0xff] %v13570_v44  ;;  %v13575_v35 = vld [vmem:[%s17238_s8 + $0x5d0] sm:$0xff]  ;;  %v13580_v46 = vld [vmem:[%s17238_s8 + $0x5d8] sm:$0xff] }
  0x75   :  { %17439 = vst [vmem:[#allocation199_spill] sm:$0xff] %v13575_v35  ;;  %17440 = vst [vmem:[#allocation200_spill] sm:$0xff] %v13580_v46  ;;  %v13585_v45 = vld [vmem:[%s17238_s8 + $0x5e0] sm:$0xff]  ;;  %v13590_v36 = vld [vmem:[%s17238_s8 + $0x5e8] sm:$0xff] }
  0x76   :  { %17441 = vst [vmem:[#allocation201_spill] sm:$0xff] %v13585_v45  ;;  %17442 = vst [vmem:[#allocation202_spill] sm:$0xff] %v13590_v36  ;;  %v13595_v44 = vld [vmem:[%s17238_s8 + $0x5f0] sm:$0xff]  ;;  %v13600_v35 = vld [vmem:[%s17238_s8 + $0x5f8] sm:$0xff] }
  0x77   :  { %17443 = vst [vmem:[#allocation203_spill] sm:$0xff] %v13595_v44  ;;  %17444 = vst [vmem:[#allocation204_spill] sm:$0xff] %v13600_v35  ;;  %v13605_v46 = vld [vmem:[%s17238_s8 + $0x600] sm:$0xff]  ;;  %v13610_v45 = vld [vmem:[%s17238_s8 + $0x608] sm:$0xff] }
  0x78   :  { %17445 = vst [vmem:[#allocation205_spill] sm:$0xff] %v13605_v46  ;;  %17446 = vst [vmem:[#allocation206_spill] sm:$0xff] %v13610_v45  ;;  %v13615_v36 = vld [vmem:[%s17238_s8 + $0x610] sm:$0xff]  ;;  %v13620_v44 = vld [vmem:[%s17238_s8 + $0x618] sm:$0xff] }
  0x79   :  { %17447 = vst [vmem:[#allocation207_spill] sm:$0xff] %v13615_v36  ;;  %17448 = vst [vmem:[#allocation208_spill] sm:$0xff] %v13620_v44  ;;  %v13625_v35 = vld [vmem:[%s17238_s8 + $0x620] sm:$0xff]  ;;  %v13630_v46 = vld [vmem:[%s17238_s8 + $0x628] sm:$0xff] }
  0x7a   :  { %17449 = vst [vmem:[#allocation209_spill] sm:$0xff] %v13625_v35  ;;  %17450 = vst [vmem:[#allocation210_spill] sm:$0xff] %v13630_v46  ;;  %v13635_v45 = vld [vmem:[%s17238_s8 + $0x630] sm:$0xff]  ;;  %v13640_v36 = vld [vmem:[%s17238_s8 + $0x638] sm:$0xff] }
  0x7b   :  { %17451 = vst [vmem:[#allocation211_spill] sm:$0xff] %v13635_v45  ;;  %17452 = vst [vmem:[#allocation212_spill] sm:$0xff] %v13640_v36  ;;  %v13645_v44 = vld [vmem:[%s17238_s8 + $0x640] sm:$0xff]  ;;  %v13650_v35 = vld [vmem:[%s17238_s8 + $0x648] sm:$0xff] }
  0x7c   :  { %17453 = vst [vmem:[#allocation213_spill] sm:$0xff] %v13645_v44  ;;  %17454 = vst [vmem:[#allocation214_spill] sm:$0xff] %v13650_v35  ;;  %v13655_v46 = vld [vmem:[%s17238_s8 + $0x650] sm:$0xff]  ;;  %v13660_v45 = vld [vmem:[%s17238_s8 + $0x658] sm:$0xff] }
  0x7d   :  { %17455 = vst [vmem:[#allocation215_spill] sm:$0xff] %v13655_v46  ;;  %17456 = vst [vmem:[#allocation216_spill] sm:$0xff] %v13660_v45  ;;  %v13665_v36 = vld [vmem:[%s17238_s8 + $0x660] sm:$0xff]  ;;  %v13670_v44 = vld [vmem:[%s17238_s8 + $0x668] sm:$0xff] }
  0x7e   :  { %17457 = vst [vmem:[#allocation217_spill] sm:$0xff] %v13665_v36  ;;  %17458 = vst [vmem:[#allocation218_spill] sm:$0xff] %v13670_v44  ;;  %v13675_v35 = vld [vmem:[%s17238_s8 + $0x670] sm:$0xff]  ;;  %v13680_v46 = vld [vmem:[%s17238_s8 + $0x678] sm:$0xff] }
  0x7f   :  { %17459 = vst [vmem:[#allocation219_spill] sm:$0xff] %v13675_v35  ;;  %17460 = vst [vmem:[#allocation220_spill] sm:$0xff] %v13680_v46  ;;  %v13685_v45 = vld [vmem:[%s17238_s8 + $0x680] sm:$0xff]  ;;  %v13690_v36 = vld [vmem:[%s17238_s8 + $0x688] sm:$0xff] }
  0x80   :  { %17461 = vst [vmem:[#allocation221_spill] sm:$0xff] %v13685_v45  ;;  %17462 = vst [vmem:[#allocation222_spill] sm:$0xff] %v13690_v36  ;;  %v13695_v44 = vld [vmem:[%s17238_s8 + $0x690] sm:$0xff]  ;;  %v13700_v35 = vld [vmem:[%s17238_s8 + $0x698] sm:$0xff] }
  0x81   :  { %17463 = vst [vmem:[#allocation223_spill] sm:$0xff] %v13695_v44  ;;  %17464 = vst [vmem:[#allocation224_spill] sm:$0xff] %v13700_v35  ;;  %v13705_v46 = vld [vmem:[%s17238_s8 + $0x6a0] sm:$0xff]  ;;  %v13710_v45 = vld [vmem:[%s17238_s8 + $0x6a8] sm:$0xff] }
  0x82   :  { %17465 = vst [vmem:[#allocation225_spill] sm:$0xff] %v13705_v46  ;;  %17466 = vst [vmem:[#allocation226_spill] sm:$0xff] %v13710_v45  ;;  %v13715_v36 = vld [vmem:[%s17238_s8 + $0x6b0] sm:$0xff]  ;;  %v13720_v44 = vld [vmem:[%s17238_s8 + $0x6b8] sm:$0xff] }
  0x83   :  { %17467 = vst [vmem:[#allocation227_spill] sm:$0xff] %v13715_v36  ;;  %17468 = vst [vmem:[#allocation228_spill] sm:$0xff] %v13720_v44  ;;  %v13725_v35 = vld [vmem:[%s17238_s8 + $0x6c0] sm:$0xff]  ;;  %v13730_v46 = vld [vmem:[%s17238_s8 + $0x6c8] sm:$0xff] }
  0x84   :  { %17469 = vst [vmem:[#allocation229_spill] sm:$0xff] %v13725_v35  ;;  %17470 = vst [vmem:[#allocation230_spill] sm:$0xff] %v13730_v46  ;;  %v13735_v45 = vld [vmem:[%s17238_s8 + $0x6d0] sm:$0xff]  ;;  %v13740_v36 = vld [vmem:[%s17238_s8 + $0x6d8] sm:$0xff] }
  0x85   :  { %17471 = vst [vmem:[#allocation231_spill] sm:$0xff] %v13735_v45  ;;  %17472 = vst [vmem:[#allocation232_spill] sm:$0xff] %v13740_v36  ;;  %v13745_v44 = vld [vmem:[%s17238_s8 + $0x6e0] sm:$0xff]  ;;  %v13750_v35 = vld [vmem:[%s17238_s8 + $0x6e8] sm:$0xff] }
  0x86   :  { %17473 = vst [vmem:[#allocation233_spill] sm:$0xff] %v13745_v44  ;;  %17474 = vst [vmem:[#allocation234_spill] sm:$0xff] %v13750_v35  ;;  %v13755_v46 = vld [vmem:[%s17238_s8 + $0x6f0] sm:$0xff]  ;;  %v13760_v45 = vld [vmem:[%s17238_s8 + $0x6f8] sm:$0xff] }
  0x87   :  { %17475 = vst [vmem:[#allocation235_spill] sm:$0xff] %v13755_v46  ;;  %17476 = vst [vmem:[#allocation236_spill] sm:$0xff] %v13760_v45  ;;  %v13765_v36 = vld [vmem:[%s17238_s8 + $0x700] sm:$0xff]  ;;  %v13770_v44 = vld [vmem:[%s17238_s8 + $0x708] sm:$0xff] }
  0x88   :  { %17477 = vst [vmem:[#allocation237_spill] sm:$0xff] %v13765_v36  ;;  %17478 = vst [vmem:[#allocation238_spill] sm:$0xff] %v13770_v44  ;;  %v13775_v35 = vld [vmem:[%s17238_s8 + $0x710] sm:$0xff]  ;;  %v13780_v46 = vld [vmem:[%s17238_s8 + $0x718] sm:$0xff] }
  0x89   :  { %17479 = vst [vmem:[#allocation239_spill] sm:$0xff] %v13775_v35  ;;  %17480 = vst [vmem:[#allocation240_spill] sm:$0xff] %v13780_v46  ;;  %v13785_v45 = vld [vmem:[%s17238_s8 + $0x720] sm:$0xff]  ;;  %v13790_v36 = vld [vmem:[%s17238_s8 + $0x728] sm:$0xff] }
  0x8a   :  { %17481 = vst [vmem:[#allocation241_spill] sm:$0xff] %v13785_v45  ;;  %17482 = vst [vmem:[#allocation242_spill] sm:$0xff] %v13790_v36  ;;  %v13795_v44 = vld [vmem:[%s17238_s8 + $0x730] sm:$0xff]  ;;  %v13800_v35 = vld [vmem:[%s17238_s8 + $0x738] sm:$0xff] }
  0x8b   :  { %17483 = vst [vmem:[#allocation243_spill] sm:$0xff] %v13795_v44  ;;  %17484 = vst [vmem:[#allocation244_spill] sm:$0xff] %v13800_v35  ;;  %v13805_v46 = vld [vmem:[%s17238_s8 + $0x740] sm:$0xff]  ;;  %v13810_v45 = vld [vmem:[%s17238_s8 + $0x748] sm:$0xff] }
  0x8c   :  { %17485 = vst [vmem:[#allocation245_spill] sm:$0xff] %v13805_v46  ;;  %17486 = vst [vmem:[#allocation246_spill] sm:$0xff] %v13810_v45  ;;  %v13815_v36 = vld [vmem:[%s17238_s8 + $0x750] sm:$0xff]  ;;  %v13820_v44 = vld [vmem:[%s17238_s8 + $0x758] sm:$0xff] }
  0x8d   :  { %17487 = vst [vmem:[#allocation247_spill] sm:$0xff] %v13815_v36  ;;  %17488 = vst [vmem:[#allocation248_spill] sm:$0xff] %v13820_v44  ;;  %v13825_v35 = vld [vmem:[%s17238_s8 + $0x760] sm:$0xff]  ;;  %v13830_v46 = vld [vmem:[%s17238_s8 + $0x768] sm:$0xff] }
  0x8e   :  { %17489 = vst [vmem:[#allocation249_spill] sm:$0xff] %v13825_v35  ;;  %17490 = vst [vmem:[#allocation250_spill] sm:$0xff] %v13830_v46  ;;  %v13835_v45 = vld [vmem:[%s17238_s8 + $0x770] sm:$0xff]  ;;  %v13840_v36 = vld [vmem:[%s17238_s8 + $0x778] sm:$0xff] }
  0x8f   :  { %17491 = vst [vmem:[#allocation251_spill] sm:$0xff] %v13835_v45  ;;  %17492 = vst [vmem:[#allocation252_spill] sm:$0xff] %v13840_v36  ;;  %v13845_v44 = vld [vmem:[%s17238_s8 + $0x780] sm:$0xff]  ;;  %v13850_v35 = vld [vmem:[%s17238_s8 + $0x788] sm:$0xff] }
  0x90   :  { %17493 = vst [vmem:[#allocation253_spill] sm:$0xff] %v13845_v44  ;;  %17494 = vst [vmem:[#allocation254_spill] sm:$0xff] %v13850_v35  ;;  %v13855_v46 = vld [vmem:[%s17238_s8 + $0x790] sm:$0xff]  ;;  %v13860_v45 = vld [vmem:[%s17238_s8 + $0x798] sm:$0xff] }
  0x91   :  { %17495 = vst [vmem:[#allocation255_spill] sm:$0xff] %v13855_v46  ;;  %17496 = vst [vmem:[#allocation256_spill] sm:$0xff] %v13860_v45  ;;  %v13865_v36 = vld [vmem:[%s17238_s8 + $0x7a0] sm:$0xff]  ;;  %v13870_v44 = vld [vmem:[%s17238_s8 + $0x7a8] sm:$0xff] }
  0x92   :  { %17497 = vst [vmem:[#allocation257_spill] sm:$0xff] %v13865_v36  ;;  %17498 = vst [vmem:[#allocation258_spill] sm:$0xff] %v13870_v44  ;;  %v13875_v35 = vld [vmem:[%s17238_s8 + $0x7b0] sm:$0xff]  ;;  %v13880_v46 = vld [vmem:[%s17238_s8 + $0x7b8] sm:$0xff] }
  0x93   :  { %17499 = vst [vmem:[#allocation259_spill] sm:$0xff] %v13875_v35  ;;  %17500 = vst [vmem:[#allocation260_spill] sm:$0xff] %v13880_v46  ;;  %v13885_v45 = vld [vmem:[%s17238_s8 + $0x7c0] sm:$0xff]  ;;  %v13890_v36 = vld [vmem:[%s17238_s8 + $0x7c8] sm:$0xff] }
  0x94   :  { %17501 = vst [vmem:[#allocation261_spill] sm:$0xff] %v13885_v45  ;;  %17502 = vst [vmem:[#allocation262_spill] sm:$0xff] %v13890_v36  ;;  %v13895_v44 = vld [vmem:[%s17238_s8 + $0x7d0] sm:$0xff]  ;;  %v13900_v35 = vld [vmem:[%s17238_s8 + $0x7d8] sm:$0xff] }
  0x95   :  { %17503 = vst [vmem:[#allocation263_spill] sm:$0xff] %v13895_v44  ;;  %17504 = vst [vmem:[#allocation264_spill] sm:$0xff] %v13900_v35  ;;  %v13905_v46 = vld [vmem:[%s17238_s8 + $0x7e0] sm:$0xff]  ;;  %v13910_v45 = vld [vmem:[%s17238_s8 + $0x7e8] sm:$0xff] }
  0x96   :  { %17505 = vst [vmem:[#allocation265_spill] sm:$0xff] %v13905_v46  ;;  %17506 = vst [vmem:[#allocation266_spill] sm:$0xff] %v13910_v45  ;;  %v13915_v36 = vld [vmem:[%s17238_s8 + $0x7f0] sm:$0xff]  ;;  %v13920_v44 = vld [vmem:[%s17238_s8 + $0x7f8] sm:$0xff] }
  0x97   :  { %17507 = vst [vmem:[#allocation267_spill] sm:$0xff] %v13915_v36  ;;  %17508 = vst [vmem:[#allocation268_spill] sm:$0xff] %v13920_v44 }
  0x98   :  { %624 = vsyncadd [#allocation4], 32768  ;;  %v11852_v46 = vld [vmem:[%s17235_s5] sm:$0xff]   ;;  %v11853_v35 = vld [vmem:[%s17235_s5 + $0x8] sm:$0xff]   ;;  %vm2060_vm0 = vcmask 408576   ;;  %s17509_s1 = sld [smem:[#allocation285_spill]] }
  0x99   :  { %11354 = vmatprep.subr.bf16.mxu0 %v11852_v46  ;;  %v11854_v44 = vld [vmem:[%s17235_s5 + $0x10] sm:$0xff]   ;;  %v11855_v45 = vld [vmem:[%s17235_s5 + $0x18] ss:$0 sps:$4 sm:$0x11]   ;;  %vm2661_vm1 = vcmask 1040384   ;;  %s12527_s0 = smov 32  }
  0x9a   :  { %11355 = vmatpush3.bf16.msra.mxu0 %v11852_v46  ;;  %v2663_v46 = vsel %vm2661_vm1, %v11855_v45, 0  ;;  %s12528_s19 = smov 64   ;;  %s12529_s8 = smov 96   ;;  %vm5186_vm2 = vcmask 261120   ;;  %vm5211_vm3 = vcmask 523264   ;;  %vm5228_vm4 = vcmask 785408  }
  0x9b   :  { %11356 = vmatprep.subr.bf16.mxu0 %v11853_v35  ;;  %s17575_s10 = sld [smem:[#allocation286_spill]]  ;;  %s17576_s27 = sld [smem:[#allocation287_spill]]  ;;  %vm6843_vm5 = vcmask 1045504   ;;  %vm6839_vm6 = vcmask 359424   ;;  %vm7999_vm7 = vcmask 1042432   ;;  %vm7995_vm8 = vcmask 310272  }
  0x9c   :  { %vm12533_vm9 = vmmov 0  }
  0x9e   :  { %v11856_v36 = vld [vmem:[%s17509_s1] sm:$0xff]   ;;  %11357 = vmatpush3.bf16.msra.mxu0 %v11853_v35  ;;  %v11857_v43 = vld [vmem:[%s17509_s1 + $0x8] sm:$0xff]   ;;  %v11858_v34 = vld [vmem:[%s17509_s1 + $0x10] sm:$0xff]  }
  0x9f   :  { %11362 = vmatprep.mubr.msk.bf16.mxu0 %vm2060_vm0, %v11856_v36  ;;  %11358 = vmatprep.subr.bf16.mxu0 %v11854_v44  ;;  %v11859_v35 = vld [vmem:[%s17509_s1 + $0x18] sm:$0xff]   ;;  %v11860_v36 = vld [vmem:[%s17509_s1 + $0x20] sm:$0xff]  }
  0xa0   :  { %v11912_v39 = vld [vmem:[%s17509_s1 + $0x1c0] sm:$0xff]  }
  0xa2   :  { %11359 = vmatpush3.bf16.msra.mxu0 %v11854_v44  ;;  %v11861_v44 = vld [vmem:[%s17509_s1 + $0x28] sm:$0xff]  }
  0xa3   :  { %11840 = vmatprep.subr.msk.bf16.mxu0 %vm2661_vm1, %v11855_v45  ;;  %v11864_v45 = vld [vmem:[%s17509_s1 + $0x40] sm:$0xff]  }
  0xa6   :  { %11361 = vmatpush3.bf16.msra.mxu0 %v2663_v46  ;;  %v11865_v46 = vld [vmem:[%s17509_s1 + $0x48] sm:$0xff]  }
  0xa9   :  { %11363 = vmatmul.mubr.msk.bf16.vlgmr.msra.gmra.mrb[0].mxu0 %vm2060_vm0, %v11857_v43  ;;  %v11863_v43 = vld [vmem:[%s17509_s1 + $0x38] sm:$0xff]  }
  0xaa   :  { %11366 = vmatprep.mubr.msk.bf16.mxu0 %vm2060_vm0, %v11858_v34  ;;  %v11862_v34 = vld [vmem:[%s17509_s1 + $0x30] sm:$0xff]  }
  0xb1   :  { %11367 = vmatmul.mubr.msk.bf16.gmra.mrb[4].mxu0 %vm2060_vm0, %v11859_v35  ;;  %v11866_v35 = vld [vmem:[%s17509_s1 + $0x50] sm:$0xff]  }
  0xb2   :  { %11370 = vmatprep.mubr.msk.bf16.mxu0 %vm2060_vm0, %v11860_v36  ;;  %v11867_v36 = vld [vmem:[%s17509_s1 + $0x58] sm:$0xff]  }
  0xb9   :  { %11371 = vmatmul.mubr.msk.bf16.gmra.mrb[8].mxu0 %vm2060_vm0, %v11861_v44  ;;  %v11868_v44 = vld [vmem:[%s17509_s1 + $0x60] sm:$0xff]  }
  0xba   :  { %11374 = vmatprep.mubr.msk.bf16.mxu0 %vm2060_vm0, %v11862_v34  ;;  %v11869_v34 = vld [vmem:[%s17509_s1 + $0x68] sm:$0xff]  }
  0xc1   :  { %11375 = vmatmul.mubr.msk.bf16.gmra.mrb[12].mxu0 %vm2060_vm0, %v11863_v43  ;;  %v11870_v43 = vld [vmem:[%s17509_s1 + $0x70] sm:$0xff]  }
  0xc2   :  { %11378 = vmatprep.mubr.msk.bf16.mxu0 %vm2060_vm0, %v11864_v45  ;;  %v11871_v45 = vld [vmem:[%s17509_s1 + $0x78] sm:$0xff]  }
  0xc9   :  { %11379 = vmatmul.mubr.msk.bf16.gmra.mrb[16].mxu0 %vm2060_vm0, %v11865_v46  ;;  %v11872_v46 = vld [vmem:[%s17509_s1 + $0x80] sm:$0xff]  }
  0xca   :  { %11382 = vmatprep.mubr.msk.bf16.mxu0 %vm2060_vm0, %v11866_v35  ;;  %v11873_v35 = vld [vmem:[%s17509_s1 + $0x88] sm:$0xff]  }
  0xd1   :  { %11383 = vmatmul.mubr.msk.bf16.gmra.mrb[20].mxu0 %vm2060_vm0, %v11867_v36  ;;  %v11874_v36 = vld [vmem:[%s17509_s1 + $0x90] sm:$0xff]  }
  0xd2   :  { %11386 = vmatprep.mubr.msk.bf16.mxu0 %vm2060_vm0, %v11868_v44  ;;  %v11875_v44 = vld [vmem:[%s17509_s1 + $0x98] sm:$0xff]  }
  0xd9   :  { %11387 = vmatmul.mubr.msk.bf16.gmra.mrb[24].mxu0 %vm2060_vm0, %v11869_v34  ;;  %v11876_v34 = vld [vmem:[%s17509_s1 + $0xa0] sm:$0xff]  }
  0xda   :  { %11390 = vmatprep.mubr.msk.bf16.mxu0 %vm2060_vm0, %v11870_v43  ;;  %v11877_v43 = vld [vmem:[%s17509_s1 + $0xa8] sm:$0xff]  }
  0xe1   :  { %11391 = vmatmul.mubr.msk.bf16.gmra.mrb[28].mxu0 %vm2060_vm0, %v11871_v45  ;;  %v11878_v45 = vld [vmem:[%s17509_s1 + $0xb0] sm:$0xff]  }
  0xe2   :  { %11394 = vmatprep.mubr.msk.bf16.mxu0 %vm2060_vm0, %v11872_v46  ;;  %v11879_v46 = vld [vmem:[%s17509_s1 + $0xb8] sm:$0xff]  }
  0xe9   :  { %11395 = vmatmul.mubr.msk.bf16.gmra.mrb[32].mxu0 %vm2060_vm0, %v11873_v35  ;;  %v11880_v35 = vld [vmem:[%s17509_s1 + $0xc0] sm:$0xff]  }
  0xea   :  { %11398 = vmatprep.mubr.msk.bf16.mxu0 %vm2060_vm0, %v11874_v36  ;;  %v11881_v36 = vld [vmem:[%s17509_s1 + $0xc8] sm:$0xff]  }
  0xf1   :  { %11399 = vmatmul.mubr.msk.bf16.gmra.mrb[36].mxu0 %vm2060_vm0, %v11875_v44  ;;  %v11882_v44 = vld [vmem:[%s17509_s1 + $0xd0] sm:$0xff]  }
  0xf2   :  { %11402 = vmatprep.mubr.msk.bf16.mxu0 %vm2060_vm0, %v11876_v34  ;;  %v11883_v34 = vld [vmem:[%s17509_s1 + $0xd8] sm:$0xff]  }
  0xf9   :  { %11403 = vmatmul.mubr.msk.bf16.gmra.mrb[40].mxu0 %vm2060_vm0, %v11877_v43  ;;  %v11884_v43 = vld [vmem:[%s17509_s1 + $0xe0] sm:$0xff]  }
  0xfa   :  { %11406 = vmatprep.mubr.msk.bf16.mxu0 %vm2060_vm0, %v11878_v45  ;;  %v11885_v45 = vld [vmem:[%s17509_s1 + $0xe8] sm:$0xff]  }
 0x101   :  { %11407 = vmatmul.mubr.msk.bf16.gmra.mrb[44].mxu0 %vm2060_vm0, %v11879_v46  ;;  %v11886_v46 = vld [vmem:[%s17509_s1 + $0xf0] sm:$0xff]  }
 0x102   :  { %11410 = vmatprep.mubr.msk.bf16.mxu0 %vm2060_vm0, %v11880_v35  ;;  %v11887_v35 = vld [vmem:[%s17509_s1 + $0xf8] sm:$0xff]  }
 0x109   :  { %11411 = vmatmul.mubr.msk.bf16.gmra.mrb[48].mxu0 %vm2060_vm0, %v11881_v36  ;;  %v11888_v36 = vld [vmem:[%s17509_s1 + $0x100] sm:$0xff]  }
 0x10a   :  { %11414 = vmatprep.mubr.msk.bf16.mxu0 %vm2060_vm0, %v11882_v44  ;;  %v11889_v44 = vld [vmem:[%s17509_s1 + $0x108] sm:$0xff]  }
 0x111   :  { %11415 = vmatmul.mubr.msk.bf16.gmra.mrb[52].mxu0 %vm2060_vm0, %v11883_v34  ;;  %v11890_v34 = vld [vmem:[%s17509_s1 + $0x110] sm:$0xff]  }
 0x112   :  { %11418 = vmatprep.mubr.msk.bf16.mxu0 %vm2060_vm0, %v11884_v43  ;;  %v11891_v43 = vld [vmem:[%s17509_s1 + $0x118] sm:$0xff]  }
 0x119   :  { %11419 = vmatmul.mubr.msk.bf16.gmra.mrb[56].mxu0 %vm2060_vm0, %v11885_v45  ;;  %v11892_v45 = vld [vmem:[%s17509_s1 + $0x120] sm:$0xff]  }
 0x11a   :  { %11422 = vmatprep.mubr.msk.bf16.mxu0 %vm2060_vm0, %v11886_v46  ;;  %v11893_v46 = vld [vmem:[%s17509_s1 + $0x128] sm:$0xff]  }
 0x121   :  { %11423 = vmatmul.mubr.msk.bf16.gmra.mrb[60].mxu0 %vm2060_vm0, %v11887_v35  ;;  %v11894_v35 = vld [vmem:[%s17509_s1 + $0x130] sm:$0xff]  }
 0x122   :  { %11426 = vmatprep.mubr.msk.bf16.mxu0 %vm2060_vm0, %v11888_v36  ;;  %v11895_v36 = vld [vmem:[%s17509_s1 + $0x138] sm:$0xff]  }
 0x129   :  { %11427 = vmatmul.mubr.msk.bf16.gmra.mrb[64].mxu0 %vm2060_vm0, %v11889_v44  ;;  %v11896_v44 = vld [vmem:[%s17509_s1 + $0x140] sm:$0xff]  }
 0x12a   :  { %11430 = vmatprep.mubr.msk.bf16.mxu0 %vm2060_vm0, %v11890_v34  ;;  %v11897_v34 = vld [vmem:[%s17509_s1 + $0x148] sm:$0xff]  }
 0x131   :  { %11431 = vmatmul.mubr.msk.bf16.gmra.mrb[68].mxu0 %vm2060_vm0, %v11891_v43  ;;  %v11898_v43 = vld [vmem:[%s17509_s1 + $0x150] sm:$0xff]  }
 0x132   :  { %11434 = vmatprep.mubr.msk.bf16.mxu0 %vm2060_vm0, %v11892_v45  ;;  %v11899_v45 = vld [vmem:[%s17509_s1 + $0x158] sm:$0xff]  }
 0x139   :  { %11435 = vmatmul.mubr.msk.bf16.gmra.mrb[72].mxu0 %vm2060_vm0, %v11893_v46  ;;  %v11900_v46 = vld [vmem:[%s17509_s1 + $0x160] sm:$0xff]  }
 0x13a   :  { %11438 = vmatprep.mubr.msk.bf16.mxu0 %vm2060_vm0, %v11894_v35  ;;  %v11901_v35 = vld [vmem:[%s17509_s1 + $0x168] sm:$0xff]  }
 0x141   :  { %11439 = vmatmul.mubr.msk.bf16.gmra.mrb[76].mxu0 %vm2060_vm0, %v11895_v36  ;;  %v11902_v36 = vld [vmem:[%s17509_s1 + $0x170] sm:$0xff]  }
 0x142   :  { %11442 = vmatprep.mubr.msk.bf16.mxu0 %vm2060_vm0, %v11896_v44  ;;  %v11903_v44 = vld [vmem:[%s17509_s1 + $0x178] sm:$0xff]  }
 0x149   :  { %11443 = vmatmul.mubr.msk.bf16.gmra.mrb[80].mxu0 %vm2060_vm0, %v11897_v34  ;;  %v11904_v34 = vld [vmem:[%s17509_s1 + $0x180] sm:$0xff]  }
 0x14a   :  { %11446 = vmatprep.mubr.msk.bf16.mxu0 %vm2060_vm0, %v11898_v43  ;;  %v11905_v43 = vld [vmem:[%s17509_s1 + $0x188] sm:$0xff]  }
 0x151   :  { %11447 = vmatmul.mubr.msk.bf16.gmra.mrb[84].mxu0 %vm2060_vm0, %v11899_v45  ;;  %v11906_v45 = vld [vmem:[%s17509_s1 + $0x190] sm:$0xff]  }
 0x152   :  { %11450 = vmatprep.mubr.msk.bf16.mxu0 %vm2060_vm0, %v11900_v46  ;;  %v11907_v46 = vld [vmem:[%s17509_s1 + $0x198] sm:$0xff]  }
 0x159   :  { %11451 = vmatmul.mubr.msk.bf16.gmra.mrb[88].mxu0 %vm2060_vm0, %v11901_v35  ;;  %v11908_v35 = vld [vmem:[%s17509_s1 + $0x1a0] sm:$0xff]  }
 0x15a   :  { %11454 = vmatprep.mubr.msk.bf16.mxu0 %vm2060_vm0, %v11902_v36  ;;  %v11909_v36 = vld [vmem:[%s17509_s1 + $0x1a8] sm:$0xff]  }
 0x161   :  { %11455 = vmatmul.mubr.msk.bf16.gmra.mrb[92].mxu0 %vm2060_vm0, %v11903_v44  ;;  %v11910_v44 = vld [vmem:[%s17509_s1 + $0x1b0] sm:$0xff]  }
 0x162   :  { %11458 = vmatprep.mubr.msk.bf16.mxu0 %vm2060_vm0, %v11904_v34  ;;  %v14155_v34 = vld [vmem:[%s17236_s6] ss:$0 sm:$0xff] }
 0x169   :  { %11459 = vmatmul.mubr.msk.bf16.gmra.mrb[96].mxu0 %vm2060_vm0, %v11905_v43  ;;  %v11911_v43 = vld [vmem:[%s17509_s1 + $0x1b8] sm:$0xff]  }
 0x16a   :  { %11462 = vmatprep.mubr.msk.bf16.mxu0 %vm2060_vm0, %v11906_v45 }
 0x171   :  { %11463 = vmatmul.mubr.msk.bf16.gmra.mrb[100].mxu0 %vm2060_vm0, %v11907_v46 }
 0x172   :  { %11466 = vmatprep.mubr.msk.bf16.mxu0 %vm2060_vm0, %v11908_v35 }
 0x179   :  { %11467 = vmatmul.mubr.msk.bf16.gmra.mrb[104].mxu0 %vm2060_vm0, %v11909_v36 }
 0x17a   :  { %11470 = vmatprep.mubr.msk.bf16.mxu0 %vm2060_vm0, %v11910_v44 }
 0x17c   :  { %v11364_v45 = vpop.f32.mrb[0].mxu0 }
 0x17d   :  { %v2708_v46 = vadd.f32 %v11364_v45, %v14155_v34  ;;  %v2699_v35 = vpop.f32.mrb[1].mxu0 }
 0x17e   :  { %v2700_v38 = vadd.f32 %v14155_v34, %v2699_v35  ;;  %v11365_v42 = vpop.f32.mrb[2].mxu0  ;;  %v11913_v35 = vld [vmem:[%s17509_s1 + $0x1c8] sm:$0xff]  }
 0x17f   :  { %v2711_v33 = vadd.f32 %v11365_v42, %v14155_v34  ;;  %v2702_v36 = vpop.f32.mrb[3].mxu0  ;;  %v4300_v47 = vmax.f32 %v2708_v46, 0.0 }
 0x180   :  { %v2703_v44 = vadd.f32 %v14155_v34, %v2702_v36  ;;  %v4298_v32 = vmax.f32 %v2700_v38, 0.0  ;;  %v11914_v38 = vld [vmem:[%s17509_s1 + $0x1d0] sm:$0xff]  }
 0x181   :  { %v4301_v41 = vmax.f32 %v2711_v33, 0.0  ;;  %11471 = vmatmul.mubr.msk.bf16.gmra.mrb[108].mxu0 %vm2060_vm0, %v11911_v43 }
 0x182   :  { %v4299_v40 = vmax.f32 %v2703_v44, 0.0  ;;  %11474 = vmatprep.mubr.msk.bf16.mxu0 %vm2060_vm0, %v11912_v39 }
 0x183   :  { %v14171_v45 = vpack.c.bf16 %v4301_v41, %v4300_v47 }
 0x184   :  { %v14176_v23 = vpack.c.bf16 %v4299_v40, %v4298_v32  ;;  %v11368_v42 = vpop.f32.mrb[4].mxu0 }
 0x185   :  { %v2724_v31 = vadd.f32 %v11368_v42, %v14155_v34  ;;  %v2715_v36 = vpop.f32.mrb[5].mxu0 }
 0x186   :  { %v2716_v33 = vadd.f32 %v14155_v34, %v2715_v36  ;;  %v11369_v46 = vpop.f32.mrb[6].mxu0  ;;  %v11915_v36 = vld [vmem:[%s17509_s1 + $0x1d8] sm:$0xff]  }
 0x187   :  { %v2727_v39 = vadd.f32 %v11369_v46, %v14155_v34  ;;  %v2718_v41 = vpop.f32.mrb[7].mxu0  ;;  %v4304_v43 = vmax.f32 %v2724_v31, 0.0 }
 0x188   :  { %v2719_v47 = vadd.f32 %v14155_v34, %v2718_v41  ;;  %v4302_v32 = vmax.f32 %v2716_v33, 0.0 }
 0x189   :  { %v4305_v44 = vmax.f32 %v2727_v39, 0.0  ;;  %11475 = vmatmul.mubr.msk.bf16.gmra.mrb[112].mxu0 %vm2060_vm0, %v11913_v35  ;;  %v11916_v35 = vld [vmem:[%s17509_s1 + $0x1e0] sm:$0xff]  }
 0x18a   :  { %v4303_v40 = vmax.f32 %v2719_v47, 0.0  ;;  %11478 = vmatprep.mubr.msk.bf16.mxu0 %vm2060_vm0, %v11914_v38 }
 0x18b   :  { %v14187_v42 = vpack.c.bf16 %v4305_v44, %v4304_v43 }
 0x18c   :  { %v14192_v22 = vpack.c.bf16 %v4303_v40, %v4302_v32  ;;  %v11372_v46 = vpop.f32.mrb[8].mxu0 }
 0x18d   :  { %v2740_v30 = vadd.f32 %v11372_v46, %v14155_v34  ;;  %v2731_v41 = vpop.f32.mrb[9].mxu0 }
 0x18e   :  { %v2732_v31 = vadd.f32 %v14155_v34, %v2731_v41  ;;  %v11373_v39 = vpop.f32.mrb[10].mxu0 }
 0x18f   :  { %v4308_v33 = vmax.f32 %v2740_v30, 0.0  ;;  %v2743_v38 = vadd.f32 %v11373_v39, %v14155_v34  ;;  %v2734_v47 = vpop.f32.mrb[11].mxu0 }
 0x190   :  { %v4306_v43 = vmax.f32 %v2732_v31, 0.0  ;;  %v2735_v44 = vadd.f32 %v14155_v34, %v2734_v47  ;;  %v11917_v31 = vld [vmem:[%s17509_s1 + $0x1e8] sm:$0xff]  }
 0x191   :  { %v4309_v32 = vmax.f32 %v2743_v38, 0.0  ;;  %11479 = vmatmul.mubr.msk.bf16.gmra.mrb[116].mxu0 %vm2060_vm0, %v11915_v36  ;;  %v11918_v36 = vld [vmem:[%s17509_s1 + $0x1f0] sm:$0xff]  }
 0x192   :  { %v4307_v40 = vmax.f32 %v2735_v44, 0.0  ;;  %11482 = vmatprep.mubr.msk.bf16.mxu0 %vm2060_vm0, %v11916_v35 }
 0x193   :  { %v14203_v46 = vpack.c.bf16 %v4309_v32, %v4308_v33 }
 0x194   :  { %v14205_v41 = vpack.c.bf16 %v4307_v40, %v4306_v43  ;;  %v11376_v21 = vpop.f32.mrb[12].mxu0 }
 0x195   :  { %v2756_v29 = vadd.f32 %v11376_v21, %v14155_v34  ;;  %v2747_v30 = vpop.f32.mrb[13].mxu0 }
 0x196   :  { %v2748_v39 = vadd.f32 %v14155_v34, %v2747_v30  ;;  %v11377_v38 = vpop.f32.mrb[14].mxu0 }
 0x197   :  { %v2759_v35 = vadd.f32 %v11377_v38, %v14155_v34  ;;  %v2750_v33 = vpop.f32.mrb[15].mxu0  ;;  %v4312_v43 = vmax.f32 %v2756_v29, 0.0  ;;  %v11919_v38 = vld [vmem:[%s17509_s1 + $0x1f8] sm:$0xff]  }
 0x198   :  { %v2751_v47 = vadd.f32 %v14155_v34, %v2750_v33  ;;  %v4310_v21 = vmax.f32 %v2748_v39, 0.0 }
 0x199   :  { %v4313_v44 = vmax.f32 %v2759_v35, 0.0  ;;  %11483 = vmatmul.mubr.msk.bf16.gmra.mrb[120].mxu0 %vm2060_vm0, %v11917_v31  ;;  %v11920_v31 = vld [vmem:[%s17509_s1 + $0x200] sm:$0xff]  }
 0x19a   :  { %v4311_v32 = vmax.f32 %v2751_v47, 0.0  ;;  %11486 = vmatprep.mubr.msk.bf16.mxu0 %vm2060_vm0, %v11918_v36 }
 0x19b   :  { %v14219_v40 = vpack.c.bf16 %v4313_v44, %v4312_v43 }
 0x19c   :  { %v14221_v30 = vpack.c.bf16 %v4311_v32, %v4310_v21  ;;  %v11380_v20 = vpop.f32.mrb[16].mxu0 }
 0x19d   :  { %17510 = vst [vmem:[#allocation269_spill] sm:$0xff] %v14219_v40  ;;  %v2772_v28 = vadd.f32 %v11380_v20, %v14155_v34  ;;  %v2763_v19 = vpop.f32.mrb[17].mxu0 }
 0x19e   :  { %v2764_v29 = vadd.f32 %v14155_v34, %v2763_v19  ;;  %v11381_v35 = vpop.f32.mrb[18].mxu0 }
 0x19f   :  { %v2775_v39 = vadd.f32 %v11381_v35, %v14155_v34  ;;  %v2766_v36 = vpop.f32.mrb[19].mxu0  ;;  %v4316_v20 = vmax.f32 %v2772_v28, 0.0 }
 0x1a0   :  { %v2767_v33 = vadd.f32 %v14155_v34, %v2766_v36  ;;  %v4314_v43 = vmax.f32 %v2764_v29, 0.0  ;;  %v11921_v36 = vld [vmem:[%s17509_s1 + $0x208] sm:$0xff]   ;;  %v11922_v29 = vld [vmem:[%s17509_s1 + $0x210] sm:$0xff]  }
 0x1a1   :  { %11487 = vmatmul.mubr.msk.bf16.gmra.mrb[124].mxu0 %vm2060_vm0, %v11919_v38  ;;  %v4317_v47 = vmax.f32 %v2775_v39, 0.0 }
 0x1a2   :  { %v4315_v44 = vmax.f32 %v2767_v33, 0.0  ;;  %11490 = vmatprep.mubr.msk.bf16.mxu0 %vm2060_vm0, %v11920_v31 }
 0x1a3   :  { %v4707_v21 = vpack.c.bf16 %v4317_v47, %v4316_v20 }
 0x1a4   :  { %v11384_v19 = vpop.f32.mrb[20].mxu0  ;;  %v4706_v32 = vpack.c.bf16 %v4315_v44, %v4314_v43 }
 0x1a5   :  { %v2788_v27 = vadd.f32 %v11384_v19, %v14155_v34  ;;  %4908 = vrot.lane.b32.xlu1 %v4707_v21, %s12527_s0  ;;  %v2779_v35 = vpop.f32.mrb[21].mxu0 }
 0x1a6   :  { %v2780_v28 = vadd.f32 %v14155_v34, %v2779_v35  ;;  %v11385_v38 = vpop.f32.mrb[22].mxu0  ;;  %4906 = vrot.lane.b32.xlu0 %v4706_v32, %s12527_s0 }
 0x1a7   :  { %v2791_v31 = vadd.f32 %v11385_v38, %v14155_v34  ;;  %v2782_v39 = vpop.f32.mrb[23].mxu0  ;;  %v4320_v20 = vmax.f32 %v2788_v27, 0.0  ;;  %v11923_v38 = vld [vmem:[%s17509_s1 + $0x218] sm:$0xff]  }
 0x1a8   :  { %v2783_v33 = vadd.f32 %v14155_v34, %v2782_v39  ;;  %v4318_v43 = vmax.f32 %v2780_v28, 0.0 }
 0x1a9   :  { %v4321_v47 = vmax.f32 %v2791_v31, 0.0  ;;  %11491 = vmatmul.mubr.msk.bf16.gmra.mrb[128].mxu0 %vm2060_vm0, %v11921_v36  ;;  %v11924_v36 = vld [vmem:[%s17509_s1 + $0x220] sm:$0xff]  }
 0x1aa   :  { %v4319_v44 = vmax.f32 %v2783_v33, 0.0  ;;  %11494 = vmatprep.mubr.msk.bf16.mxu0 %vm2060_vm0, %v11922_v29 }
 0x1ab   :  { %v4709_v21 = vpack.c.bf16 %v4321_v47, %v4320_v20 }
 0x1ac   :  { %v11388_v19 = vpop.f32.mrb[24].mxu0  ;;  %v4708_v32 = vpack.c.bf16 %v4319_v44, %v4318_v43 }
 0x1ad   :  { %v2804_v35 = vadd.f32 %v11388_v19, %v14155_v34  ;;  %4912 = vrot.lane.b32.xlu1 %v4709_v21, %s12527_s0  ;;  %v2795_v18 = vpop.f32.mrb[25].mxu0 }
 0x1ae   :  { %v2796_v27 = vadd.f32 %v14155_v34, %v2795_v18  ;;  %v11389_v31 = vpop.f32.mrb[26].mxu0 }
 0x1af   :  { %v2807_v28 = vadd.f32 %v11389_v31, %v14155_v34  ;;  %v2798_v29 = vpop.f32.mrb[27].mxu0  ;;  %v4324_v33 = vmax.f32 %v2804_v35, 0.0  ;;  %v11925_v35 = vld [vmem:[%s17509_s1 + $0x228] sm:$0xff]  }
 0x1b0   :  { %v2799_v39 = vadd.f32 %v14155_v34, %v2798_v29  ;;  %v4322_v47 = vmax.f32 %v2796_v27, 0.0 }
 0x1b1   :  { %v4325_v20 = vmax.f32 %v2807_v28, 0.0  ;;  %11495 = vmatmul.mubr.msk.bf16.gmra.mrb[132].mxu0 %vm2060_vm0, %v11923_v38  ;;  %4910 = vrot.lane.b32.xlu1 %v4708_v32, %s12527_s0  ;;  %v11926_v32 = vld [vmem:[%s17509_s1 + $0x230] sm:$0xff]  }
 0x1b2   :  { %v4323_v43 = vmax.f32 %v2799_v39, 0.0  ;;  %11498 = vmatprep.mubr.msk.bf16.mxu0 %vm2060_vm0, %v11924_v36 }
 0x1b3   :  { %v4711_v18 = vpack.c.bf16 %v4325_v20, %v4324_v33 }
 0x1b4   :  { %v11392_v44 = vpop.f32.mrb[28].mxu0  ;;  %v4710_v21 = vpack.c.bf16 %v4323_v43, %v4322_v47 }
 0x1b5   :  { %v2820_v19 = vadd.f32 %v11392_v44, %v14155_v34  ;;  %v2811_v26 = vpop.f32.mrb[29].mxu0  ;;  %4916 = vrot.lane.b32.xlu1 %v4711_v18, %s12527_s0 }
 0x1b6   :  { %v2812_v38 = vadd.f32 %v14155_v34, %v2811_v26  ;;  %v11393_v31 = vpop.f32.mrb[30].mxu0 }
 0x1b7   :  { %v2823_v27 = vadd.f32 %v11393_v31, %v14155_v34  ;;  %v2814_v36 = vpop.f32.mrb[31].mxu0  ;;  %v4328_v29 = vmax.f32 %v2820_v19, 0.0  ;;  %v11927_v19 = vld [vmem:[%s17509_s1 + $0x238] sm:$0xff]  }
 0x1b8   :  { %v2815_v28 = vadd.f32 %v14155_v34, %v2814_v36  ;;  %v4326_v33 = vmax.f32 %v2812_v38, 0.0 }
 0x1b9   :  { %v4329_v39 = vmax.f32 %v2823_v27, 0.0  ;;  %11499 = vmatmul.mubr.msk.bf16.gmra.mrb[136].mxu0 %vm2060_vm0, %v11925_v35  ;;  %4914 = vrot.lane.b32.xlu1 %v4710_v21, %s12527_s0  ;;  %v11928_v21 = vld [vmem:[%s17509_s1 + $0x240] sm:$0xff]  }
 0x1ba   :  { %v4327_v20 = vmax.f32 %v2815_v28, 0.0  ;;  %11502 = vmatprep.mubr.msk.bf16.mxu0 %vm2060_vm0, %v11926_v32 }
 0x1bb   :  { %v4713_v26 = vpack.c.bf16 %v4329_v39, %v4328_v29 }
 0x1bc   :  { %v11396_v47 = vpop.f32.mrb[32].mxu0  ;;  %v4712_v43 = vpack.c.bf16 %v4327_v20, %v4326_v33 }
 0x1bd   :  { %v2836_v18 = vadd.f32 %v11396_v47, %v14155_v34  ;;  %v2827_v44 = vpop.f32.mrb[33].mxu0  ;;  %4920 = vrot.lane.b32.xlu1 %v4713_v26, %s12527_s0 }
 0x1be   :  { %v2828_v35 = vadd.f32 %v14155_v34, %v2827_v44  ;;  %v11397_v31 = vpop.f32.mrb[34].mxu0 }
 0x1bf   :  { %v2839_v38 = vadd.f32 %v11397_v31, %v14155_v34  ;;  %v2830_v32 = vpop.f32.mrb[35].mxu0  ;;  %v4332_v36 = vmax.f32 %v2836_v18, 0.0  ;;  %v11929_v18 = vld [vmem:[%s17509_s1 + $0x248] sm:$0xff]  }
 0x1c0   :  { %v2831_v27 = vadd.f32 %v14155_v34, %v2830_v32  ;;  %v4330_v29 = vmax.f32 %v2828_v35, 0.0  ;;  %v11930_v35 = vld [vmem:[%s17509_s1 + $0x250] sm:$0xff]  }
 0x1c1   :  { %v4333_v28 = vmax.f32 %v2839_v38, 0.0  ;;  %11503 = vmatmul.mubr.msk.bf16.gmra.mrb[140].mxu0 %vm2060_vm0, %v11927_v19  ;;  %4918 = vrot.lane.b32.xlu1 %v4712_v43, %s12527_s0 }
 0x1c2   :  { %v4331_v39 = vmax.f32 %v2831_v27, 0.0  ;;  %11506 = vmatprep.mubr.msk.bf16.mxu0 %vm2060_vm0, %v11928_v21 }
 0x1c3   :  { %v4715_v33 = vpack.c.bf16 %v4333_v28, %v4332_v36 }
 0x1c4   :  { %v11400_v20 = vpop.f32.mrb[36].mxu0  ;;  %v4714_v26 = vpack.c.bf16 %v4331_v39, %v4330_v29 }
 0x1c5   :  { %v2852_v47 = vadd.f32 %v11400_v20, %v14155_v34  ;;  %v2843_v44 = vpop.f32.mrb[37].mxu0  ;;  %4932 = vrot.lane.b32.xlu1 %v4715_v33, %s12528_s19 }
 0x1c6   :  { %v2844_v19 = vadd.f32 %v14155_v34, %v2843_v44  ;;  %v11401_v43 = vpop.f32.mrb[38].mxu0 }
 0x1c7   :  { %v2855_v31 = vadd.f32 %v11401_v43, %v14155_v34  ;;  %v2846_v21 = vpop.f32.mrb[39].mxu0  ;;  %v4336_v32 = vmax.f32 %v2852_v47, 0.0  ;;  %v11931_v47 = vld [vmem:[%s17509_s1 + $0x258] sm:$0xff]  }
 0x1c8   :  { %v2847_v38 = vadd.f32 %v14155_v34, %v2846_v21  ;;  %v4334_v36 = vmax.f32 %v2844_v19, 0.0 }
 0x1c9   :  { %v4337_v27 = vmax.f32 %v2855_v31, 0.0  ;;  %11507 = vmatmul.mubr.msk.bf16.gmra.mrb[144].mxu0 %vm2060_vm0, %v11929_v18  ;;  %4930 = vrot.lane.b32.xlu1 %v4714_v26, %s12528_s19  ;;  %v11932_v26 = vld [vmem:[%s17509_s1 + $0x260] sm:$0xff]  }
 0x1ca   :  { %v4335_v28 = vmax.f32 %v2847_v38, 0.0  ;;  %11510 = vmatprep.mubr.msk.bf16.mxu0 %vm2060_vm0, %v11930_v35 }
 0x1cb   :  { %v4717_v29 = vpack.c.bf16 %v4337_v27, %v4336_v32 }
 0x1cc   :  { %v11404_v39 = vpop.f32.mrb[40].mxu0  ;;  %v4716_v33 = vpack.c.bf16 %v4335_v28, %v4334_v36 }
 0x1cd   :  { %v2868_v20 = vadd.f32 %v11404_v39, %v14155_v34  ;;  %v2859_v44 = vpop.f32.mrb[41].mxu0  ;;  %4936 = vrot.lane.b32.xlu1 %v4717_v29, %s12528_s19 }
 0x1ce   :  { %v2860_v18 = vadd.f32 %v14155_v34, %v2859_v44  ;;  %v11405_v43 = vpop.f32.mrb[42].mxu0 }
 0x1cf   :  { %v2871_v19 = vadd.f32 %v11405_v43, %v14155_v34  ;;  %v2862_v35 = vpop.f32.mrb[43].mxu0  ;;  %v4340_v21 = vmax.f32 %v2868_v20, 0.0  ;;  %v11933_v20 = vld [vmem:[%s17509_s1 + $0x268] sm:$0xff]  }
 0x1d0   :  { %v2863_v31 = vadd.f32 %v14155_v34, %v2862_v35  ;;  %v4338_v32 = vmax.f32 %v2860_v18, 0.0 }
 0x1d1   :  { %v4341_v38 = vmax.f32 %v2871_v19, 0.0  ;;  %11511 = vmatmul.mubr.msk.bf16.gmra.mrb[148].mxu0 %vm2060_vm0, %v11931_v47  ;;  %4934 = vrot.lane.b32.xlu1 %v4716_v33, %s12528_s19  ;;  %v11934_v33 = vld [vmem:[%s17509_s1 + $0x270] sm:$0xff]  }
 0x1d2   :  { %v4339_v27 = vmax.f32 %v2863_v31, 0.0  ;;  %11514 = vmatprep.mubr.msk.bf16.mxu0 %vm2060_vm0, %v11932_v26 }
 0x1d3   :  { %v4719_v36 = vpack.c.bf16 %v4341_v38, %v4340_v21 }
 0x1d4   :  { %v11408_v28 = vpop.f32.mrb[44].mxu0  ;;  %v4718_v29 = vpack.c.bf16 %v4339_v27, %v4338_v32 }
 0x1d5   :  { %v2884_v39 = vadd.f32 %v11408_v28, %v14155_v34  ;;  %v2875_v44 = vpop.f32.mrb[45].mxu0  ;;  %4940 = vrot.lane.b32.xlu1 %v4719_v36, %s12528_s19 }
 0x1d6   :  { %v2876_v47 = vadd.f32 %v14155_v34, %v2875_v44  ;;  %v11409_v43 = vpop.f32.mrb[46].mxu0 }
 0x1d7   :  { %v2887_v18 = vadd.f32 %v11409_v43, %v14155_v34  ;;  %v2878_v26 = vpop.f32.mrb[47].mxu0  ;;  %v4344_v35 = vmax.f32 %v2884_v39, 0.0  ;;  %v11935_v39 = vld [vmem:[%s17509_s1 + $0x278] sm:$0xff]  }
 0x1d8   :  { %v2879_v19 = vadd.f32 %v14155_v34, %v2878_v26  ;;  %v4342_v21 = vmax.f32 %v2876_v47, 0.0 }
 0x1d9   :  { %v4345_v31 = vmax.f32 %v2887_v18, 0.0  ;;  %11515 = vmatmul.mubr.msk.bf16.gmra.mrb[152].mxu0 %vm2060_vm0, %v11933_v20  ;;  %4938 = vrot.lane.b32.xlu1 %v4718_v29, %s12528_s19  ;;  %v11936_v29 = vld [vmem:[%s17509_s1 + $0x280] sm:$0xff]  }
 0x1da   :  { %v4343_v38 = vmax.f32 %v2879_v19, 0.0  ;;  %11518 = vmatprep.mubr.msk.bf16.mxu0 %vm2060_vm0, %v11934_v33 }
 0x1db   :  { %v4721_v32 = vpack.c.bf16 %v4345_v31, %v4344_v35 }
 0x1dc   :  { %v11412_v27 = vpop.f32.mrb[48].mxu0  ;;  %v4720_v36 = vpack.c.bf16 %v4343_v38, %v4342_v21 }
 0x1dd   :  { %v2900_v28 = vadd.f32 %v11412_v27, %v14155_v34  ;;  %v2891_v44 = vpop.f32.mrb[49].mxu0  ;;  %4944 = vrot.lane.b32.xlu1 %v4721_v32, %s12528_s19 }
 0x1de   :  { %v2892_v20 = vadd.f32 %v14155_v34, %v2891_v44  ;;  %v11413_v43 = vpop.f32.mrb[50].mxu0 }
 0x1df   :  { %v2903_v47 = vadd.f32 %v11413_v43, %v14155_v34  ;;  %v2894_v33 = vpop.f32.mrb[51].mxu0  ;;  %v4348_v26 = vmax.f32 %v2900_v28, 0.0  ;;  %v11937_v28 = vld [vmem:[%s17509_s1 + $0x288] sm:$0xff]  }
 0x1e0   :  { %v2895_v18 = vadd.f32 %v14155_v34, %v2894_v33  ;;  %v4346_v35 = vmax.f32 %v2892_v20, 0.0  ;;  %v11938_v20 = vld [vmem:[%s17509_s1 + $0x290] sm:$0xff]  }
 0x1e1   :  { %v4349_v19 = vmax.f32 %v2903_v47, 0.0  ;;  %11519 = vmatmul.mubr.msk.bf16.gmra.mrb[156].mxu0 %vm2060_vm0, %v11935_v39  ;;  %4942 = vrot.lane.b32.xlu1 %v4720_v36, %s12528_s19 }
 0x1e2   :  { %v4347_v31 = vmax.f32 %v2895_v18, 0.0  ;;  %11522 = vmatprep.mubr.msk.bf16.mxu0 %vm2060_vm0, %v11936_v29 }
 0x1e3   :  { %v4723_v21 = vpack.c.bf16 %v4349_v19, %v4348_v26 }
 0x1e4   :  { %v11416_v38 = vpop.f32.mrb[52].mxu0  ;;  %v4722_v32 = vpack.c.bf16 %v4347_v31, %v4346_v35 }
 0x1e5   :  { %v2916_v27 = vadd.f32 %v11416_v38, %v14155_v34  ;;  %v2907_v44 = vpop.f32.mrb[53].mxu0  ;;  %4956 = vrot.lane.b32.xlu1 %v4723_v21, %s12529_s8 }
 0x1e6   :  { %v2908_v39 = vadd.f32 %v14155_v34, %v2907_v44  ;;  %v11417_v36 = vpop.f32.mrb[54].mxu0 }
 0x1e7   :  { %v2919_v43 = vadd.f32 %v11417_v36, %v14155_v34  ;;  %v2910_v29 = vpop.f32.mrb[55].mxu0  ;;  %v4352_v33 = vmax.f32 %v2916_v27, 0.0  ;;  %v11939_v27 = vld [vmem:[%s17509_s1 + $0x298] sm:$0xff]  }
 0x1e8   :  { %v2911_v47 = vadd.f32 %v14155_v34, %v2910_v29  ;;  %v4350_v26 = vmax.f32 %v2908_v39, 0.0 }
 0x1e9   :  { %v4353_v18 = vmax.f32 %v2919_v43, 0.0  ;;  %11523 = vmatmul.mubr.msk.bf16.gmra.mrb[160].mxu0 %vm2060_vm0, %v11937_v28  ;;  %4954 = vrot.lane.b32.xlu1 %v4722_v32, %s12529_s8  ;;  %v11940_v32 = vld [vmem:[%s17509_s1 + $0x2a0] sm:$0xff]  }
 0x1ea   :  { %v4351_v19 = vmax.f32 %v2911_v47, 0.0  ;;  %11526 = vmatprep.mubr.msk.bf16.mxu0 %vm2060_vm0, %v11938_v20 }
 0x1eb   :  { %v4725_v35 = vpack.c.bf16 %v4353_v18, %v4352_v33 }
 0x1ec   :  { %v11420_v31 = vpop.f32.mrb[56].mxu0  ;;  %v4724_v21 = vpack.c.bf16 %v4351_v19, %v4350_v26 }
 0x1ed   :  { %v2932_v38 = vadd.f32 %v11420_v31, %v14155_v34  ;;  %v2923_v44 = vpop.f32.mrb[57].mxu0  ;;  %4960 = vrot.lane.b32.xlu1 %v4725_v35, %s12529_s8 }
 0x1ee   :  { %v2924_v28 = vadd.f32 %v14155_v34, %v2923_v44  ;;  %v11421_v36 = vpop.f32.mrb[58].mxu0 }
 0x1ef   :  { %v2935_v39 = vadd.f32 %v11421_v36, %v14155_v34  ;;  %v2926_v20 = vpop.f32.mrb[59].mxu0  ;;  %v4356_v29 = vmax.f32 %v2932_v38, 0.0  ;;  %v11941_v38 = vld [vmem:[%s17509_s1 + $0x2a8] sm:$0xff]  }
 0x1f0   :  { %v2927_v43 = vadd.f32 %v14155_v34, %v2926_v20  ;;  %v4354_v33 = vmax.f32 %v2924_v28, 0.0 }
 0x1f1   :  { %v4357_v47 = vmax.f32 %v2935_v39, 0.0  ;;  %11527 = vmatmul.mubr.msk.bf16.gmra.mrb[164].mxu0 %vm2060_vm0, %v11939_v27  ;;  %4958 = vrot.lane.b32.xlu1 %v4724_v21, %s12529_s8  ;;  %v11942_v21 = vld [vmem:[%s17509_s1 + $0x2b0] sm:$0xff]  }
 0x1f2   :  { %v4355_v18 = vmax.f32 %v2927_v43, 0.0  ;;  %11530 = vmatprep.mubr.msk.bf16.mxu0 %vm2060_vm0, %v11940_v32 }
 0x1f3   :  { %v4727_v26 = vpack.c.bf16 %v4357_v47, %v4356_v29 }
 0x1f4   :  { %v11424_v19 = vpop.f32.mrb[60].mxu0  ;;  %v4726_v35 = vpack.c.bf16 %v4355_v18, %v4354_v33 }
 0x1f5   :  { %v2948_v31 = vadd.f32 %v11424_v19, %v14155_v34  ;;  %v2939_v44 = vpop.f32.mrb[61].mxu0  ;;  %4964 = vrot.lane.b32.xlu1 %v4727_v26, %s12529_s8 }
 0x1f6   :  { %v2940_v27 = vadd.f32 %v14155_v34, %v2939_v44  ;;  %v11425_v36 = vpop.f32.mrb[62].mxu0 }
 0x1f7   :  { %v2951_v28 = vadd.f32 %v11425_v36, %v14155_v34  ;;  %v2942_v32 = vpop.f32.mrb[63].mxu0  ;;  %v4360_v20 = vmax.f32 %v2948_v31, 0.0  ;;  %v11943_v31 = vld [vmem:[%s17509_s1 + $0x2b8] sm:$0xff]  }
 0x1f8   :  { %v2943_v39 = vadd.f32 %v14155_v34, %v2942_v32  ;;  %v4358_v29 = vmax.f32 %v2940_v27, 0.0 }
 0x1f9   :  { %v4361_v43 = vmax.f32 %v2951_v28, 0.0  ;;  %11531 = vmatmul.mubr.msk.bf16.gmra.mrb[168].mxu0 %vm2060_vm0, %v11941_v38  ;;  %4962 = vrot.lane.b32.xlu1 %v4726_v35, %s12529_s8  ;;  %v11944_v35 = vld [vmem:[%s17509_s1 + $0x2c0] sm:$0xff]  }
 0x1fa   :  { %v4359_v47 = vmax.f32 %v2943_v39, 0.0  ;;  %11534 = vmatprep.mubr.msk.bf16.mxu0 %vm2060_vm0, %v11942_v21 }
 0x1fb   :  { %v4729_v33 = vpack.c.bf16 %v4361_v43, %v4360_v20 }
 0x1fc   :  { %v11428_v18 = vpop.f32.mrb[64].mxu0  ;;  %v4728_v26 = vpack.c.bf16 %v4359_v47, %v4358_v29 }
 0x1fd   :  { %v2964_v19 = vadd.f32 %v11428_v18, %v14155_v34  ;;  %v2955_v44 = vpop.f32.mrb[65].mxu0  ;;  %4968 = vrot.lane.b32.xlu1 %v4729_v33, %s12529_s8 }
 0x1fe   :  { %v2956_v38 = vadd.f32 %v14155_v34, %v2955_v44  ;;  %v11429_v36 = vpop.f32.mrb[66].mxu0 }
 0x1ff   :  { %v2967_v27 = vadd.f32 %v11429_v36, %v14155_v34  ;;  %v2958_v21 = vpop.f32.mrb[67].mxu0  ;;  %v4364_v32 = vmax.f32 %v2964_v19, 0.0  ;;  %v11945_v19 = vld [vmem:[%s17509_s1 + $0x2c8] sm:$0xff]  }
 0x200   :  { %v2959_v28 = vadd.f32 %v14155_v34, %v2958_v21  ;;  %v4362_v20 = vmax.f32 %v2956_v38, 0.0 }
 0x201   :  { %v4365_v39 = vmax.f32 %v2967_v27, 0.0  ;;  %11535 = vmatmul.mubr.msk.bf16.gmra.mrb[172].mxu0 %vm2060_vm0, %v11943_v31  ;;  %4966 = vrot.lane.b32.xlu1 %v4728_v26, %s12529_s8  ;;  %v11946_v26 = vld [vmem:[%s17509_s1 + $0x2d0] sm:$0xff]  }
 0x202   :  { %v4363_v43 = vmax.f32 %v2959_v28, 0.0  ;;  %11538 = vmatprep.mubr.msk.bf16.mxu0 %vm2060_vm0, %v11944_v35 }
 0x203   :  { %v14403_v29 = vpack.c.bf16 %v4365_v39, %v4364_v32 }
 0x204   :  { %v14405_v47 = vpack.c.bf16 %v4363_v43, %v4362_v20  ;;  %v11432_v33 = vpop.f32.mrb[68].mxu0 }
 0x205   :  { %v2980_v18 = vadd.f32 %v11432_v33, %v14155_v34  ;;  %v2971_v44 = vpop.f32.mrb[69].mxu0 }
 0x206   :  { %v2972_v31 = vadd.f32 %v14155_v34, %v2971_v44  ;;  %v11433_v36 = vpop.f32.mrb[70].mxu0 }
 0x207   :  { %v2983_v38 = vadd.f32 %v11433_v36, %v14155_v34  ;;  %v2974_v35 = vpop.f32.mrb[71].mxu0  ;;  %v4368_v21 = vmax.f32 %v2980_v18, 0.0  ;;  %v11947_v36 = vld [vmem:[%s17509_s1 + $0x2d8] sm:$0xff]  }
 0x208   :  { %v2975_v27 = vadd.f32 %v14155_v34, %v2974_v35  ;;  %v4366_v32 = vmax.f32 %v2972_v31, 0.0 }
 0x209   :  { %v4369_v28 = vmax.f32 %v2983_v38, 0.0  ;;  %11539 = vmatmul.mubr.msk.bf16.gmra.mrb[176].mxu0 %vm2060_vm0, %v11945_v19  ;;  %v11948_v19 = vld [vmem:[%s17509_s1 + $0x2e0] sm:$0xff]  }
 0x20a   :  { %v4367_v39 = vmax.f32 %v2975_v27, 0.0  ;;  %11542 = vmatprep.mubr.msk.bf16.mxu0 %vm2060_vm0, %v11946_v26 }
 0x20b   :  { %v14419_v20 = vpack.c.bf16 %v4369_v28, %v4368_v21 }
 0x20c   :  { %v14421_v43 = vpack.c.bf16 %v4367_v39, %v4366_v32  ;;  %v11436_v33 = vpop.f32.mrb[72].mxu0 }
 0x20d   :  { %v2996_v44 = vadd.f32 %v11436_v33, %v14155_v34  ;;  %v2987_v17 = vpop.f32.mrb[73].mxu0 }
 0x20e   :  { %v2988_v18 = vadd.f32 %v14155_v34, %v2987_v17  ;;  %v11437_v38 = vpop.f32.mrb[74].mxu0 }
 0x20f   :  { %v2999_v31 = vadd.f32 %v11437_v38, %v14155_v34  ;;  %v2990_v26 = vpop.f32.mrb[75].mxu0  ;;  %v4372_v27 = vmax.f32 %v2996_v44, 0.0  ;;  %v14442_v38 = vld [vmem:[%s17236_s6] ss:$0 sm:$0xff] }
 0x210   :  { %v2991_v35 = vadd.f32 %v14155_v34, %v2990_v26  ;;  %v4370_v28 = vmax.f32 %v2988_v18, 0.0 }
 0x211   :  { %v4373_v21 = vmax.f32 %v2999_v31, 0.0  ;;  %11543 = vmatmul.mubr.msk.bf16.gmra.mrb[180].mxu0 %vm2060_vm0, %v11947_v36  ;;  %v11949_v36 = vld [vmem:[%s17509_s1 + $0x2e8] sm:$0xff]   ;;  %v11950_v31 = vld [vmem:[%s17509_s1 + $0x2f0] sm:$0xff]  }
 0x212   :  { %v4371_v32 = vmax.f32 %v2991_v35, 0.0  ;;  %11546 = vmatprep.mubr.msk.bf16.mxu0 %vm2060_vm0, %v11948_v19 }
 0x213   :  { %v14435_v39 = vpack.c.bf16 %v4373_v21, %v4372_v27 }
 0x214   :  { %v14437_v17 = vpack.c.bf16 %v4371_v32, %v4370_v28  ;;  %v11440_v33 = vpop.f32.mrb[76].mxu0 }
 0x215   :  { %v3012_v34 = vadd.f32 %v14442_v38, %v11440_v33  ;;  %v3003_v44 = vpop.f32.mrb[77].mxu0 }
 0x216   :  { %v3004_v18 = vadd.f32 %v14442_v38, %v3003_v44  ;;  %v11441_v19 = vpop.f32.mrb[78].mxu0 }
 0x217   :  { %v3015_v26 = vadd.f32 %v14442_v38, %v11441_v19  ;;  %v3006_v35 = vpop.f32.mrb[79].mxu0  ;;  %v4376_v21 = vmax.f32 %v3012_v34, 0.0  ;;  %v11951_v19 = vld [vmem:[%s17509_s1 + $0x2f8] sm:$0xff]  }
 0x218   :  { %v3007_v27 = vadd.f32 %v14442_v38, %v3006_v35  ;;  %v4374_v32 = vmax.f32 %v3004_v18, 0.0 }
 0x219   :  { %v4377_v28 = vmax.f32 %v3015_v26, 0.0  ;;  %11547 = vmatmul.mubr.msk.bf16.gmra.mrb[184].mxu0 %vm2060_vm0, %v11949_v36  ;;  %v11952_v36 = vld [vmem:[%s17509_s1 + $0x300] sm:$0xff]  }
 0x21a   :  { %v4375_v33 = vmax.f32 %v3007_v27, 0.0  ;;  %11550 = vmatprep.mubr.msk.bf16.mxu0 %vm2060_vm0, %v11950_v31 }
 0x21b   :  { %v14456_v25 = vpack.c.bf16 %v4377_v28, %v4376_v21 }
 0x21c   :  { %v14458_v44 = vpack.c.bf16 %v4375_v33, %v4374_v32  ;;  %v11444_v16 = vpop.f32.mrb[80].mxu0 }
 0x21d   :  { %17511 = vst [vmem:[#allocation270_spill] sm:$0xff] %v14456_v25  ;;  %v3028_v37 = vadd.f32 %v14442_v38, %v11444_v16  ;;  %v3019_v24 = vpop.f32.mrb[81].mxu0  ;;  %v14895_v25 = vld [vmem:[%s17236_s6] ss:$0 sm:$0xff] }
 0x21e   :  { %v3020_v34 = vadd.f32 %v14442_v38, %v3019_v24  ;;  %v11445_v26 = vpop.f32.mrb[82].mxu0 }
 0x21f   :  { %v3031_v18 = vadd.f32 %v14442_v38, %v11445_v26  ;;  %v3022_v31 = vpop.f32.mrb[83].mxu0  ;;  %v4380_v27 = vmax.f32 %v3028_v37, 0.0  ;;  %v11953_v26 = vld [vmem:[%s17509_s1 + $0x308] sm:$0xff]  }
 0x220   :  { %v3023_v35 = vadd.f32 %v14442_v38, %v3022_v31  ;;  %v4378_v16 = vmax.f32 %v3020_v34, 0.0 }
 0x221   :  { %v4381_v21 = vmax.f32 %v3031_v18, 0.0  ;;  %11551 = vmatmul.mubr.msk.bf16.gmra.mrb[188].mxu0 %vm2060_vm0, %v11951_v19  ;;  %v11954_v19 = vld [vmem:[%s17509_s1 + $0x310] sm:$0xff]  }
 0x222   :  { %v4379_v28 = vmax.f32 %v3023_v35, 0.0  ;;  %11554 = vmatprep.mubr.msk.bf16.mxu0 %vm2060_vm0, %v11952_v36 }
 0x223   :  { %v4739_v32 = vpack.c.bf16 %v4381_v21, %v4380_v27 }
 0x224   :  { %v11448_v24 = vpop.f32.mrb[84].mxu0  ;;  %v4738_v33 = vpack.c.bf16 %v4379_v28, %v4378_v16 }
 0x225   :  { %v3044_v60 = vadd.f32 %v14442_v38, %v11448_v24  ;;  %v3035_v7 = vpop.f32.mrb[85].mxu0  ;;  %4980 = vrot.lane.b32.xlu0 %v4739_v32, %s12527_s0 }
 0x226   :  { %v3036_v37 = vadd.f32 %v14442_v38, %v3035_v7  ;;  %v11449_v18 = vpop.f32.mrb[86].mxu0 }
 0x227   :  { %v3047_v34 = vadd.f32 %v14442_v38, %v11449_v18  ;;  %v3038_v36 = vpop.f32.mrb[87].mxu0  ;;  %v4384_v35 = vmax.f32 %v3044_v60, 0.0  ;;  %v11955_v60 = vld [vmem:[%s17509_s1 + $0x318] sm:$0xff]  }
 0x228   :  { %v3039_v31 = vadd.f32 %v14442_v38, %v3038_v36  ;;  %v4382_v21 = vmax.f32 %v3036_v37, 0.0 }
 0x229   :  { %v4385_v27 = vmax.f32 %v3047_v34, 0.0  ;;  %11555 = vmatmul.mubr.msk.bf16.gmra.mrb[192].mxu0 %vm2060_vm0, %v11953_v26  ;;  %4978 = vrot.lane.b32.xlu0 %v4738_v33, %s12527_s0  ;;  %v11956_v33 = vld [vmem:[%s17509_s1 + $0x320] sm:$0xff]  }
 0x22a   :  { %v4383_v16 = vmax.f32 %v3039_v31, 0.0  ;;  %11558 = vmatprep.mubr.msk.bf16.mxu0 %vm2060_vm0, %v11954_v19 }
 0x22b   :  { %v4741_v7 = vpack.c.bf16 %v4385_v27, %v4384_v35 }
 0x22c   :  { %v11452_v28 = vpop.f32.mrb[88].mxu0  ;;  %v4740_v32 = vpack.c.bf16 %v4383_v16, %v4382_v21 }
 0x22d   :  { %v3060_v24 = vadd.f32 %v14442_v38, %v11452_v28  ;;  %v3051_v56 = vpop.f32.mrb[89].mxu0  ;;  %4984 = vrot.lane.b32.xlu0 %v4741_v7, %s12527_s0 }
 0x22e   :  { %v3052_v26 = vadd.f32 %v14442_v38, %v3051_v56  ;;  %v11453_v18 = vpop.f32.mrb[90].mxu0 }
 0x22f   :  { %v3063_v37 = vadd.f32 %v14442_v38, %v11453_v18  ;;  %v3054_v19 = vpop.f32.mrb[91].mxu0  ;;  %v4388_v36 = vmax.f32 %v3060_v24, 0.0  ;;  %v11957_v24 = vld [vmem:[%s17509_s1 + $0x328] sm:$0xff]  }
 0x230   :  { %v3055_v34 = vadd.f32 %v14442_v38, %v3054_v19  ;;  %v4386_v35 = vmax.f32 %v3052_v26, 0.0 }
 0x231   :  { %v4389_v31 = vmax.f32 %v3063_v37, 0.0  ;;  %11559 = vmatmul.mubr.msk.bf16.gmra.mrb[196].mxu0 %vm2060_vm0, %v11955_v60  ;;  %4982 = vrot.lane.b32.xlu0 %v4740_v32, %s12527_s0  ;;  %v11958_v32 = vld [vmem:[%s17509_s1 + $0x330] sm:$0xff]  }
 0x232   :  { %v4387_v27 = vmax.f32 %v3055_v34, 0.0  ;;  %11562 = vmatprep.mubr.msk.bf16.mxu0 %vm2060_vm0, %v11956_v33 }
 0x233   :  { %v4743_v56 = vpack.c.bf16 %v4389_v31, %v4388_v36 }
 0x234   :  { %v11456_v21 = vpop.f32.mrb[92].mxu0  ;;  %v4742_v16 = vpack.c.bf16 %v4387_v27, %v4386_v35 }
 0x235   :  { %v3076_v7 = vadd.f32 %v14442_v38, %v11456_v21  ;;  %v3067_v28 = vpop.f32.mrb[93].mxu0  ;;  %4988 = vrot.lane.b32.xlu0 %v4743_v56, %s12527_s0  ;;  %v11990_v21 = vld [vmem:[%s17237_s7 + $0x40] sm:$0xff]  }
 0x236   :  { %v3068_v60 = vadd.f32 %v14442_v38, %v3067_v28  ;;  %v11457_v18 = vpop.f32.mrb[94].mxu0  ;;  %10716 = vmatprep.subr.bf16.mxu1 %v11990_v21 }
 0x237   :  { %v3079_v26 = vadd.f32 %v14442_v38, %v11457_v18  ;;  %v3070_v33 = vpop.f32.mrb[95].mxu0  ;;  %v4392_v19 = vmax.f32 %v3076_v7, 0.0  ;;  %v11991_v7 = vld [vmem:[%s17237_s7] sm:$0xff]  }
 0x238   :  { %v3071_v37 = vadd.f32 %v14442_v38, %v3070_v33  ;;  %v4390_v36 = vmax.f32 %v3068_v60, 0.0  ;;  %10717 = vmatpush3.bf16.msra.mxu1 %v11991_v7 }
 0x239   :  { %v4393_v34 = vmax.f32 %v3079_v26, 0.0  ;;  %11563 = vmatmul.mubr.msk.bf16.gmra.mrb[200].mxu0 %vm2060_vm0, %v11957_v24  ;;  %4986 = vrot.lane.b32.xlu0 %v4742_v16, %s12527_s0  ;;  %v11959_v16 = vld [vmem:[%s17509_s1 + $0x338] sm:$0xff]  }
 0x23a   :  { %v4391_v31 = vmax.f32 %v3071_v37, 0.0  ;;  %11566 = vmatprep.mubr.msk.bf16.mxu0 %vm2060_vm0, %v11958_v32  ;;  %v11960_v32 = vld [vmem:[%s17509_s1 + $0x340] sm:$0xff]  }
 0x23b   :  { %v4745_v35 = vpack.c.bf16 %v4393_v34, %v4392_v19  ;;  %v11994_v19 = vld [vmem:[%s17237_s7 + $0x48] sm:$0xff]  }
 0x23c   :  { %v11460_v27 = vpop.f32.mrb[96].mxu0  ;;  %v4744_v56 = vpack.c.bf16 %v4391_v31, %v4390_v36  ;;  %v11995_v31 = vld [vmem:[%s17237_s7 + $0x8] sm:$0xff]   ;;  %10718 = vmatprep.subr.bf16.mxu1 %v11994_v19 }
 0x23d   :  { %v3092_v28 = vadd.f32 %v14442_v38, %v11460_v27  ;;  %v3083_v18 = vpop.f32.mrb[97].mxu0  ;;  %4992 = vrot.lane.b32.xlu0 %v4745_v35, %s12527_s0  ;;  %10719 = vmatpush3.bf16.msra.mxu1 %v11995_v31 }
 0x23e   :  { %v3084_v24 = vadd.f32 %v14442_v38, %v3083_v18  ;;  %v11461_v60 = vpop.f32.mrb[98].mxu0 }
 0x23f   :  { %v3095_v26 = vadd.f32 %v14442_v38, %v11461_v60  ;;  %v3086_v33 = vpop.f32.mrb[99].mxu0  ;;  %v4396_v34 = vmax.f32 %v3092_v28, 0.0  ;;  %v11996_v28 = vld [vmem:[%s17237_s7 + $0x50] sm:$0xff]  }
 0x240   :  { %v3087_v37 = vadd.f32 %v14442_v38, %v3086_v33  ;;  %v4394_v35 = vmax.f32 %v3084_v24, 0.0  ;;  %v11961_v24 = vld [vmem:[%s17509_s1 + $0x348] sm:$0xff]   ;;  %v11997_v60 = vld [vmem:[%s17237_s7 + $0x10] sm:$0xff]   ;;  %10720 = vmatprep.subr.bf16.mxu1 %v11996_v28 }
 0x241   :  { %v4397_v36 = vmax.f32 %v3095_v26, 0.0  ;;  %11567 = vmatmul.mubr.msk.bf16.gmra.mrb[204].mxu0 %vm2060_vm0, %v11959_v16  ;;  %4990 = vrot.lane.b32.xlu0 %v4744_v56, %s12527_s0  ;;  %v11962_v33 = vld [vmem:[%s17509_s1 + $0x350] sm:$0xff]  }
 0x242   :  { %v4395_v27 = vmax.f32 %v3087_v37, 0.0  ;;  %11570 = vmatprep.mubr.msk.bf16.mxu0 %vm2060_vm0, %v11960_v32  ;;  %10721 = vmatpush3.bf16.msra.mxu1 %v11997_v60 }
 0x243   :  { %v4747_v21 = vpack.c.bf16 %v4397_v36, %v4396_v34  ;;  %v12000_v36 = vld [vmem:[%s17237_s7 + $0x58] sm:$0xff]  }
 0x244   :  { %v11464_v18 = vpop.f32.mrb[100].mxu0  ;;  %v4746_v7 = vpack.c.bf16 %v4395_v27, %v4394_v35  ;;  %v12001_v27 = vld [vmem:[%s17237_s7 + $0x18] sm:$0xff]   ;;  %10722 = vmatprep.subr.bf16.mxu1 %v12000_v36 }
 0x245   :  { %v3108_v16 = vadd.f32 %v14442_v38, %v11464_v18  ;;  %v3099_v56 = vpop.f32.mrb[101].mxu0  ;;  %5004 = vrot.lane.b32.xlu0 %v4747_v21, %s12528_s19 }
 0x246   :  { %v3100_v32 = vadd.f32 %v14442_v38, %v3099_v56  ;;  %v11465_v26 = vpop.f32.mrb[102].mxu0  ;;  %5002 = vrot.lane.b32.xlu1 %v4746_v7, %s12528_s19  ;;  %10723 = vmatpush3.bf16.msra.mxu1 %v12001_v27 }
 0x247   :  { %v3111_v37 = vadd.f32 %v14442_v38, %v11465_v26  ;;  %v3102_v19 = vpop.f32.mrb[103].mxu0  ;;  %v4400_v31 = vmax.f32 %v3108_v16, 0.0  ;;  %v12002_v16 = vld [vmem:[%s17237_s7 + $0x60] sm:$0xff]  }
 0x248   :  { %v3103_v34 = vadd.f32 %v14442_v38, %v3102_v19  ;;  %v4398_v21 = vmax.f32 %v3100_v32, 0.0  ;;  %v11963_v32 = vld [vmem:[%s17509_s1 + $0x358] sm:$0xff]   ;;  %v12003_v26 = vld [vmem:[%s17237_s7 + $0x20] sm:$0xff]   ;;  %10724 = vmatprep.subr.bf16.mxu1 %v12002_v16 }
 0x249   :  { %v4401_v35 = vmax.f32 %v3111_v37, 0.0  ;;  %11571 = vmatmul.mubr.msk.bf16.gmra.mrb[208].mxu0 %vm2060_vm0, %v11961_v24  ;;  %v11964_v19 = vld [vmem:[%s17509_s1 + $0x360] sm:$0xff]  }
 0x24a   :  { %v4399_v18 = vmax.f32 %v3103_v34, 0.0  ;;  %11574 = vmatprep.mubr.msk.bf16.mxu0 %vm2060_vm0, %v11962_v33  ;;  %10725 = vmatpush3.bf16.msra.mxu1 %v12003_v26 }
 0x24b   :  { %v4749_v7 = vpack.c.bf16 %v4401_v35, %v4400_v31  ;;  %v12006_v35 = vld [vmem:[%s17237_s7 + $0x68] sm:$0xff]  }
 0x24c   :  { %v11468_v28 = vpop.f32.mrb[104].mxu0  ;;  %v4748_v56 = vpack.c.bf16 %v4399_v18, %v4398_v21  ;;  %v12007_v18 = vld [vmem:[%s17237_s7 + $0x28] sm:$0xff]   ;;  %10726 = vmatprep.subr.bf16.mxu1 %v12006_v35  ;;  %v11966_v35 = vld [vmem:[%s17509_s1 + $0x370] sm:$0xff]  }
 0x24d   :  { %v3124_v60 = vadd.f32 %v14442_v38, %v11468_v28  ;;  %v3115_v24 = vpop.f32.mrb[105].mxu0  ;;  %5008 = vrot.lane.b32.xlu0 %v4749_v7, %s12528_s19  ;;  %v14591_v7 = vpop.permute.xlu1 %4908 }
 0x24e   :  { %v3116_v33 = vadd.f32 %v14442_v38, %v3115_v24  ;;  %v11469_v37 = vpop.f32.mrb[106].mxu0  ;;  %10727 = vmatpush3.bf16.msra.mxu1 %v12007_v18 }
 0x24f   :  { %v3127_v34 = vadd.f32 %v14442_v38, %v11469_v37  ;;  %v3118_v36 = vpop.f32.mrb[107].mxu0  ;;  %v4404_v27 = vmax.f32 %v3124_v60, 0.0 }
 0x250   :  { %v3119_v31 = vadd.f32 %v14442_v38, %v3118_v36  ;;  %v4402_v28 = vmax.f32 %v3116_v33, 0.0  ;;  %v11965_v33 = vld [vmem:[%s17509_s1 + $0x368] sm:$0xff]  }
 0x251   :  { %v4405_v21 = vmax.f32 %v3127_v34, 0.0  ;;  %11575 = vmatmul.mubr.msk.bf16.gmra.mrb[212].mxu0 %vm2060_vm0, %v11963_v32  ;;  %5006 = vrot.lane.b32.xlu0 %v4748_v56, %s12528_s19  ;;  %v12008_v32 = vld [vmem:[%s17237_s7 + $0x70] sm:$0xff]   ;;  %v14605_v34 = vpop.permute.xlu1 %4912 }
 0x252   :  { %v4403_v16 = vmax.f32 %v3119_v31, 0.0  ;;  %11578 = vmatprep.mubr.msk.bf16.mxu0 %vm2060_vm0, %v11964_v19  ;;  %v12009_v19 = vld [vmem:[%s17237_s7 + $0x30] sm:$0xff]   ;;  %10728 = vmatprep.subr.bf16.mxu1 %v12008_v32 }
 0x253   :  { %v4751_v24 = vpack.c.bf16 %v4405_v21, %v4404_v27  ;;  %10729 = vmatpush3.bf16.msra.mxu1 %v12009_v19 }
 0x254   :  { %v11472_v26 = vpop.f32.mrb[108].mxu0  ;;  %v4750_v60 = vpack.c.bf16 %v4403_v16, %v4402_v28  ;;  %v12012_v28 = vld [vmem:[%s17237_s7 + $0x78] sm:$0xff]  }
 0x255   :  { %v3140_v56 = vadd.f32 %v14442_v38, %v11472_v26  ;;  %v3131_v37 = vpop.f32.mrb[109].mxu0  ;;  %5012 = vrot.lane.b32.xlu0 %v4751_v24, %s12528_s19  ;;  %v12013_v26 = vld [vmem:[%s17237_s7 + $0x38] sm:$0xff]   ;;  %10730 = vmatprep.subr.bf16.mxu1 %v12012_v28 }
 0x256   :  { %v3132_v36 = vadd.f32 %v14442_v38, %v3131_v37  ;;  %v11473_v31 = vpop.f32.mrb[110].mxu0 }
 0x257   :  { %v3143_v27 = vadd.f32 %v14442_v38, %v11473_v31  ;;  %v3134_v21 = vpop.f32.mrb[111].mxu0  ;;  %v4408_v16 = vmax.f32 %v3140_v56, 0.0  ;;  %10731 = vmatpush3.bf16.msra.mxu1 %v12013_v26  ;;  %v14622_v31 = vpop.permute.xlu1 %4910 }
 0x258   :  { %v3135_v18 = vadd.f32 %v14442_v38, %v3134_v21  ;;  %v4406_v32 = vmax.f32 %v3132_v36, 0.0 }
 0x259   :  { %v4409_v24 = vmax.f32 %v3143_v27, 0.0  ;;  %11579 = vmatmul.mubr.msk.bf16.gmra.mrb[216].mxu0 %vm2060_vm0, %v11965_v33  ;;  %5010 = vrot.lane.b32.xlu0 %v4750_v60, %s12528_s19  ;;  %v11967_v60 = vld [vmem:[%s17509_s1 + $0x378] sm:$0xff]  }
 0x25a   :  { %v4407_v37 = vmax.f32 %v3135_v18, 0.0  ;;  %11582 = vmatprep.mubr.msk.bf16.mxu0 %vm2060_vm0, %v11966_v35  ;;  %v11968_v35 = vld [vmem:[%s17509_s1 + $0x380] sm:$0xff]  }
 0x25b   :  { %v4753_v19 = vpack.c.bf16 %v4409_v24, %v4408_v16 }
 0x25c   :  { %v11476_v21 = vpop.f32.mrb[112].mxu0  ;;  %v4752_v56 = vpack.c.bf16 %v4407_v37, %v4406_v32  ;;  %v14637_v37 = vpop.permute.xlu1 %4916 }
 0x25d   :  { %v3156_v27 = vadd.f32 %v14442_v38, %v11476_v21  ;;  %v3147_v33 = vpop.f32.mrb[113].mxu0  ;;  %5016 = vrot.lane.b32.xlu0 %v4753_v19, %s12528_s19 }
 0x25e   :  { %v3148_v36 = vadd.f32 %v14442_v38, %v3147_v33  ;;  %v11477_v18 = vpop.f32.mrb[114].mxu0 }
 0x25f   :  { %v3159_v28 = vadd.f32 %v14442_v38, %v11477_v18  ;;  %v3150_v16 = vpop.f32.mrb[115].mxu0  ;;  %v4412_v26 = vmax.f32 %v3156_v27, 0.0  ;;  %v11969_v27 = vld [vmem:[%s17509_s1 + $0x388] sm:$0xff]  }
 0x260   :  { %v3151_v24 = vadd.f32 %v14442_v38, %v3150_v16  ;;  %v4410_v19 = vmax.f32 %v3148_v36, 0.0  ;;  %v11970_v36 = vld [vmem:[%s17509_s1 + $0x390] sm:$0xff]   ;;  %v14650_v16 = vpop.permute.xlu1 %4914 }
 0x261   :  { %v4413_v32 = vmax.f32 %v3159_v28, 0.0  ;;  %11583 = vmatmul.mubr.msk.bf16.gmra.mrb[220].mxu0 %vm2060_vm0, %v11967_v60  ;;  %5014 = vrot.lane.b32.xlu0 %v4752_v56, %s12528_s19 }
 0x262   :  { %v4411_v21 = vmax.f32 %v3151_v24, 0.0  ;;  %11586 = vmatprep.mubr.msk.bf16.mxu0 %vm2060_vm0, %v11968_v35 }
 0x263   :  { %v4755_v33 = vpack.c.bf16 %v4413_v32, %v4412_v26 }
 0x264   :  { %v11480_v15 = vpop.f32.mrb[116].mxu0  ;;  %v4754_v52 = vpack.c.bf16 %v4411_v21, %v4410_v19 }
 0x265   :  { %v3172_v18 = vadd.f32 %v14442_v38, %v11480_v15  ;;  %v3163_v6 = vpop.f32.mrb[117].mxu0  ;;  %5028 = vrot.lane.b32.xlu0 %v4755_v33, %s12529_s8 }
 0x266   :  { %v3164_v56 = vadd.f32 %v14442_v38, %v3163_v6  ;;  %v11481_v60 = vpop.f32.mrb[118].mxu0 }
 0x267   :  { %v3175_v35 = vadd.f32 %v14442_v38, %v11481_v60  ;;  %v3166_v28 = vpop.f32.mrb[119].mxu0  ;;  %v4416_v24 = vmax.f32 %v3172_v18, 0.0  ;;  %v11971_v18 = vld [vmem:[%s17509_s1 + $0x398] sm:$0xff]  }
 0x268   :  { %v3167_v15 = vadd.f32 %v14442_v38, %v3166_v28  ;;  %v4414_v32 = vmax.f32 %v3164_v56, 0.0  ;;  %v11972_v56 = vld [vmem:[%s17509_s1 + $0x3a0] sm:$0xff]  }
 0x269   :  { %v4417_v26 = vmax.f32 %v3175_v35, 0.0  ;;  %11587 = vmatmul.mubr.msk.bf16.gmra.mrb[224].mxu0 %vm2060_vm0, %v11969_v27  ;;  %5026 = vrot.lane.b32.xlu0 %v4754_v52, %s12529_s8  ;;  %v14661_v35 = vpop.permute.xlu1 %4920 }
 0x26a   :  { %v4415_v6 = vmax.f32 %v3167_v15, 0.0  ;;  %11590 = vmatprep.mubr.msk.bf16.mxu0 %vm2060_vm0, %v11970_v36  ;;  %17512 = vst [vmem:[#allocation271_spill] sm:$0xff] %v14661_v35 }
 0x26b   :  { %v4757_v19 = vpack.c.bf16 %v4417_v26, %v4416_v24 }
 0x26c   :  { %v11484_v21 = vpop.f32.mrb[120].mxu0  ;;  %v4756_v33 = vpack.c.bf16 %v4415_v6, %v4414_v32 }
 0x26d   :  { %v3188_v60 = vadd.f32 %v14442_v38, %v11484_v21  ;;  %v3179_v48 = vpop.f32.mrb[121].mxu0  ;;  %5032 = vrot.lane.b32.xlu0 %v4757_v19, %s12529_s8  ;;  %v14672_v19 = vpop.permute.xlu1 %4918 }
 0x26e   :  { %v3180_v52 = vadd.f32 %v14442_v38, %v3179_v48  ;;  %v11485_v27 = vpop.f32.mrb[122].mxu0 }
 0x26f   :  { %v3191_v36 = vadd.f32 %v14442_v38, %v11485_v27  ;;  %v3182_v28 = vpop.f32.mrb[123].mxu0  ;;  %v4420_v24 = vmax.f32 %v3188_v60, 0.0  ;;  %v11973_v60 = vld [vmem:[%s17509_s1 + $0x3a8] sm:$0xff]  }
 0x270   :  { %v3183_v15 = vadd.f32 %v14442_v38, %v3182_v28  ;;  %v4418_v32 = vmax.f32 %v3180_v52, 0.0  ;;  %v11974_v52 = vld [vmem:[%s17509_s1 + $0x3b0] sm:$0xff]  }
 0x271   :  { %v4421_v26 = vmax.f32 %v3191_v36, 0.0  ;;  %11591 = vmatmul.mubr.msk.bf16.gmra.mrb[228].mxu0 %vm2060_vm0, %v11971_v18  ;;  %5030 = vrot.lane.b32.xlu0 %v4756_v33, %s12529_s8 }
 0x272   :  { %v4419_v6 = vmax.f32 %v3183_v15, 0.0  ;;  %11594 = vmatprep.mubr.msk.bf16.mxu0 %vm2060_vm0, %v11972_v56 }
 0x273   :  { %v4759_v48 = vpack.c.bf16 %v4421_v26, %v4420_v24  ;;  %v14687_v26 = vpop.permute.xlu1 %4932 }
 0x274   :  { %v11488_v21 = vpop.f32.mrb[124].mxu0  ;;  %v4758_v14 = vpack.c.bf16 %v4419_v6, %v4418_v32 }
 0x275   :  { %v3204_v27 = vadd.f32 %v14442_v38, %v11488_v21  ;;  %v3195_v61 = vpop.f32.mrb[125].mxu0  ;;  %5036 = vrot.lane.b32.xlu0 %v4759_v48, %s12529_s8 }
 0x276   :  { %v3196_v33 = vadd.f32 %v14442_v38, %v3195_v61  ;;  %v11489_v18 = vpop.f32.mrb[126].mxu0 }
 0x277   :  { %v3207_v56 = vadd.f32 %v14442_v38, %v11489_v18  ;;  %v3198_v36 = vpop.f32.mrb[127].mxu0  ;;  %v4424_v15 = vmax.f32 %v3204_v27, 0.0  ;;  %v11975_v27 = vld [vmem:[%s17509_s1 + $0x3b8] sm:$0xff]  }
 0x278   :  { %v3199_v28 = vadd.f32 %v14442_v38, %v3198_v36  ;;  %v4422_v32 = vmax.f32 %v3196_v33, 0.0  ;;  %v11976_v33 = vld [vmem:[%s17509_s1 + $0x3c0] sm:$0xff]   ;;  %v14700_v36 = vpop.permute.xlu1 %4930 }
 0x279   :  { %v4425_v24 = vmax.f32 %v3207_v56, 0.0  ;;  %11595 = vmatmul.mubr.msk.bf16.gmra.mrb[232].mxu0 %vm2060_vm0, %v11973_v60  ;;  %5034 = vrot.lane.b32.xlu0 %v4758_v14, %s12529_s8 }
 0x27a   :  { %v4423_v61 = vmax.f32 %v3199_v28, 0.0  ;;  %11598 = vmatprep.mubr.msk.bf16.mxu0 %vm2060_vm0, %v11974_v52 }
 0x27b   :  { %v4761_v6 = vpack.c.bf16 %v4425_v24, %v4424_v15 }
 0x27c   :  { %v11492_v48 = vpop.f32.mrb[128].mxu0  ;;  %v4760_v21 = vpack.c.bf16 %v4423_v61, %v4422_v32 }
 0x27d   :  { %v3220_v18 = vadd.f32 %v14442_v38, %v11492_v48  ;;  %v3211_v5 = vpop.f32.mrb[129].mxu0  ;;  %5040 = vrot.lane.b32.xlu0 %v4761_v6, %s12529_s8 }
 0x27e   :  { %v3212_v14 = vadd.f32 %v14442_v38, %v3211_v5  ;;  %v11493_v60 = vpop.f32.mrb[130].mxu0 }
 0x27f   :  { %v3223_v52 = vadd.f32 %v14442_v38, %v11493_v60  ;;  %v3214_v56 = vpop.f32.mrb[131].mxu0  ;;  %v4428_v15 = vmax.f32 %v3220_v18, 0.0  ;;  %v11977_v18 = vld [vmem:[%s17509_s1 + $0x3c8] sm:$0xff]  }
 0x280   :  { %v3215_v28 = vadd.f32 %v14442_v38, %v3214_v56  ;;  %v4426_v32 = vmax.f32 %v3212_v14, 0.0  ;;  %v11978_v14 = vld [vmem:[%s17509_s1 + $0x3d0] sm:$0xff]  }
 0x281   :  { %v4429_v24 = vmax.f32 %v3223_v52, 0.0  ;;  %11599 = vmatmul.mubr.msk.bf16.gmra.mrb[236].mxu0 %vm2060_vm0, %v11975_v27  ;;  %5038 = vrot.lane.b32.xlu0 %v4760_v21, %s12529_s8  ;;  %v14714_v52 = vpop.permute.xlu1 %4936 }
 0x282   :  { %v4427_v5 = vmax.f32 %v3215_v28, 0.0  ;;  %11602 = vmatprep.mubr.msk.bf16.mxu0 %vm2060_vm0, %v11976_v33 }
 0x283   :  { %v14706_v61 = vpack.c.bf16 %v4429_v24, %v4428_v15 }
 0x284   :  { %v14708_v6 = vpack.c.bf16 %v4427_v5, %v4426_v32  ;;  %v11496_v48 = vpop.f32.mrb[132].mxu0 }
 0x285   :  { %17513 = vst [vmem:[#allocation272_spill] sm:$0xff] %v14706_v61  ;;  %v3236_v60 = vadd.f32 %v14442_v38, %v11496_v48  ;;  %v3227_v57 = vpop.f32.mrb[133].mxu0 }
 0x286   :  { %17514 = vst [vmem:[#allocation273_spill] sm:$0xff] %v14708_v6  ;;  %v3228_v21 = vadd.f32 %v14442_v38, %v3227_v57  ;;  %v11497_v27 = vpop.f32.mrb[134].mxu0  ;;  %v14726_v57 = vpop.permute.xlu1 %4934 }
 0x287   :  { %v3239_v33 = vadd.f32 %v14442_v38, %v11497_v27  ;;  %v3230_v56 = vpop.f32.mrb[135].mxu0  ;;  %v4432_v15 = vmax.f32 %v3236_v60, 0.0  ;;  %v11979_v60 = vld [vmem:[%s17509_s1 + $0x3d8] sm:$0xff]  }
 0x288   :  { %v3231_v28 = vadd.f32 %v14442_v38, %v3230_v56  ;;  %v4430_v32 = vmax.f32 %v3228_v21, 0.0 }
 0x289   :  { %v4433_v24 = vmax.f32 %v3239_v33, 0.0  ;;  %11603 = vmatmul.mubr.msk.bf16.gmra.mrb[240].mxu0 %vm2060_vm0, %v11977_v18 }
 0x28a   :  { %v4431_v5 = vmax.f32 %v3231_v28, 0.0  ;;  %11606 = vmatprep.mubr.msk.bf16.mxu0 %vm2060_vm0, %v11978_v14  ;;  %v11980_v14 = vld [vmem:[%s17509_s1 + $0x3e0] sm:$0xff]  }
 0x28b   :  { %v14724_v48 = vpack.c.bf16 %v4433_v24, %v4432_v15 }
 0x28c   :  { %v14728_v13 = vpack.c.bf16 %v4431_v5, %v4430_v32  ;;  %v11500_v54 = vpop.f32.mrb[136].mxu0 }
 0x28d   :  { %17515 = vst [vmem:[#allocation274_spill] sm:$0xff] %v14724_v48  ;;  %v3252_v27 = vadd.f32 %v14442_v38, %v11500_v54  ;;  %v3243_v4 = vpop.f32.mrb[137].mxu0  ;;  %v14741_v54 = vpop.permute.xlu1 %4940 }
 0x28e   :  { %17516 = vst [vmem:[#allocation275_spill] sm:$0xff] %v14728_v13  ;;  %v3244_v18 = vadd.f32 %v14442_v38, %v3243_v4  ;;  %v11501_v21 = vpop.f32.mrb[138].mxu0  ;;  %v14744_v4 = vpop.permute.xlu0 %4906 }
 0x28f   :  { %v3255_v33 = vadd.f32 %v14442_v38, %v11501_v21  ;;  %v3246_v56 = vpop.f32.mrb[139].mxu0  ;;  %v4436_v15 = vmax.f32 %v3252_v27, 0.0  ;;  %v11981_v27 = vld [vmem:[%s17509_s1 + $0x3e8] sm:$0xff]  }
 0x290   :  { %v3247_v28 = vadd.f32 %v14442_v38, %v3246_v56  ;;  %v4434_v32 = vmax.f32 %v3244_v18, 0.0 }
 0x291   :  { %v4437_v24 = vmax.f32 %v3255_v33, 0.0  ;;  %11607 = vmatmul.mubr.msk.bf16.gmra.mrb[244].mxu0 %vm2060_vm0, %v11979_v60 }
 0x292   :  { %v4435_v5 = vmax.f32 %v3247_v28, 0.0  ;;  %11610 = vmatprep.mubr.msk.bf16.mxu0 %vm2060_vm0, %v11980_v14  ;;  %v11982_v14 = vld [vmem:[%s17509_s1 + $0x3f0] sm:$0xff]  }
 0x293   :  { %v14746_v49 = vpack.c.bf16 %v4437_v24, %v4436_v15  ;;  %v14761_v24 = vpop.permute.xlu1 %4938 }
 0x294   :  { %v14748_v12 = vpack.c.bf16 %v4435_v5, %v4434_v32  ;;  %v11504_v21 = vpop.f32.mrb[140].mxu0 }
 0x295   :  { %17517 = vst [vmem:[#allocation276_spill] sm:$0xff] %v14746_v49  ;;  %v3268_v55 = vadd.f32 %v14442_v38, %v11504_v21  ;;  %v3259_v56 = vpop.f32.mrb[141].mxu0 }
 0x296   :  { %17518 = vst [vmem:[#allocation277_spill] sm:$0xff] %v14748_v12  ;;  %v3260_v60 = vadd.f32 %v14442_v38, %v3259_v56  ;;  %v11505_v18 = vpop.f32.mrb[142].mxu0 }
 0x297   :  { %v3271_v33 = vadd.f32 %v14442_v38, %v11505_v18  ;;  %v3262_v28 = vpop.f32.mrb[143].mxu0  ;;  %v14759_v15 = vpop.permute.xlu0 %4980  ;;  %v4440_v5 = vmax.f32 %v3268_v55, 0.0  ;;  %v11983_v55 = vld [vmem:[%s17509_s1 + $0x3f8] sm:$0xff]  }
 0x298   :  { %v3263_v32 = vadd.f32 %v14442_v38, %v3262_v28  ;;  %v4438_v3 = vmax.f32 %v3260_v60, 0.0 }
 0x299   :  { %v4441_v21 = vmax.f32 %v3271_v33, 0.0  ;;  %11611 = vmatmul.mubr.msk.bf16.gmra.mrb[248].mxu0 %vm2060_vm0, %v11981_v27  ;;  %v14776_v33 = vpop.permute.xlu1 %4944 }
 0x29a   :  { %v4439_v56 = vmax.f32 %v3263_v32, 0.0  ;;  %11614 = vmatprep.mubr.msk.bf16.mxu0 %vm2060_vm0, %v11982_v14  ;;  %17521 = vst [vmem:[#allocation280_spill] sm:$0xff] %v14776_v33  ;;  %v11984_v14 = vld [vmem:[%s17509_s1 + $0x400] sm:$0xff]  }
 0x29b   :  { %v14766_v58 = vpack.c.bf16 %v4441_v21, %v4440_v5  ;;  %v14768_v11 = vpop.permute.xlu0 %4978 }
 0x29c   :  { %v14770_v18 = vpack.c.bf16 %v4439_v56, %v4438_v3  ;;  %v11508_v63 = vpop.f32.mrb[144].mxu0 }
 0x29d   :  { %17519 = vst [vmem:[#allocation278_spill] sm:$0xff] %v14766_v58  ;;  %v3284_v2 = vadd.f32 %v14442_v38, %v11508_v63  ;;  %v3275_v50 = vpop.f32.mrb[145].mxu0  ;;  %v14790_v1 = vpop.permute.xlu1 %4942 }
 0x29e   :  { %17520 = vst [vmem:[#allocation279_spill] sm:$0xff] %v14770_v18  ;;  %v3276_v27 = vadd.f32 %v14442_v38, %v3275_v50  ;;  %v11509_v60 = vpop.f32.mrb[146].mxu0  ;;  %17522 = vst [vmem:[#allocation281_spill] sm:$0xff] %v14790_v1 }
 0x29f   :  { %v3287_v3 = vadd.f32 %v14442_v38, %v11509_v60  ;;  %v3278_v28 = vpop.f32.mrb[147].mxu0  ;;  %v14783_v32 = vpop.permute.xlu0 %4984  ;;  %v4444_v5 = vmax.f32 %v3284_v2, 0.0  ;;  %v11985_v2 = vld [vmem:[%s17509_s1 + $0x408] sm:$0xff]  }
 0x2a0   :  { %v3279_v63 = vadd.f32 %v14442_v38, %v3278_v28  ;;  %v4442_v56 = vmax.f32 %v3276_v27, 0.0 }
 0x2a1   :  { %v4445_v21 = vmax.f32 %v3287_v3, 0.0  ;;  %11615 = vmatmul.mubr.msk.bf16.gmra.mrb[252].mxu0 %vm2060_vm0, %v11983_v55 }
 0x2a2   :  { %v4443_v10 = vmax.f32 %v3279_v63, 0.0  ;;  %11618 = vmatprep.mubr.msk.bf16.mxu0 %vm2060_vm0, %v11984_v14  ;;  %v11986_v14 = vld [vmem:[%s17509_s1 + $0x410] sm:$0xff]  }
 0x2a3   :  { %v4771_v50 = vpack.c.bf16 %v4445_v21, %v4444_v5  ;;  %v14788_v62 = vpop.permute.xlu0 %4982 }
 0x2a4   :  { %v4770_v59 = vpack.c.bf16 %v4443_v10, %v4442_v56  ;;  %v11512_v60 = vpop.f32.mrb[148].mxu0  ;;  %v14807_v56 = vpop.permute.xlu1 %4956 }
 0x2a5   :  { %v3300_v9 = vadd.f32 %v14442_v38, %v11512_v60  ;;  %v3291_v53 = vpop.f32.mrb[149].mxu0  ;;  %5052 = vrot.lane.b32.xlu1 %v4771_v50, %s12527_s0 }
 0x2a6   :  { %v3292_v55 = vadd.f32 %v14442_v38, %v3291_v53  ;;  %v11513_v27 = vpop.f32.mrb[150].mxu0 }
 0x2a7   :  { %v3303_v3 = vadd.f32 %v14442_v38, %v11513_v27  ;;  %v3294_v10 = vpop.f32.mrb[151].mxu0  ;;  %v14802_v28 = vpop.permute.xlu0 %4988  ;;  %v4448_v5 = vmax.f32 %v3300_v9, 0.0  ;;  %v11987_v9 = vld [vmem:[%s17509_s1 + $0x418] sm:$0xff]  }
 0x2a8   :  { %v3295_v63 = vadd.f32 %v14442_v38, %v3294_v10  ;;  %v4446_v53 = vmax.f32 %v3292_v55, 0.0  ;;  %v11988_v55 = vld [vmem:[%s17509_s1 + $0x420] sm:$0xff]  }
 0x2a9   :  { %v4449_v21 = vmax.f32 %v3303_v3, 0.0  ;;  %11619 = vmatmul.mubr.msk.bf16.gmra.mrb[0].mxu0 %vm2060_vm0, %v11985_v2  ;;  %5050 = vrot.lane.b32.xlu1 %v4770_v59, %s12527_s0 }
 0x2aa   :  { %v4447_v50 = vmax.f32 %v3295_v63, 0.0  ;;  %11622 = vmatprep.mubr.msk.bf16.mxu0 %vm2060_vm0, %v11986_v14 }
 0x2ab   :  { %v4773_v60 = vpack.c.bf16 %v4449_v21, %v4448_v5  ;;  %v14810_v0 = vpop.permute.xlu0 %4986 }
 0x2ac   :  { %v4772_v27 = vpack.c.bf16 %v4447_v50, %v4446_v53  ;;  %v11516_v51 = vpop.f32.mrb[152].mxu0 }
 0x2ad   :  { %v3316_v8 = vadd.f32 %v14442_v38, %v11516_v51  ;;  %v3307_v10 = vpop.f32.mrb[153].mxu0  ;;  %5056 = vrot.lane.b32.xlu1 %v4773_v60, %s12527_s0  ;;  %v14824_v51 = vpop.permute.xlu1 %4954 }
 0x2ae   :  { %v3308_v59 = vadd.f32 %v14442_v38, %v3307_v10  ;;  %v11517_v2 = vpop.f32.mrb[154].mxu0 }
 0x2af   :  { %v3319_v14 = vadd.f32 %v14442_v38, %v11517_v2  ;;  %v3310_v3 = vpop.f32.mrb[155].mxu0  ;;  %v14822_v63 = vpop.permute.xlu0 %4992  ;;  %v4452_v21 = vmax.f32 %v3316_v8, 0.0  ;;  %v11989_v8 = vld [vmem:[%s17509_s1 + $0x428] sm:$0xff]  }
 0x2b0   :  { %17523 = vst [vmem:[#allocation282_spill] sm:$0xff] %v14822_v63  ;;  %v3311_v5 = vadd.f32 %v14442_v38, %v3310_v3  ;;  %v4450_v50 = vmax.f32 %v3308_v59, 0.0 }
 0x2b1   :  { %v4453_v53 = vmax.f32 %v3319_v14, 0.0  ;;  %11623 = vmatmul.mubr.msk.bf16.gmra.mrb[4].mxu0 %vm2060_vm0, %v11987_v9  ;;  %5054 = vrot.lane.b32.xlu1 %v4772_v27, %s12527_s0  ;;  %v14837_v9 = vpop.permute.xlu1 %4960 }
 0x2b2   :  { %v4451_v60 = vmax.f32 %v3311_v5, 0.0  ;;  %11626 = vmatprep.mubr.msk.bf16.mxu0 %vm2060_vm0, %v11988_v55  ;;  %v11992_v55 = vld [vmem:[%s17509_s1 + $0x430] sm:$0xff]  }
 0x2b3   :  { %v4775_v10 = vpack.c.bf16 %v4453_v53, %v4452_v21  ;;  %v14830_v18 = vpop.permute.xlu0 %4990 }
 0x2b4   :  { %v4774_v6 = vpack.c.bf16 %v4451_v60, %v4450_v50  ;;  %v11520_v2 = vpop.f32.mrb[156].mxu0 }
 0x2b5   :  { %v3332_v58 = vadd.f32 %v14442_v38, %v11520_v2  ;;  %v3323_v12 = vpop.f32.mrb[157].mxu0  ;;  %5060 = vrot.lane.b32.xlu1 %v4775_v10, %s12527_s0  ;;  %v14850_v2 = vpop.permute.xlu1 %4958 }
 0x2b6   :  { %v3324_v27 = vadd.f32 %v14442_v38, %v3323_v12  ;;  %v11521_v59 = vpop.f32.mrb[158].mxu0 }
 0x2b7   :  { %v3335_v14 = vadd.f32 %v14442_v38, %v11521_v59  ;;  %v3326_v3 = vpop.f32.mrb[159].mxu0  ;;  %v4456_v21 = vmax.f32 %v3332_v58, 0.0  ;;  %v14848_v10 = vpop.permute.xlu0 %5004  ;;  %v11993_v58 = vld [vmem:[%s17509_s1 + $0x438] sm:$0xff]  }
 0x2b8   :  { %v3327_v5 = vadd.f32 %v14442_v38, %v3326_v3  ;;  %v4454_v50 = vmax.f32 %v3324_v27, 0.0  ;;  %v11998_v27 = vld [vmem:[%s17509_s1 + $0x440] sm:$0xff]  }
 0x2b9   :  { %v4457_v53 = vmax.f32 %v3335_v14, 0.0  ;;  %11627 = vmatmul.mubr.msk.bf16.gmra.mrb[8].mxu0 %vm2060_vm0, %v11989_v8  ;;  %5058 = vrot.lane.b32.xlu1 %v4774_v6, %s12527_s0 }
 0x2ba   :  { %v4455_v60 = vmax.f32 %v3327_v5, 0.0  ;;  %11630 = vmatprep.mubr.msk.bf16.mxu0 %vm2060_vm0, %v11992_v55 }
 0x2bb   :  { %v4777_v12 = vpack.c.bf16 %v4457_v53, %v4456_v21 }
 0x2bc   :  { %v4776_v49 = vpack.c.bf16 %v4455_v60, %v4454_v50  ;;  %v11524_v59 = vpop.f32.mrb[160].mxu0  ;;  %v14867_v60 = vpop.permute.xlu1 %4964 }
 0x2bd   :  { %v3348_v13 = vadd.f32 %v14442_v38, %v11524_v59  ;;  %v3339_v3 = vpop.f32.mrb[161].mxu0  ;;  %5064 = vrot.lane.b32.xlu1 %v4777_v12, %s12527_s0 }
 0x2be   :  { %v3340_v6 = vadd.f32 %v14442_v38, %v3339_v3  ;;  %v11525_v8 = vpop.f32.mrb[162].mxu0 }
 0x2bf   :  { %v3351_v55 = vadd.f32 %v14442_v38, %v11525_v8  ;;  %v3342_v14 = vpop.f32.mrb[163].mxu0  ;;  %v14862_v5 = vpop.permute.xlu0 %5008  ;;  %v4460_v53 = vmax.f32 %v3348_v13, 0.0  ;;  %v11999_v13 = vld [vmem:[%s17509_s1 + $0x448] sm:$0xff]  }
 0x2c0   :  { %v3343_v21 = vadd.f32 %v14442_v38, %v3342_v14  ;;  %v4458_v12 = vmax.f32 %v3340_v6, 0.0  ;;  %v12004_v6 = vld [vmem:[%s17509_s1 + $0x450] sm:$0xff]  }
 0x2c1   :  { %v4461_v50 = vmax.f32 %v3351_v55, 0.0  ;;  %11631 = vmatmul.mubr.msk.bf16.gmra.mrb[12].mxu0 %vm2060_vm0, %v11993_v58  ;;  %5062 = vrot.lane.b32.xlu1 %v4776_v49, %s12527_s0 }
 0x2c2   :  { %v4459_v59 = vmax.f32 %v3343_v21, 0.0  ;;  %11634 = vmatprep.mubr.msk.bf16.mxu0 %vm2060_vm0, %v11998_v27 }
 0x2c3   :  { %v4779_v3 = vpack.c.bf16 %v4461_v50, %v4460_v53  ;;  %v14870_v48 = vpop.permute.xlu0 %5006 }
 0x2c4   :  { %v4778_v8 = vpack.c.bf16 %v4459_v59, %v4458_v12  ;;  %v11528_v61 = vpop.f32.mrb[164].mxu0 }
 0x2c5   :  { %v3364_v33 = vadd.f32 %v14442_v38, %v11528_v61  ;;  %v3355_v14 = vpop.f32.mrb[165].mxu0  ;;  %5076 = vrot.lane.b32.xlu1 %v4779_v3, %s12528_s19  ;;  %v14884_v61 = vpop.permute.xlu1 %4962 }
 0x2c6   :  { %v3356_v49 = vadd.f32 %v14442_v38, %v3355_v14  ;;  %v11529_v58 = vpop.f32.mrb[166].mxu0 }
 0x2c7   :  { %v3367_v27 = vadd.f32 %v14442_v38, %v11529_v58  ;;  %v3358_v55 = vpop.f32.mrb[167].mxu0  ;;  %v14882_v21 = vpop.permute.xlu0 %5012  ;;  %v4464_v50 = vmax.f32 %v3364_v33, 0.0 }
 0x2c8   :  { %v3359_v53 = vadd.f32 %v14442_v38, %v3358_v55  ;;  %v4462_v59 = vmax.f32 %v3356_v49, 0.0 }
 0x2c9   :  { %v4465_v12 = vmax.f32 %v3367_v27, 0.0  ;;  %11635 = vmatmul.mubr.msk.bf16.gmra.mrb[16].mxu0 %vm2060_vm0, %v11999_v13  ;;  %5074 = vrot.lane.b32.xlu1 %v4778_v8, %s12528_s19  ;;  %v12005_v8 = vld [vmem:[%s17509_s1 + $0x458] sm:$0xff]   ;;  %v14902_v13 = vpop.permute.xlu1 %4968  ;;  %v12010_v27 = vld [vmem:[%s17509_s1 + $0x460] sm:$0xff]  }
 0x2ca   :  { %v4463_v3 = vmax.f32 %v3359_v53, 0.0  ;;  %11638 = vmatprep.mubr.msk.bf16.mxu0 %vm2060_vm0, %v12004_v6  ;;  %17524 = vst [vmem:[#allocation283_spill] sm:$0xff] %v14902_v13 }
 0x2cb   :  { %v4781_v14 = vpack.c.bf16 %v4465_v12, %v4464_v50  ;;  %v14890_v40 = vpop.permute.xlu0 %5010 }
 0x2cc   :  { %v4780_v58 = vpack.c.bf16 %v4463_v3, %v4462_v59  ;;  %v11532_v35 = vpop.f32.mrb[168].mxu0 }
 0x2cd   :  { %v3380_v38 = vadd.f32 %v14895_v25, %v11532_v35  ;;  %v3371_v33 = vpop.f32.mrb[169].mxu0  ;;  %5080 = vrot.lane.b32.xlu1 %v4781_v14, %s12528_s19  ;;  %v14917_v63 = vpop.permute.xlu1 %4966 }
 0x2ce   :  { %v3372_v49 = vadd.f32 %v14895_v25, %v3371_v33  ;;  %v11533_v6 = vpop.f32.mrb[170].mxu0 }
 0x2cf   :  { %v3383_v55 = vadd.f32 %v14895_v25, %v11533_v6  ;;  %v3374_v53 = vpop.f32.mrb[171].mxu0  ;;  %v14909_v35 = vpop.permute.xlu0 %5016  ;;  %v4468_v12 = vmax.f32 %v3380_v38, 0.0 }
 0x2d0   :  { %17525 = vst [vmem:[#allocation284_spill] sm:$0xff] %v14909_v35  ;;  %v3375_v50 = vadd.f32 %v14895_v25, %v3374_v53  ;;  %v4466_v3 = vmax.f32 %v3372_v49, 0.0  ;;  %v12014_v49 = vld [vmem:[%s17509_s1 + $0x470] sm:$0xff]  }
 0x2d1   :  { %v4469_v59 = vmax.f32 %v3383_v55, 0.0  ;;  %11639 = vmatmul.mubr.msk.bf16.gmra.mrb[20].mxu0 %vm2060_vm0, %v12005_v8  ;;  %5078 = vrot.lane.b32.xlu1 %v4780_v58, %s12528_s19  ;;  %v12011_v58 = vld [vmem:[%s17509_s1 + $0x468] sm:$0xff]  }
 0x2d2   :  { %v4467_v14 = vmax.f32 %v3375_v50, 0.0  ;;  %11642 = vmatprep.mubr.msk.bf16.mxu0 %vm2060_vm0, %v12010_v27 }
 0x2d3   :  { %v4783_v33 = vpack.c.bf16 %v4469_v59, %v4468_v12  ;;  %v14915_v13 = vpop.permute.xlu0 %5014 }
 0x2d4   :  { %v4782_v6 = vpack.c.bf16 %v4467_v14, %v4466_v3  ;;  %v11536_v1 = vpop.f32.mrb[172].mxu0  ;;  %v5255_v14 = vsel %vm5186_vm2, %v14405_v47, %v14768_v11  ;;  %v5258_v11 = vsel %vm5186_vm2, %v14403_v29, %v14759_v15  ;;  %v12015_v29 = vld [vmem:[%s17509_s1 + $0x478] sm:$0xff]  }
 0x2d5   :  { %v3396_v35 = vadd.f32 %v14895_v25, %v11536_v1  ;;  %v3387_v53 = vpop.f32.mrb[173].mxu0  ;;  %5084 = vrot.lane.b32.xlu1 %v4783_v33, %s12528_s19  ;;  %v5003_v1 = vpop.permute.xlu1 %5002 }
 0x2d6   :  { %v3388_v38 = vadd.f32 %v14895_v25, %v3387_v53  ;;  %v11537_v8 = vpop.f32.mrb[174].mxu0 }
 0x2d7   :  { %v3399_v27 = vadd.f32 %v14895_v25, %v11537_v8  ;;  %v3390_v55 = vpop.f32.mrb[175].mxu0  ;;  %v5029_v50 = vpop.permute.xlu0 %5028  ;;  %v4472_v59 = vmax.f32 %v3396_v35, 0.0  ;;  %v5189_v8 = vsel %vm5186_vm2, %v14176_v23, %v14744_v4  ;;  %v5278_v35 = vsel %vm5211_vm3, %v5255_v14, %v5003_v1 }
 0x2d8   :  { %v3391_v12 = vadd.f32 %v14895_v25, %v3390_v55  ;;  %v4470_v33 = vmax.f32 %v3388_v38, 0.0 }
 0x2d9   :  { %v4473_v3 = vmax.f32 %v3399_v27, 0.0  ;;  %11643 = vmatmul.mubr.msk.bf16.gmra.mrb[24].mxu0 %vm2060_vm0, %v12011_v58  ;;  %5082 = vrot.lane.b32.xlu1 %v4782_v6, %s12528_s19  ;;  %v5213_v6 = vsel %vm5211_vm3, %v5189_v8, %v14700_v36 }
 0x2da   :  { %v4471_v53 = vmax.f32 %v3391_v12, 0.0  ;;  %11646 = vmatprep.mubr.msk.bf16.mxu0 %vm2060_vm0, %v12014_v49  ;;  %v5280_v49 = vsel %vm5211_vm3, %v5258_v11, %v14848_v10  ;;  %v5230_v36 = vsel %vm5228_vm4, %v5213_v6, %v14824_v51  ;;  %v12016_v10 = vld [vmem:[%s17509_s1 + $0x480] sm:$0xff]   ;;  %v5261_v11 = vsel %vm5186_vm2, %v14421_v43, %v14788_v62 }
 0x2db   :  { %v4785_v27 = vpack.c.bf16 %v4473_v3, %v4472_v59  ;;  %v5027_v55 = vpop.permute.xlu0 %5026  ;;  %v5297_v12 = vsel %vm5228_vm4, %v5280_v49, %v5029_v50  ;;  %v5192_v50 = vsel %vm5186_vm2, %v14171_v45, %v14591_v7  ;;  %v12017_v7 = vld [vmem:[%s17509_s1 + $0x488] sm:$0xff]  }
 0x2dc   :  { %v4784_v47 = vpack.c.bf16 %v4471_v53, %v4470_v33  ;;  %v11540_v58 = vpop.f32.mrb[176].mxu0  ;;  %v5294_v38 = vsel %vm5228_vm4, %v5278_v35, %v5027_v55  ;;  %v5215_v6 = vsel %vm5211_vm3, %v5192_v50, %v14687_v26 }
 0x2dd   :  { %v3412_v23 = vadd.f32 %v14895_v25, %v11540_v58  ;;  %v3403_v4 = vpop.f32.mrb[177].mxu0  ;;  %5088 = vrot.lane.b32.xlu1 %v4785_v27, %s12528_s19  ;;  %6189 = vmatprep.mubr.bf16.mxu1 %v5294_v38  ;;  %v5233_v45 = vsel %vm5228_vm4, %v5215_v6, %v14807_v56 }
 0x2de   :  { %v3404_v15 = vadd.f32 %v14895_v25, %v3403_v4  ;;  %v11541_v1 = vpop.f32.mrb[178].mxu0  ;;  %6190 = vmatmul.mubr.bf16.vlgmr.msra.gmra.mrb[0].mxu1 %v5230_v36 }
 0x2df   :  { %v3415_v59 = vadd.f32 %v14895_v25, %v11541_v1  ;;  %v3406_v3 = vpop.f32.mrb[179].mxu0  ;;  %v5033_v14 = vpop.permute.xlu0 %5032  ;;  %6197 = vmatprep.mubr.bf16.mxu1 %v5297_v12  ;;  %v4476_v33 = vmax.f32 %v3412_v23, 0.0 }
 0x2e0   :  { %v3407_v51 = vadd.f32 %v14895_v25, %v3406_v3  ;;  %v4474_v8 = vmax.f32 %v3404_v15, 0.0 }
 0x2e1   :  { %v4477_v53 = vmax.f32 %v3415_v59, 0.0  ;;  %11647 = vmatmul.mubr.msk.bf16.gmra.mrb[28].mxu0 %vm2060_vm0, %v12015_v29  ;;  %5086 = vrot.lane.b32.xlu1 %v4784_v47, %s12528_s19  ;;  %v5282_v47 = vsel %vm5211_vm3, %v5261_v11, %v14870_v48  ;;  %v12018_v48 = vld [vmem:[%s17509_s1 + $0x490] sm:$0xff]  }
 0x2e2   :  { %v4475_v35 = vmax.f32 %v3407_v51, 0.0  ;;  %11650 = vmatprep.mubr.msk.bf16.mxu0 %vm2060_vm0, %v12016_v10  ;;  %v5195_v10 = vsel %vm5186_vm2, %v14192_v22, %v14622_v31  ;;  %v5264_v51 = vsel %vm5186_vm2, %v14419_v20, %v14783_v32  ;;  %v12019_v31 = vld [vmem:[%s17509_s1 + $0x498] sm:$0xff]  }
 0x2e3   :  { %v4787_v27 = vpack.c.bf16 %v4477_v53, %v4476_v33  ;;  %v5031_v55 = vpop.permute.xlu0 %5030  ;;  %v5217_v3 = vsel %vm5211_vm3, %v5195_v10, %v14726_v57  ;;  %v5201_v10 = vsel %vm5186_vm2, %v14205_v41, %v14650_v16  ;;  %v12023_v16 = vld [vmem:[%s17509_s1 + $0x4b8] sm:$0xff]  }
 0x2e4   :  { %v4786_v58 = vpack.c.bf16 %v4475_v35, %v4474_v8  ;;  %v11544_v38 = vpop.f32.mrb[180].mxu0  ;;  %v5300_v43 = vsel %vm5228_vm4, %v5282_v47, %v5031_v55  ;;  %v5284_v8 = vsel %vm5211_vm3, %v5264_v51, %v14862_v5  ;;  %v5236_v22 = vsel %vm5228_vm4, %v5217_v3, %v14850_v2  ;;  %v12020_v5 = vld [vmem:[%s17509_s1 + $0x4a0] sm:$0xff]  }
 0x2e5   :  { %v3428_v49 = vadd.f32 %v14895_v25, %v11544_v38  ;;  %v3419_v23 = vpop.f32.mrb[181].mxu0  ;;  %5100 = vrot.lane.b32.xlu1 %v4787_v27, %s12529_s8  ;;  %v5303_v32 = vsel %vm5228_vm4, %v5284_v8, %v5033_v14  ;;  %v5198_v14 = vsel %vm5186_vm2, %v14187_v42, %v14605_v34  ;;  %v12021_v34 = vld [vmem:[%s17509_s1 + $0x4a8] sm:$0xff]   ;;  %v5221_v3 = vsel %vm5211_vm3, %v5201_v10, %v14761_v24 }
 0x2e6   :  { %v3420_v26 = vadd.f32 %v14895_v25, %v3419_v23  ;;  %v11545_v62 = vpop.f32.mrb[182].mxu0  ;;  %6198 = vmatmul.mubr.bf16.gmra.mrb[4].mxu1 %v5233_v45  ;;  %v5219_v45 = vsel %vm5211_vm3, %v5198_v14, %v14714_v52  ;;  %v5270_v51 = vsel %vm5186_vm2, %v14435_v39, %v14802_v28  ;;  %v5242_v41 = vsel %vm5228_vm4, %v5221_v3, %v14884_v61  ;;  %v12028_v3 = vld [vmem:[%s17509_s1 + $0x4e0] sm:$0xff]  }
 0x2e7   :  { %v3431_v4 = vadd.f32 %v14895_v25, %v11545_v62  ;;  %v3422_v36 = vpop.f32.mrb[183].mxu0  ;;  %6205 = vmatprep.mubr.bf16.mxu1 %v5300_v43  ;;  %v4480_v29 = vmax.f32 %v3428_v49, 0.0  ;;  %v15002_v35 = vpop.permute.xlu0 %5036  ;;  %v5239_v42 = vsel %vm5228_vm4, %v5219_v45, %v14837_v9  ;;  %v5288_v8 = vsel %vm5211_vm3, %v5270_v51, %v14882_v21  ;;  %v12024_v21 = vld [vmem:[%s17509_s1 + $0x4c0] sm:$0xff]  }
 0x2e8   :  { %v3423_v56 = vadd.f32 %v14895_v25, %v3422_v36  ;;  %v4478_v1 = vmax.f32 %v3420_v26, 0.0  ;;  %v5309_v28 = vsel %vm5228_vm4, %v5288_v8, %v15002_v35  ;;  %v5204_v35 = vsel %vm5186_vm2, %v14203_v46, %v14637_v37  ;;  %v12025_v37 = vld [vmem:[%s17509_s1 + $0x4c8] sm:$0xff]  }
 0x2e9   :  { %v4481_v15 = vmax.f32 %v3431_v4, 0.0  ;;  %11651 = vmatmul.mubr.msk.bf16.gmra.mrb[32].mxu0 %vm2060_vm0, %v12017_v7  ;;  %5098 = vrot.lane.b32.xlu1 %v4786_v58, %s12529_s8  ;;  %v5267_v7 = vsel %vm5186_vm2, %v14437_v17, %v14810_v0 }
 0x2ea   :  { %v4479_v12 = vmax.f32 %v3423_v56, 0.0  ;;  %11654 = vmatprep.mubr.msk.bf16.mxu0 %vm2060_vm0, %v12018_v48  ;;  %v5286_v43 = vsel %vm5211_vm3, %v5267_v7, %v14890_v40  ;;  %v12022_v40 = vld [vmem:[%s17509_s1 + $0x4b0] sm:$0xff]  }
 0x2eb   :  { %v4789_v59 = vpack.c.bf16 %v4481_v15, %v4480_v29  ;;  %v5035_v49 = vpop.permute.xlu0 %5034 }
 0x2ec   :  { %v4788_v33 = vpack.c.bf16 %v4479_v12, %v4478_v1  ;;  %v11548_v53 = vpop.f32.mrb[184].mxu0  ;;  %v5306_v17 = vsel %vm5228_vm4, %v5286_v43, %v5035_v49 }
 0x2ed   :  { %v3444_v50 = vadd.f32 %v14895_v25, %v11548_v53  ;;  %v3435_v27 = vpop.f32.mrb[185].mxu0  ;;  %5104 = vrot.lane.b32.xlu1 %v4789_v59, %s12529_s8 }
 0x2ee   :  { %v3436_v20 = vadd.f32 %v14895_v25, %v3435_v27  ;;  %v11549_v57 = vpop.f32.mrb[186].mxu0  ;;  %6206 = vmatmul.mubr.bf16.gmra.mrb[8].mxu1 %v5236_v22 }
 0x2ef   :  { %v3447_v55 = vadd.f32 %v14895_v25, %v11549_v57  ;;  %v3438_v6 = vpop.f32.mrb[187].mxu0  ;;  %6213 = vmatprep.mubr.bf16.mxu1 %v5303_v32  ;;  %v4484_v11 = vmax.f32 %v3444_v50, 0.0  ;;  %v15058_v50 = vpop.permute.xlu0 %5040 }
 0x2f0   :  { %v3439_v2 = vadd.f32 %v14895_v25, %v3438_v6  ;;  %v4482_v38 = vmax.f32 %v3436_v20, 0.0 }
 0x2f1   :  { %v4485_v58 = vmax.f32 %v3447_v55, 0.0  ;;  %11655 = vmatmul.mubr.msk.bf16.gmra.mrb[36].mxu0 %vm2060_vm0, %v12019_v31  ;;  %5102 = vrot.lane.b32.xlu1 %v4788_v33, %s12529_s8 }
 0x2f2   :  { %v4483_v47 = vmax.f32 %v3439_v2, 0.0  ;;  %11658 = vmatprep.mubr.msk.bf16.mxu0 %vm2060_vm0, %v12020_v5 }
 0x2f3   :  { %v4791_v23 = vpack.c.bf16 %v4485_v58, %v4484_v11  ;;  %v5039_v6 = vpop.permute.xlu0 %5038  ;;  %v5223_v11 = vsel %vm5211_vm3, %v5204_v35, %v14741_v54  ;;  %v5273_v58 = vsel %vm5186_vm2, %v14458_v44, %v14830_v18  ;;  %v12026_v18 = vld [vmem:[%s17509_s1 + $0x4d0] sm:$0xff]  }
 0x2f4   :  { %v4790_v26 = vpack.c.bf16 %v4483_v47, %v4482_v38  ;;  %v11552_v62 = vpop.f32.mrb[188].mxu0  ;;  %v5290_v14 = vsel %vm5211_vm3, %v5273_v58, %v14915_v13  ;;  %v5245_v46 = vsel %vm5228_vm4, %v5223_v11, %v14867_v60 }
 0x2f5   :  { %v3460_v48 = vadd.f32 %v14895_v25, %v11552_v62  ;;  %v3451_v4 = vpop.f32.mrb[189].mxu0  ;;  %5108 = vrot.lane.b32.xlu1 %v4791_v23, %s12529_s8  ;;  %v5312_v44 = vsel %vm5228_vm4, %v5290_v14, %v5039_v6  ;;  %v12030_v6 = vld [vmem:[%s17509_s1 + $0x4f0] sm:$0xff]  }
 0x2f6   :  { %v3452_v52 = vadd.f32 %v14895_v25, %v3451_v4  ;;  %v11553_v0 = vpop.f32.mrb[190].mxu0  ;;  %6214 = vmatmul.mubr.bf16.gmra.mrb[12].mxu1 %v5239_v42  ;;  %v5207_v4 = vsel %vm5186_vm2, %v14221_v30, %v14672_v19  ;;  %v12027_v19 = vld [vmem:[%s17509_s1 + $0x4d8] sm:$0xff]  }
 0x2f7   :  { %v3463_v36 = vadd.f32 %v14895_v25, %v11553_v0  ;;  %v3454_v56 = vpop.f32.mrb[191].mxu0  ;;  %6221 = vmatprep.mubr.bf16.mxu1 %v5306_v17  ;;  %v4488_v29 = vmax.f32 %v3460_v48, 0.0  ;;  %v17527_v0 = vld [vmem:[#allocation282_spill] sm:$0xff] }
 0x2f8   :  { %v3455_v9 = vadd.f32 %v14895_v25, %v3454_v56  ;;  %v4486_v1 = vmax.f32 %v3452_v52, 0.0  ;;  %v17528_v17 = vld [vmem:[#allocation270_spill] sm:$0xff] }
 0x2f9   :  { %v4489_v15 = vmax.f32 %v3463_v36, 0.0  ;;  %11659 = vmatmul.mubr.msk.bf16.gmra.mrb[40].mxu0 %vm2060_vm0, %v12021_v34  ;;  %5106 = vrot.lane.b32.xlu1 %v4790_v26, %s12529_s8  ;;  %v17526_v34 = vld [vmem:[#allocation281_spill] sm:$0xff] }
 0x2fa   :  { %v4487_v12 = vmax.f32 %v3455_v9, 0.0  ;;  %11662 = vmatprep.mubr.msk.bf16.mxu0 %vm2060_vm0, %v12022_v40  ;;  %v5225_v52 = vsel %vm5211_vm3, %v5207_v4, %v17526_v34  ;;  %v5276_v40 = vsel %vm5186_vm2, %v17528_v17, %v17527_v0  ;;  %v17529_v9 = vld [vmem:[#allocation284_spill] sm:$0xff] }
 0x2fb   :  { %v4793_v59 = vpack.c.bf16 %v4489_v15, %v4488_v29  ;;  %v5292_v29 = vsel %vm5211_vm3, %v5276_v40, %v17529_v9  ;;  %v5248_v30 = vsel %vm5228_vm4, %v5225_v52, %v14917_v63  ;;  %v12032_v4 = vld [vmem:[%s17509_s1 + $0x500] sm:$0xff]   ;;  %v17535_v40 = vld [vmem:[#allocation274_spill] sm:$0xff] }
 0x2fc   :  { %v4792_v33 = vpack.c.bf16 %v4487_v12, %v4486_v1  ;;  %v11556_v53 = vpop.f32.mrb[192].mxu0 }
 0x2fd   :  { %v3476_v27 = vadd.f32 %v14895_v25, %v11556_v53  ;;  %v3467_v22 = vpop.f32.mrb[193].mxu0  ;;  %5112 = vrot.lane.b32.xlu1 %v4793_v59, %s12529_s8  ;;  %v5315_v59 = vsel %vm5228_vm4, %v5292_v29, %v15058_v50  ;;  %v17531_v50 = vld [vmem:[#allocation269_spill] sm:$0xff] }
 0x2fe   :  { %v3468_v39 = vadd.f32 %v14895_v25, %v3467_v22  ;;  %v11557_v24 = vpop.f32.mrb[194].mxu0  ;;  %6222 = vmatmul.mubr.bf16.gmra.mrb[16].mxu1 %v5242_v41  ;;  %v17530_v41 = vld [vmem:[#allocation271_spill] sm:$0xff] }
 0x2ff   :  { %v3479_v31 = vadd.f32 %v14895_v25, %v11557_v24  ;;  %v3470_v20 = vpop.f32.mrb[195].mxu0  ;;  %6229 = vmatprep.mubr.bf16.mxu1 %v5309_v28  ;;  %v4492_v57 = vmax.f32 %v3476_v27, 0.0  ;;  %v17532_v24 = vld [vmem:[#allocation280_spill] sm:$0xff] }
 0x300   :  { %v3471_v61 = vadd.f32 %v14895_v25, %v3470_v20  ;;  %v4490_v5 = vmax.f32 %v3468_v39, 0.0 }
 0x301   :  { %v4493_v32 = vmax.f32 %v3479_v31, 0.0  ;;  %11663 = vmatmul.mubr.msk.bf16.gmra.mrb[44].mxu0 %vm2060_vm0, %v12023_v16  ;;  %5110 = vrot.lane.b32.xlu1 %v4792_v33, %s12529_s8  ;;  %v5210_v16 = vsel %vm5186_vm2, %v17531_v50, %v17530_v41 }
 0x302   :  { %v4491_v55 = vmax.f32 %v3471_v61, 0.0  ;;  %11666 = vmatprep.mubr.msk.bf16.mxu0 %vm2060_vm0, %v12024_v21  ;;  %v5227_v28 = vsel %vm5211_vm3, %v5210_v16, %v17532_v24  ;;  %v17537_v24 = vld [vmem:[#allocation276_spill] sm:$0xff] }
 0x303   :  { %v15081_v2 = vpack.c.bf16 %v4493_v32, %v4492_v57  ;;  %v17533_v57 = vld [vmem:[#allocation283_spill] sm:$0xff] }
 0x304   :  { %v15088_v38 = vpack.c.bf16 %v4491_v55, %v4490_v5  ;;  %v11560_v47 = vpop.f32.mrb[196].mxu0  ;;  %v5251_v32 = vsel %vm5228_vm4, %v5227_v28, %v17533_v57  ;;  %v12029_v5 = vld [vmem:[%s17509_s1 + $0x4e8] sm:$0xff]  }
 0x305   :  { %v3492_v49 = vadd.f32 %v14895_v25, %v11560_v47  ;;  %v3483_v23 = vpop.f32.mrb[197].mxu0 }
 0x306   :  { %v3484_v54 = vadd.f32 %v14895_v25, %v3483_v23  ;;  %v11561_v45 = vpop.f32.mrb[198].mxu0  ;;  %6230 = vmatmul.mubr.bf16.gmra.mrb[20].mxu1 %v5245_v46 }
 0x307   :  { %v3495_v13 = vadd.f32 %v14895_v25, %v11561_v45  ;;  %v3486_v7 = vpop.f32.mrb[199].mxu0  ;;  %6237 = vmatprep.mubr.bf16.mxu1 %v5312_v44  ;;  %v4496_v26 = vmax.f32 %v3492_v49, 0.0  ;;  %v17534_v49 = vld [vmem:[#allocation272_spill] sm:$0xff] }
 0x308   :  { %v3487_v60 = vadd.f32 %v14895_v25, %v3486_v7  ;;  %v4494_v43 = vmax.f32 %v3484_v54, 0.0 }
 0x309   :  { %v4497_v62 = vmax.f32 %v3495_v13, 0.0  ;;  %11667 = vmatmul.mubr.msk.bf16.gmra.mrb[48].mxu0 %vm2060_vm0, %v12025_v37 }
 0x30a   :  { %v4495_v48 = vmax.f32 %v3487_v60, 0.0  ;;  %11670 = vmatprep.mubr.msk.bf16.mxu0 %vm2060_vm0, %v12026_v18 }
 0x30b   :  { %v15110_v42 = vpack.c.bf16 %v4497_v62, %v4496_v26  ;;  %v12031_v62 = vld [vmem:[%s17509_s1 + $0x4f8] sm:$0xff]  }
 0x30c   :  { %v15117_v36 = vpack.c.bf16 %v4495_v48, %v4494_v43  ;;  %v11564_v56 = vpop.f32.mrb[200].mxu0 }
 0x30d   :  { %v3508_v15 = vadd.f32 %v14895_v25, %v11564_v56  ;;  %v3499_v1 = vpop.f32.mrb[201].mxu0 }
 0x30e   :  { %v3500_v12 = vadd.f32 %v14895_v25, %v3499_v1  ;;  %v11565_v10 = vpop.f32.mrb[202].mxu0  ;;  %6238 = vmatmul.mubr.bf16.gmra.mrb[24].mxu1 %v5248_v30 }
 0x30f   :  { %v3511_v51 = vadd.f32 %v14895_v25, %v11565_v10  ;;  %v3502_v33 = vpop.f32.mrb[203].mxu0  ;;  %6245 = vmatprep.mubr.bf16.mxu1 %v5315_v59  ;;  %v4500_v53 = vmax.f32 %v3508_v15, 0.0  ;;  %v17536_v10 = vld [vmem:[#allocation275_spill] sm:$0xff] }
 0x310   :  { %v3503_v63 = vadd.f32 %v14895_v25, %v3502_v33  ;;  %v4498_v27 = vmax.f32 %v3500_v12, 0.0 }
 0x311   :  { %v4501_v8 = vmax.f32 %v3511_v51, 0.0  ;;  %11671 = vmatmul.mubr.msk.bf16.gmra.mrb[52].mxu0 %vm2060_vm0, %v12027_v19 }
 0x312   :  { %v4499_v22 = vmax.f32 %v3503_v63, 0.0  ;;  %11674 = vmatprep.mubr.msk.bf16.mxu0 %vm2060_vm0, %v12028_v3  ;;  %v12033_v63 = vld [vmem:[%s17509_s1 + $0x508] sm:$0xff]  }
 0x313   :  { %v15140_v39 = vpack.c.bf16 %v4501_v8, %v4500_v53 }
 0x314   :  { %v15144_v21 = vpack.c.bf16 %v4499_v22, %v4498_v27  ;;  %v11568_v31 = vpop.f32.mrb[204].mxu0  ;;  %v12034_v27 = vld [vmem:[%s17509_s1 + $0x510] sm:$0xff]  }
 0x315   :  { %v3524_v20 = vadd.f32 %v14895_v25, %v11568_v31  ;;  %v3515_v61 = vpop.f32.mrb[205].mxu0 }
 0x316   :  { %v3516_v55 = vadd.f32 %v14895_v25, %v3515_v61  ;;  %v11569_v35 = vpop.f32.mrb[206].mxu0  ;;  %6246 = vmatmul.mubr.bf16.gmra.mrb[28].mxu1 %v5251_v32 }
 0x317   :  { %v3527_v11 = vadd.f32 %v14895_v25, %v11569_v35  ;;  %v3518_v58 = vpop.f32.mrb[207].mxu0  ;;  %v5053_v47 = vpop.permute.xlu1 %5052  ;;  %v4504_v46 = vmax.f32 %v3524_v20, 0.0  ;;  %v17538_v35 = vld [vmem:[#allocation277_spill] sm:$0xff] }
 0x318   :  { %v3519_v14 = vadd.f32 %v14895_v25, %v3518_v58  ;;  %v15160_v23 = vsel %vm5186_vm2, %v17534_v49, %v5053_v47  ;;  %v4502_v54 = vmax.f32 %v3516_v55, 0.0 }
 0x319   :  { %v4505_v37 = vmax.f32 %v3527_v11, 0.0  ;;  %11675 = vmatmul.mubr.msk.bf16.gmra.mrb[56].mxu0 %vm2060_vm0, %v12029_v5 }
 0x31a   :  { %v4503_v45 = vmax.f32 %v3519_v14, 0.0  ;;  %11678 = vmatprep.mubr.msk.bf16.mxu0 %vm2060_vm0, %v12030_v6  ;;  %v12035_v14 = vld [vmem:[%s17509_s1 + $0x518] sm:$0xff]  }
 0x31b   :  { %v15164_v44 = vpack.c.bf16 %v4505_v37, %v4504_v46  ;;  %v15166_v18 = vpop.permute.xlu1 %5050  ;;  %v12036_v37 = vld [vmem:[%s17509_s1 + $0x520] sm:$0xff]  }
 0x31c   :  { %v15168_v13 = vpack.c.bf16 %v4503_v45, %v4502_v54  ;;  %v11572_v7 = vpop.f32.mrb[208].mxu0 }
 0x31d   :  { %v3540_v60 = vadd.f32 %v14895_v25, %v11572_v7  ;;  %v3531_v26 = vpop.f32.mrb[209].mxu0 }
 0x31e   :  { %v3532_v43 = vadd.f32 %v14895_v25, %v3531_v26  ;;  %v11573_v48 = vpop.f32.mrb[210].mxu0  ;;  %v17539_v26 = vld [vmem:[#allocation278_spill] sm:$0xff] }
 0x31f   :  { %v3543_v34 = vadd.f32 %v14895_v25, %v11573_v48  ;;  %v3534_v52 = vpop.f32.mrb[211].mxu0  ;;  %v5057_v0 = vpop.permute.xlu1 %5056  ;;  %v4508_v9 = vmax.f32 %v3540_v60, 0.0 }
 0x320   :  { %v3535_v17 = vadd.f32 %v14895_v25, %v3534_v52  ;;  %v15182_v56 = vsel %vm5186_vm2, %v17535_v40, %v5057_v0  ;;  %v4506_v15 = vmax.f32 %v3532_v43, 0.0  ;;  %v17540_v40 = vld [vmem:[#allocation279_spill] sm:$0xff] }
 0x321   :  { %v4509_v29 = vmax.f32 %v3543_v34, 0.0  ;;  %11679 = vmatmul.mubr.msk.bf16.gmra.mrb[60].mxu0 %vm2060_vm0, %v12031_v62 }
 0x322   :  { %v4507_v1 = vmax.f32 %v3535_v17, 0.0  ;;  %11682 = vmatprep.mubr.msk.bf16.mxu0 %vm2060_vm0, %v12032_v4 }
 0x323   :  { %v4803_v30 = vpack.c.bf16 %v4509_v29, %v4508_v9  ;;  %v5055_v19 = vpop.permute.xlu1 %5054 }
 0x324   :  { %v4802_v12 = vpack.c.bf16 %v4507_v1, %v4506_v15  ;;  %v15188_v59 = vsel %vm5186_vm2, %v17536_v10, %v5055_v19  ;;  %v11576_v3 = vpop.f32.mrb[212].mxu0  ;;  %v12038_v10 = vld [vmem:[%s17509_s1 + $0x530] sm:$0xff]  }
 0x325   :  { %v3556_v51 = vadd.f32 %v14895_v25, %v11576_v3  ;;  %v3547_v33 = vpop.f32.mrb[213].mxu0  ;;  %5124 = vrot.lane.b32.xlu0 %v4803_v30, %s12527_s0  ;;  %v12037_v30 = vld [vmem:[%s17509_s1 + $0x528] sm:$0xff]  }
 0x326   :  { %v3548_v53 = vadd.f32 %v14895_v25, %v3547_v33  ;;  %v11577_v8 = vpop.f32.mrb[214].mxu0 }
 0x327   :  { %v3559_v22 = vadd.f32 %v14895_v25, %v11577_v8  ;;  %v3550_v41 = vpop.f32.mrb[215].mxu0  ;;  %v5061_v50 = vpop.permute.xlu1 %5060  ;;  %v4512_v31 = vmax.f32 %v3556_v51, 0.0 }
 0x328   :  { %v3551_v16 = vadd.f32 %v14895_v25, %v3550_v41  ;;  %v15203_v28 = vsel %vm5186_vm2, %v17537_v24, %v5061_v50  ;;  %v4510_v61 = vmax.f32 %v3548_v53, 0.0 }
 0x329   :  { %v4513_v20 = vmax.f32 %v3559_v22, 0.0  ;;  %11683 = vmatmul.mubr.msk.bf16.gmra.mrb[64].mxu0 %vm2060_vm0, %v12033_v63  ;;  %5122 = vrot.lane.b32.xlu0 %v4802_v12, %s12527_s0 }
 0x32a   :  { %v4511_v57 = vmax.f32 %v3551_v16, 0.0  ;;  %11686 = vmatprep.mubr.msk.bf16.mxu0 %vm2060_vm0, %v12034_v27 }
 0x32b   :  { %v4805_v32 = vpack.c.bf16 %v4513_v20, %v4512_v31  ;;  %v5059_v5 = vpop.permute.xlu1 %5058  ;;  %v12064_v31 = vld [vmem:[%s17237_s7 + $0xc0] sm:$0xff]  }
 0x32c   :  { %v4804_v55 = vpack.c.bf16 %v4511_v57, %v4510_v61  ;;  %v15210_v6 = vsel %vm5186_vm2, %v17538_v35, %v5059_v5  ;;  %v11580_v11 = vpop.f32.mrb[216].mxu0  ;;  %v12039_v57 = vld [vmem:[%s17509_s1 + $0x538] sm:$0xff]   ;;  %v12040_v35 = vld [vmem:[%s17509_s1 + $0x540] sm:$0xff]   ;;  %10780 = vmatprep.subr.bf16.mxu1 %v12064_v31 }
 0x32d   :  { %v3572_v58 = vadd.f32 %v14895_v25, %v11580_v11  ;;  %v3563_v47 = vpop.f32.mrb[217].mxu0  ;;  %5128 = vrot.lane.b32.xlu0 %v4805_v32, %s12527_s0  ;;  %v12065_v32 = vld [vmem:[%s17237_s7 + $0x80] sm:$0xff]  }
 0x32e   :  { %v3564_v49 = vadd.f32 %v14895_v25, %v3563_v47  ;;  %v11581_v46 = vpop.f32.mrb[218].mxu0  ;;  %10781 = vmatpush3.bf16.msra.mxu1 %v12065_v32 }
 0x32f   :  { %v3575_v54 = vadd.f32 %v14895_v25, %v11581_v46  ;;  %v3566_v45 = vpop.f32.mrb[219].mxu0  ;;  %v5065_v7 = vpop.permute.xlu1 %5064  ;;  %v4516_v43 = vmax.f32 %v3572_v58, 0.0 }
 0x330   :  { %v3567_v60 = vadd.f32 %v14895_v25, %v3566_v45  ;;  %v15225_v62 = vsel %vm5186_vm2, %v17539_v26, %v5065_v7  ;;  %v4514_v4 = vmax.f32 %v3564_v49, 0.0  ;;  %v12066_v49 = vld [vmem:[%s17237_s7 + $0xc8] sm:$0xff]  }
 0x331   :  { %v4517_v48 = vmax.f32 %v3575_v54, 0.0  ;;  %11687 = vmatmul.mubr.msk.bf16.gmra.mrb[68].mxu0 %vm2060_vm0, %v12035_v14  ;;  %5126 = vrot.lane.b32.xlu0 %v4804_v55, %s12527_s0  ;;  %v12067_v54 = vld [vmem:[%s17237_s7 + $0x88] sm:$0xff]  }
 0x332   :  { %v4515_v34 = vmax.f32 %v3567_v60, 0.0  ;;  %11690 = vmatprep.mubr.msk.bf16.mxu0 %vm2060_vm0, %v12036_v37  ;;  %10782 = vmatprep.subr.bf16.mxu1 %v12066_v49 }
 0x333   :  { %v4807_v52 = vpack.c.bf16 %v4517_v48, %v4516_v43  ;;  %v5063_v0 = vpop.permute.xlu1 %5062  ;;  %10783 = vmatpush3.bf16.msra.mxu1 %v12067_v54 }
 0x334   :  { %v4806_v17 = vpack.c.bf16 %v4515_v34, %v4514_v4  ;;  %v15232_v9 = vsel %vm5186_vm2, %v17540_v40, %v5063_v0  ;;  %v11584_v29 = vpop.f32.mrb[220].mxu0  ;;  %v12068_v4 = vld [vmem:[%s17237_s7 + $0xd0] sm:$0xff]   ;;  %v12041_v0 = vld [vmem:[%s17509_s1 + $0x548] sm:$0xff]  }
 0x335   :  { %v3588_v15 = vadd.f32 %v14895_v25, %v11584_v29  ;;  %v3579_v1 = vpop.f32.mrb[221].mxu0  ;;  %5132 = vrot.lane.b32.xlu0 %v4807_v52, %s12527_s0  ;;  %10784 = vmatprep.subr.bf16.mxu1 %v12068_v4  ;;  %v12076_v4 = vld [vmem:[%s17237_s7 + $0xf0] sm:$0xff]  }
 0x336   :  { %v3580_v19 = vadd.f32 %v14895_v25, %v3579_v1  ;;  %v11585_v12 = vpop.f32.mrb[222].mxu0 }
 0x337   :  { %v3591_v3 = vadd.f32 %v14895_v25, %v11585_v12  ;;  %v3582_v51 = vpop.f32.mrb[223].mxu0  ;;  %v15244_v33 = vpop.permute.xlu1 %5076  ;;  %v4520_v53 = vmax.f32 %v3588_v15, 0.0  ;;  %v12042_v15 = vld [vmem:[%s17509_s1 + $0x550] sm:$0xff]  }
 0x338   :  { %v3583_v63 = vadd.f32 %v14895_v25, %v3582_v51  ;;  %v4518_v27 = vmax.f32 %v3580_v19, 0.0 }
 0x339   :  { %v4521_v8 = vmax.f32 %v3591_v3, 0.0  ;;  %11691 = vmatmul.mubr.msk.bf16.gmra.mrb[72].mxu0 %vm2060_vm0, %v12037_v30  ;;  %5130 = vrot.lane.b32.xlu0 %v4806_v17, %s12527_s0  ;;  %v12069_v17 = vld [vmem:[%s17237_s7 + $0x90] sm:$0xff]  }
 0x33a   :  { %v4519_v22 = vmax.f32 %v3583_v63, 0.0  ;;  %11694 = vmatprep.mubr.msk.bf16.mxu0 %vm2060_vm0, %v12038_v10  ;;  %10785 = vmatpush3.bf16.msra.mxu1 %v12069_v17  ;;  %v12070_v10 = vld [vmem:[%s17237_s7 + $0xd8] sm:$0xff]   ;;  %v12077_v17 = vld [vmem:[%s17237_s7 + $0xb0] sm:$0xff]  }
 0x33b   :  { %v4809_v41 = vpack.c.bf16 %v4521_v8, %v4520_v53  ;;  %v15250_v50 = vpop.permute.xlu1 %5074  ;;  %v12071_v63 = vld [vmem:[%s17237_s7 + $0x98] sm:$0xff]   ;;  %10786 = vmatprep.subr.bf16.mxu1 %v12070_v10 }
 0x33c   :  { %v4808_v16 = vpack.c.bf16 %v4519_v22, %v4518_v27  ;;  %v11588_v24 = vpop.f32.mrb[224].mxu0  ;;  %v12078_v10 = vld [vmem:[%s17237_s7 + $0xf8] sm:$0xff]  }
 0x33d   :  { %v3604_v20 = vadd.f32 %v14895_v25, %v11588_v24  ;;  %v3595_v61 = vpop.f32.mrb[225].mxu0  ;;  %5136 = vrot.lane.b32.xlu0 %v4809_v41, %s12527_s0  ;;  %v12072_v24 = vld [vmem:[%s17237_s7 + $0xe0] sm:$0xff]  }
 0x33e   :  { %v3596_v5 = vadd.f32 %v14895_v25, %v3595_v61  ;;  %v11589_v55 = vpop.f32.mrb[226].mxu0  ;;  %10787 = vmatpush3.bf16.msra.mxu1 %v12071_v63  ;;  %v12043_v61 = vld [vmem:[%s17509_s1 + $0x558] sm:$0xff]  }
 0x33f   :  { %v3607_v11 = vadd.f32 %v14895_v25, %v11589_v55  ;;  %v3598_v58 = vpop.f32.mrb[227].mxu0  ;;  %v15268_v47 = vpop.permute.xlu1 %5080  ;;  %v4524_v46 = vmax.f32 %v3604_v20, 0.0  ;;  %v12044_v55 = vld [vmem:[%s17509_s1 + $0x560] sm:$0xff]   ;;  %10788 = vmatprep.subr.bf16.mxu1 %v12072_v24  ;;  %v12079_v63 = vld [vmem:[%s17237_s7 + $0xb8] sm:$0xff]  }
 0x340   :  { %v3599_v14 = vadd.f32 %v14895_v25, %v3598_v58  ;;  %v4522_v45 = vmax.f32 %v3596_v5, 0.0 }
 0x341   :  { %v4525_v37 = vmax.f32 %v3607_v11, 0.0  ;;  %11695 = vmatmul.mubr.msk.bf16.gmra.mrb[76].mxu0 %vm2060_vm0, %v12039_v57  ;;  %5134 = vrot.lane.b32.xlu0 %v4808_v16, %s12527_s0  ;;  %v12073_v57 = vld [vmem:[%s17237_s7 + $0xa0] sm:$0xff]  }
 0x342   :  { %v4523_v7 = vmax.f32 %v3599_v14, 0.0  ;;  %11698 = vmatprep.mubr.msk.bf16.mxu0 %vm2060_vm0, %v12040_v35  ;;  %10789 = vmatpush3.bf16.msra.mxu1 %v12073_v57 }
 0x343   :  { %v4811_v60 = vpack.c.bf16 %v4525_v37, %v4524_v46  ;;  %v15280_v26 = vpop.permute.xlu1 %5078  ;;  %v12074_v46 = vld [vmem:[%s17237_s7 + $0xe8] sm:$0xff]  }
 0x344   :  { %v4810_v43 = vpack.c.bf16 %v4523_v7, %v4522_v45  ;;  %v11592_v48 = vpop.f32.mrb[228].mxu0  ;;  %v12075_v45 = vld [vmem:[%s17237_s7 + $0xa8] sm:$0xff]   ;;  %10790 = vmatprep.subr.bf16.mxu1 %v12074_v46 }
 0x345   :  { %v3620_v34 = vadd.f32 %v14895_v25, %v11592_v48  ;;  %v3611_v52 = vpop.f32.mrb[229].mxu0  ;;  %5148 = vrot.lane.b32.xlu0 %v4811_v60, %s12528_s19 }
 0x346   :  { %v3612_v40 = vadd.f32 %v14895_v25, %v3611_v52  ;;  %v11593_v29 = vpop.f32.mrb[230].mxu0  ;;  %10791 = vmatpush3.bf16.msra.mxu1 %v12075_v45 }
 0x347   :  { %v3623_v1 = vadd.f32 %v14895_v25, %v11593_v29  ;;  %v3614_v30 = vpop.f32.mrb[231].mxu0  ;;  %v15298_v19 = vpop.permute.xlu1 %5084  ;;  %v4528_v3 = vmax.f32 %v3620_v34, 0.0  ;;  %10792 = vmatprep.subr.bf16.mxu1 %v12076_v4  ;;  %v12050_v4 = vld [vmem:[%s17509_s1 + $0x590] sm:$0xff]  }
 0x348   :  { %v3615_v12 = vadd.f32 %v14895_v25, %v3614_v30  ;;  %v4526_v53 = vmax.f32 %v3612_v40, 0.0 }
 0x349   :  { %v4529_v51 = vmax.f32 %v3623_v1, 0.0  ;;  %11699 = vmatmul.mubr.msk.bf16.gmra.mrb[80].mxu0 %vm2060_vm0, %v12041_v0  ;;  %5146 = vrot.lane.b32.xlu0 %v4810_v43, %s12528_s19  ;;  %v12045_v0 = vld [vmem:[%s17509_s1 + $0x568] sm:$0xff]  }
 0x34a   :  { %v4527_v8 = vmax.f32 %v3615_v12, 0.0  ;;  %11702 = vmatprep.mubr.msk.bf16.mxu0 %vm2060_vm0, %v12042_v15  ;;  %v12046_v15 = vld [vmem:[%s17509_s1 + $0x570] sm:$0xff]   ;;  %10793 = vmatpush3.bf16.msra.mxu1 %v12077_v17 }
 0x34b   :  { %v4813_v27 = vpack.c.bf16 %v4529_v51, %v4528_v3  ;;  %v15310_v22 = vpop.permute.xlu1 %5082  ;;  %10794 = vmatprep.subr.bf16.mxu1 %v12078_v10 }
 0x34c   :  { %v4812_v41 = vpack.c.bf16 %v4527_v8, %v4526_v53  ;;  %v11596_v16 = vpop.f32.mrb[232].mxu0 }
 0x34d   :  { %v3636_v31 = vadd.f32 %v14895_v25, %v11596_v16  ;;  %v3627_v20 = vpop.f32.mrb[233].mxu0  ;;  %5152 = vrot.lane.b32.xlu0 %v4813_v27, %s12528_s19 }
 0x34e   :  { %v3628_v32 = vadd.f32 %v14895_v25, %v3627_v20  ;;  %v11597_v5 = vpop.f32.mrb[234].mxu0  ;;  %10795 = vmatpush3.bf16.msra.mxu1 %v12079_v63  ;;  %v12047_v20 = vld [vmem:[%s17509_s1 + $0x578] sm:$0xff]  }
 0x34f   :  { %v3639_v35 = vadd.f32 %v14895_v25, %v11597_v5  ;;  %v3630_v11 = vpop.f32.mrb[235].mxu0  ;;  %v5089_v58 = vpop.permute.xlu1 %5088  ;;  %v4532_v37 = vmax.f32 %v3636_v31, 0.0 }
 0x350   :  { %v3631_v14 = vadd.f32 %v14895_v25, %v3630_v11  ;;  %v15331_v49 = vsel %vm5211_vm3, %v15225_v62, %v5089_v58  ;;  %v4530_v7 = vmax.f32 %v3628_v32, 0.0  ;;  %v12048_v32 = vld [vmem:[%s17509_s1 + $0x580] sm:$0xff]  }
 0x351   :  { %v4533_v54 = vmax.f32 %v3639_v35, 0.0  ;;  %11703 = vmatmul.mubr.msk.bf16.gmra.mrb[84].mxu0 %vm2060_vm0, %v12043_v61  ;;  %5150 = vrot.lane.b32.xlu0 %v4812_v41, %s12528_s19 }
 0x352   :  { %v4531_v60 = vmax.f32 %v3631_v14, 0.0  ;;  %11706 = vmatprep.mubr.msk.bf16.mxu0 %vm2060_vm0, %v12044_v55 }
 0x353   :  { %v4815_v62 = vpack.c.bf16 %v4533_v54, %v4532_v37 }
 0x354   :  { %v4814_v43 = vpack.c.bf16 %v4531_v60, %v4530_v7  ;;  %v11600_v48 = vpop.f32.mrb[236].mxu0 }
 0x355   :  { %v3652_v34 = vadd.f32 %v14895_v25, %v11600_v48  ;;  %v3643_v52 = vpop.f32.mrb[237].mxu0  ;;  %5156 = vrot.lane.b32.xlu0 %v4815_v62, %s12528_s19  ;;  %v12049_v62 = vld [vmem:[%s17509_s1 + $0x588] sm:$0xff]  }
 0x356   :  { %v3644_v40 = vadd.f32 %v14895_v25, %v3643_v52  ;;  %v11601_v29 = vpop.f32.mrb[238].mxu0 }
 0x357   :  { %v3655_v1 = vadd.f32 %v14895_v25, %v11601_v29  ;;  %v3646_v30 = vpop.f32.mrb[239].mxu0  ;;  %v4536_v3 = vmax.f32 %v3652_v34, 0.0  ;;  %v15394_v34 = vld [vmem:[%s17236_s6] ss:$0 sm:$0xff] }
 0x358   :  { %v3647_v12 = vadd.f32 %v14895_v25, %v3646_v30  ;;  %v4534_v53 = vmax.f32 %v3644_v40, 0.0 }
 0x359   :  { %v4537_v51 = vmax.f32 %v3655_v1, 0.0  ;;  %11707 = vmatmul.mubr.msk.bf16.gmra.mrb[88].mxu0 %vm2060_vm0, %v12045_v0  ;;  %5154 = vrot.lane.b32.xlu0 %v4814_v43, %s12528_s19 }
 0x35a   :  { %v4535_v8 = vmax.f32 %v3647_v12, 0.0  ;;  %11710 = vmatprep.mubr.msk.bf16.mxu0 %vm2060_vm0, %v12046_v15 }
 0x35b   :  { %v4817_v27 = vpack.c.bf16 %v4537_v51, %v4536_v3  ;;  %v12051_v51 = vld [vmem:[%s17509_s1 + $0x598] sm:$0xff]  }
 0x35c   :  { %v4816_v41 = vpack.c.bf16 %v4535_v8, %v4534_v53  ;;  %v11604_v16 = vpop.f32.mrb[240].mxu0  ;;  %v12052_v8 = vld [vmem:[%s17509_s1 + $0x5a0] sm:$0xff]  }
 0x35d   :  { %v3668_v24 = vadd.f32 %v14895_v25, %v11604_v16  ;;  %v3659_v31 = vpop.f32.mrb[241].mxu0  ;;  %5160 = vrot.lane.b32.xlu0 %v4817_v27, %s12528_s19 }
 0x35e   :  { %v3660_v61 = vadd.f32 %v14895_v25, %v3659_v31  ;;  %v11605_v57 = vpop.f32.mrb[242].mxu0 }
 0x35f   :  { %v3671_v5 = vadd.f32 %v14895_v25, %v11605_v57  ;;  %v3662_v55 = vpop.f32.mrb[243].mxu0  ;;  %v4540_v11 = vmax.f32 %v3668_v24, 0.0 }
 0x360   :  { %v3663_v35 = vadd.f32 %v14895_v25, %v3662_v55  ;;  %v4538_v14 = vmax.f32 %v3660_v61, 0.0 }
 0x361   :  { %v4541_v58 = vmax.f32 %v3671_v5, 0.0  ;;  %11711 = vmatmul.mubr.msk.bf16.gmra.mrb[92].mxu0 %vm2060_vm0, %v12047_v20  ;;  %5158 = vrot.lane.b32.xlu0 %v4816_v41, %s12528_s19 }
 0x362   :  { %v4539_v46 = vmax.f32 %v3663_v35, 0.0  ;;  %11714 = vmatprep.mubr.msk.bf16.mxu0 %vm2060_vm0, %v12048_v32 }
 0x363   :  { %v4819_v37 = vpack.c.bf16 %v4541_v58, %v4540_v11  ;;  %v12053_v11 = vld [vmem:[%s17509_s1 + $0x5a8] sm:$0xff]  }
 0x364   :  { %v4818_v54 = vpack.c.bf16 %v4539_v46, %v4538_v14  ;;  %v11608_v45 = vpop.f32.mrb[244].mxu0  ;;  %v12054_v46 = vld [vmem:[%s17509_s1 + $0x5b0] sm:$0xff]  }
 0x365   :  { %v3684_v7 = vadd.f32 %v14895_v25, %v11608_v45  ;;  %v3675_v60 = vpop.f32.mrb[245].mxu0  ;;  %5172 = vrot.lane.b32.xlu0 %v4819_v37, %s12529_s8 }
 0x366   :  { %v3676_v43 = vadd.f32 %v14895_v25, %v3675_v60  ;;  %v11609_v48 = vpop.f32.mrb[246].mxu0 }
 0x367   :  { %v3687_v52 = vadd.f32 %v15394_v34, %v11609_v48  ;;  %v3678_v0 = vpop.f32.mrb[247].mxu0  ;;  %v4544_v40 = vmax.f32 %v3684_v7, 0.0 }
 0x368   :  { %v3679_v17 = vadd.f32 %v15394_v34, %v3678_v0  ;;  %v4542_v25 = vmax.f32 %v3676_v43, 0.0 }
 0x369   :  { %v4545_v29 = vmax.f32 %v3687_v52, 0.0  ;;  %11715 = vmatmul.mubr.msk.bf16.gmra.mrb[96].mxu0 %vm2060_vm0, %v12049_v62  ;;  %5170 = vrot.lane.b32.xlu0 %v4818_v54, %s12529_s8 }
 0x36a   :  { %v4543_v15 = vmax.f32 %v3679_v17, 0.0  ;;  %11718 = vmatprep.mubr.msk.bf16.mxu0 %vm2060_vm0, %v12050_v4 }
 0x36b   :  { %v4821_v1 = vpack.c.bf16 %v4545_v29, %v4544_v40  ;;  %v12055_v40 = vld [vmem:[%s17509_s1 + $0x5b8] sm:$0xff]  }
 0x36c   :  { %v4820_v30 = vpack.c.bf16 %v4543_v15, %v4542_v25  ;;  %v11612_v12 = vpop.f32.mrb[248].mxu0  ;;  %v12056_v15 = vld [vmem:[%s17509_s1 + $0x5c0] sm:$0xff]  }
 0x36d   :  { %v3700_v10 = vadd.f32 %v15394_v34, %v11612_v12  ;;  %v3691_v3 = vpop.f32.mrb[249].mxu0  ;;  %5176 = vrot.lane.b32.xlu0 %v4821_v1, %s12529_s8 }
 0x36e   :  { %v3692_v63 = vadd.f32 %v15394_v34, %v3691_v3  ;;  %v11613_v53 = vpop.f32.mrb[250].mxu0 }
 0x36f   :  { %v3703_v27 = vadd.f32 %v15394_v34, %v11613_v53  ;;  %v3694_v41 = vpop.f32.mrb[251].mxu0  ;;  %v4548_v24 = vmax.f32 %v3700_v10, 0.0 }
 0x370   :  { %v3695_v16 = vadd.f32 %v15394_v34, %v3694_v41  ;;  %v4546_v20 = vmax.f32 %v3692_v63, 0.0 }
 0x371   :  { %v4549_v31 = vmax.f32 %v3703_v27, 0.0  ;;  %11719 = vmatmul.mubr.msk.bf16.gmra.mrb[100].mxu0 %vm2060_vm0, %v12051_v51  ;;  %5174 = vrot.lane.b32.xlu0 %v4820_v30, %s12529_s8 }
 0x372   :  { %v4547_v61 = vmax.f32 %v3695_v16, 0.0  ;;  %11722 = vmatprep.mubr.msk.bf16.mxu0 %vm2060_vm0, %v12052_v8 }
 0x373   :  { %v4823_v57 = vpack.c.bf16 %v4549_v31, %v4548_v24  ;;  %v12057_v24 = vld [vmem:[%s17509_s1 + $0x5c8] sm:$0xff]  }
 0x374   :  { %v4822_v32 = vpack.c.bf16 %v4547_v61, %v4546_v20  ;;  %v11616_v5 = vpop.f32.mrb[252].mxu0  ;;  %v12058_v61 = vld [vmem:[%s17509_s1 + $0x5d0] sm:$0xff]  }
 0x375   :  { %v3716_v55 = vadd.f32 %v15394_v34, %v11616_v5  ;;  %v3707_v35 = vpop.f32.mrb[253].mxu0  ;;  %5180 = vrot.lane.b32.xlu0 %v4823_v57, %s12529_s8 }
 0x376   :  { %v3708_v58 = vadd.f32 %v15394_v34, %v3707_v35  ;;  %v11617_v14 = vpop.f32.mrb[254].mxu0 }
 0x377   :  { %v3719_v37 = vadd.f32 %v15394_v34, %v11617_v14  ;;  %v3710_v54 = vpop.f32.mrb[255].mxu0  ;;  %v4552_v7 = vmax.f32 %v3716_v55, 0.0 }
 0x378   :  { %v3711_v45 = vadd.f32 %v15394_v34, %v3710_v54  ;;  %v4550_v62 = vmax.f32 %v3708_v58, 0.0 }
 0x379   :  { %v4553_v60 = vmax.f32 %v3719_v37, 0.0  ;;  %11723 = vmatmul.mubr.msk.bf16.gmra.mrb[104].mxu0 %vm2060_vm0, %v12053_v11  ;;  %5178 = vrot.lane.b32.xlu0 %v4822_v32, %s12529_s8 }
 0x37a   :  { %v4551_v43 = vmax.f32 %v3711_v45, 0.0  ;;  %11726 = vmatprep.mubr.msk.bf16.mxu0 %vm2060_vm0, %v12054_v46 }
 0x37b   :  { %v4825_v48 = vpack.c.bf16 %v4553_v60, %v4552_v7  ;;  %v12059_v7 = vld [vmem:[%s17509_s1 + $0x5d8] sm:$0xff]  }
 0x37c   :  { %v4824_v4 = vpack.c.bf16 %v4551_v43, %v4550_v62  ;;  %v11620_v52 = vpop.f32.mrb[0].mxu0  ;;  %v12060_v43 = vld [vmem:[%s17509_s1 + $0x5e0] sm:$0xff]  }
 0x37d   :  { %v3732_v0 = vadd.f32 %v15394_v34, %v11620_v52  ;;  %v3723_v17 = vpop.f32.mrb[1].mxu0  ;;  %5184 = vrot.lane.b32.xlu0 %v4825_v48, %s12529_s8 }
 0x37e   :  { %v3724_v29 = vadd.f32 %v15394_v34, %v3723_v17  ;;  %v11621_v25 = vpop.f32.mrb[2].mxu0 }
 0x37f   :  { %v3735_v1 = vadd.f32 %v15394_v34, %v11621_v25  ;;  %v3726_v30 = vpop.f32.mrb[3].mxu0  ;;  %v4556_v10 = vmax.f32 %v3732_v0, 0.0 }
 0x380   :  { %v3727_v12 = vadd.f32 %v15394_v34, %v3726_v30  ;;  %v4554_v51 = vmax.f32 %v3724_v29, 0.0 }
 0x381   :  { %v4557_v3 = vmax.f32 %v3735_v1, 0.0  ;;  %11727 = vmatmul.mubr.msk.bf16.gmra.mrb[108].mxu0 %vm2060_vm0, %v12055_v40  ;;  %5182 = vrot.lane.b32.xlu0 %v4824_v4, %s12529_s8 }
 0x382   :  { %v4555_v63 = vmax.f32 %v3727_v12, 0.0  ;;  %11730 = vmatprep.mubr.msk.bf16.mxu0 %vm2060_vm0, %v12056_v15 }
 0x383   :  { %v15443_v53 = vpack.c.bf16 %v4557_v3, %v4556_v10  ;;  %v12061_v10 = vld [vmem:[%s17509_s1 + $0x5e8] sm:$0xff]  }
 0x384   :  { %v15445_v8 = vpack.c.bf16 %v4555_v63, %v4554_v51  ;;  %v11624_v27 = vpop.f32.mrb[4].mxu0  ;;  %v12062_v63 = vld [vmem:[%s17509_s1 + $0x5f0] sm:$0xff]  }
 0x385   :  { %17541 = vst [vmem:[#allocation281_spill] sm:$0xff] %v15443_v53  ;;  %v3748_v41 = vadd.f32 %v15394_v34, %v11624_v27  ;;  %v3739_v16 = vpop.f32.mrb[5].mxu0 }
 0x386   :  { %17542 = vst [vmem:[#allocation282_spill] sm:$0xff] %v15445_v8  ;;  %v3740_v31 = vadd.f32 %v15394_v34, %v3739_v16  ;;  %v11625_v20 = vpop.f32.mrb[6].mxu0 }
 0x387   :  { %v3751_v57 = vadd.f32 %v15394_v34, %v11625_v20  ;;  %v3742_v32 = vpop.f32.mrb[7].mxu0  ;;  %v4560_v55 = vmax.f32 %v3748_v41, 0.0 }
 0x388   :  { %v3743_v5 = vadd.f32 %v15394_v34, %v3742_v32  ;;  %v4558_v11 = vmax.f32 %v3740_v31, 0.0 }
 0x389   :  { %v4561_v35 = vmax.f32 %v3751_v57, 0.0  ;;  %11731 = vmatmul.mubr.msk.bf16.gmra.mrb[112].mxu0 %vm2060_vm0, %v12057_v24 }
 0x38a   :  { %v4559_v58 = vmax.f32 %v3743_v5, 0.0  ;;  %11734 = vmatprep.mubr.msk.bf16.mxu0 %vm2060_vm0, %v12058_v61 }
 0x38b   :  { %v15459_v14 = vpack.c.bf16 %v4561_v35, %v4560_v55 }
 0x38c   :  { %v15461_v46 = vpack.c.bf16 %v4559_v58, %v4558_v11  ;;  %v11628_v37 = vpop.f32.mrb[8].mxu0 }
 0x38d   :  { %17543 = vst [vmem:[#allocation270_spill] sm:$0xff] %v15459_v14  ;;  %v3764_v54 = vadd.f32 %v15394_v34, %v11628_v37  ;;  %v3755_v45 = vpop.f32.mrb[9].mxu0 }
 0x38e   :  { %17544 = vst [vmem:[#allocation284_spill] sm:$0xff] %v15461_v46  ;;  %v3756_v60 = vadd.f32 %v15394_v34, %v3755_v45  ;;  %v11629_v62 = vpop.f32.mrb[10].mxu0 }
 0x38f   :  { %v3767_v48 = vadd.f32 %v15394_v34, %v11629_v62  ;;  %v3758_v4 = vpop.f32.mrb[11].mxu0  ;;  %v4564_v0 = vmax.f32 %v3764_v54, 0.0 }
 0x390   :  { %v3759_v52 = vadd.f32 %v15394_v34, %v3758_v4  ;;  %v4562_v40 = vmax.f32 %v3756_v60, 0.0 }
 0x391   :  { %v4565_v17 = vmax.f32 %v3767_v48, 0.0  ;;  %11735 = vmatmul.mubr.msk.bf16.gmra.mrb[116].mxu0 %vm2060_vm0, %v12059_v7 }
 0x392   :  { %v4563_v29 = vmax.f32 %v3759_v52, 0.0  ;;  %11738 = vmatprep.mubr.msk.bf16.mxu0 %vm2060_vm0, %v12060_v43 }
 0x393   :  { %v15475_v25 = vpack.c.bf16 %v4565_v17, %v4564_v0 }
 0x394   :  { %v15477_v15 = vpack.c.bf16 %v4563_v29, %v4562_v40  ;;  %v11632_v1 = vpop.f32.mrb[12].mxu0 }
 0x395   :  { %17545 = vst [vmem:[#allocation271_spill] sm:$0xff] %v15475_v25  ;;  %v3780_v30 = vadd.f32 %v15394_v34, %v11632_v1  ;;  %v3771_v12 = vpop.f32.mrb[13].mxu0 }
 0x396   :  { %17546 = vst [vmem:[#allocation269_spill] sm:$0xff] %v15477_v15  ;;  %v3772_v3 = vadd.f32 %v15394_v34, %v3771_v12  ;;  %v11633_v51 = vpop.f32.mrb[14].mxu0 }
 0x397   :  { %v3783_v27 = vadd.f32 %v15394_v34, %v11633_v51  ;;  %v3774_v41 = vpop.f32.mrb[15].mxu0  ;;  %v5125_v16 = vpop.permute.xlu0 %5124  ;;  %v4568_v20 = vmax.f32 %v3780_v30, 0.0 }
 0x398   :  { %v3775_v24 = vadd.f32 %v15394_v34, %v3774_v41  ;;  %v15491_v31 = vsel %vm5186_vm2, %v15081_v2, %v5125_v16  ;;  %v4566_v57 = vmax.f32 %v3772_v3, 0.0  ;;  %v12063_v2 = vld [vmem:[%s17509_s1 + $0x5f8] sm:$0xff]  }
 0x399   :  { %v4569_v61 = vmax.f32 %v3783_v27, 0.0  ;;  %11739 = vmatmul.mubr.msk.bf16.gmra.mrb[120].mxu0 %vm2060_vm0, %v12061_v10 }
 0x39a   :  { %v4567_v32 = vmax.f32 %v3775_v24, 0.0  ;;  %11742 = vmatprep.mubr.msk.bf16.mxu0 %vm2060_vm0, %v12062_v63 }
 0x39b   :  { %v15495_v5 = vpack.c.bf16 %v4569_v61, %v4568_v20  ;;  %v15497_v55 = vpop.permute.xlu0 %5122 }
 0x39c   :  { %v15499_v35 = vpack.c.bf16 %v4567_v32, %v4566_v57  ;;  %v11636_v11 = vpop.f32.mrb[16].mxu0 }
 0x39d   :  { %17547 = vst [vmem:[#allocation280_spill] sm:$0xff] %v15495_v5  ;;  %v3796_v58 = vadd.f32 %v15394_v34, %v11636_v11  ;;  %v3787_v37 = vpop.f32.mrb[17].mxu0 }
 0x39e   :  { %17548 = vst [vmem:[#allocation283_spill] sm:$0xff] %v15499_v35  ;;  %v3788_v54 = vadd.f32 %v15394_v34, %v3787_v37  ;;  %v11637_v45 = vpop.f32.mrb[18].mxu0 }
 0x39f   :  { %v3799_v7 = vadd.f32 %v15394_v34, %v11637_v45  ;;  %v3790_v60 = vpop.f32.mrb[19].mxu0  ;;  %v5129_v62 = vpop.permute.xlu0 %5128  ;;  %v4572_v4 = vmax.f32 %v3796_v58, 0.0 }
 0x3a0   :  { %v3791_v43 = vadd.f32 %v15394_v34, %v3790_v60  ;;  %v15510_v48 = vsel %vm5186_vm2, %v15110_v42, %v5129_v62  ;;  %v4570_v0 = vmax.f32 %v3788_v54, 0.0 }
 0x3a1   :  { %v4573_v52 = vmax.f32 %v3799_v7, 0.0  ;;  %11743 = vmatmul.mubr.msk.bf16.gmra.mrb[124].mxu0 %vm2060_vm0, %v12063_v2 }
 0x3a2   :  { %v4571_v17 = vmax.f32 %v3791_v43, 0.0 }
 0x3a3   :  { %v4835_v40 = vpack.c.bf16 %v4573_v52, %v4572_v4  ;;  %v5127_v29 = vpop.permute.xlu0 %5126 }
 0x3a4   :  { %v4834_v1 = vpack.c.bf16 %v4571_v17, %v4570_v0  ;;  %v15515_v30 = vsel %vm5186_vm2, %v15117_v36, %v5127_v29  ;;  %v11640_v12 = vpop.f32.mrb[20].mxu0 }
 0x3a5   :  { %v3812_v10 = vadd.f32 %v15394_v34, %v11640_v12  ;;  %v3803_v3 = vpop.f32.mrb[21].mxu0  ;;  %5455 = vrot.lane.b32.xlu1 %v4835_v40, %s12527_s0 }
 0x3a6   :  { %v3804_v42 = vadd.f32 %v15394_v34, %v3803_v3  ;;  %v11641_v51 = vpop.f32.mrb[22].mxu0 }
 0x3a7   :  { %v3815_v63 = vadd.f32 %v15394_v34, %v11641_v51  ;;  %v3806_v27 = vpop.f32.mrb[23].mxu0  ;;  %v5133_v41 = vpop.permute.xlu0 %5132  ;;  %v4576_v36 = vmax.f32 %v3812_v10, 0.0 }
 0x3a8   :  { %v3807_v16 = vadd.f32 %v15394_v34, %v3806_v27  ;;  %v15524_v24 = vsel %vm5186_vm2, %v15140_v39, %v5133_v41  ;;  %v4574_v61 = vmax.f32 %v3804_v42, 0.0 }
 0x3a9   :  { %v4577_v20 = vmax.f32 %v3815_v63, 0.0  ;;  %5453 = vrot.lane.b32.xlu1 %v4834_v1, %s12527_s0 }
 0x3aa   :  { %v4575_v57 = vmax.f32 %v3807_v16, 0.0 }
 0x3ab   :  { %v4837_v32 = vpack.c.bf16 %v4577_v20, %v4576_v36  ;;  %v5131_v11 = vpop.permute.xlu0 %5130 }
 0x3ac   :  { %v4836_v58 = vpack.c.bf16 %v4575_v57, %v4574_v61  ;;  %v15529_v37 = vsel %vm5186_vm2, %v15144_v21, %v5131_v11  ;;  %v11644_v2 = vpop.f32.mrb[24].mxu0 }
 0x3ad   :  { %v3828_v54 = vadd.f32 %v15394_v34, %v11644_v2  ;;  %v3819_v45 = vpop.f32.mrb[25].mxu0  ;;  %5459 = vrot.lane.b32.xlu1 %v4837_v32, %s12527_s0 }
 0x3ae   :  { %v3820_v39 = vadd.f32 %v15394_v34, %v3819_v45  ;;  %v11645_v7 = vpop.f32.mrb[26].mxu0 }
 0x3af   :  { %v3831_v60 = vadd.f32 %v15394_v34, %v11645_v7  ;;  %v3822_v62 = vpop.f32.mrb[27].mxu0  ;;  %v5137_v43 = vpop.permute.xlu0 %5136  ;;  %v4580_v21 = vmax.f32 %v3828_v54, 0.0 }
 0x3b0   :  { %v3823_v4 = vadd.f32 %v15394_v34, %v3822_v62  ;;  %v15538_v52 = vsel %vm5186_vm2, %v15164_v44, %v5137_v43  ;;  %v4578_v40 = vmax.f32 %v3820_v39, 0.0 }
 0x3b1   :  { %v4581_v0 = vmax.f32 %v3831_v60, 0.0  ;;  %5457 = vrot.lane.b32.xlu1 %v4836_v58, %s12527_s0  ;;  %v10732_v17 = vpop.f32.mrb[0].mxu1  ;;  %v12080_v60 = vld [vmem:[%s17509_s1 + $0x600] sm:$0xff]  }
 0x3b2   :  { %v4579_v29 = vmax.f32 %v3823_v4, 0.0  ;;  %v10733_v1 = vpop.f32.mrb[1].mxu1  ;;  %11746 = vmatprep.mubr.msk.bf16.mxu0 %vm2060_vm0, %v12080_v60 }
 0x3b3   :  { %v15541_v12 = vpack.c.bf16 %v4581_v0, %v4580_v21  ;;  %v15543_v10 = vadd.f32 %v10733_v1, %v10732_v17  ;;  %v5135_v3 = vpop.permute.xlu0 %5134  ;;  %v10735_v42 = vpop.f32.mrb[2].mxu1  ;;  %v12081_v0 = vld [vmem:[%s17509_s1 + $0x608] sm:$0xff]  }
 0x3b4   :  { %v15545_v51 = vpack.c.bf16 %v4579_v29, %v4578_v40  ;;  %v15549_v44 = vsel %vm5186_vm2, %v15168_v13, %v5135_v3  ;;  %v11648_v63 = vpop.f32.mrb[28].mxu0  ;;  %v10736_v27 = vpop.f32.mrb[3].mxu1  ;;  %11747 = vmatmul.mubr.msk.bf16.gmra.mrb[128].mxu0 %vm2060_vm0, %v12081_v0 }
 0x3b5   :  { %v3844_v41 = vadd.f32 %v15394_v34, %v11648_v63  ;;  %v15552_v16 = vadd.f32 %v10736_v27, %v10735_v42  ;;  %v3835_v36 = vpop.f32.mrb[29].mxu0 }
 0x3b6   :  { %v3836_v20 = vadd.f32 %v15394_v34, %v3835_v36  ;;  %v11649_v61 = vpop.f32.mrb[30].mxu0 }
 0x3b7   :  { %v3847_v57 = vadd.f32 %v15394_v34, %v11649_v61  ;;  %v3838_v32 = vpop.f32.mrb[31].mxu0  ;;  %v15556_v11 = vpop.permute.xlu0 %5148  ;;  %v4584_v2 = vmax.f32 %v3844_v41, 0.0 }
 0x3b8   :  { %v3839_v58 = vadd.f32 %v15394_v34, %v3838_v32  ;;  %v4582_v45 = vmax.f32 %v3836_v20, 0.0 }
 0x3b9   :  { %v4585_v13 = vmax.f32 %v3847_v57, 0.0  ;;  %v10738_v54 = vpop.f32.mrb[4].mxu1 }
 0x3ba   :  { %v4583_v39 = vmax.f32 %v3839_v58, 0.0  ;;  %v10739_v7 = vpop.f32.mrb[5].mxu1 }
 0x3bb   :  { %v15562_v62 = vpack.c.bf16 %v4585_v13, %v4584_v2  ;;  %v15564_v43 = vadd.f32 %v10739_v7, %v10738_v54  ;;  %v15566_v4 = vpop.permute.xlu0 %5146  ;;  %v10741_v21 = vpop.f32.mrb[6].mxu1 }
 0x3bc   :  { %v15571_v17 = vpack.c.bf16 %v4583_v39, %v4582_v45  ;;  %v11652_v40 = vpop.f32.mrb[32].mxu0  ;;  %v10742_v29 = vpop.f32.mrb[7].mxu1 }
 0x3bd   :  { %v3860_v1 = vadd.f32 %v15394_v34, %v11652_v40  ;;  %v15575_v3 = vadd.f32 %v10742_v29, %v10741_v21  ;;  %v3851_v42 = vpop.f32.mrb[33].mxu0 }
 0x3be   :  { %v3852_v63 = vadd.f32 %v15394_v34, %v3851_v42  ;;  %v11653_v27 = vpop.f32.mrb[34].mxu0 }
 0x3bf   :  { %v3863_v41 = vadd.f32 %v15394_v34, %v11653_v27  ;;  %v3854_v36 = vpop.f32.mrb[35].mxu0  ;;  %v15580_v20 = vpop.permute.xlu0 %5152  ;;  %v4588_v57 = vmax.f32 %v3860_v1, 0.0  ;;  %v12082_v1 = vld [vmem:[%s17509_s1 + $0x610] sm:$0xff]  }
 0x3c0   :  { %v3855_v61 = vadd.f32 %v15394_v34, %v3854_v36  ;;  %v4586_v2 = vmax.f32 %v3852_v63, 0.0  ;;  %v12083_v36 = vld [vmem:[%s17509_s1 + $0x618] sm:$0xff]   ;;  %11750 = vmatprep.mubr.msk.bf16.mxu0 %vm2060_vm0, %v12082_v1 }
 0x3c1   :  { %v4589_v32 = vmax.f32 %v3863_v41, 0.0  ;;  %v10744_v58 = vpop.f32.mrb[8].mxu1  ;;  %11751 = vmatmul.mubr.msk.bf16.gmra.mrb[132].mxu0 %vm2060_vm0, %v12083_v36 }
 0x3c2   :  { %v4587_v13 = vmax.f32 %v3855_v61, 0.0  ;;  %v10745_v54 = vpop.f32.mrb[9].mxu1 }
 0x3c3   :  { %v4843_v45 = vpack.c.bf16 %v4589_v32, %v4588_v57  ;;  %v15583_v39 = vadd.f32 %v10745_v54, %v10744_v58  ;;  %v15585_v7 = vpop.permute.xlu0 %5150  ;;  %v10747_v60 = vpop.f32.mrb[10].mxu1 }
 0x3c4   :  { %v4842_v21 = vpack.c.bf16 %v4587_v13, %v4586_v2  ;;  %v11656_v0 = vpop.f32.mrb[36].mxu0  ;;  %v10748_v40 = vpop.f32.mrb[11].mxu1 }
 0x3c5   :  { %v3876_v29 = vadd.f32 %v15394_v34, %v11656_v0  ;;  %v15588_v42 = vadd.f32 %v10748_v40, %v10747_v60  ;;  %v3867_v27 = vpop.f32.mrb[37].mxu0  ;;  %5479 = vrot.lane.b32.xlu1 %v4843_v45, %s12528_s19  ;;  %v15605_v45 = vpop.permute.xlu1 %5086 }
 0x3c6   :  { %v3868_v63 = vadd.f32 %v15394_v34, %v3867_v27  ;;  %v11657_v41 = vpop.f32.mrb[38].mxu0 }
 0x3c7   :  { %17549 = vst [vmem:[#allocation272_spill] sm:$0xff] %v15588_v42  ;;  %v3879_v61 = vadd.f32 %v15394_v34, %v11657_v41  ;;  %v3870_v57 = vpop.f32.mrb[39].mxu0  ;;  %v15599_v32 = vpop.permute.xlu0 %5156  ;;  %v4592_v2 = vmax.f32 %v3876_v29, 0.0 }
 0x3c8   :  { %v3871_v58 = vadd.f32 %v15394_v34, %v3870_v57  ;;  %v4590_v60 = vmax.f32 %v3868_v63, 0.0  ;;  %v12084_v63 = vld [vmem:[%s17509_s1 + $0x620] sm:$0xff]  }
 0x3c9   :  { %v4593_v13 = vmax.f32 %v3879_v61, 0.0  ;;  %5477 = vrot.lane.b32.xlu1 %v4842_v21, %s12528_s19  ;;  %v10750_v54 = vpop.f32.mrb[12].mxu1  ;;  %11754 = vmatprep.mubr.msk.bf16.mxu0 %vm2060_vm0, %v12084_v63 }
 0x3ca   :  { %v4591_v0 = vmax.f32 %v3871_v58, 0.0  ;;  %v10751_v40 = vpop.f32.mrb[13].mxu1 }
 0x3cb   :  { %v4845_v27 = vpack.c.bf16 %v4593_v13, %v4592_v2  ;;  %v15607_v41 = vadd.f32 %v10751_v40, %v10750_v54  ;;  %v15609_v5 = vpop.permute.xlu0 %5154  ;;  %v10753_v1 = vpop.f32.mrb[14].mxu1  ;;  %v12085_v2 = vld [vmem:[%s17509_s1 + $0x628] sm:$0xff]  }
 0x3cc   :  { %v4844_v35 = vpack.c.bf16 %v4591_v0, %v4590_v60  ;;  %v11660_v57 = vpop.f32.mrb[40].mxu0  ;;  %v10754_v25 = vpop.f32.mrb[15].mxu1  ;;  %11755 = vmatmul.mubr.msk.bf16.gmra.mrb[136].mxu0 %vm2060_vm0, %v12085_v2 }
 0x3cd   :  { %17550 = vst [vmem:[#allocation274_spill] sm:$0xff] %v15607_v41  ;;  %v3892_v29 = vadd.f32 %v15394_v34, %v11660_v57  ;;  %v15612_v36 = vadd.f32 %v10754_v25, %v10753_v1  ;;  %v3883_v21 = vpop.f32.mrb[41].mxu0  ;;  %5483 = vrot.lane.b32.xlu1 %v4845_v27, %s12528_s19  ;;  %v15629_v1 = vpop.permute.xlu1 %5100 }
 0x3ce   :  { %v3884_v61 = vadd.f32 %v15394_v34, %v3883_v21  ;;  %v11661_v58 = vpop.f32.mrb[42].mxu0 }
 0x3cf   :  { %17551 = vst [vmem:[#allocation275_spill] sm:$0xff] %v15612_v36  ;;  %v3895_v13 = vadd.f32 %v15394_v34, %v11661_v58  ;;  %v3886_v54 = vpop.f32.mrb[43].mxu0  ;;  %v15623_v60 = vpop.permute.xlu0 %5160  ;;  %v4596_v0 = vmax.f32 %v3892_v29, 0.0 }
 0x3d0   :  { %v3887_v25 = vadd.f32 %v15394_v34, %v3886_v54  ;;  %v4594_v57 = vmax.f32 %v3884_v61, 0.0  ;;  %v12086_v61 = vld [vmem:[%s17509_s1 + $0x630] sm:$0xff]  }
 0x3d1   :  { %v4597_v40 = vmax.f32 %v3895_v13, 0.0  ;;  %5481 = vrot.lane.b32.xlu1 %v4844_v35, %s12528_s19  ;;  %v10756_v27 = vpop.f32.mrb[16].mxu1  ;;  %11758 = vmatprep.mubr.msk.bf16.mxu0 %vm2060_vm0, %v12086_v61  ;;  %v5099_v8 = vpop.permute.xlu1 %5098 }
 0x3d2   :  { %v4595_v21 = vmax.f32 %v3887_v25, 0.0  ;;  %v10757_v15 = vpop.f32.mrb[17].mxu1 }
 0x3d3   :  { %v15631_v58 = vpack.c.bf16 %v4597_v40, %v4596_v0  ;;  %v15633_v14 = vadd.f32 %v10757_v15, %v10756_v27  ;;  %v15635_v46 = vpop.permute.xlu0 %5158  ;;  %v10759_v63 = vpop.f32.mrb[18].mxu1  ;;  %v12087_v0 = vld [vmem:[%s17509_s1 + $0x638] sm:$0xff]  }
 0x3d4   :  { %v15637_v54 = vpack.c.bf16 %v4595_v21, %v4594_v57  ;;  %v11664_v2 = vpop.f32.mrb[44].mxu0  ;;  %v10760_v29 = vpop.f32.mrb[19].mxu1  ;;  %11759 = vmatmul.mubr.msk.bf16.gmra.mrb[140].mxu0 %vm2060_vm0, %v12087_v0 }
 0x3d5   :  { %17552 = vst [vmem:[#allocation276_spill] sm:$0xff] %v15633_v14  ;;  %v3908_v13 = vadd.f32 %v15394_v34, %v11664_v2  ;;  %v15640_v35 = vadd.f32 %v10760_v29, %v10759_v63  ;;  %v3899_v53 = vpop.f32.mrb[45].mxu0 }
 0x3d6   :  { %v3900_v25 = vadd.f32 %v15394_v34, %v3899_v53  ;;  %v11665_v15 = vpop.f32.mrb[46].mxu0  ;;  %v5383_v53 = vsel %vm5186_vm2, %v15088_v38, %v15497_v55 }
 0x3d7   :  { %17553 = vst [vmem:[#allocation277_spill] sm:$0xff] %v15640_v35  ;;  %v3911_v40 = vadd.f32 %v15394_v34, %v11665_v15  ;;  %v3902_v27 = vpop.f32.mrb[47].mxu0  ;;  %v5173_v57 = vpop.permute.xlu0 %5172  ;;  %v4600_v63 = vmax.f32 %v3908_v13, 0.0  ;;  %v17554_v15 = vld [vmem:[#allocation273_spill] sm:$0xff]  ;;  %v5406_v61 = vsel %vm5211_vm3, %v5383_v53, %v15566_v4  ;;  %v5408_v4 = vsel %vm5211_vm3, %v15491_v31, %v15556_v11 }
 0x3d8   :  { %v3903_v21 = vadd.f32 %v15394_v34, %v3902_v27  ;;  %v4598_v35 = vmax.f32 %v3900_v25, 0.0  ;;  %v5319_v41 = vsel %vm5186_vm2, %v17554_v15, %v15166_v18  ;;  %v15681_v15 = vpop.permute.xlu1 %5104 }
 0x3d9   :  { %v4601_v2 = vmax.f32 %v3911_v40, 0.0  ;;  %v10762_v29 = vpop.f32.mrb[20].mxu1  ;;  %v5342_v42 = vsel %vm5211_vm3, %v5319_v41, %v15250_v50  ;;  %v5425_v41 = vsel %vm5228_vm4, %v5408_v4, %v5173_v57 }
 0x3da   :  { %v4599_v14 = vmax.f32 %v3903_v21, 0.0  ;;  %v10763_v36 = vpop.f32.mrb[21].mxu1  ;;  %v5358_v18 = vsel %vm5228_vm4, %v5342_v42, %v5099_v8 }
 0x3db   :  { %v15661_v27 = vpack.c.bf16 %v4601_v2, %v4600_v63  ;;  %v15663_v13 = vadd.f32 %v10763_v36, %v10762_v29  ;;  %v5171_v0 = vpop.permute.xlu0 %5170  ;;  %v10765_v40 = vpop.f32.mrb[22].mxu1 }
 0x3dc   :  { %v15667_v38 = vpack.c.bf16 %v4599_v14, %v4598_v35  ;;  %v11668_v55 = vpop.f32.mrb[48].mxu0  ;;  %v10766_v25 = vpop.f32.mrb[23].mxu1  ;;  %v5422_v21 = vsel %vm5228_vm4, %v5406_v61, %v5171_v0 }
 0x3dd   :  { %v3924_v36 = vadd.f32 %v15394_v34, %v11668_v55  ;;  %v15675_v63 = vadd.f32 %v10766_v25, %v10765_v40  ;;  %v3915_v2 = vpop.f32.mrb[49].mxu0  ;;  %6286 = vmatprep.mubr.bf16.mxu1 %v5422_v21 }
 0x3de   :  { %v3916_v50 = vadd.f32 %v15394_v34, %v3915_v2  ;;  %v11669_v14 = vpop.f32.mrb[50].mxu0  ;;  %6287 = vmatmul.mubr.bf16.vlgmr.msra.gmra.mrb[32].mxu1 %v5358_v18  ;;  %v5344_v18 = vsel %vm5211_vm3, %v15160_v23, %v15244_v33 }
 0x3df   :  { %v3927_v35 = vadd.f32 %v15394_v34, %v11669_v14  ;;  %v3918_v29 = vpop.f32.mrb[51].mxu0  ;;  %v5177_v8 = vpop.permute.xlu0 %5176  ;;  %6294 = vmatprep.mubr.bf16.mxu1 %v5425_v41  ;;  %v4604_v31 = vmax.f32 %v3924_v36, 0.0  ;;  %v5410_v36 = vsel %vm5211_vm3, %v15515_v30, %v15585_v7 }
 0x3e0   :  { %v3919_v42 = vadd.f32 %v15394_v34, %v3918_v29  ;;  %v4602_v61 = vmax.f32 %v3916_v50, 0.0  ;;  %v5361_v29 = vsel %vm5228_vm4, %v5344_v18, %v15629_v1 }
 0x3e1   :  { %v4605_v11 = vmax.f32 %v3927_v35, 0.0  ;;  %v10768_v53 = vpop.f32.mrb[24].mxu1 }
 0x3e2   :  { %v4603_v0 = vmax.f32 %v3919_v42, 0.0  ;;  %v10769_v40 = vpop.f32.mrb[25].mxu1 }
 0x3e3   :  { %v4851_v55 = vpack.c.bf16 %v4605_v11, %v4604_v31  ;;  %v15683_v25 = vadd.f32 %v10769_v40, %v10768_v53  ;;  %v5175_v21 = vpop.permute.xlu0 %5174  ;;  %v10771_v57 = vpop.f32.mrb[26].mxu1 }
 0x3e4   :  { %v4850_v4 = vpack.c.bf16 %v4603_v0, %v4602_v61  ;;  %v11672_v2 = vpop.f32.mrb[52].mxu0  ;;  %v10772_v14 = vpop.f32.mrb[27].mxu1  ;;  %v5428_v33 = vsel %vm5228_vm4, %v5410_v36, %v5175_v21  ;;  %v5346_v21 = vsel %vm5211_vm3, %v15188_v59, %v15280_v26 }
 0x3e5   :  { %v3940_v50 = vadd.f32 %v15394_v34, %v11672_v2  ;;  %v15692_v41 = vadd.f32 %v10772_v14, %v10771_v57  ;;  %v3931_v35 = vpop.f32.mrb[53].mxu0  ;;  %5503 = vrot.lane.b32.xlu1 %v4851_v55, %s12529_s8  ;;  %v5103_v0 = vpop.permute.xlu1 %5102 }
 0x3e6   :  { %v3932_v42 = vadd.f32 %v15394_v34, %v3931_v35  ;;  %v11673_v23 = vpop.f32.mrb[54].mxu0  ;;  %6295 = vmatmul.mubr.bf16.gmra.mrb[36].mxu1 %v5361_v29 }
 0x3e7   :  { %v3943_v31 = vadd.f32 %v15394_v34, %v11673_v23  ;;  %v3934_v11 = vpop.f32.mrb[55].mxu0  ;;  %6302 = vmatprep.mubr.bf16.mxu1 %v5428_v33  ;;  %v4608_v7 = vmax.f32 %v3940_v50, 0.0  ;;  %v5181_v50 = vpop.permute.xlu0 %5180  ;;  %v5364_v33 = vsel %vm5228_vm4, %v5346_v21, %v5103_v0 }
 0x3e8   :  { %v3935_v30 = vadd.f32 %v15394_v34, %v3934_v11  ;;  %v4606_v40 = vmax.f32 %v3932_v42, 0.0 }
 0x3e9   :  { %v4609_v53 = vmax.f32 %v3943_v31, 0.0  ;;  %5501 = vrot.lane.b32.xlu1 %v4850_v4, %s12529_s8  ;;  %v10774_v61 = vpop.f32.mrb[28].mxu1  ;;  %v5412_v4 = vsel %vm5211_vm3, %v15510_v48, %v15580_v20 }
 0x3ea   :  { %v4607_v1 = vmax.f32 %v3935_v30, 0.0  ;;  %v10775_v55 = vpop.f32.mrb[29].mxu1  ;;  %v5431_v26 = vsel %vm5228_vm4, %v5412_v4, %v5177_v8  ;;  %v5109_v8 = vpop.permute.xlu1 %5108 }
 0x3eb   :  { %v4853_v57 = vpack.c.bf16 %v4609_v53, %v4608_v7  ;;  %v15702_v18 = vadd.f32 %v10775_v55, %v10774_v61  ;;  %v10777_v2 = vpop.f32.mrb[30].mxu1 }
 0x3ec   :  { %v4852_v14 = vpack.c.bf16 %v4607_v1, %v4606_v40  ;;  %v11676_v36 = vpop.f32.mrb[56].mxu0  ;;  %v10778_v35 = vpop.f32.mrb[31].mxu1  ;;  %v5348_v1 = vsel %vm5211_vm3, %v15182_v56, %v15268_v47 }
 0x3ed   :  { %v3956_v29 = vadd.f32 %v15394_v34, %v11676_v36  ;;  %v15711_v42 = vadd.f32 %v10778_v35, %v10777_v2  ;;  %v3947_v23 = vpop.f32.mrb[57].mxu0  ;;  %5507 = vrot.lane.b32.xlu1 %v4853_v57, %s12529_s8  ;;  %v5179_v40 = vpop.permute.xlu0 %5178  ;;  %v5414_v2 = vsel %vm5211_vm3, %v15529_v37, %v15609_v5 }
 0x3ee   :  { %v3948_v31 = vadd.f32 %v15394_v34, %v3947_v23  ;;  %v11677_v59 = vpop.f32.mrb[58].mxu0  ;;  %6303 = vmatmul.mubr.bf16.gmra.mrb[40].mxu1 %v5364_v33  ;;  %v5434_v56 = vsel %vm5228_vm4, %v5414_v2, %v5179_v40 }
 0x3ef   :  { %v3959_v11 = vadd.f32 %v15394_v34, %v11677_v59  ;;  %v3950_v30 = vpop.f32.mrb[59].mxu0  ;;  %6310 = vmatprep.mubr.bf16.mxu1 %v5431_v26  ;;  %v4612_v20 = vmax.f32 %v3956_v29, 0.0  ;;  %v5350_v59 = vsel %vm5211_vm3, %v15210_v6, %v15310_v22 }
 0x3f0   :  { %v3951_v48 = vadd.f32 %v15394_v34, %v3950_v30  ;;  %v4610_v53 = vmax.f32 %v3948_v31, 0.0  ;;  %v5416_v30 = vsel %vm5211_vm3, %v15524_v24, %v15599_v32 }
 0x3f1   :  { %v4613_v7 = vmax.f32 %v3959_v11, 0.0  ;;  %5505 = vrot.lane.b32.xlu1 %v4852_v14, %s12529_s8  ;;  %v5367_v14 = vsel %vm5228_vm4, %v5348_v1, %v15681_v15  ;;  %v5437_v6 = vsel %vm5228_vm4, %v5416_v30, %v5181_v50  ;;  %v5352_v50 = vsel %vm5211_vm3, %v15203_v28, %v15298_v19 }
 0x3f2   :  { %v4611_v61 = vmax.f32 %v3951_v48, 0.0  ;;  %v5185_v48 = vpop.permute.xlu0 %5184  ;;  %v5420_v30 = vsel %vm5211_vm3, %v15538_v52, %v15623_v60 }
 0x3f3   :  { %v15720_v0 = vpack.c.bf16 %v4613_v7, %v4612_v20 }
 0x3f4   :  { %v4854_v55 = vpack.c.bf16 %v4611_v61, %v4610_v53  ;;  %v11680_v57 = vpop.f32.mrb[60].mxu0 }
 0x3f5   :  { %v3972_v21 = vadd.f32 %v15394_v34, %v11680_v57  ;;  %v3963_v36 = vpop.f32.mrb[61].mxu0  ;;  %5461 = vrot.lane.b32.xlu1 %v15545_v51, %s12527_s0  ;;  %v5107_v51 = vpop.permute.xlu1 %5106 }
 0x3f6   :  { %v3964_v35 = vadd.f32 %v15394_v34, %v3963_v36  ;;  %v11681_v4 = vpop.f32.mrb[62].mxu0  ;;  %6311 = vmatmul.mubr.bf16.gmra.mrb[44].mxu1 %v5367_v14  ;;  %v5370_v7 = vsel %vm5228_vm4, %v5350_v59, %v5107_v51  ;;  %v5183_v2 = vpop.permute.xlu0 %5182 }
 0x3f7   :  { %v3975_v47 = vadd.f32 %v15394_v34, %v11681_v4  ;;  %v3966_v29 = vpop.f32.mrb[63].mxu0  ;;  %6318 = vmatprep.mubr.bf16.mxu1 %v5434_v56  ;;  %v4616_v37 = vmax.f32 %v3972_v21, 0.0  ;;  %v5418_v4 = vsel %vm5211_vm3, %v15549_v44, %v15635_v46 }
 0x3f8   :  { %v3967_v5 = vadd.f32 %v15394_v34, %v3966_v29  ;;  %v4614_v33 = vmax.f32 %v3964_v35, 0.0  ;;  %v5440_v28 = vsel %vm5228_vm4, %v5418_v4, %v5183_v2 }
 0x3f9   :  { %v4617_v23 = vmax.f32 %v3975_v47, 0.0  ;;  %5485 = vrot.lane.b32.xlu1 %v15637_v54, %s12528_s19  ;;  %v5113_v36 = vpop.permute.xlu1 %5112  ;;  %v5373_v47 = vsel %vm5228_vm4, %v5352_v50, %v5109_v8 }
 0x3fa   :  { %v4615_v15 = vmax.f32 %v3967_v5, 0.0 }
 0x3fb   :  { %v15739_v31 = vpack.c.bf16 %v4617_v23, %v4616_v37 }
 0x3fc   :  { %v15744_v26 = vpack.c.bf16 %v4615_v15, %v4614_v33  ;;  %v11684_v11 = vpop.f32.mrb[64].mxu0  ;;  %v5354_v15 = vsel %vm5211_vm3, %v15232_v9, %v15605_v45  ;;  %v5443_v9 = vsel %vm5228_vm4, %v5420_v30, %v5185_v48 }
 0x3fd   :  { %v3988_v20 = vadd.f32 %v15394_v34, %v11684_v11  ;;  %v3979_v54 = vpop.f32.mrb[65].mxu0  ;;  %5509 = vrot.lane.b32.xlu1 %v4854_v55, %s12529_s8 }
 0x3fe   :  { %v3980_v53 = vadd.f32 %v15394_v34, %v3979_v54  ;;  %v11685_v61 = vpop.f32.mrb[66].mxu0  ;;  %6319 = vmatmul.mubr.bf16.gmra.mrb[48].mxu1 %v5370_v7 }
 0x3ff   :  { %v3991_v22 = vadd.f32 %v15394_v34, %v11685_v61  ;;  %v3982_v40 = vpop.f32.mrb[67].mxu0  ;;  %6326 = vmatprep.mubr.bf16.mxu1 %v5437_v6  ;;  %v4620_v32 = vmax.f32 %v3988_v20, 0.0 }
 0x400   :  { %v3983_v24 = vadd.f32 %v15394_v34, %v3982_v40  ;;  %v4618_v55 = vmax.f32 %v3980_v53, 0.0 }
 0x401   :  { %v4621_v1 = vmax.f32 %v3991_v22, 0.0  ;;  %5463 = vrot.lane.b32.xlu1 %v15541_v12, %s12527_s0 }
 0x402   :  { %v4619_v57 = vmax.f32 %v3983_v24, 0.0 }
 0x403   :  { %v15758_v21 = vpack.c.bf16 %v4621_v1, %v4620_v32 }
 0x404   :  { %v15763_v14 = vpack.c.bf16 %v4619_v57, %v4618_v55  ;;  %v11688_v35 = vpop.f32.mrb[68].mxu0  ;;  %v5379_v55 = vsel %vm5228_vm4, %v15331_v49, %v5113_v36 }
 0x405   :  { %v4004_v56 = vadd.f32 %v15394_v34, %v11688_v35  ;;  %v3995_v12 = vpop.f32.mrb[69].mxu0  ;;  %5487 = vrot.lane.b32.xlu1 %v15631_v58, %s12528_s19  ;;  %v5111_v58 = vpop.permute.xlu1 %5110 }
 0x406   :  { %v3996_v29 = vadd.f32 %v15394_v34, %v3995_v12  ;;  %v11689_v5 = vpop.f32.mrb[70].mxu0  ;;  %6327 = vmatmul.mubr.bf16.gmra.mrb[52].mxu1 %v5373_v47 }
 0x407   :  { %v4007_v19 = vadd.f32 %v15394_v34, %v11689_v5  ;;  %v3998_v37 = vpop.f32.mrb[71].mxu0  ;;  %6334 = vmatprep.mubr.bf16.mxu1 %v5440_v28  ;;  %v4624_v44 = vmax.f32 %v4004_v56, 0.0  ;;  %v12088_v28 = vld [vmem:[%s17237_s7 + $0x140] sm:$0xff]  }
 0x408   :  { %v3999_v46 = vadd.f32 %v15394_v34, %v3998_v37  ;;  %v4622_v51 = vmax.f32 %v3996_v29, 0.0  ;;  %10844 = vmatprep.subr.bf16.mxu1 %v12088_v28 }
 0x409   :  { %v4625_v23 = vmax.f32 %v4007_v19, 0.0  ;;  %5511 = vrot.lane.b32.xlu1 %v15720_v0, %s12529_s8  ;;  %v5376_v0 = vsel %vm5228_vm4, %v5354_v15, %v5111_v58 }
 0x40a   :  { %v4623_v8 = vmax.f32 %v3999_v46, 0.0 }
 0x40b   :  { %v15778_v33 = vpack.c.bf16 %v4625_v23, %v4624_v44  ;;  %v12089_v23 = vld [vmem:[%s17237_s7 + $0x100] sm:$0xff]  }
 0x40c   :  { %v15783_v59 = vpack.c.bf16 %v4623_v8, %v4622_v51  ;;  %v11692_v11 = vpop.f32.mrb[72].mxu0  ;;  %10845 = vmatpush3.bf16.msra.mxu1 %v12089_v23 }
 0x40d   :  { %v4020_v20 = vadd.f32 %v15394_v34, %v11692_v11  ;;  %v4011_v54 = vpop.f32.mrb[73].mxu0  ;;  %5465 = vrot.lane.b32.xlu1 %v15571_v17, %s12527_s0 }
 0x40e   :  { %v4012_v7 = vadd.f32 %v15394_v34, %v4011_v54  ;;  %v11693_v53 = vpop.f32.mrb[74].mxu0  ;;  %6335 = vmatmul.mubr.bf16.gmra.mrb[56].mxu1 %v5376_v0  ;;  %v12091_v54 = vld [vmem:[%s17237_s7 + $0x108] sm:$0xff]   ;;  %v12092_v0 = vld [vmem:[%s17237_s7 + $0x150] sm:$0xff]  }
 0x40f   :  { %v4023_v45 = vadd.f32 %v15394_v34, %v11693_v53  ;;  %v4014_v61 = vpop.f32.mrb[75].mxu0  ;;  %6342 = vmatprep.mubr.bf16.mxu1 %v5443_v9  ;;  %v4628_v60 = vmax.f32 %v4020_v20, 0.0  ;;  %v12090_v20 = vld [vmem:[%s17237_s7 + $0x148] sm:$0xff]  }
 0x410   :  { %v4015_v52 = vadd.f32 %v15394_v34, %v4014_v61  ;;  %v4626_v17 = vmax.f32 %v4012_v7, 0.0  ;;  %10846 = vmatprep.subr.bf16.mxu1 %v12090_v20 }
 0x411   :  { %v4629_v6 = vmax.f32 %v4023_v45, 0.0  ;;  %5489 = vrot.lane.b32.xlu1 %v15667_v38, %s12528_s19  ;;  %v15810_v38 = vld [vmem:[%s17236_s6] ss:$0 sm:$0xff]  ;;  %10847 = vmatpush3.bf16.msra.mxu1 %v12091_v54 }
 0x412   :  { %v4627_v22 = vmax.f32 %v4015_v52, 0.0  ;;  %v12093_v52 = vld [vmem:[%s17237_s7 + $0x110] sm:$0xff]   ;;  %10848 = vmatprep.subr.bf16.mxu1 %v12092_v0 }
 0x413   :  { %v15798_v40 = vpack.c.bf16 %v4629_v6, %v4628_v60 }
 0x414   :  { %v15800_v24 = vpack.c.bf16 %v4627_v22, %v4626_v17  ;;  %v11696_v32 = vpop.f32.mrb[76].mxu0 }
 0x415   :  { %v4036_v48 = vadd.f32 %v15394_v34, %v11696_v32  ;;  %v4027_v1 = vpop.f32.mrb[77].mxu0  ;;  %5513 = vrot.lane.b32.xlu1 %v15744_v26, %s12529_s8  ;;  %10849 = vmatpush3.bf16.msra.mxu1 %v12093_v52 }
 0x416   :  { %v4028_v57 = vadd.f32 %v15810_v38, %v4027_v1  ;;  %v11697_v2 = vpop.f32.mrb[78].mxu0  ;;  %6343 = vmatmul.mubr.bf16.gmra.mrb[60].mxu1 %v5379_v55 }
 0x417   :  { %v4039_v50 = vadd.f32 %v15810_v38, %v11697_v2  ;;  %v4030_v35 = vpop.f32.mrb[79].mxu0  ;;  %v4632_v4 = vmax.f32 %v4036_v48, 0.0 }
 0x418   :  { %v4031_v34 = vadd.f32 %v15810_v38, %v4030_v35  ;;  %v4630_v49 = vmax.f32 %v4028_v57, 0.0 }
 0x419   :  { %v4633_v56 = vmax.f32 %v4039_v50, 0.0  ;;  %5467 = vrot.lane.b32.xlu1 %v15562_v62, %s12527_s0 }
 0x41a   :  { %v4631_v26 = vmax.f32 %v4031_v34, 0.0 }
 0x41b   :  { %v15817_v36 = vpack.c.bf16 %v4633_v56, %v4632_v4 }
 0x41c   :  { %v15819_v12 = vpack.c.bf16 %v4631_v26, %v4630_v49  ;;  %v11700_v47 = vpop.f32.mrb[80].mxu0 }
 0x41d   :  { %v4052_v29 = vadd.f32 %v15810_v38, %v11700_v47  ;;  %v4043_v5 = vpop.f32.mrb[81].mxu0  ;;  %5491 = vrot.lane.b32.xlu1 %v15661_v27, %s12528_s19 }
 0x41e   :  { %v4044_v19 = vadd.f32 %v15810_v38, %v4043_v5  ;;  %v11701_v62 = vpop.f32.mrb[82].mxu0 }
 0x41f   :  { %v4055_v37 = vadd.f32 %v15810_v38, %v11701_v62  ;;  %v4046_v46 = vpop.f32.mrb[83].mxu0  ;;  %v4636_v58 = vmax.f32 %v4052_v29, 0.0 }
 0x420   :  { %v4047_v44 = vadd.f32 %v15810_v38, %v4046_v46  ;;  %v4634_v27 = vmax.f32 %v4044_v19, 0.0 }
 0x421   :  { %v4637_v51 = vmax.f32 %v4055_v37, 0.0  ;;  %5515 = vrot.lane.b32.xlu1 %v15739_v31, %s12529_s8 }
 0x422   :  { %v4635_v8 = vmax.f32 %v4047_v44, 0.0 }
 0x423   :  { %v4867_v15 = vpack.c.bf16 %v4637_v51, %v4636_v58  ;;  %v12094_v51 = vld [vmem:[%s17237_s7 + $0x158] sm:$0xff]  }
 0x424   :  { %v4866_v11 = vpack.c.bf16 %v4635_v8, %v4634_v27  ;;  %v11704_v30 = vpop.f32.mrb[84].mxu0  ;;  %v12095_v8 = vld [vmem:[%s17237_s7 + $0x118] sm:$0xff]   ;;  %10850 = vmatprep.subr.bf16.mxu1 %v12094_v51 }
 0x425   :  { %v4068_v31 = vadd.f32 %v15810_v38, %v11704_v30  ;;  %v4059_v7 = vpop.f32.mrb[85].mxu0  ;;  %5527 = vrot.lane.b32.xlu0 %v4867_v15, %s12527_s0  ;;  %10851 = vmatpush3.bf16.msra.mxu1 %v12095_v8 }
 0x426   :  { %v4060_v53 = vadd.f32 %v15810_v38, %v4059_v7  ;;  %v11705_v9 = vpop.f32.mrb[86].mxu0 }
 0x427   :  { %v4071_v45 = vadd.f32 %v15810_v38, %v11705_v9  ;;  %v4062_v61 = vpop.f32.mrb[87].mxu0  ;;  %v4640_v6 = vmax.f32 %v4068_v31, 0.0 }
 0x428   :  { %v4063_v60 = vadd.f32 %v15810_v38, %v4062_v61  ;;  %v4638_v22 = vmax.f32 %v4060_v53, 0.0 }
 0x429   :  { %v4641_v17 = vmax.f32 %v4071_v45, 0.0  ;;  %5525 = vrot.lane.b32.xlu0 %v4866_v11, %s12527_s0 }
 0x42a   :  { %v4639_v32 = vmax.f32 %v4063_v60, 0.0  ;;  %v12096_v60 = vld [vmem:[%s17237_s7 + $0x160] sm:$0xff]  }
 0x42b   :  { %v4869_v48 = vpack.c.bf16 %v4641_v17, %v4640_v6  ;;  %v12097_v17 = vld [vmem:[%s17237_s7 + $0x120] sm:$0xff]   ;;  %10852 = vmatprep.subr.bf16.mxu1 %v12096_v60 }
 0x42c   :  { %v4868_v1 = vpack.c.bf16 %v4639_v32, %v4638_v22  ;;  %v11708_v55 = vpop.f32.mrb[88].mxu0  ;;  %10853 = vmatpush3.bf16.msra.mxu1 %v12097_v17 }
 0x42d   :  { %v4084_v57 = vadd.f32 %v15810_v38, %v11708_v55  ;;  %v4075_v2 = vpop.f32.mrb[89].mxu0  ;;  %5531 = vrot.lane.b32.xlu0 %v4869_v48, %s12527_s0 }
 0x42e   :  { %v4076_v50 = vadd.f32 %v15810_v38, %v4075_v2  ;;  %v11709_v35 = vpop.f32.mrb[90].mxu0 }
 0x42f   :  { %v4087_v34 = vadd.f32 %v15810_v38, %v11709_v35  ;;  %v4078_v4 = vpop.f32.mrb[91].mxu0  ;;  %v4644_v49 = vmax.f32 %v4084_v57, 0.0 }
 0x430   :  { %v4079_v56 = vadd.f32 %v15810_v38, %v4078_v4  ;;  %v4642_v47 = vmax.f32 %v4076_v50, 0.0 }
 0x431   :  { %v4645_v26 = vmax.f32 %v4087_v34, 0.0  ;;  %5529 = vrot.lane.b32.xlu0 %v4868_v1, %s12527_s0 }
 0x432   :  { %v4643_v29 = vmax.f32 %v4079_v56, 0.0 }
 0x433   :  { %v15859_v5 = vpack.c.bf16 %v4645_v26, %v4644_v49  ;;  %v12098_v26 = vld [vmem:[%s17237_s7 + $0x168] sm:$0xff]  }
 0x434   :  { %v15861_v28 = vpack.c.bf16 %v4643_v29, %v4642_v47  ;;  %v11712_v19 = vpop.f32.mrb[92].mxu0  ;;  %v12099_v47 = vld [vmem:[%s17237_s7 + $0x128] sm:$0xff]   ;;  %10854 = vmatprep.subr.bf16.mxu1 %v12098_v26 }
 0x435   :  { %v4100_v62 = vadd.f32 %v15810_v38, %v11712_v19  ;;  %v4091_v37 = vpop.f32.mrb[93].mxu0  ;;  %10855 = vmatpush3.bf16.msra.mxu1 %v12099_v47 }
 0x436   :  { %v4092_v46 = vadd.f32 %v15810_v38, %v4091_v37  ;;  %v11713_v44 = vpop.f32.mrb[94].mxu0 }
 0x437   :  { %v4103_v23 = vadd.f32 %v15810_v38, %v11713_v44  ;;  %v4094_v58 = vpop.f32.mrb[95].mxu0  ;;  %v4648_v15 = vmax.f32 %v4100_v62, 0.0 }
 0x438   :  { %v4095_v27 = vadd.f32 %v15810_v38, %v4094_v58  ;;  %v4646_v30 = vmax.f32 %v4092_v46, 0.0 }
 0x439   :  { %v4649_v11 = vmax.f32 %v4103_v23, 0.0 }
 0x43a   :  { %v4647_v20 = vmax.f32 %v4095_v27, 0.0 }
 0x43b   :  { %v15873_v54 = vpack.c.bf16 %v4649_v11, %v4648_v15 }
 0x43c   :  { %v15875_v0 = vpack.c.bf16 %v4647_v20, %v4646_v30  ;;  %v11716_v31 = vpop.f32.mrb[96].mxu0  ;;  %v12100_v20 = vld [vmem:[%s17237_s7 + $0x170] sm:$0xff]  }
 0x43d   :  { %v4116_v7 = vadd.f32 %v15810_v38, %v11716_v31  ;;  %v4107_v53 = vpop.f32.mrb[97].mxu0  ;;  %v12101_v31 = vld [vmem:[%s17237_s7 + $0x130] sm:$0xff]   ;;  %10856 = vmatprep.subr.bf16.mxu1 %v12100_v20 }
 0x43e   :  { %v4108_v9 = vadd.f32 %v15810_v38, %v4107_v53  ;;  %v11717_v45 = vpop.f32.mrb[98].mxu0  ;;  %10857 = vmatpush3.bf16.msra.mxu1 %v12101_v31 }
 0x43f   :  { %v4119_v61 = vadd.f32 %v15810_v38, %v11717_v45  ;;  %v4110_v52 = vpop.f32.mrb[99].mxu0  ;;  %v4652_v22 = vmax.f32 %v4116_v7, 0.0 }
 0x440   :  { %v4111_v6 = vadd.f32 %v15810_v38, %v4110_v52  ;;  %v4650_v48 = vmax.f32 %v4108_v9, 0.0 }
 0x441   :  { %v4653_v32 = vmax.f32 %v4119_v61, 0.0 }
 0x442   :  { %v4651_v1 = vmax.f32 %v4111_v6, 0.0 }
 0x443   :  { %v4875_v55 = vpack.c.bf16 %v4653_v32, %v4652_v22 }
 0x444   :  { %v4874_v57 = vpack.c.bf16 %v4651_v1, %v4650_v48  ;;  %v11720_v2 = vpop.f32.mrb[100].mxu0 }
 0x445   :  { %v4132_v50 = vadd.f32 %v15810_v38, %v11720_v2  ;;  %v4123_v35 = vpop.f32.mrb[101].mxu0  ;;  %5551 = vrot.lane.b32.xlu0 %v4875_v55, %s12528_s19  ;;  %v12103_v2 = vld [vmem:[%s17237_s7 + $0x138] sm:$0xff]  }
 0x446   :  { %v4124_v34 = vadd.f32 %v15810_v38, %v4123_v35  ;;  %v11721_v4 = vpop.f32.mrb[102].mxu0 }
 0x447   :  { %v4135_v56 = vadd.f32 %v15810_v38, %v11721_v4  ;;  %v4126_v49 = vpop.f32.mrb[103].mxu0  ;;  %v4656_v19 = vmax.f32 %v4132_v50, 0.0 }
 0x448   :  { %v4127_v29 = vadd.f32 %v15810_v38, %v4126_v49  ;;  %v4654_v37 = vmax.f32 %v4124_v34, 0.0 }
 0x449   :  { %v4657_v62 = vmax.f32 %v4135_v56, 0.0  ;;  %5549 = vrot.lane.b32.xlu0 %v4874_v57, %s12528_s19  ;;  %v12102_v57 = vld [vmem:[%s17237_s7 + $0x178] sm:$0xff]  }
 0x44a   :  { %v4655_v46 = vmax.f32 %v4127_v29, 0.0  ;;  %10858 = vmatprep.subr.bf16.mxu1 %v12102_v57 }
 0x44b   :  { %v4877_v44 = vpack.c.bf16 %v4657_v62, %v4656_v19  ;;  %10859 = vmatpush3.bf16.msra.mxu1 %v12103_v2 }
 0x44c   :  { %v4876_v23 = vpack.c.bf16 %v4655_v46, %v4654_v37  ;;  %v11724_v58 = vpop.f32.mrb[104].mxu0 }
 0x44d   :  { %v4148_v51 = vadd.f32 %v15810_v38, %v11724_v58  ;;  %v4139_v27 = vpop.f32.mrb[105].mxu0  ;;  %5555 = vrot.lane.b32.xlu0 %v4877_v44, %s12528_s19 }
 0x44e   :  { %v4140_v8 = vadd.f32 %v15810_v38, %v4139_v27  ;;  %v11725_v15 = vpop.f32.mrb[106].mxu0 }
 0x44f   :  { %v4151_v11 = vadd.f32 %v15810_v38, %v11725_v15  ;;  %v4142_v30 = vpop.f32.mrb[107].mxu0  ;;  %v4660_v53 = vmax.f32 %v4148_v51, 0.0 }
 0x450   :  { %v4143_v7 = vadd.f32 %v15810_v38, %v4142_v30  ;;  %v4658_v45 = vmax.f32 %v4140_v8, 0.0 }
 0x451   :  { %v4661_v9 = vmax.f32 %v4151_v11, 0.0  ;;  %5553 = vrot.lane.b32.xlu0 %v4876_v23, %s12528_s19  ;;  %v15933_v23 = vld [vmem:[%s17237_s7 + $0x180] sm:$0xff]  }
 0x452   :  { %v4659_v61 = vmax.f32 %v4143_v7, 0.0  ;;  %11762 = vmatprep.subr.bf16.mxu1 %v15933_v23 }
 0x453   :  { %v15911_v52 = vpack.c.bf16 %v4661_v9, %v4660_v53 }
 0x454   :  { %v4878_v60 = vpack.c.bf16 %v4659_v61, %v4658_v45  ;;  %v11728_v6 = vpop.f32.mrb[108].mxu0 }
 0x455   :  { %v4164_v17 = vadd.f32 %v15810_v38, %v11728_v6  ;;  %v4155_v22 = vpop.f32.mrb[109].mxu0 }
 0x456   :  { %v4156_v32 = vadd.f32 %v15810_v38, %v4155_v22  ;;  %v11729_v48 = vpop.f32.mrb[110].mxu0 }
 0x457   :  { %v4167_v1 = vadd.f32 %v15810_v38, %v11729_v48  ;;  %v4158_v55 = vpop.f32.mrb[111].mxu0  ;;  %v4664_v35 = vmax.f32 %v4164_v17, 0.0 }
 0x458   :  { %v4159_v50 = vadd.f32 %v15810_v38, %v4158_v55  ;;  %v4662_v4 = vmax.f32 %v4156_v32, 0.0 }
 0x459   :  { %v4665_v34 = vmax.f32 %v4167_v1, 0.0 }
 0x45a   :  { %v4663_v56 = vmax.f32 %v4159_v50, 0.0 }
 0x45b   :  { %v15923_v49 = vpack.c.bf16 %v4665_v34, %v4664_v35 }
 0x45c   :  { %v15925_v26 = vpack.c.bf16 %v4663_v56, %v4662_v4  ;;  %v11732_v47 = vpop.f32.mrb[112].mxu0 }
 0x45d   :  { %v4180_v29 = vadd.f32 %v15810_v38, %v11732_v47  ;;  %v4171_v19 = vpop.f32.mrb[113].mxu0 }
 0x45e   :  { %v4172_v62 = vadd.f32 %v15810_v38, %v4171_v19  ;;  %v11733_v37 = vpop.f32.mrb[114].mxu0 }
 0x45f   :  { %v4183_v46 = vadd.f32 %v15810_v38, %v11733_v37  ;;  %v4174_v44 = vpop.f32.mrb[115].mxu0  ;;  %v4668_v51 = vmax.f32 %v4180_v29, 0.0 }
 0x460   :  { %v4175_v58 = vadd.f32 %v15810_v38, %v4174_v44  ;;  %v4666_v8 = vmax.f32 %v4172_v62, 0.0 }
 0x461   :  { %v4669_v27 = vmax.f32 %v4183_v46, 0.0 }
 0x462   :  { %v4667_v15 = vmax.f32 %v4175_v58, 0.0 }
 0x463   :  { %v4883_v11 = vpack.c.bf16 %v4669_v27, %v4668_v51 }
 0x464   :  { %v4882_v30 = vpack.c.bf16 %v4667_v15, %v4666_v8  ;;  %v11736_v20 = vpop.f32.mrb[116].mxu0 }
 0x465   :  { %5575 = vrot.lane.b32.xlu0 %v4883_v11, %s12529_s8  ;;  %v4196_v31 = vadd.f32 %v15810_v38, %v11736_v20  ;;  %v4187_v7 = vpop.f32.mrb[117].mxu0 }
 0x466   :  { %v4188_v53 = vadd.f32 %v15810_v38, %v4187_v7  ;;  %v11737_v9 = vpop.f32.mrb[118].mxu0 }
 0x467   :  { %v4672_v45 = vmax.f32 %v4196_v31, 0.0  ;;  %v4199_v61 = vadd.f32 %v15810_v38, %v11737_v9  ;;  %v4190_v6 = vpop.f32.mrb[119].mxu0 }
 0x468   :  { %v4670_v17 = vmax.f32 %v4188_v53, 0.0  ;;  %v4191_v22 = vadd.f32 %v15810_v38, %v4190_v6 }
 0x469   :  { %5573 = vrot.lane.b32.xlu0 %v4882_v30, %s12529_s8  ;;  %v4673_v32 = vmax.f32 %v4199_v61, 0.0 }
 0x46a   :  { %v4671_v48 = vmax.f32 %v4191_v22, 0.0 }
 0x46b   :  { %v4885_v1 = vpack.c.bf16 %v4673_v32, %v4672_v45  ;;  %v15962_v45 = vpop.permute.xlu1 %5455 }
 0x46c   :  { %v4884_v55 = vpack.c.bf16 %v4671_v48, %v4670_v17  ;;  %v11740_v57 = vpop.f32.mrb[120].mxu0 }
 0x46d   :  { %5533 = vrot.lane.b32.xlu0 %v15861_v28, %s12527_s0  ;;  %v4212_v2 = vadd.f32 %v15810_v38, %v11740_v57  ;;  %v4203_v50 = vpop.f32.mrb[121].mxu0 }
 0x46e   :  { %v4204_v35 = vadd.f32 %v15810_v38, %v4203_v50  ;;  %v11741_v34 = vpop.f32.mrb[122].mxu0 }
 0x46f   :  { %v4676_v4 = vmax.f32 %v4212_v2, 0.0  ;;  %v4215_v56 = vadd.f32 %v15810_v38, %v11741_v34  ;;  %v4206_v47 = vpop.f32.mrb[123].mxu0 }
 0x470   :  { %v4674_v29 = vmax.f32 %v4204_v35, 0.0  ;;  %v4207_v19 = vadd.f32 %v15810_v38, %v4206_v47 }
 0x471   :  { %5557 = vrot.lane.b32.xlu0 %v4878_v60, %s12528_s19  ;;  %v4677_v62 = vmax.f32 %v4215_v56, 0.0 }
 0x472   :  { %v4675_v37 = vmax.f32 %v4207_v19, 0.0 }
 0x473   :  { %v4887_v46 = vpack.c.bf16 %v4677_v62, %v4676_v4 }
 0x474   :  { %v4886_v44 = vpack.c.bf16 %v4675_v37, %v4674_v29  ;;  %v11744_v28 = vpop.f32.mrb[124].mxu0 }
 0x475   :  { %5579 = vrot.lane.b32.xlu0 %v4885_v1, %s12529_s8  ;;  %v4228_v58 = vadd.f32 %v15810_v38, %v11744_v28  ;;  %v4219_v51 = vpop.f32.mrb[125].mxu0 }
 0x476   :  { %v4220_v27 = vadd.f32 %v15810_v38, %v4219_v51  ;;  %v11745_v8 = vpop.f32.mrb[126].mxu0 }
 0x477   :  { %v4680_v15 = vmax.f32 %v4228_v58, 0.0  ;;  %v4231_v11 = vadd.f32 %v15810_v38, %v11745_v8  ;;  %v4222_v30 = vpop.f32.mrb[127].mxu0 }
 0x478   :  { %v4678_v20 = vmax.f32 %v4220_v27, 0.0  ;;  %v4223_v60 = vadd.f32 %v15810_v38, %v4222_v30 }
 0x479   :  { %5577 = vrot.lane.b32.xlu0 %v4884_v55, %s12529_s8  ;;  %v4681_v31 = vmax.f32 %v4231_v11, 0.0 }
 0x47a   :  { %v4679_v7 = vmax.f32 %v4223_v60, 0.0 }
 0x47b   :  { %v4889_v53 = vpack.c.bf16 %v4681_v31, %v4680_v15 }
 0x47c   :  { %v4888_v9 = vpack.c.bf16 %v4679_v7, %v4678_v20 }
 0x47d   :  { %5535 = vrot.lane.b32.xlu0 %v15859_v5, %s12527_s0  ;;  %v15969_v5 = vpop.permute.xlu1 %5453 }
 0x481   :  { %5559 = vrot.lane.b32.xlu0 %v15911_v52, %s12528_s19  ;;  %v15978_v50 = vpop.permute.xlu1 %5459 }
 0x485   :  { %5583 = vrot.lane.b32.xlu0 %v4887_v46, %s12529_s8  ;;  %v15987_v29 = vpop.permute.xlu1 %5457 }
 0x487   :  { %v11748_v61 = vpop.f32.mrb[128].mxu0 }
 0x488   :  { %v4244_v6 = vadd.f32 %v15810_v38, %v11748_v61  ;;  %v4235_v17 = vpop.f32.mrb[129].mxu0 }
 0x489   :  { %5581 = vrot.lane.b32.xlu0 %v4886_v44, %s12529_s8  ;;  %v4236_v52 = vadd.f32 %v15810_v38, %v4235_v17  ;;  %v11749_v22 = vpop.f32.mrb[130].mxu0  ;;  %v15992_v51 = vpop.permute.xlu1 %5479 }
 0x48a   :  { %v4684_v32 = vmax.f32 %v4244_v6, 0.0  ;;  %v4247_v48 = vadd.f32 %v15810_v38, %v11749_v22  ;;  %v4238_v1 = vpop.f32.mrb[131].mxu0 }
 0x48b   :  { %v4682_v55 = vmax.f32 %v4236_v52, 0.0  ;;  %v4239_v57 = vadd.f32 %v15810_v38, %v4238_v1 }
 0x48d   :  { %5537 = vrot.lane.b32.xlu0 %v15875_v0, %s12527_s0  ;;  %v4685_v0 = vmax.f32 %v4247_v48, 0.0  ;;  %v16002_v61 = vpop.permute.xlu1 %5477 }
 0x48f   :  { %v15976_v2 = vpack.c.bf16 %v4685_v0, %v4684_v32 }
 0x491   :  { %5561 = vrot.lane.b32.xlu0 %v15925_v26, %s12528_s19  ;;  %v4683_v26 = vmax.f32 %v4239_v57, 0.0 }
 0x493   :  { %v15980_v35 = vpack.c.bf16 %v4683_v26, %v4682_v55  ;;  %v16012_v26 = vpop.permute.xlu1 %5483 }
 0x494   :  { %v11752_v34 = vpop.f32.mrb[132].mxu0 }
 0x495   :  { %5539 = vrot.lane.b32.xlu0 %v15873_v54, %s12527_s0  ;;  %v4260_v4 = vadd.f32 %v15810_v38, %v11752_v34  ;;  %v4251_v56 = vpop.f32.mrb[133].mxu0 }
 0x496   :  { %v4252_v47 = vadd.f32 %v15810_v38, %v4251_v56  ;;  %v11753_v54 = vpop.f32.mrb[134].mxu0 }
 0x497   :  { %v4688_v19 = vmax.f32 %v4260_v4, 0.0  ;;  %v4263_v62 = vadd.f32 %v15810_v38, %v11753_v54  ;;  %v4254_v37 = vpop.f32.mrb[135].mxu0  ;;  %v16006_v22 = vpop.permute.xlu0 %5527 }
 0x498   :  { %v4686_v46 = vmax.f32 %v4252_v47, 0.0  ;;  %v4255_v44 = vadd.f32 %v15810_v38, %v4254_v37 }
 0x499   :  { %5585 = vrot.lane.b32.xlu0 %v4888_v9, %s12529_s8  ;;  %v4689_v28 = vmax.f32 %v4263_v62, 0.0 }
 0x49a   :  { %v4687_v58 = vmax.f32 %v4255_v44, 0.0 }
 0x49b   :  { %v15994_v27 = vpack.c.bf16 %v4689_v28, %v4688_v19  ;;  %v5817_v19 = vld [vmem:[%s17234_s4] sm:$0xff]  ;;  %v16019_v37 = vpop.permute.xlu0 %5525  ;;  %v5818_v28 = vld [vmem:[%s17234_s4 + $0x8] sm:$0xff] }
 0x49d   :  { %5563 = vrot.lane.b32.xlu0 %v15923_v49, %s12528_s19  ;;  %v15996_v49 = vpack.c.bf16 %v4687_v58, %v4686_v46 }
 0x49f   :  { %v11756_v8 = vpop.f32.mrb[136].mxu0 }
 0x4a0   :  { %v4276_v15 = vadd.f32 %v15810_v38, %v11756_v8  ;;  %v4267_v11 = vpop.f32.mrb[137].mxu0 }
 0x4a1   :  { %5587 = vrot.lane.b32.xlu0 %v4889_v53, %s12529_s8  ;;  %v4268_v30 = vadd.f32 %v15810_v38, %v4267_v11  ;;  %v11757_v20 = vpop.f32.mrb[138].mxu0 }
 0x4a2   :  { %v4692_v60 = vmax.f32 %v4276_v15, 0.0  ;;  %v4279_v31 = vadd.f32 %v15810_v38, %v11757_v20  ;;  %v4270_v7 = vpop.f32.mrb[139].mxu0  ;;  %v6192_v15 = vadd.f32 %v15543_v10, %v5817_v19  ;;  %v16029_v20 = vpop.permute.xlu1 %5481  ;;  %v5819_v10 = vld [vmem:[%s17234_s4 + $0x10] sm:$0xff] }
 0x4a3   :  { %v4690_v9 = vmax.f32 %v4268_v30, 0.0  ;;  %v4271_v53 = vadd.f32 %v15810_v38, %v4270_v7 }
 0x4a4   :  { %v4693_v6 = vmax.f32 %v4279_v31, 0.0  ;;  %v6195_v31 = vadd.f32 %v15552_v16, %v5818_v28  ;;  %v6200_v16 = vadd.f32 %v15564_v43, %v5819_v10 }
 0x4a5   :  { %v4691_v17 = vmax.f32 %v4271_v53, 0.0  ;;  %v16034_v53 = vpop.permute.xlu0 %5531 }
 0x4a6   :  { %v16004_v52 = vpack.c.bf16 %v4693_v6, %v4692_v60 }
 0x4a7   :  { %v16008_v32 = vpack.c.bf16 %v4691_v17, %v4690_v9  ;;  %v11760_v48 = vpop.f32.mrb[140].mxu0  ;;  %v16041_v17 = vpop.permute.xlu1 %5503 }
 0x4a8   :  { %v4292_v1 = vadd.f32 %v15810_v38, %v11760_v48  ;;  %v4283_v55 = vpop.f32.mrb[141].mxu0 }
 0x4a9   :  { %v4284_v57 = vadd.f32 %v15810_v38, %v4283_v55  ;;  %v11761_v0 = vpop.f32.mrb[142].mxu0 }
 0x4aa   :  { %v4696_v34 = vmax.f32 %v4292_v1, 0.0  ;;  %v4295_v4 = vadd.f32 %v15810_v38, %v11761_v0  ;;  %v4286_v56 = vpop.f32.mrb[143].mxu0  ;;  %v5820_v1 = vld [vmem:[%s17234_s4 + $0x18] sm:$0xff] }
 0x4ab   :  { %v4694_v47 = vmax.f32 %v4284_v57, 0.0  ;;  %v4287_v54 = vadd.f32 %v15810_v38, %v4286_v56  ;;  %v16048_v56 = vpop.permute.xlu0 %5529  ;;  %v16052_v19 = vpop.permute.xlu1 %5501 }
 0x4ac   :  { %v4697_v62 = vmax.f32 %v4295_v4, 0.0  ;;  %v6203_v4 = vadd.f32 %v15575_v3, %v5820_v1  ;;  %v5822_v3 = vld [vmem:[%s17234_s4 + $0x28] sm:$0xff] }
 0x4ad   :  { %v4695_v44 = vmax.f32 %v4287_v54, 0.0 }
 0x4ae   :  { %v16024_v8 = vpack.c.bf16 %v4697_v62, %v4696_v34 }
 0x4af   :  { %v16027_v30 = vpack.c.bf16 %v4695_v44, %v4694_v47 }
 0x4b1   :  { %v10796_v46 = vpop.f32.mrb[32].mxu1 }
 0x4b2   :  { %v10797_v58 = vpop.f32.mrb[33].mxu1 }
 0x4b3   :  { %v10798_v11 = vadd.f32 %v10797_v58, %v10796_v46  ;;  %v10799_v38 = vpop.f32.mrb[34].mxu1  ;;  %v5821_v46 = vld [vmem:[%s17234_s4 + $0x20] sm:$0xff] }
 0x4b4   :  { %v10800_v60 = vpop.f32.mrb[35].mxu1  ;;  %v6208_v58 = vadd.f32 %v15583_v39, %v5821_v46  ;;  %v5824_v39 = vld [vmem:[%s17234_s4 + $0x38] sm:$0xff] }
 0x4b5   :  { %v16032_v7 = vadd.f32 %v10798_v11, %v6192_v15  ;;  %v10801_v9 = vadd.f32 %v10800_v60, %v10799_v38  ;;  %v16065_v38 = vpop.permute.xlu1 %5507 }
 0x4b7   :  { %v16036_v6 = vadd.f32 %v10801_v9, %v6195_v31  ;;  %v16059_v44 = vpop.permute.xlu0 %5551  ;;  %v17556_v31 = vld [vmem:[#allocation272_spill] sm:$0xff] }
 0x4b8   :  { %v6211_v9 = vadd.f32 %v17556_v31, %v5822_v3 }
 0x4b9   :  { %v10802_v48 = vpop.f32.mrb[36].mxu1 }
 0x4ba   :  { %v10803_v55 = vpop.f32.mrb[37].mxu1 }
 0x4bb   :  { %v10804_v57 = vadd.f32 %v10803_v55, %v10802_v48  ;;  %v10805_v0 = vpop.f32.mrb[38].mxu1  ;;  %v5550_v1 = vpop.permute.xlu0 %5549 }
 0x4bc   :  { %v10806_v34 = vpop.f32.mrb[39].mxu1 }
 0x4bd   :  { %v16050_v47 = vadd.f32 %v10804_v57, %v6200_v16  ;;  %v10807_v54 = vadd.f32 %v10806_v34, %v10805_v0  ;;  %v5823_v16 = vld [vmem:[%s17234_s4 + $0x30] sm:$0xff]  ;;  %v16078_v0 = vpop.permute.xlu1 %5505 }
 0x4bf   :  { %v16054_v62 = vadd.f32 %v10807_v54, %v6203_v4  ;;  %v17559_v4 = vld [vmem:[#allocation274_spill] sm:$0xff] }
 0x4c0   :  { %v6216_v54 = vadd.f32 %v17559_v4, %v5823_v16  ;;  %v5826_v16 = vld [vmem:[%s17234_s4 + $0x48] sm:$0xff] }
 0x4c1   :  { %17555 = vst [vmem:[#allocation278_spill] sm:$0xff] %v16054_v62  ;;  %v10808_v43 = vpop.f32.mrb[40].mxu1  ;;  %v5827_v62 = vld [vmem:[%s17234_s4 + $0x50] sm:$0xff] }
 0x4c2   :  { %v10809_v28 = vpop.f32.mrb[41].mxu1 }
 0x4c3   :  { %v10810_v15 = vadd.f32 %v10809_v28, %v10808_v43  ;;  %v10811_v11 = vpop.f32.mrb[42].mxu1  ;;  %v17560_v28 = vld [vmem:[#allocation275_spill] sm:$0xff] }
 0x4c4   :  { %v10812_v60 = vpop.f32.mrb[43].mxu1 }
 0x4c5   :  { %v16068_v10 = vadd.f32 %v10810_v15, %v6208_v58  ;;  %v10813_v48 = vadd.f32 %v10812_v60, %v10811_v11  ;;  %v6219_v58 = vadd.f32 %v17560_v28, %v5824_v39  ;;  %v16082_v15 = vpop.permute.xlu0 %5555  ;;  %v17563_v39 = vld [vmem:[#allocation276_spill] sm:$0xff] }
 0x4c7   :  { %17557 = vst [vmem:[#allocation279_spill] sm:$0xff] %v16068_v10  ;;  %v16070_v55 = vadd.f32 %v10813_v48, %v6211_v9  ;;  %v5825_v9 = vld [vmem:[%s17234_s4 + $0x40] sm:$0xff]  ;;  %v16091_v48 = vpop.permute.xlu1 %5461 }
 0x4c9   :  { %17558 = vst [vmem:[#allocation273_spill] sm:$0xff] %v16070_v55  ;;  %v10814_v57 = vpop.f32.mrb[44].mxu1  ;;  %v16097_v4 = vpop.permute.xlu0 %5553 }
 0x4ca   :  { %v10815_v34 = vpop.f32.mrb[45].mxu1 }
 0x4cb   :  { %v10816_v46 = vadd.f32 %v10815_v34, %v10814_v57  ;;  %v10817_v43 = vpop.f32.mrb[46].mxu1  ;;  %v6224_v34 = vadd.f32 %v17563_v39, %v5825_v9  ;;  %v6232_v39 = vadd.f32 %v15663_v13, %v5827_v62  ;;  %v5658_v13 = vsel %vm5186_vm2, %v15758_v21, %v16006_v22 }
 0x4cc   :  { %v10818_v3 = vpop.f32.mrb[47].mxu1 }
 0x4cd   :  { %v16084_v11 = vadd.f32 %v10816_v46, %v6216_v54  ;;  %v10819_v60 = vadd.f32 %v10818_v3, %v10817_v43  ;;  %v17564_v3 = vld [vmem:[#allocation277_spill] sm:$0xff] }
 0x4ce   :  { %v6227_v28 = vadd.f32 %v17564_v3, %v5826_v16  ;;  %v5655_v16 = vsel %vm5186_vm2, %v15763_v14, %v16019_v37 }
 0x4cf   :  { %17561 = vst [vmem:[#allocation272_spill] sm:$0xff] %v16084_v11  ;;  %v16086_v31 = vadd.f32 %v10819_v60, %v6219_v58 }
 0x4d1   :  { %17562 = vst [vmem:[#allocation274_spill] sm:$0xff] %v16086_v31  ;;  %v10820_v55 = vpop.f32.mrb[48].mxu1  ;;  %v16102_v31 = vpop.permute.xlu1 %5485 }
 0x4d2   :  { %v10821_v57 = vpop.f32.mrb[49].mxu1 }
 0x4d3   :  { %v10822_v54 = vadd.f32 %v10821_v57, %v10820_v55  ;;  %v10823_v46 = vpop.f32.mrb[50].mxu1  ;;  %v5828_v55 = vld [vmem:[%s17234_s4 + $0x58] sm:$0xff] }
 0x4d4   :  { %v10824_v43 = vpop.f32.mrb[51].mxu1 }
 0x4d5   :  { %v16100_v58 = vadd.f32 %v10822_v54, %v6224_v34  ;;  %v10825_v60 = vadd.f32 %v10824_v43, %v10823_v46  ;;  %v17567_v34 = vld [vmem:[#allocation282_spill] sm:$0xff]  ;;  %v5678_v46 = vsel %vm5211_vm3, %v5655_v16, %v5550_v1 }
 0x4d6   :  { %v5591_v54 = vsel %vm5186_vm2, %v17567_v34, %v15969_v5  ;;  %v12105_v5 = vld [vmem:[%s17237_s7 + $0x188] sm:$0xff]  }
 0x4d7   :  { %17565 = vst [vmem:[#allocation275_spill] sm:$0xff] %v16100_v58  ;;  %v16104_v11 = vadd.f32 %v10825_v60, %v6227_v28  ;;  %v5576_v10 = vpop.permute.xlu0 %5575  ;;  %v6235_v60 = vadd.f32 %v15675_v63, %v5828_v55  ;;  %v16123_v58 = vpop.permute.xlu1 %5509  ;;  %v5680_v63 = vsel %vm5211_vm3, %v5658_v13, %v16059_v44  ;;  %v12108_v44 = vld [vmem:[%s17239_s9 + $0x4] ss:$16 sps:$4 sm:$0xff]  }
 0x4d8   :  { %v5697_v21 = vsel %vm5228_vm4, %v5680_v63, %v5576_v10  ;;  %v5830_v10 = vld [vmem:[%s17234_s4 + $0x68] sm:$0xff] }
 0x4d9   :  { %17566 = vst [vmem:[#allocation276_spill] sm:$0xff] %v16104_v11  ;;  %v10826_v9 = vpop.f32.mrb[52].mxu1  ;;  %v5614_v11 = vsel %vm5211_vm3, %v5591_v54, %v16002_v61 }
 0x4da   :  { %v10827_v57 = vpop.f32.mrb[53].mxu1  ;;  %v5630_v62 = vsel %vm5228_vm4, %v5614_v11, %v16052_v19  ;;  %v5829_v19 = vld [vmem:[%s17234_s4 + $0x60] sm:$0xff] }
 0x4db   :  { %v10828_v43 = vadd.f32 %v10827_v57, %v10826_v9  ;;  %v5574_v3 = vpop.permute.xlu0 %5573  ;;  %v10829_v28 = vpop.f32.mrb[54].mxu1  ;;  %v6240_v57 = vadd.f32 %v15683_v25, %v5829_v19 }
 0x4dc   :  { %v10830_v14 = vpop.f32.mrb[55].mxu1  ;;  %v5694_v37 = vsel %vm5228_vm4, %v5678_v46, %v5574_v3  ;;  %v16153_v9 = vpop.permute.xlu1 %5463 }
 0x4dd   :  { %v16136_v61 = vadd.f32 %v10828_v43, %v6232_v39  ;;  %v10831_v1 = vadd.f32 %v10830_v14, %v10829_v28  ;;  %6383 = vmatprep.mubr.bf16.mxu1 %v5694_v37  ;;  %v6243_v28 = vadd.f32 %v15692_v41, %v5830_v10  ;;  %v5831_v37 = vld [vmem:[%s17234_s4 + $0x70] sm:$0xff] }
 0x4de   :  { %6384 = vmatmul.mubr.bf16.vlgmr.msra.gmra.mrb[64].mxu1 %v5630_v62  ;;  %v5661_v62 = vsel %vm5186_vm2, %v15783_v59, %v16048_v56  ;;  %v5664_v59 = vsel %vm5186_vm2, %v15778_v33, %v16034_v53  ;;  %v17570_v53 = vld [vmem:[#allocation270_spill] sm:$0xff] }
 0x4df   :  { %v16139_v22 = vadd.f32 %v10831_v1, %v6235_v60  ;;  %v16141_v55 = vpop.permute.xlu0 %5533  ;;  %6391 = vmatprep.mubr.bf16.mxu1 %v5697_v21  ;;  %11763 = vmatpush3.bf16.msra.mxu1 %v15933_v23  ;;  %v17568_v23 = vld [vmem:[#allocation281_spill] sm:$0xff]  ;;  %v17569_v1 = vld [vmem:[#allocation284_spill] sm:$0xff]  ;;  %v5682_v19 = vsel %vm5211_vm3, %v5661_v62, %v16097_v4 }
 0x4e0   :  { %11764 = vmatprep.subr.bf16.mxu1 %v12105_v5  ;;  %v5594_v39 = vsel %vm5186_vm2, %v17568_v23, %v15962_v45  ;;  %v5597_v21 = vsel %vm5186_vm2, %v17569_v1, %v15987_v29  ;;  %v5684_v29 = vsel %vm5211_vm3, %v5664_v59, %v16082_v15 }
 0x4e1   :  { %v10832_v11 = vpop.f32.mrb[56].mxu1  ;;  %v5616_v43 = vsel %vm5211_vm3, %v5594_v39, %v15992_v51  ;;  %v5832_v51 = vld [vmem:[%s17234_s4 + $0x78] sm:$0xff] }
 0x4e2   :  { %v10833_v16 = vpop.f32.mrb[57].mxu1  ;;  %v5633_v25 = vsel %vm5228_vm4, %v5616_v43, %v16041_v17  ;;  %v6248_v17 = vadd.f32 %v15702_v18, %v5831_v37 }
 0x4e3   :  { %v10834_v34 = vadd.f32 %v10833_v16, %v10832_v11  ;;  %v5558_v54 = vpop.permute.xlu0 %5557  ;;  %v10835_v46 = vpop.f32.mrb[58].mxu1  ;;  %11765 = vmatpush3.bf16.msra.mxu1 %v12105_v5  ;;  %v6251_v16 = vadd.f32 %v15711_v42, %v5832_v51 }
 0x4e4   :  { %v10836_v3 = vpop.f32.mrb[59].mxu1  ;;  %6850 = vmatprep.subr.bf16.mxu1 %v12108_v44  ;;  %v5488_v5 = vpop.permute.xlu1 %5487 }
 0x4e5   :  { %v16162_v60 = vadd.f32 %v10834_v34, %v6240_v57  ;;  %v10837_v13 = vadd.f32 %v10836_v3, %v10835_v46  ;;  %v5618_v57 = vsel %vm5211_vm3, %v5597_v21, %v16029_v20  ;;  %v5600_v46 = vsel %vm5186_vm2, %v17570_v53, %v15978_v50 }
 0x4e6   :  { %6392 = vmatmul.mubr.bf16.gmra.mrb[68].mxu1 %v5633_v25  ;;  %v5636_v42 = vsel %vm5228_vm4, %v5618_v57, %v16078_v0  ;;  %v5620_v43 = vsel %vm5211_vm3, %v5600_v46, %v16012_v26  ;;  %v5667_v25 = vsel %vm5186_vm2, %v15800_v24, %v16141_v55  ;;  %v12111_v46 = vld [vmem:[%s17239_s9 + $0x24] ss:$16 sps:$4 sm:$0xff]  }
 0x4e7   :  { %v16166_v14 = vadd.f32 %v10837_v13, %v6243_v28  ;;  %v5580_v45 = vpop.permute.xlu0 %5579  ;;  %v5639_v0 = vsel %vm5228_vm4, %v5620_v43, %v16065_v38  ;;  %v5686_v50 = vsel %vm5211_vm3, %v5667_v25, %v5558_v54  ;;  %v12115_v25 = vld [vmem:[%s17239_s9 + $0x60] ss:$16 sps:$4 sm:$0xff]  }
 0x4e8   :  { %v5512_v39 = vpop.permute.xlu1 %5511  ;;  %v5703_v20 = vsel %vm5228_vm4, %v5684_v29, %v5580_v45  ;;  %v17571_v45 = vld [vmem:[#allocation269_spill] sm:$0xff]  ;;  %v17574_v29 = vld [vmem:[#allocation280_spill] sm:$0xff] }
 0x4e9   :  { %v10838_v41 = vpop.f32.mrb[60].mxu1  ;;  %v5603_v37 = vsel %vm5186_vm2, %v17571_v45, %v16091_v48 }
 0x4ea   :  { %v10839_v63 = vpop.f32.mrb[61].mxu1  ;;  %v5622_v26 = vsel %vm5211_vm3, %v5603_v37, %v16102_v31  ;;  %v12120_v37 = vld [vmem:[%s17239_s9 + $0x84] ss:$16 sps:$4 sm:$0xff]  }
 0x4eb   :  { %v10840_v44 = vadd.f32 %v10839_v63, %v10838_v41  ;;  %v5578_v11 = vpop.permute.xlu0 %5577  ;;  %v10841_v10 = vpop.f32.mrb[62].mxu1  ;;  %v5642_v24 = vsel %vm5228_vm4, %v5622_v26, %v16123_v58  ;;  %v17572_v63 = vld [vmem:[#allocation271_spill] sm:$0xff] }
 0x4ec   :  { %v10842_v18 = vpop.f32.mrb[63].mxu1  ;;  %v5700_v56 = vsel %vm5228_vm4, %v5682_v19, %v5578_v11  ;;  %v5466_v3 = vpop.permute.xlu1 %5465  ;;  %v5606_v31 = vsel %vm5186_vm2, %v17572_v63, %v16153_v9  ;;  %v12121_v26 = vld [vmem:[%s17239_s9 + $0xa0] ss:$16 sps:$4 sm:$0xff]   ;;  %v12138_v63 = vld [vmem:[%s17239_s9 + $0x144] ss:$16 sps:$4 sm:$0xff]  }
 0x4ed   :  { %v16192_v23 = vadd.f32 %v10840_v44, %v6248_v17  ;;  %v10843_v4 = vadd.f32 %v10842_v18, %v10841_v10  ;;  %6399 = vmatprep.mubr.bf16.mxu1 %v5700_v56  ;;  %v17573_v44 = vld [vmem:[#allocation283_spill] sm:$0xff] }
 0x4ee   :  { %6400 = vmatmul.mubr.bf16.gmra.mrb[72].mxu1 %v5636_v42  ;;  %v5609_v11 = vsel %vm5186_vm2, %v17573_v44, %v5466_v3  ;;  %v6583_v3 = vlaneseq  ;;  %v12150_v44 = vld [vmem:[%s17239_s9 + $0x1c4] ss:$16 sps:$4 sm:$0xff]  }
 0x4ef   :  { %v16197_v34 = vadd.f32 %v10843_v4, %v6251_v16  ;;  %v5536_v33 = vpop.permute.xlu0 %5535  ;;  %6407 = vmatprep.mubr.bf16.mxu1 %v5703_v20 }
 0x4f0   :  { %v5490_v13 = vpop.permute.xlu1 %5489  ;;  %v5670_v38 = vsel %vm5186_vm2, %v15798_v40, %v5536_v33  ;;  %v5624_v40 = vsel %vm5211_vm3, %v5606_v31, %v5488_v5  ;;  %v12136_v31 = vld [vmem:[%s17239_s9 + $0x140] ss:$16 sps:$4 sm:$0xff]  }
 0x4f1   :  { %v5645_v1 = vsel %vm5228_vm4, %v5624_v40, %v5512_v39  ;;  %v5626_v57 = vsel %vm5211_vm3, %v5609_v11, %v5490_v13  ;;  %v16264_v13 = vshrl.u32 %v6583_v3, 7  ;;  %v12139_v40 = vld [vmem:[%s17239_s9 + $0x160] ss:$16 sps:$4 sm:$0xff]   ;;  %v12167_v3 = vld [vmem:[%s17239_s9 + $0x28] ss:$16 sps:$4 sm:$0xff]  }
 0x4f2   :  { %v12148_v11 = vld [vmem:[%s17239_s9 + $0x1c0] ss:$16 sps:$4 sm:$0xff]  }
 0x4f3   :  { %v5560_v15 = vpop.permute.xlu0 %5559 }
 0x4f4   :  { %v5688_v62 = vsel %vm5211_vm3, %v5670_v38, %v5560_v15  ;;  %v5514_v54 = vpop.permute.xlu1 %5513  ;;  %v12109_v15 = vld [vmem:[%s17239_s9 + $0x20] ss:$16 sps:$4 sm:$0xff]  }
 0x4f5   :  { %v5648_v5 = vsel %vm5228_vm4, %v5626_v57, %v5514_v54  ;;  %v12133_v54 = vld [vmem:[%s17239_s9 + $0x120] ss:$16 sps:$4 sm:$0xff]   ;;  %v12157_v57 = vld [vmem:[%s17239_s9 + $0x204] ss:$16 sps:$4 sm:$0xff]  }
 0x4f6   :  { %6408 = vmatmul.mubr.bf16.gmra.mrb[76].mxu1 %v5639_v0  ;;  %v12114_v0 = vld [vmem:[%s17239_s9 + $0x44] ss:$16 sps:$4 sm:$0xff]  }
 0x4f7   :  { %v5584_v28 = vpop.permute.xlu0 %5583 }
 0x4f8   :  { %v5709_v48 = vsel %vm5228_vm4, %v5688_v62, %v5584_v28  ;;  %v5468_v21 = vpop.permute.xlu1 %5467  ;;  %v12124_v62 = vld [vmem:[%s17239_s9 + $0xc0] ss:$16 sps:$4 sm:$0xff]  }
 0x4f9   :  { %v5612_v4 = vsel %vm5186_vm2, %v17574_v29, %v5468_v21  ;;  %v12142_v21 = vld [vmem:[%s17239_s9 + $0x180] ss:$16 sps:$4 sm:$0xff]   ;;  %v12531_v29 = vmov 0  }
 0x4fb   :  { %v5582_v51 = vpop.permute.xlu0 %5581 }
 0x4fc   :  { %v5706_v41 = vsel %vm5228_vm4, %v5686_v50, %v5582_v51  ;;  %v5492_v9 = vpop.permute.xlu1 %5491  ;;  %v12118_v50 = vld [vmem:[%s17239_s9 + $0x80] ss:$16 sps:$4 sm:$0xff]   ;;  %v12123_v51 = vld [vmem:[%s17239_s9 + $0xa4] ss:$16 sps:$4 sm:$0xff]  }
 0x4fd   :  { %6415 = vmatprep.mubr.bf16.mxu1 %v5706_v41  ;;  %v5628_v20 = vsel %vm5211_vm3, %v5612_v4, %v5492_v9  ;;  %v12126_v41 = vld [vmem:[%s17239_s9 + $0xc4] ss:$16 sps:$4 sm:$0xff]  }
 0x4fe   :  { %6416 = vmatmul.mubr.bf16.gmra.mrb[80].mxu1 %v5642_v24  ;;  %v12129_v24 = vld [vmem:[%s17239_s9 + $0xe4] ss:$16 sps:$4 sm:$0xff]  }
 0x4ff   :  { %v5538_v55 = vpop.permute.xlu0 %5537  ;;  %6423 = vmatprep.mubr.bf16.mxu1 %v5709_v48  ;;  %v12132_v48 = vld [vmem:[%s17239_s9 + $0x104] ss:$16 sps:$4 sm:$0xff]  }
 0x500   :  { %v5673_v58 = vsel %vm5186_vm2, %v15819_v12, %v5538_v55  ;;  %v5516_v56 = vpop.permute.xlu1 %5515  ;;  %v12130_v55 = vld [vmem:[%s17239_s9 + $0x100] ss:$16 sps:$4 sm:$0xff]  }
 0x501   :  { %v5651_v53 = vsel %vm5228_vm4, %v5628_v20, %v5516_v56 }
 0x503   :  { %v5562_v17 = vpop.permute.xlu0 %5561 }
 0x504   :  { %v5690_v10 = vsel %vm5211_vm3, %v5673_v58, %v5562_v17  ;;  %v12141_v17 = vld [vmem:[%s17239_s9 + $0x164] ss:$16 sps:$4 sm:$0xff]   ;;  %v12145_v58 = vld [vmem:[%s17239_s9 + $0x1a0] ss:$16 sps:$4 sm:$0xff]  }
 0x506   :  { %6424 = vmatmul.mubr.bf16.gmra.mrb[84].mxu1 %v5645_v1  ;;  %v12144_v1 = vld [vmem:[%s17239_s9 + $0x184] ss:$16 sps:$4 sm:$0xff]  }
 0x507   :  { %v5540_v19 = vpop.permute.xlu0 %5539 }
 0x508   :  { %v5676_v12 = vsel %vm5186_vm2, %v15817_v36, %v5540_v19  ;;  %v12106_v36 = vld [vmem:[%s17239_s9] ss:$16 sps:$4 sm:$0xff]   ;;  %v12147_v19 = vld [vmem:[%s17239_s9 + $0x1a4] ss:$16 sps:$4 sm:$0xff]  }
 0x50b   :  { %v5586_v16 = vpop.permute.xlu0 %5585 }
 0x50c   :  { %v5712_v59 = vsel %vm5228_vm4, %v5690_v10, %v5586_v16  ;;  %v12153_v10 = vld [vmem:[%s17239_s9 + $0x1e4] ss:$16 sps:$4 sm:$0xff]   ;;  %v12151_v16 = vld [vmem:[%s17239_s9 + $0x1e0] ss:$16 sps:$4 sm:$0xff]  }
 0x50d   :  { %6431 = vmatprep.mubr.bf16.mxu1 %v5712_v59  ;;  %v12155_v59 = vld [vmem:[%s17239_s9 + $0x200] ss:$16 sps:$4 sm:$0xff]  }
 0x50e   :  { %6432 = vmatmul.mubr.bf16.gmra.mrb[88].mxu1 %v5648_v5  ;;  %v12160_v5 = vld [vmem:[%s17239_s9 + $0x224] ss:$16 sps:$4 sm:$0xff]  }
 0x50f   :  { %v5564_v18 = vpop.permute.xlu0 %5563 }
 0x510   :  { %v5692_v42 = vsel %vm5211_vm3, %v5676_v12, %v5564_v18  ;;  %v16376_v18 = vld [vmem:[%s17576_s27] sm:$0x3f] }
 0x511   :  { %v12158_v12 = vld [vmem:[%s17239_s9 + $0x220] ss:$16 sps:$4 sm:$0xff]  }
 0x513   :  { %v5588_v39 = vpop.permute.xlu0 %5587 }
 0x514   :  { %v5715_v33 = vsel %vm5228_vm4, %v5692_v42, %v5588_v39  ;;  %v12161_v42 = vld [vmem:[%s17239_s9 + $0x244] ss:$16 sps:$4 sm:$0x3f]   ;;  %v12163_v39 = vld [vmem:[%s17239_s9 + $0x240] ss:$16 sps:$4 sm:$0x3f]  }
 0x515   :  { %6439 = vmatprep.mubr.bf16.mxu1 %v5715_v33 }
 0x516   :  { %6440 = vmatmul.mubr.bf16.gmra.mrb[92].mxu1 %v5651_v53  ;;  %v6845_v53 = vsel %vm6843_vm5, %v12163_v39, 0 }
 0x517   :  { %11766 = vmatprep.mubr.msk.bf16.mxu1 %vm5186_vm2, %v15980_v35  ;;  %v12530_v35 = vmov 1983009808  }
 0x518   :  { %v6581_v43 = vunpack.c.l.s4 %v12530_v35 }
 0x51a   :  { %v6582_v28 = vunpack.c.0.s8 %v6581_v43  ;;  %v12169_v43 = vld [vmem:[%s17239_s9 + $0x2c] ss:$16 sps:$4 sm:$0xff]  }
 0x51c   :  { %v16277_v45 = vsub.s32 %v6582_v28, %v16264_v13  ;;  %v12175_v28 = vld [vmem:[%s17239_s9 + $0x6c] ss:$16 sps:$4 sm:$0xff]  }
 0x51e   :  { %11767 = vmatmul.mubr.msk.bf16.vlgmr.msra.gmra.mrb[96].mxu1 %vm5186_vm2, %v15976_v2  ;;  %v12112_v2 = vld [vmem:[%s17239_s9 + $0x40] ss:$16 sps:$4 sm:$0xff]   ;;  %v16386_v4 = vrot.slane %v16376_v18, %v16277_v45 }
 0x51f   :  { %6851 = vmatpush1.bf16.msra.mxu1 %v12106_v36  ;;  %11770 = vmatprep.mubr.msk.bf16.mxu1 %vm5186_vm2, %v15996_v49  ;;  %v12117_v49 = vld [vmem:[%s17239_s9 + $0x64] ss:$16 sps:$4 sm:$0xff]   ;;  %v12166_v36 = vld [vmem:[%s17239_s9 + $0xc] ss:$16 sps:$4 sm:$0xff]  }
 0x520   :  { %6852 = vmatprep.subr.bf16.mxu1 %v12111_v46  ;;  %v6951_v33 = vcombine.high %v16386_v4, %v16386_v4 }
 0x522   :  { %v6956_v35 = vpack.c.bf16 %v6951_v33, %v6951_v33  ;;  %v12222_v33 = vld [vmem:[#allocation5] ss:$8 sps:$4 sm:$0xff]  }
 0x523   :  { %6853 = vmatpush1.bf16.msra.mxu1 %v12109_v15  ;;  %v12164_v15 = vld [vmem:[%s17239_s9 + $0x8] ss:$16 sps:$4 sm:$0xff]  }
 0x524   :  { %6854 = vmatprep.subr.bf16.mxu1 %v12114_v0  ;;  %v12172_v0 = vld [vmem:[%s17239_s9 + $0x4c] ss:$16 sps:$4 sm:$0xff]  }
 0x526   :  { %11771 = vmatmul.mubr.msk.bf16.gmra.mrb[100].mxu1 %vm5186_vm2, %v15994_v27  ;;  %v16285_v27 = vld [vmem:[%s17575_s10] sm:$0x3f] }
 0x527   :  { %6855 = vmatpush1.bf16.msra.mxu1 %v12112_v2  ;;  %11774 = vmatprep.mubr.msk.bf16.mxu1 %vm5186_vm2, %v16008_v32  ;;  %v6586_v32 = vrot.slane %v16285_v27, %v16277_v45  ;;  %v6579_v56 = vcombine.high %v16285_v27, %v16285_v27  ;;  %v12170_v2 = vld [vmem:[%s17239_s9 + $0x48] ss:$16 sps:$4 sm:$0xff]   ;;  %v12181_v27 = vld [vmem:[%s17239_s9 + $0xac] ss:$16 sps:$4 sm:$0xff]  }
 0x528   :  { %6856 = vmatprep.subr.bf16.mxu1 %v12117_v49  ;;  %v12173_v49 = vld [vmem:[%s17239_s9 + $0x68] ss:$16 sps:$4 sm:$0xff]  }
 0x529   :  { %v6594_v38 = vcombine.high %v6586_v32, %v6586_v32  ;;  %v6598_v9 = vpack.c.bf16 %v6586_v32, %v6586_v32  ;;  %v6593_v20 = vrot.slane %v6579_v56, %v16277_v45  ;;  %v12184_v32 = vld [vmem:[%s17239_s9 + $0xcc] ss:$16 sps:$4 sm:$0xff]  }
 0x52a   :  { %v12224_v56 = vld [vmem:[#allocation5 + $0x4] ss:$8 sps:$4 sm:$0xff]  }
 0x52b   :  { %6857 = vmatpush1.bf16.msra.mxu1 %v12115_v25  ;;  %v6600_v46 = vpack.c.bf16 %v6593_v20, %v6593_v20  ;;  %v12178_v25 = vld [vmem:[%s17239_s9 + $0x8c] ss:$16 sps:$4 sm:$0xff]  }
 0x52c   :  { %6858 = vmatprep.subr.bf16.mxu1 %v12120_v37  ;;  %v12176_v37 = vld [vmem:[%s17239_s9 + $0x88] ss:$16 sps:$4 sm:$0xff]  }
 0x52e   :  { %11775 = vmatmul.mubr.msk.bf16.gmra.mrb[104].mxu1 %vm5186_vm2, %v16004_v52  ;;  %v6599_v52 = vpack.c.bf16 %v6594_v38, %v6594_v38  ;;  %v12185_v38 = vld [vmem:[%s17239_s9 + $0xe8] ss:$16 sps:$4 sm:$0xff]  }
 0x52f   :  { %6859 = vmatpush1.bf16.msra.mxu1 %v12118_v50  ;;  %11778 = vmatprep.mubr.msk.bf16.mxu1 %vm5186_vm2, %v16027_v30  ;;  %v12127_v30 = vld [vmem:[%s17239_s9 + $0xe0] ss:$16 sps:$4 sm:$0xff]   ;;  %v12179_v50 = vld [vmem:[%s17239_s9 + $0xa8] ss:$16 sps:$4 sm:$0xff]  }
 0x530   :  { %6860 = vmatprep.subr.bf16.mxu1 %v12123_v51  ;;  %v12182_v51 = vld [vmem:[%s17239_s9 + $0xc8] ss:$16 sps:$4 sm:$0xff]  }
 0x533   :  { %6861 = vmatpush1.bf16.msra.mxu1 %v12121_v26  ;;  %v12187_v26 = vld [vmem:[%s17239_s9 + $0xec] ss:$16 sps:$4 sm:$0xff]  }
 0x534   :  { %6862 = vmatprep.subr.bf16.mxu1 %v12126_v41  ;;  %v12190_v41 = vld [vmem:[%s17239_s9 + $0x10c] ss:$16 sps:$4 sm:$0xff]  }
 0x536   :  { %11779 = vmatmul.mubr.msk.bf16.gmra.mrb[108].mxu1 %vm5186_vm2, %v16024_v8  ;;  %v12135_v8 = vld [vmem:[%s17239_s9 + $0x124] ss:$16 sps:$4 sm:$0xff]  }
 0x537   :  { %6863 = vmatpush1.bf16.msra.mxu1 %v12124_v62  ;;  %6882 = vmatprep.mubr.bf16.mxu1 %v6599_v52  ;;  %v12188_v62 = vld [vmem:[%s17239_s9 + $0x108] ss:$16 sps:$4 sm:$0xff]   ;;  %v12193_v52 = vld [vmem:[%s17239_s9 + $0x12c] ss:$16 sps:$4 sm:$0xff]  }
 0x538   :  { %6864 = vmatprep.subr.bf16.mxu1 %v12129_v24  ;;  %v12191_v24 = vld [vmem:[%s17239_s9 + $0x128] ss:$16 sps:$4 sm:$0xff]  }
 0x53b   :  { %6865 = vmatpush1.bf16.msra.mxu1 %v12127_v30  ;;  %v12196_v30 = vld [vmem:[%s17239_s9 + $0x14c] ss:$16 sps:$4 sm:$0xff]  }
 0x53c   :  { %6866 = vmatprep.subr.bf16.mxu1 %v12132_v48  ;;  %v12194_v48 = vld [vmem:[%s17239_s9 + $0x148] ss:$16 sps:$4 sm:$0xff]  }
 0x53f   :  { %6867 = vmatpush1.bf16.msra.mxu1 %v12130_v55  ;;  %v12199_v55 = vld [vmem:[%s17239_s9 + $0x16c] ss:$16 sps:$4 sm:$0xff]  }
 0x540   :  { %6868 = vmatprep.subr.bf16.mxu1 %v12135_v8  ;;  %v12197_v8 = vld [vmem:[%s17239_s9 + $0x168] ss:$16 sps:$4 sm:$0xff]  }
 0x543   :  { %6869 = vmatpush1.bf16.msra.mxu1 %v12133_v54  ;;  %v12202_v54 = vld [vmem:[%s17239_s9 + $0x18c] ss:$16 sps:$4 sm:$0xff]  }
 0x544   :  { %6870 = vmatprep.subr.bf16.mxu1 %v12138_v63  ;;  %v12200_v63 = vld [vmem:[%s17239_s9 + $0x188] ss:$16 sps:$4 sm:$0xff]  }
 0x547   :  { %6871 = vmatpush1.bf16.msra.mxu1 %v12136_v31  ;;  %v12205_v31 = vld [vmem:[%s17239_s9 + $0x1ac] ss:$16 sps:$4 sm:$0xff]  }
 0x548   :  { %6872 = vmatprep.subr.bf16.mxu1 %v12141_v17  ;;  %v12203_v17 = vld [vmem:[%s17239_s9 + $0x1a8] ss:$16 sps:$4 sm:$0xff]  }
 0x54b   :  { %6873 = vmatpush1.bf16.msra.mxu1 %v12139_v40  ;;  %v12208_v40 = vld [vmem:[%s17239_s9 + $0x1cc] ss:$16 sps:$4 sm:$0xff]  }
 0x54c   :  { %6874 = vmatprep.subr.bf16.mxu1 %v12144_v1  ;;  %v12206_v1 = vld [vmem:[%s17239_s9 + $0x1c8] ss:$16 sps:$4 sm:$0xff]  }
 0x54f   :  { %6875 = vmatpush1.bf16.msra.mxu1 %v12142_v21  ;;  %v12211_v21 = vld [vmem:[%s17239_s9 + $0x1ec] ss:$16 sps:$4 sm:$0xff]  }
 0x550   :  { %6876 = vmatprep.subr.bf16.mxu1 %v12147_v19  ;;  %v12209_v19 = vld [vmem:[%s17239_s9 + $0x1e8] ss:$16 sps:$4 sm:$0xff]  }
 0x553   :  { %6877 = vmatpush1.bf16.msra.mxu1 %v12145_v58  ;;  %v12215_v58 = vld [vmem:[%s17239_s9 + $0x20c] ss:$16 sps:$4 sm:$0xff]  }
 0x554   :  { %6878 = vmatprep.subr.bf16.mxu1 %v12150_v44  ;;  %v6955_v44 = vpack.c.bf16 %v16386_v4, %v16386_v4 }
 0x557   :  { %6879 = vmatpush1.bf16.msra.mxu1 %v12148_v11  ;;  %v12213_v11 = vld [vmem:[%s17239_s9 + $0x208] ss:$16 sps:$4 sm:$0xff]  }
 0x558   :  { %6880 = vmatprep.subr.bf16.mxu1 %v12153_v10  ;;  %v12218_v10 = vld [vmem:[%s17239_s9 + $0x22c] ss:$16 sps:$4 sm:$0xff]  }
 0x55b   :  { %6881 = vmatpush1.bf16.msra.mxu1 %v12151_v16  ;;  %v6936_v16 = vcombine.high %v16376_v18, %v16376_v18 }
 0x55c   :  { %6891 = vmatprep.subr.bf16.mxu1 %v12157_v57  ;;  %v12216_v57 = vld [vmem:[%s17239_s9 + $0x228] ss:$16 sps:$4 sm:$0xff]  }
 0x55e   :  { %6883 = vmatmul.mubr.bf16.vlgmr.msra.gmra.mrb[112].mxu1 %v6598_v9  ;;  %v12219_v9 = vld [vmem:[%s17239_s9 + $0x24c] ss:$16 sps:$4 sm:$0x3f]  }
 0x55f   :  { %6892 = vmatpush1.bf16.msra.mxu1 %v12155_v59  ;;  %6923 = vmatprep.mubr.bf16.mxu1 %v12531_v29  ;;  %v12221_v59 = vld [vmem:[%s17239_s9 + $0x248] ss:$16 sps:$4 sm:$0x3f]  }
 0x560   :  { %6893 = vmatprep.subr.bf16.mxu1 %v12160_v5  ;;  %v6950_v5 = vrot.slane %v6936_v16, %v16277_v45  ;;  %v7200_v18 = vsel %vm6843_vm5, %v12221_v59, 0  ;;  %v12243_v59 = vld [vmem:[#allocation5 + $0x70] ss:$8 sps:$4 sm:$0xff]  }
 0x562   :  { %v6957_v4 = vpack.c.bf16 %v6950_v5, %v6950_v5  ;;  %v12248_v5 = vld [vmem:[#allocation5 + $0x84] ss:$8 sps:$4 sm:$0xff]  }
 0x563   :  { %6894 = vmatpush1.bf16.msra.mxu1 %v12158_v12 }
 0x564   :  { %10327 = vmatprep.subr.msk.bf16.mxu1 %vm6843_vm5, %v12161_v42 }
 0x567   :  { %6896 = vmatpush1.bf16.msra.mxu1 %v6845_v53 }
 0x568   :  { %7205 = vmatprep.subr.bf16.mxu1 %v12166_v36  ;;  %v12227_v36 = vld [vmem:[#allocation5 + $0x14] ss:$8 sps:$4 sm:$0xff]  }
 0x56a   :  { %10328 = vmatmul.mubr.msk.bf16.vlgmr.msra.gmra.mrb[112].mxu1 %vm6839_vm6, %v6600_v46 }
 0x56b   :  { %7206 = vmatpush1.bf16.msra.mxu1 %v12164_v15  ;;  %7237 = vmatprep.mubr.bf16.mxu1 %v6956_v35  ;;  %v12225_v35 = vld [vmem:[#allocation5 + $0x10] ss:$8 sps:$4 sm:$0xff]  }
 0x56c   :  { %7207 = vmatprep.subr.bf16.mxu1 %v12169_v43  ;;  %v12230_v43 = vld [vmem:[#allocation5 + $0x24] ss:$8 sps:$4 sm:$0xff]  }
 0x56f   :  { %7208 = vmatpush1.bf16.msra.mxu1 %v12167_v3 }
 0x570   :  { %7209 = vmatprep.subr.bf16.mxu1 %v12172_v0 }
 0x573   :  { %7210 = vmatpush1.bf16.msra.mxu1 %v12170_v2 }
 0x574   :  { %7211 = vmatprep.subr.bf16.mxu1 %v12175_v28 }
 0x577   :  { %7212 = vmatpush1.bf16.msra.mxu1 %v12173_v49  ;;  %v12228_v49 = vld [vmem:[#allocation5 + $0x20] ss:$8 sps:$4 sm:$0xff]  }
 0x578   :  { %7213 = vmatprep.subr.bf16.mxu1 %v12178_v25 }
 0x57b   :  { %7214 = vmatpush1.bf16.msra.mxu1 %v12176_v37  ;;  %v12233_v37 = vld [vmem:[#allocation5 + $0x34] ss:$8 sps:$4 sm:$0xff]  }
 0x57c   :  { %7215 = vmatprep.subr.bf16.mxu1 %v12181_v27 }
 0x57f   :  { %7216 = vmatpush1.bf16.msra.mxu1 %v12179_v50  ;;  %v17577_v50 = vld [vmem:[#allocation278_spill] sm:$0xff] }
 0x580   :  { %7217 = vmatprep.subr.bf16.mxu1 %v12184_v32  ;;  %v12231_v32 = vld [vmem:[#allocation5 + $0x30] ss:$8 sps:$4 sm:$0xff]  }
 0x583   :  { %7218 = vmatpush1.bf16.msra.mxu1 %v12182_v51  ;;  %v12236_v51 = vld [vmem:[#allocation5 + $0x44] ss:$8 sps:$4 sm:$0xff]  }
 0x584   :  { %7219 = vmatprep.subr.bf16.mxu1 %v12187_v26 }
 0x587   :  { %7220 = vmatpush1.bf16.msra.mxu1 %v12185_v38 }
 0x588   :  { %7221 = vmatprep.subr.bf16.mxu1 %v12190_v41 }
 0x58b   :  { %7222 = vmatpush1.bf16.msra.mxu1 %v12188_v62 }
 0x58c   :  { %7223 = vmatprep.subr.bf16.mxu1 %v12193_v52  ;;  %v12234_v52 = vld [vmem:[#allocation5 + $0x40] ss:$8 sps:$4 sm:$0xff]  }
 0x58f   :  { %7224 = vmatpush1.bf16.msra.mxu1 %v12191_v24 }
 0x590   :  { %7225 = vmatprep.subr.bf16.mxu1 %v12196_v30  ;;  %v12239_v30 = vld [vmem:[#allocation5 + $0x54] ss:$8 sps:$4 sm:$0xff]  }
 0x593   :  { %7226 = vmatpush1.bf16.msra.mxu1 %v12194_v48 }
 0x594   :  { %7227 = vmatprep.subr.bf16.mxu1 %v12199_v55  ;;  %v17578_v55 = vld [vmem:[#allocation279_spill] sm:$0xff] }
 0x597   :  { %7228 = vmatpush1.bf16.msra.mxu1 %v12197_v8  ;;  %v17579_v8 = vld [vmem:[#allocation273_spill] sm:$0xff] }
 0x598   :  { %7229 = vmatprep.subr.bf16.mxu1 %v12202_v54 }
 0x59b   :  { %7230 = vmatpush1.bf16.msra.mxu1 %v12200_v63  ;;  %v12237_v63 = vld [vmem:[#allocation5 + $0x50] ss:$8 sps:$4 sm:$0xff]  }
 0x59c   :  { %7231 = vmatprep.subr.bf16.mxu1 %v12205_v31  ;;  %v12242_v31 = vld [vmem:[#allocation5 + $0x64] ss:$8 sps:$4 sm:$0xff]  }
 0x59f   :  { %7232 = vmatpush1.bf16.msra.mxu1 %v12203_v17 }
 0x5a0   :  { %7233 = vmatprep.subr.bf16.mxu1 %v12208_v40 }
 0x5a3   :  { %7234 = vmatpush1.bf16.msra.mxu1 %v12206_v1 }
 0x5a4   :  { %7235 = vmatprep.subr.bf16.mxu1 %v12211_v21 }
 0x5a7   :  { %7236 = vmatpush1.bf16.msra.mxu1 %v12209_v19  ;;  %v12240_v19 = vld [vmem:[#allocation5 + $0x60] ss:$8 sps:$4 sm:$0xff]  }
 0x5a8   :  { %7246 = vmatprep.subr.bf16.mxu1 %v12215_v58 }
 0x5aa   :  { %7238 = vmatmul.mubr.bf16.vlgmr.msra.gmra.mrb[116].mxu1 %v6955_v44  ;;  %v12245_v44 = vld [vmem:[#allocation5 + $0x74] ss:$8 sps:$4 sm:$0xff]  }
 0x5ab   :  { %7247 = vmatpush1.bf16.msra.mxu1 %v12213_v11  ;;  %7278 = vmatprep.mubr.bf16.mxu1 %v12531_v29 }
 0x5ac   :  { %7248 = vmatprep.subr.bf16.mxu1 %v12218_v10  ;;  %v17580_v10 = vld [vmem:[#allocation272_spill] sm:$0xff] }
 0x5af   :  { %7249 = vmatpush1.bf16.msra.mxu1 %v12216_v57  ;;  %v17581_v57 = vld [vmem:[#allocation274_spill] sm:$0xff] }
 0x5b0   :  { %10367 = vmatprep.subr.msk.bf16.mxu1 %vm6843_vm5, %v12219_v9 }
 0x5b1   :  { %v10860_v12 = vpop.f32.mrb[64].mxu1 }
 0x5b2   :  { %v10861_v42 = vpop.f32.mrb[65].mxu1 }
 0x5b3   :  { %v10862_v39 = vadd.f32 %v10861_v42, %v10860_v12  ;;  %7251 = vmatpush1.bf16.msra.mxu1 %v7200_v18  ;;  %v10863_v20 = vpop.f32.mrb[66].mxu1  ;;  %v12246_v42 = vld [vmem:[#allocation5 + $0x80] ss:$8 sps:$4 sm:$0xff]  }
 0x5b4   :  { %v10864_v53 = vpop.f32.mrb[67].mxu1  ;;  %7689 = vmatprep.subr.bf16.mxu1 %v12224_v56 }
 0x5b5   :  { %v10865_v46 = vadd.f32 %v10864_v53, %v10863_v20  ;;  %v16523_v15 = vadd.f32 %v10862_v39, %v16032_v7  ;;  %v12251_v20 = vld [vmem:[#allocation5 + $0x94] ss:$8 sps:$4 sm:$0xff]  }
 0x5b6   :  { %10368 = vmatmul.mubr.msk.bf16.vlgmr.msra.gmra.mrb[116].mxu1 %vm6839_vm6, %v6957_v4  ;;  %v17582_v53 = vld [vmem:[#allocation275_spill] sm:$0xff] }
 0x5b7   :  { %v16527_v45 = vadd.f32 %v10865_v46, %v16036_v6  ;;  %7690 = vmatpush1.bf16.msra.mxu1 %v12222_v33  ;;  %v17583_v46 = vld [vmem:[#allocation276_spill] sm:$0xff] }
 0x5b8   :  { %7691 = vmatprep.subr.bf16.mxu1 %v12227_v36 }
 0x5b9   :  { %v10866_v3 = vpop.f32.mrb[68].mxu1 }
 0x5ba   :  { %v10867_v0 = vpop.f32.mrb[69].mxu1 }
 0x5bb   :  { %v10868_v2 = vadd.f32 %v10867_v0, %v10866_v3  ;;  %v10869_v28 = vpop.f32.mrb[70].mxu1  ;;  %7692 = vmatpush1.bf16.msra.mxu1 %v12225_v35  ;;  %v12254_v3 = vld [vmem:[#allocation5 + $0xa4] ss:$8 sps:$4 sm:$0xff]  }
 0x5bc   :  { %v10870_v25 = vpop.f32.mrb[71].mxu1  ;;  %7693 = vmatprep.subr.bf16.mxu1 %v12230_v43  ;;  %v12249_v43 = vld [vmem:[#allocation5 + $0x90] ss:$8 sps:$4 sm:$0xff]  }
 0x5bd   :  { %v10871_v7 = vadd.f32 %v10870_v25, %v10869_v28  ;;  %v16530_v27 = vadd.f32 %v10868_v2, %v16050_v47  ;;  %v12252_v25 = vld [vmem:[#allocation5 + $0xa0] ss:$8 sps:$4 sm:$0xff]  }
 0x5bf   :  { %v16533_v6 = vadd.f32 %v10871_v7, %v17577_v50  ;;  %7694 = vmatpush1.bf16.msra.mxu1 %v12228_v49  ;;  %v12257_v7 = vld [vmem:[#allocation5 + $0xb4] ss:$8 sps:$4 sm:$0xff]  }
 0x5c0   :  { %7695 = vmatprep.subr.bf16.mxu1 %v12233_v37 }
 0x5c1   :  { %v10872_v26 = vpop.f32.mrb[72].mxu1 }
 0x5c2   :  { %v10873_v38 = vpop.f32.mrb[73].mxu1 }
 0x5c3   :  { %v10874_v41 = vadd.f32 %v10873_v38, %v10872_v26  ;;  %v10875_v62 = vpop.f32.mrb[74].mxu1  ;;  %7696 = vmatpush1.bf16.msra.mxu1 %v12231_v32  ;;  %v12255_v26 = vld [vmem:[#allocation5 + $0xb0] ss:$8 sps:$4 sm:$0xff]   ;;  %v12260_v38 = vld [vmem:[#allocation5 + $0xc4] ss:$8 sps:$4 sm:$0xff]  }
 0x5c4   :  { %v10876_v24 = vpop.f32.mrb[75].mxu1  ;;  %7697 = vmatprep.subr.bf16.mxu1 %v12236_v51 }
 0x5c5   :  { %v10877_v48 = vadd.f32 %v10876_v24, %v10875_v62  ;;  %v16536_v47 = vadd.f32 %v10874_v41, %v17578_v55  ;;  %v12263_v55 = vld [vmem:[#allocation5 + $0xd4] ss:$8 sps:$4 sm:$0xff]  }
 0x5c7   :  { %v16539_v54 = vadd.f32 %v10877_v48, %v17579_v8  ;;  %7698 = vmatpush1.bf16.msra.mxu1 %v12234_v52 }
 0x5c8   :  { %7699 = vmatprep.subr.bf16.mxu1 %v12239_v30  ;;  %v12258_v30 = vld [vmem:[#allocation5 + $0xc0] ss:$8 sps:$4 sm:$0xff]  }
 0x5c9   :  { %v10878_v17 = vpop.f32.mrb[76].mxu1 }
 0x5ca   :  { %v10879_v40 = vpop.f32.mrb[77].mxu1 }
 0x5cb   :  { %v10880_v1 = vadd.f32 %v10879_v40, %v10878_v17  ;;  %v10881_v21 = vpop.f32.mrb[78].mxu1  ;;  %7700 = vmatpush1.bf16.msra.mxu1 %v12237_v63  ;;  %v12261_v63 = vld [vmem:[#allocation5 + $0xd0] ss:$8 sps:$4 sm:$0xff]  }
 0x5cc   :  { %v10882_v58 = vpop.f32.mrb[79].mxu1  ;;  %7701 = vmatprep.subr.bf16.mxu1 %v12242_v31  ;;  %v12266_v31 = vld [vmem:[#allocation5 + $0xe4] ss:$8 sps:$4 sm:$0xff]  }
 0x5cd   :  { %v10883_v11 = vadd.f32 %v10882_v58, %v10881_v21  ;;  %v16542_v16 = vadd.f32 %v10880_v1, %v17580_v10 }
 0x5cf   :  { %v16545_v9 = vadd.f32 %v10883_v11, %v17581_v57  ;;  %7702 = vmatpush1.bf16.msra.mxu1 %v12240_v19  ;;  %v12264_v19 = vld [vmem:[#allocation5 + $0xe0] ss:$8 sps:$4 sm:$0xff]   ;;  %v12272_v57 = vld [vmem:[#allocation5 + $0x104] ss:$8 sps:$4 sm:$0xff]  }
 0x5d0   :  { %7703 = vmatprep.subr.bf16.mxu1 %v12245_v44  ;;  %v12269_v44 = vld [vmem:[#allocation5 + $0xf4] ss:$8 sps:$4 sm:$0xff]  }
 0x5d1   :  { %v10884_v18 = vpop.f32.mrb[80].mxu1 }
 0x5d2   :  { %v10885_v56 = vpop.f32.mrb[81].mxu1 }
 0x5d3   :  { %v10886_v12 = vadd.f32 %v10885_v56, %v10884_v18  ;;  %v10887_v4 = vpop.f32.mrb[82].mxu1  ;;  %7704 = vmatpush1.bf16.msra.mxu1 %v12243_v59 }
 0x5d4   :  { %v10888_v39 = vpop.f32.mrb[83].mxu1  ;;  %7705 = vmatprep.subr.bf16.mxu1 %v12248_v5 }
 0x5d5   :  { %v10889_v33 = vadd.f32 %v10888_v39, %v10887_v4  ;;  %v16548_v36 = vadd.f32 %v10886_v12, %v17582_v53 }
 0x5d7   :  { %v16551_v35 = vadd.f32 %v10889_v33, %v17583_v46  ;;  %7706 = vmatpush1.bf16.msra.mxu1 %v12246_v42 }
 0x5d8   :  { %7707 = vmatprep.subr.bf16.mxu1 %v12251_v20 }
 0x5d9   :  { %v10890_v0 = vpop.f32.mrb[84].mxu1 }
 0x5da   :  { %v10891_v2 = vpop.f32.mrb[85].mxu1 }
 0x5db   :  { %v10892_v28 = vadd.f32 %v10891_v2, %v10890_v0  ;;  %v10893_v49 = vpop.f32.mrb[86].mxu1  ;;  %7708 = vmatpush1.bf16.msra.mxu1 %v12249_v43 }
 0x5dc   :  { %v10894_v37 = vpop.f32.mrb[87].mxu1  ;;  %7709 = vmatprep.subr.bf16.mxu1 %v12254_v3 }
 0x5dd   :  { %v10895_v50 = vadd.f32 %v10894_v37, %v10893_v49  ;;  %v16554_v32 = vadd.f32 %v10892_v28, %v16136_v61 }
 0x5df   :  { %v16557_v51 = vadd.f32 %v10895_v50, %v16139_v22  ;;  %7710 = vmatpush1.bf16.msra.mxu1 %v12252_v25 }
 0x5e0   :  { %7711 = vmatprep.subr.bf16.mxu1 %v12257_v7 }
 0x5e1   :  { %v10896_v41 = vpop.f32.mrb[88].mxu1 }
 0x5e2   :  { %v10897_v62 = vpop.f32.mrb[89].mxu1 }
 0x5e3   :  { %v10898_v52 = vadd.f32 %v10897_v62, %v10896_v41  ;;  %v10899_v24 = vpop.f32.mrb[90].mxu1  ;;  %7712 = vmatpush1.bf16.msra.mxu1 %v12255_v26 }
 0x5e4   :  { %v10900_v48 = vpop.f32.mrb[91].mxu1  ;;  %7713 = vmatprep.subr.bf16.mxu1 %v12260_v38 }
 0x5e5   :  { %v10901_v8 = vadd.f32 %v10900_v48, %v10899_v24  ;;  %v16560_v61 = vadd.f32 %v10898_v52, %v16162_v60 }
 0x5e7   :  { %v16563_v22 = vadd.f32 %v10901_v8, %v16166_v14  ;;  %7714 = vmatpush1.bf16.msra.mxu1 %v12258_v30  ;;  %v12267_v14 = vld [vmem:[#allocation5 + $0xf0] ss:$8 sps:$4 sm:$0xff]  }
 0x5e8   :  { %7715 = vmatprep.subr.bf16.mxu1 %v12263_v55 }
 0x5e9   :  { %v10902_v17 = vpop.f32.mrb[92].mxu1 }
 0x5ea   :  { %v10903_v40 = vpop.f32.mrb[93].mxu1 }
 0x5eb   :  { %v10904_v1 = vadd.f32 %v10903_v40, %v10902_v17  ;;  %v10905_v21 = vpop.f32.mrb[94].mxu1  ;;  %7716 = vmatpush1.bf16.msra.mxu1 %v12261_v63  ;;  %v16598_v17 = vsub.s32 0, %v16264_v13  ;;  %v16604_v40 = vsub.s32 1, %v16264_v13  ;;  %v12273_v13 = vld [vmem:[#allocation5 + $0x110] ss:$8 sps:$4 sm:$0xff]  }
 0x5ec   :  { %v10906_v58 = vpop.f32.mrb[95].mxu1  ;;  %7717 = vmatprep.subr.bf16.mxu1 %v12266_v31 }
 0x5ed   :  { %v10907_v11 = vadd.f32 %v10906_v58, %v10905_v21  ;;  %v6442_v60 = vadd.f32 %v10904_v1, %v16192_v23 }
 0x5ef   :  { %v6445_v10 = vadd.f32 %v10907_v11, %v16197_v34  ;;  %7718 = vmatpush1.bf16.msra.mxu1 %v12264_v19 }
 0x5f0   :  { %7719 = vmatprep.subr.bf16.mxu1 %v12269_v44 }
 0x5f1   :  { %v11768_v59 = vpop.f32.mrb[96].mxu1 }
 0x5f2   :  { %v6491_v5 = vadd.f32 %v11768_v59, %v16530_v27  ;;  %v6482_v18 = vpop.f32.mrb[97].mxu1  ;;  %v12270_v59 = vld [vmem:[#allocation5 + $0x100] ss:$8 sps:$4 sm:$0xff]  }
 0x5f3   :  { %v6483_v56 = vadd.f32 %v6482_v18, %v16523_v15  ;;  %v11769_v12 = vpop.f32.mrb[98].mxu1  ;;  %7720 = vmatpush1.bf16.msra.mxu1 %v12267_v14  ;;  %v12275_v18 = vld [vmem:[#allocation5 + $0x114] ss:$8 sps:$4 sm:$0xff]  }
 0x5f4   :  { %v6547_v4 = vmax.f32 %v6491_v5, 0.0  ;;  %v6494_v42 = vadd.f32 %v11769_v12, %v16533_v6  ;;  %v6485_v39 = vpop.f32.mrb[99].mxu1  ;;  %7730 = vmatprep.subr.bf16.mxu1 %v12272_v57  ;;  %v12276_v12 = vld [vmem:[#allocation5 + $0x120] ss:$8 sps:$4 sm:$0xff]  }
 0x5f5   :  { %v6545_v23 = vmax.f32 %v6483_v56, 0.0  ;;  %v6486_v34 = vadd.f32 %v6485_v39, %v16527_v45  ;;  %v12278_v56 = vld [vmem:[#allocation5 + $0x124] ss:$8 sps:$4 sm:$0xff]  }
 0x5f6   :  { %6563 = vst.msk [vmem:[#allocation3 + $0x10] sm:$0xff] %vm5211_vm3, %v6547_v4  ;;  %v6548_v20 = vmax.f32 %v6494_v42, 0.0  ;;  %v12281_v4 = vld [vmem:[#allocation5 + $0x134] ss:$8 sps:$4 sm:$0xff]   ;;  %v12279_v42 = vld [vmem:[#allocation5 + $0x130] ss:$8 sps:$4 sm:$0xff]  }
 0x5f7   :  { %6561 = vst.msk [vmem:[#allocation3] sm:$0xff] %vm5211_vm3, %v6545_v23  ;;  %v6546_v33 = vmax.f32 %v6486_v34, 0.0  ;;  %v12284_v39 = vld [vmem:[#allocation5 + $0x144] ss:$8 sps:$4 sm:$0xff]   ;;  %v12282_v23 = vld [vmem:[#allocation5 + $0x140] ss:$8 sps:$4 sm:$0xff]  }
 0x5f8   :  { %6564 = vst.msk [vmem:[#allocation3 + $0x18] sm:$0xff] %vm5211_vm3, %v6548_v20  ;;  %v12287_v34 = vld [vmem:[#allocation5 + $0x154] ss:$8 sps:$4 sm:$0xff]   ;;  %v12285_v20 = vld [vmem:[#allocation5 + $0x150] ss:$8 sps:$4 sm:$0xff]  }
 0x5f9   :  { %6562 = vst.msk [vmem:[#allocation3 + $0x8] sm:$0xff] %vm5211_vm3, %v6546_v33  ;;  %v11772_v15 = vpop.f32.mrb[100].mxu1  ;;  %v12290_v33 = vld [vmem:[#allocation5 + $0x164] ss:$8 sps:$4 sm:$0xff]  }
 0x5fa   :  { %v6507_v27 = vadd.f32 %v11772_v15, %v16542_v16  ;;  %v6498_v53 = vpop.f32.mrb[101].mxu1  ;;  %v12288_v15 = vld [vmem:[#allocation5 + $0x160] ss:$8 sps:$4 sm:$0xff]  }
 0x5fb   :  { %v6499_v6 = vadd.f32 %v6498_v53, %v16536_v47  ;;  %v11773_v46 = vpop.f32.mrb[102].mxu1  ;;  %v12291_v53 = vld [vmem:[#allocation5 + $0x170] ss:$8 sps:$4 sm:$0xff]  }
 0x5fc   :  { %v6551_v43 = vmax.f32 %v6507_v27, 0.0  ;;  %v6510_v45 = vadd.f32 %v11773_v46, %v16545_v9  ;;  %v6501_v3 = vpop.f32.mrb[103].mxu1  ;;  %v12293_v27 = vld [vmem:[#allocation5 + $0x174] ss:$8 sps:$4 sm:$0xff]   ;;  %v12294_v46 = vld [vmem:[#allocation5 + $0x180] ss:$8 sps:$4 sm:$0xff]  }
 0x5fd   :  { %v6549_v0 = vmax.f32 %v6499_v6, 0.0  ;;  %v6502_v2 = vadd.f32 %v6501_v3, %v16539_v54  ;;  %v12296_v6 = vld [vmem:[#allocation5 + $0x184] ss:$8 sps:$4 sm:$0xff]  }
 0x5fe   :  { %6567 = vst.msk [vmem:[#allocation3 + $0x30] sm:$0xff] %vm5211_vm3, %v6551_v43  ;;  %v6552_v28 = vmax.f32 %v6510_v45, 0.0  ;;  %v12299_v43 = vld [vmem:[#allocation5 + $0x194] ss:$8 sps:$4 sm:$0xff]   ;;  %v12297_v45 = vld [vmem:[#allocation5 + $0x190] ss:$8 sps:$4 sm:$0xff]  }
 0x5ff   :  { %6565 = vst.msk [vmem:[#allocation3 + $0x20] sm:$0xff] %vm5211_vm3, %v6549_v0  ;;  %v6550_v49 = vmax.f32 %v6502_v2, 0.0  ;;  %v12302_v3 = vld [vmem:[#allocation5 + $0x1a4] ss:$8 sps:$4 sm:$0xff]   ;;  %v12300_v0 = vld [vmem:[#allocation5 + $0x1a0] ss:$8 sps:$4 sm:$0xff]  }
 0x600   :  { %6568 = vst.msk [vmem:[#allocation3 + $0x38] sm:$0xff] %vm5211_vm3, %v6552_v28  ;;  %v12305_v2 = vld [vmem:[#allocation5 + $0x1b4] ss:$8 sps:$4 sm:$0xff]   ;;  %v12303_v28 = vld [vmem:[#allocation5 + $0x1b0] ss:$8 sps:$4 sm:$0xff]  }
 0x601   :  { %6566 = vst.msk [vmem:[#allocation3 + $0x28] sm:$0xff] %vm5211_vm3, %v6550_v49  ;;  %v11776_v16 = vpop.f32.mrb[104].mxu1  ;;  %v12308_v49 = vld [vmem:[#allocation5 + $0x1c4] ss:$8 sps:$4 sm:$0xff]  }
 0x602   :  { %v6523_v47 = vadd.f32 %v11776_v16, %v16554_v32  ;;  %v6514_v25 = vpop.f32.mrb[105].mxu1  ;;  %v12306_v16 = vld [vmem:[#allocation5 + $0x1c0] ss:$8 sps:$4 sm:$0xff]  }
 0x603   :  { %v6515_v9 = vadd.f32 %v6514_v25, %v16548_v36  ;;  %v11777_v37 = vpop.f32.mrb[106].mxu1  ;;  %v12309_v25 = vld [vmem:[#allocation5 + $0x1d0] ss:$8 sps:$4 sm:$0xff]  }
 0x604   :  { %v6555_v7 = vmax.f32 %v6523_v47, 0.0  ;;  %v6526_v54 = vadd.f32 %v11777_v37, %v16557_v51  ;;  %v6517_v50 = vpop.f32.mrb[107].mxu1  ;;  %v12311_v47 = vld [vmem:[#allocation5 + $0x1d4] ss:$8 sps:$4 sm:$0xff]   ;;  %v12312_v37 = vld [vmem:[#allocation5 + $0x1e0] ss:$8 sps:$4 sm:$0xff]  }
 0x605   :  { %v6553_v26 = vmax.f32 %v6515_v9, 0.0  ;;  %v6518_v38 = vadd.f32 %v6517_v50, %v16551_v35  ;;  %v12314_v9 = vld [vmem:[#allocation5 + $0x1e4] ss:$8 sps:$4 sm:$0xff]  }
 0x606   :  { %6571 = vst.msk [vmem:[#allocation3 + $0x50] sm:$0xff] %vm5211_vm3, %v6555_v7  ;;  %v6556_v41 = vmax.f32 %v6526_v54, 0.0  ;;  %v12317_v7 = vld [vmem:[#allocation5 + $0x1f4] ss:$8 sps:$4 sm:$0xff]   ;;  %v12315_v54 = vld [vmem:[#allocation5 + $0x1f0] ss:$8 sps:$4 sm:$0xff]  }
 0x607   :  { %6569 = vst.msk [vmem:[#allocation3 + $0x40] sm:$0xff] %vm5211_vm3, %v6553_v26  ;;  %v6554_v62 = vmax.f32 %v6518_v38, 0.0  ;;  %v12318_v50 = vld [vmem:[%s17241_s11 + $0x40] sm:$0xff]  }
 0x608   :  { %6572 = vst.msk [vmem:[#allocation3 + $0x58] sm:$0xff] %vm5211_vm3, %v6556_v41  ;;  %v6996_v26 = vld [vmem:[%s17247_s17 + $0x2] sm:$0x3] }
 0x609   :  { %6570 = vst.msk [vmem:[#allocation3 + $0x48] sm:$0xff] %vm5211_vm3, %v6554_v62  ;;  %v11780_v32 = vpop.f32.mrb[108].mxu1  ;;  %v7001_v38 = vrot.slane %v6996_v26, %v16598_v17  ;;  %v7005_v41 = vrot.slane %v6996_v26, %v16604_v40  ;;  %v12353_v26 = vld [vmem:[%s17243_s13 + $0x28] sm:$0xff]  }
 0x60a   :  { %v6539_v36 = vadd.f32 %v11780_v32, %v6442_v60  ;;  %v6530_v52 = vpop.f32.mrb[109].mxu1 }
 0x60b   :  { %v6531_v24 = vadd.f32 %v6530_v52, %v16560_v61  ;;  %v11781_v51 = vpop.f32.mrb[110].mxu1  ;;  %v6639_v61 = vld [vmem:[%s17247_s17] sm:$0x3] }
 0x60c   :  { %v6559_v30 = vmax.f32 %v6539_v36, 0.0  ;;  %v6542_v48 = vadd.f32 %v11781_v51, %v6445_v10  ;;  %v6533_v55 = vpop.f32.mrb[111].mxu1  ;;  %v6648_v1 = vrot.slane %v6639_v61, %v16604_v40 }
 0x60d   :  { %v6557_v35 = vmax.f32 %v6531_v24, 0.0  ;;  %v6534_v8 = vadd.f32 %v6533_v55, %v16563_v22  ;;  %v6644_v22 = vrot.slane %v6639_v61, %v16598_v17  ;;  %v12322_v61 = vld [vmem:[%s17241_s11 + $0x50] sm:$0xff]  }
 0x60e   :  { %6575 = vst.msk [vmem:[#allocation3 + $0x70] sm:$0xff] %vm5211_vm3, %v6559_v30  ;;  %v6560_v63 = vmax.f32 %v6542_v48, 0.0 }
 0x60f   :  { %6573 = vst.msk [vmem:[#allocation3 + $0x60] sm:$0xff] %vm5211_vm3, %v6557_v35  ;;  %v6558_v31 = vmax.f32 %v6534_v8, 0.0  ;;  %v12319_v35 = vld [vmem:[%s17241_s11] sm:$0xff]  }
 0x610   :  { %6576 = vst.msk [vmem:[#allocation3 + $0x78] sm:$0xff] %vm5211_vm3, %v6560_v63  ;;  %v12320_v63 = vld [vmem:[%s17241_s11 + $0x48] sm:$0xff]  }
 0x611   :  { %6574 = vst.msk [vmem:[#allocation3 + $0x68] sm:$0xff] %vm5211_vm3, %v6558_v31  ;;  %v12321_v31 = vld [vmem:[%s17241_s11 + $0x8] sm:$0xff]  }
 0x63d   :  { %v6925_v21 = vpop.f32.mrb[112].mxu1 }
 0x63e   :  { %v11822_v19 = vadd.f32 %v6925_v21, %v6644_v22  ;;  %v6927_v58 = vpop.f32.mrb[113].mxu1  ;;  %v12323_v22 = vld [vmem:[%s17241_s11 + $0x10] sm:$0xff]   ;;  %v12325_v21 = vld [vmem:[%s17241_s11 + $0x18] sm:$0xff]  }
 0x63f   :  { %v11823_v44 = vadd.f32 %v6927_v58, %v6648_v1  ;;  %v6929_v11 = vpop.f32.mrb[114].mxu1  ;;  %v12324_v1 = vld [vmem:[%s17241_s11 + $0x58] sm:$0xff]   ;;  %v12327_v58 = vld [vmem:[%s17241_s11 + $0x20] sm:$0xff]  }
 0x640   :  { %v6932_v60 = vmax.f32 %v11822_v19, 0.0  ;;  %v6930_v10 = vpop.f32.mrb[115].mxu1  ;;  %v12326_v19 = vld [vmem:[%s17241_s11 + $0x60] sm:$0xff]   ;;  %v12329_v11 = vld [vmem:[%s17241_s11 + $0x28] sm:$0xff]  }
 0x641   :  { %v6933_v14 = vmax.f32 %v11823_v44, 0.0  ;;  %v12328_v44 = vld [vmem:[%s17241_s11 + $0x68] sm:$0xff]   ;;  %v12331_v10 = vld [vmem:[%s17241_s11 + $0x30] sm:$0xff]  }
 0x642   :  { %v7289_v5 = vpack.c.bf16 %v6932_v60, %v6932_v60  ;;  %v12330_v60 = vld [vmem:[%s17241_s11 + $0x70] sm:$0xff]  }
 0x643   :  { %v7290_v57 = vpack.c.bf16 %v6933_v14, %v6933_v14  ;;  %v12332_v14 = vld [vmem:[%s17241_s11 + $0x78] sm:$0xff]  }
 0x645   :  { %7721 = vmatprep.mubr.bf16.mxu1 %v7290_v57  ;;  %v12333_v57 = vld [vmem:[%s17241_s11 + $0x38] sm:$0xff]  }
 0x646   :  { %7722 = vmatmul.mubr.bf16.vlgmr.msra.gmra.mrb[120].mxu1 %v7289_v5  ;;  %v7357_v5 = vld [vmem:[%s17247_s17 + $0x4] sm:$0x3] }
 0x647   :  { %7731 = vmatpush1.bf16.msra.mxu1 %v12270_v59  ;;  %v12336_v59 = vld [vmem:[%s17242_s12 + $0x4] ss:$8 sps:$4 sm:$0xff]  }
 0x648   :  { %7732 = vmatprep.subr.bf16.mxu1 %v12275_v18  ;;  %v7362_v18 = vrot.slane %v7357_v5, %v16598_v17 }
 0x64b   :  { %7733 = vmatpush1.bf16.msra.mxu1 %v12273_v13  ;;  %v7366_v13 = vrot.slane %v7357_v5, %v16604_v40  ;;  %v12362_v5 = vld [vmem:[%s17244_s14 + $0x20] sm:$0xff]  }
 0x64c   :  { %7734 = vmatprep.subr.bf16.mxu1 %v12278_v56 }
 0x64f   :  { %7735 = vmatpush1.bf16.msra.mxu1 %v12276_v12 }
 0x650   :  { %7736 = vmatprep.subr.bf16.mxu1 %v12281_v4 }
 0x653   :  { %7737 = vmatpush1.bf16.msra.mxu1 %v12279_v42 }
 0x654   :  { %7738 = vmatprep.subr.bf16.mxu1 %v12284_v39 }
 0x657   :  { %7739 = vmatpush1.bf16.msra.mxu1 %v12282_v23 }
 0x658   :  { %7740 = vmatprep.subr.bf16.mxu1 %v12287_v34 }
 0x65b   :  { %7741 = vmatpush1.bf16.msra.mxu1 %v12285_v20 }
 0x65c   :  { %7742 = vmatprep.subr.bf16.mxu1 %v12290_v33 }
 0x65f   :  { %7743 = vmatpush1.bf16.msra.mxu1 %v12288_v15  ;;  %v12334_v15 = vld [vmem:[%s17242_s12] ss:$8 sps:$4 sm:$0xff]  }
 0x660   :  { %7744 = vmatprep.subr.bf16.mxu1 %v12293_v27 }
 0x663   :  { %7745 = vmatpush1.bf16.msra.mxu1 %v12291_v53  ;;  %v12339_v53 = vld [vmem:[%s17242_s12 + $0x14] ss:$8 sps:$4 sm:$0xff]  }
 0x664   :  { %7746 = vmatprep.subr.bf16.mxu1 %v12296_v6  ;;  %v7957_v6 = vld [vmem:[%s17242_s12 + $0x20] sm:$0x77] }
 0x667   :  { %7747 = vmatpush1.bf16.msra.mxu1 %v12294_v46  ;;  %v12337_v46 = vld [vmem:[%s17242_s12 + $0x10] ss:$8 sps:$4 sm:$0xff]  }
 0x668   :  { %7748 = vmatprep.subr.bf16.mxu1 %v12299_v43  ;;  %v10455_v43 = vcombine.high %v7957_v6, %v7957_v6 }
 0x66b   :  { %7749 = vmatpush1.bf16.msra.mxu1 %v12297_v45  ;;  %v10454_v45 = vcombine.low %v7957_v6, %v7957_v6 }
 0x66c   :  { %7750 = vmatprep.subr.bf16.mxu1 %v12302_v3  ;;  %v7951_v3 = vld [vmem:[%s17233_s3] sm:$0x3] }
 0x66f   :  { %7751 = vmatpush1.bf16.msra.mxu1 %v12300_v0  ;;  %v8001_v0 = vsel %vm7999_vm7, %v10454_v45, 0 }
 0x670   :  { %7752 = vmatprep.subr.bf16.mxu1 %v12305_v2  ;;  %v12342_v2 = vld [vmem:[%s17243_s13 + $0x40] sm:$0xff]  }
 0x673   :  { %7753 = vmatpush1.bf16.msra.mxu1 %v12303_v28  ;;  %v7952_v28 = vpack.c.bf16 %v7951_v3, %v7951_v3 }
 0x674   :  { %7754 = vmatprep.subr.bf16.mxu1 %v12308_v49  ;;  %v12344_v49 = vld [vmem:[%s17243_s13 + $0x48] sm:$0xff]  }
 0x677   :  { %7755 = vmatpush1.bf16.msra.mxu1 %v12306_v16  ;;  %v12345_v16 = vld [vmem:[%s17243_s13 + $0x8] sm:$0xff]  }
 0x678   :  { %7756 = vmatprep.subr.bf16.mxu1 %v12311_v47  ;;  %v12346_v47 = vld [vmem:[%s17243_s13 + $0x50] sm:$0xff]  }
 0x67b   :  { %7757 = vmatpush1.bf16.msra.mxu1 %v12309_v25  ;;  %v12347_v25 = vld [vmem:[%s17243_s13 + $0x10] sm:$0xff]  }
 0x67c   :  { %7758 = vmatprep.subr.bf16.mxu1 %v12314_v9  ;;  %v12348_v9 = vld [vmem:[%s17243_s13 + $0x58] sm:$0xff]  }
 0x67f   :  { %7759 = vmatpush1.bf16.msra.mxu1 %v12312_v37  ;;  %v12349_v37 = vld [vmem:[%s17243_s13 + $0x18] sm:$0xff]  }
 0x680   :  { %7760 = vmatprep.subr.bf16.mxu1 %v12317_v7  ;;  %v12350_v7 = vld [vmem:[%s17243_s13 + $0x60] sm:$0xff]  }
 0x683   :  { %7761 = vmatpush1.bf16.msra.mxu1 %v12315_v54  ;;  %v12351_v54 = vld [vmem:[%s17243_s13 + $0x20] sm:$0xff]  }
 0x684   :  { %10918 = vmatprep.subr.bf16.mxu1 %v12318_v50  ;;  %v12352_v50 = vld [vmem:[%s17243_s13 + $0x68] sm:$0xff]  }
 0x689   :  { %v7280_v62 = vpop.f32.mrb[116].mxu1 }
 0x68a   :  { %v11824_v32 = vadd.f32 %v7280_v62, %v7001_v38  ;;  %v7282_v36 = vpop.f32.mrb[117].mxu1  ;;  %v12354_v38 = vld [vmem:[%s17243_s13 + $0x70] sm:$0xff]   ;;  %v12356_v62 = vld [vmem:[%s17243_s13 + $0x78] sm:$0xff]  }
 0x68b   :  { %v11825_v52 = vadd.f32 %v7282_v36, %v7005_v41  ;;  %v7284_v24 = vpop.f32.mrb[118].mxu1  ;;  %v12355_v41 = vld [vmem:[%s17243_s13 + $0x30] sm:$0xff]   ;;  %v12532_v36 = vmov 0.0  }
 0x68c   :  { %v7287_v51 = vmax.f32 %v11824_v32, 0.0  ;;  %v7285_v30 = vpop.f32.mrb[119].mxu1  ;;  %v12357_v32 = vld [vmem:[%s17243_s13 + $0x38] sm:$0xff]   ;;  %v10433_v24 = vld [vmem:[%s17247_s17 + $0x6] ss:$0 sm:$0xff] }
 0x68d   :  { %v7288_v48 = vmax.f32 %v11825_v52, 0.0 }
 0x68e   :  { %v7291_v8 = vpack.c.bf16 %v7287_v51, %v7287_v51 }
 0x68f   :  { %v7292_v55 = vpack.c.bf16 %v7288_v48, %v7288_v48 }
 0x691   :  { %7762 = vmatprep.mubr.bf16.mxu1 %v7292_v55 }
 0x692   :  { %7763 = vmatmul.mubr.bf16.vlgmr.msra.gmra.mrb[120].mxu1 %v7291_v8 }
 0x693   :  { %10919 = vmatpush3.bf16.msra.mxu1 %v12319_v35 }
 0x694   :  { %10920 = vmatprep.subr.bf16.mxu1 %v12320_v63  ;;  %v7958_v63 = vld [vmem:[%s17247_s17 + $0x8] sm:$0x3] }
 0x697   :  { %10921 = vmatpush3.bf16.msra.mxu1 %v12321_v31  ;;  %v7963_v31 = vrot.slane %v7958_v63, %v16598_v17  ;;  %v12359_v17 = vld [vmem:[%s17244_s14 + $0x8] sm:$0xff]  }
 0x698   :  { %10922 = vmatprep.subr.bf16.mxu1 %v12322_v61  ;;  %v7967_v61 = vrot.slane %v7958_v63, %v16604_v40  ;;  %v12360_v40 = vld [vmem:[%s17244_s14 + $0x10] sm:$0xff]  }
 0x69b   :  { %10923 = vmatpush3.bf16.msra.mxu1 %v12323_v22 }
 0x69c   :  { %10924 = vmatprep.subr.bf16.mxu1 %v12324_v1 }
 0x69f   :  { %10925 = vmatpush3.bf16.msra.mxu1 %v12325_v21 }
 0x6a0   :  { %10926 = vmatprep.subr.bf16.mxu1 %v12326_v19 }
 0x6a3   :  { %10927 = vmatpush3.bf16.msra.mxu1 %v12327_v58 }
 0x6a4   :  { %10928 = vmatprep.subr.bf16.mxu1 %v12328_v44 }
 0x6a7   :  { %10929 = vmatpush3.bf16.msra.mxu1 %v12329_v11 }
 0x6a8   :  { %10930 = vmatprep.subr.bf16.mxu1 %v12330_v60 }
 0x6ab   :  { %10931 = vmatpush3.bf16.msra.mxu1 %v12331_v10 }
 0x6ac   :  { %10932 = vmatprep.subr.bf16.mxu1 %v12332_v14  ;;  %v12358_v14 = vld [vmem:[%s17244_s14] sm:$0xff]  }
 0x6af   :  { %10933 = vmatpush3.bf16.msra.mxu1 %v12333_v57 }
 0x6b0   :  { %8006 = vmatprep.subr.bf16.mxu1 %v12336_v59  ;;  %v12361_v59 = vld [vmem:[%s17244_s14 + $0x18] sm:$0xff]  }
 0x765   :  { %v7764_v56 = vpop.f32.mrb[120].mxu1 }
 0x766   :  { %v11826_v12 = vadd.f32 %v7764_v56, %v7362_v18  ;;  %v7766_v4 = vpop.f32.mrb[121].mxu1  ;;  %v12363_v18 = vld [vmem:[%s17244_s14 + $0x28] sm:$0xff]   ;;  %v12365_v56 = vld [vmem:[%s17244_s14 + $0x38] sm:$0xff]  }
 0x767   :  { %v11827_v42 = vadd.f32 %v7766_v4, %v7366_v13  ;;  %v7768_v39 = vpop.f32.mrb[122].mxu1  ;;  %v12364_v13 = vld [vmem:[%s17244_s14 + $0x30] sm:$0xff]   ;;  %v10458_v4 = vld [vmem:[%s17247_s17 + $0xa] ss:$0 sm:$0xff] }
 0x768   :  { %v7771_v23 = vmax.f32 %v11826_v12, 0.0  ;;  %v7769_v34 = vpop.f32.mrb[123].mxu1 }
 0x769   :  { %v7772_v20 = vmax.f32 %v11827_v42, 0.0 }
 0x76a   :  { %v7773_v27 = vpack.c.bf16 %v7771_v23, %v7771_v23 }
 0x76b   :  { %v7774_v33 = vpack.c.bf16 %v7772_v20, %v7772_v20 }
 0x76d   :  { %7942 = vmatprep.mubr.bf16.mxu1 %v7774_v33 }
 0x76e   :  { %7943 = vmatmul.mubr.bf16.vlgmr.msra.gmra.mrb[124].mxu1 %v7773_v27  ;;  %v10475_v27 = vld [vmem:[%s17247_s17 + $0xb] ss:$0 sm:$0xff] }
 0x76f   :  { %8007 = vmatpush1.bf16.msra.mxu1 %v12334_v15  ;;  %8038 = vmatprep.mubr.bf16.mxu1 %v12531_v29  ;;  %v12343_v29 = vld [vmem:[%s17243_s13] sm:$0xff]  }
 0x770   :  { %8008 = vmatprep.subr.bf16.mxu1 %v12339_v53 }
 0x773   :  { %8009 = vmatpush1.bf16.msra.mxu1 %v12337_v46 }
 0x774   :  { %10456 = vmatprep.subr.msk.bf16.mxu1 %vm7999_vm7, %v10455_v43 }
 0x777   :  { %8011 = vmatpush1.bf16.msra.mxu1 %v8001_v0 }
 0x778   :  { %10940 = vmatprep.subr.bf16.mxu1 %v12342_v2 }
 0x77a   :  { %10457 = vmatmul.mubr.msk.bf16.vlgmr.msra.gmra.mrb[128].mxu1 %vm7995_vm8, %v7952_v28 }
 0x77b   :  { %10941 = vmatpush3.bf16.msra.mxu1 %v12343_v29 }
 0x77c   :  { %10942 = vmatprep.subr.bf16.mxu1 %v12344_v49 }
 0x77f   :  { %10943 = vmatpush3.bf16.msra.mxu1 %v12345_v16 }
 0x780   :  { %10944 = vmatprep.subr.bf16.mxu1 %v12346_v47 }
 0x783   :  { %10945 = vmatpush3.bf16.msra.mxu1 %v12347_v25 }
 0x784   :  { %10946 = vmatprep.subr.bf16.mxu1 %v12348_v9 }
 0x787   :  { %10947 = vmatpush3.bf16.msra.mxu1 %v12349_v37 }
 0x788   :  { %10948 = vmatprep.subr.bf16.mxu1 %v12350_v7 }
 0x78b   :  { %10949 = vmatpush3.bf16.msra.mxu1 %v12351_v54 }
 0x78c   :  { %10950 = vmatprep.subr.bf16.mxu1 %v12352_v50 }
 0x78f   :  { %10951 = vmatpush3.bf16.msra.mxu1 %v12353_v26 }
 0x790   :  { %10952 = vmatprep.subr.bf16.mxu1 %v12354_v38 }
 0x793   :  { %10953 = vmatpush3.bf16.msra.mxu1 %v12355_v41 }
 0x794   :  { %10954 = vmatprep.subr.bf16.mxu1 %v12356_v62 }
 0x797   :  { %10955 = vmatpush3.bf16.msra.mxu1 %v12357_v32 }
 0x798   :  { %11782 = vmatprep.subr.bf16.mxu1 %v12532_v36 }
 0x841   :  { %v10934_v52 = vpop.f32.mrb[124].mxu1 }
 0x842   :  { %v10935_v51 = vpop.f32.mrb[125].mxu1 }
 0x843   :  { %v10936_v30 = vadd.f32 %v10935_v51, %v10934_v52  ;;  %v10937_v48 = vpop.f32.mrb[126].mxu1 }
 0x844   :  { %v10938_v55 = vpop.f32.mrb[127].mxu1 }
 0x845   :  { %v16737_v35 = vadd.f32 %v10936_v30, %v10433_v24 }
 0x847   :  { %v7950_v8 = vmax.f32 %v16737_v35, 0.0 }
 0x84d   :  { %v8040_v22 = vpop.f32.mrb[128].mxu1 }
 0x84e   :  { %v8041_v1 = vadd.f32 %v8040_v22, %v7963_v31  ;;  %v8042_v21 = vpop.f32.mrb[129].mxu1 }
 0x84f   :  { %v8043_v19 = vadd.f32 %v8042_v21, %v7967_v61  ;;  %v8044_v58 = vpop.f32.mrb[130].mxu1 }
 0x850   :  { %v8047_v44 = vmax.f32 %v8041_v1, 0.0  ;;  %v8045_v11 = vpop.f32.mrb[131].mxu1 }
 0x851   :  { %v8048_v60 = vmax.f32 %v8043_v19, 0.0 }
 0x852   :  { %v8049_v57 = vpack.c.bf16 %v8047_v44, %v8047_v44 }
 0x853   :  { %v8050_v10 = vpack.c.bf16 %v8048_v60, %v8048_v60 }
 0x855   :  { %8218 = vmatprep.mubr.bf16.mxu1 %v8050_v10 }
 0x856   :  { %8219 = vmatmul.mubr.bf16.vlgmr.msra.gmra.mrb[132].mxu1 %v8049_v57 }
 0x857   :  { %11783 = vmatpush3.bf16.msra.mxu1 %v12358_v14  ;;  %11798 = vmatprep.mubr.msk.bf16.mxu1 %vm12533_vm9, %v12532_v36 }
 0x858   :  { %11784 = vmatprep.subr.bf16.mxu1 %v12532_v36 }
 0x85b   :  { %11785 = vmatpush3.bf16.msra.mxu1 %v12359_v17 }
 0x85c   :  { %11786 = vmatprep.subr.bf16.mxu1 %v12532_v36 }
 0x85f   :  { %11787 = vmatpush3.bf16.msra.mxu1 %v12360_v40 }
 0x860   :  { %11788 = vmatprep.subr.bf16.mxu1 %v12532_v36 }
 0x863   :  { %11789 = vmatpush3.bf16.msra.mxu1 %v12361_v59 }
 0x864   :  { %11790 = vmatprep.subr.bf16.mxu1 %v12532_v36 }
 0x867   :  { %11791 = vmatpush3.bf16.msra.mxu1 %v12362_v5 }
 0x868   :  { %11792 = vmatprep.subr.bf16.mxu1 %v12532_v36 }
 0x86b   :  { %11793 = vmatpush3.bf16.msra.mxu1 %v12363_v18 }
 0x86c   :  { %11794 = vmatprep.subr.bf16.mxu1 %v12532_v36 }
 0x86f   :  { %11795 = vmatpush3.bf16.msra.mxu1 %v12364_v13 }
 0x870   :  { %11796 = vmatprep.subr.bf16.mxu1 %v12532_v36 }
 0x873   :  { %11797 = vmatpush3.bf16.msra.mxu1 %v12365_v56 }
 0x929   :  { %v10956_v12 = vpop.f32.mrb[132].mxu1 }
 0x92a   :  { %v10957_v42 = vpop.f32.mrb[133].mxu1 }
 0x92b   :  { %v10958_v39 = vadd.f32 %v10957_v42, %v10956_v12  ;;  %v10959_v23 = vpop.f32.mrb[134].mxu1 }
 0x92c   :  { %v10960_v34 = vpop.f32.mrb[135].mxu1 }
 0x92d   :  { %v8221_v20 = vadd.f32 %v10958_v39, %v10458_v4 }
 0x92f   :  { %v8226_v33 = vmax.f32 %v8221_v20, 0.0 }
 0x931   :  { %v8227_v15 = vpack.c.bf16 %v8226_v33, %v8226_v33 }
 0x933   :  { %11799 = vmatmul.mubr.bf16.vlgmr.msra.gmra.mrb[136].mxu1 %v8227_v15 }
 0xa06   :  { %v8333_v53 = vpop.f32.mrb[136].mxu1 }
 0xa07   :  { %v16784_v6 = vadd.f32 %v10475_v27, %v8333_v53  ;;  %v11800_v46 = vpop.f32.mrb[137].mxu1 }
 0xa08   :  { %v8336_v43 = vpop.f32.mrb[138].mxu1 }
 0xa09   :  { %v8339_v45 = vmax.f32 %v16784_v6, 0.0  ;;  %v11801_v3 = vpop.f32.mrb[139].mxu1 }
 0xa0a   :  { %12520 = dma.done.wait [#allocation4], 32768 }
 0xa0b   :  { %12521 = vsyncadd [#allocation4], 4294934528  ;;  %v17584_v0 = vld [vmem:[#allocation21_spill] sm:$0xff]  ;;  %v17588_v49 = vld [vmem:[#allocation22_spill] sm:$0xff] }
 0xa0c   :  { %10971 = vmatprep.subr.bf16.mxu1 %v17584_v0  ;;  %v17585_v2 = vld [vmem:[#allocation117_spill] sm:$0xff]  ;;  %v17589_v16 = vld [vmem:[#allocation118_spill] sm:$0xff]  ;;  %v17592_v9 = vld [vmem:[#allocation23_spill] sm:$0xff] }
 0xa0d   :  { %11103 = vmatprep.subr.bf16.mxu0 %v17585_v2  ;;  %v17586_v28 = vld [vmem:[#allocation13_spill] sm:$0xff]  ;;  %v17590_v47 = vld [vmem:[#allocation14_spill] sm:$0xff]  ;;  %v17593_v37 = vld [vmem:[#allocation119_spill] sm:$0xff] }
 0xa0e   :  { %10972 = vmatpush3.bf16.msra.mxu1 %v17586_v28  ;;  %v17587_v29 = vld [vmem:[#allocation109_spill] sm:$0xff]  ;;  %v17591_v25 = vld [vmem:[#allocation110_spill] sm:$0xff]  ;;  %v8353_v41 = vld [vmem:[#allocation3 + $0x12] sm:$0x3] }
 0xa0f   :  { %11104 = vmatpush3.bf16.msra.mxu0 %v17587_v29  ;;  %10973 = vmatprep.subr.bf16.mxu1 %v17588_v49  ;;  %v8345_v7 = vld [vmem:[#allocation3 + $0x2] sm:$0x3]  ;;  %v8347_v54 = vld [vmem:[#allocation3 + $0x6] sm:$0x3]  ;;  %v8349_v50 = vld [vmem:[#allocation3 + $0xa] sm:$0x3] }
 0xa10   :  { %11105 = vmatprep.subr.bf16.mxu0 %v17589_v16  ;;  %v12370_v26 = vpack.i.bf16 %v8345_v7, %v8347_v54  ;;  %v8351_v38 = vld [vmem:[#allocation3 + $0xe] sm:$0x3]  ;;  %v8355_v62 = vld [vmem:[#allocation3 + $0x16] sm:$0x3]  ;;  %v8357_v52 = vld [vmem:[#allocation3 + $0x1a] sm:$0x3] }
 0xa11   :  { %v12380_v32 = vpack.i.bf16 %v8353_v41, %v8355_v62  ;;  %v8359_v24 = vld [vmem:[#allocation3 + $0x1e] sm:$0x3]  ;;  %v17594_v51 = vld [vmem:[#allocation15_spill] sm:$0xff]  ;;  %v12375_v48 = vpack.i.bf16 %v8349_v50, %v8351_v38  ;;  %v8361_v63 = vld [vmem:[#allocation3 + $0x22] sm:$0x3] }
 0xa12   :  { %10974 = vmatpush3.bf16.msra.mxu1 %v17590_v47  ;;  %v17595_v30 = vld [vmem:[#allocation111_spill] sm:$0xff]  ;;  %12371 = vrot.lane.b32.xlu0 %v12370_v26, %s12528_s19  ;;  %v17596_v55 = vld [vmem:[#allocation24_spill] sm:$0xff]  ;;  %v8363_v31 = vld [vmem:[#allocation3 + $0x26] sm:$0x3]  ;;  %v12385_v61 = vpack.i.bf16 %v8357_v52, %v8359_v24 }
 0xa13   :  { %11106 = vmatpush3.bf16.msra.mxu0 %v17591_v25  ;;  %10975 = vmatprep.subr.bf16.mxu1 %v17592_v9  ;;  %v17597_v22 = vld [vmem:[#allocation120_spill] sm:$0xff]  ;;  %v17600_v19 = vld [vmem:[#allocation25_spill] sm:$0xff]  ;;  %v12390_v58 = vpack.i.bf16 %v8361_v63, %v8363_v31  ;;  %v17604_v10 = vld [vmem:[#allocation26_spill] sm:$0xff] }
 0xa14   :  { %11107 = vmatprep.subr.bf16.mxu0 %v17593_v37  ;;  %12381 = vrot.lane.b32.xlu1 %v12380_v32, %s12528_s19  ;;  %v17598_v1 = vld [vmem:[#allocation16_spill] sm:$0xff]  ;;  %v17601_v44 = vld [vmem:[#allocation121_spill] sm:$0xff]  ;;  %v17605_v14 = vld [vmem:[#allocation122_spill] sm:$0xff] }
 0xa15   :  { %v17599_v21 = vld [vmem:[#allocation112_spill] sm:$0xff]  ;;  %v17602_v11 = vld [vmem:[#allocation17_spill] sm:$0xff]  ;;  %v17606_v57 = vld [vmem:[#allocation18_spill] sm:$0xff] }
 0xa16   :  { %10976 = vmatpush3.bf16.msra.mxu1 %v17594_v51  ;;  %12376 = vrot.lane.b32.xlu0 %v12375_v48, %s12528_s19  ;;  %v17603_v60 = vld [vmem:[#allocation113_spill] sm:$0xff]  ;;  %v17607_v17 = vld [vmem:[#allocation114_spill] sm:$0xff]  ;;  %v17608_v40 = vld [vmem:[#allocation27_spill] sm:$0xff] }
 0xa17   :  { %11108 = vmatpush3.bf16.msra.mxu0 %v17595_v30  ;;  %10977 = vmatprep.subr.bf16.mxu1 %v17596_v55  ;;  %v17609_v59 = vld [vmem:[#allocation123_spill] sm:$0xff]  ;;  %v17612_v13 = vld [vmem:[#allocation28_spill] sm:$0xff]  ;;  %v17616_v42 = vld [vmem:[#allocation37_spill] sm:$0xff] }
 0xa18   :  { %11109 = vmatprep.subr.bf16.mxu0 %v17597_v22  ;;  %12386 = vrot.lane.b32.xlu1 %v12385_v61, %s12528_s19  ;;  %v17610_v5 = vld [vmem:[#allocation19_spill] sm:$0xff]  ;;  %v17613_v56 = vld [vmem:[#allocation124_spill] sm:$0xff]  ;;  %v17617_v39 = vld [vmem:[#allocation149_spill] sm:$0xff] }
 0xa19   :  { %v17611_v18 = vld [vmem:[#allocation115_spill] sm:$0xff]  ;;  %v17614_v12 = vld [vmem:[#allocation20_spill] sm:$0xff]  ;;  %v8365_v23 = vld [vmem:[#allocation3 + $0x2a] sm:$0x3] }
 0xa1a   :  { %10978 = vmatpush3.bf16.msra.mxu1 %v17598_v1  ;;  %12391 = vrot.lane.b32.xlu0 %v12390_v58, %s12528_s19  ;;  %v17615_v4 = vld [vmem:[#allocation116_spill] sm:$0xff]  ;;  %v8367_v34 = vld [vmem:[#allocation3 + $0x2e] sm:$0x3]  ;;  %v8369_v33 = vld [vmem:[#allocation3 + $0x32] sm:$0x3] }
 0xa1b   :  { %11110 = vmatpush3.bf16.msra.mxu0 %v17599_v21  ;;  %10979 = vmatprep.subr.bf16.mxu1 %v17600_v19  ;;  %v12395_v20 = vpack.i.bf16 %v8365_v23, %v8367_v34  ;;  %v8371_v15 = vld [vmem:[#allocation3 + $0x36] sm:$0x3]  ;;  %v8373_v53 = vld [vmem:[#allocation3 + $0x3a] sm:$0x3]  ;;  %v8375_v46 = vld [vmem:[#allocation3 + $0x3e] sm:$0x3] }
 0xa1c   :  { %11111 = vmatprep.subr.bf16.mxu0 %v17601_v44  ;;  %v12400_v27 = vpack.i.bf16 %v8369_v33, %v8371_v15  ;;  %v12405_v43 = vpack.i.bf16 %v8373_v53, %v8375_v46  ;;  %v8377_v3 = vld [vmem:[#allocation3 + $0x42] sm:$0x3]  ;;  %v8379_v0 = vld [vmem:[#allocation3 + $0x46] sm:$0x3]  ;;  %v8381_v28 = vld [vmem:[#allocation3 + $0x4a] sm:$0x3] }
 0xa1d   :  { %12396 = vrot.lane.b32.xlu1 %v12395_v20, %s12528_s19  ;;  %v12410_v2 = vpack.i.bf16 %v8377_v3, %v8379_v0  ;;  %v8383_v29 = vld [vmem:[#allocation3 + $0x4e] sm:$0x3]  ;;  %v8385_v16 = vld [vmem:[#allocation3 + $0x52] sm:$0x3]  ;;  %v8387_v47 = vld [vmem:[#allocation3 + $0x56] sm:$0x3] }
 0xa1e   :  { %10980 = vmatpush3.bf16.msra.mxu1 %v17602_v11  ;;  %12401 = vrot.lane.b32.xlu0 %v12400_v27, %s12528_s19  ;;  %v12415_v49 = vpack.i.bf16 %v8381_v28, %v8383_v29  ;;  %v12420_v25 = vpack.i.bf16 %v8385_v16, %v8387_v47  ;;  %v8344_v37 = vld [vmem:[#allocation3] sm:$0x3]  ;;  %v8346_v7 = vld [vmem:[#allocation3 + $0x4] sm:$0x3]  ;;  %v8350_v32 = vld [vmem:[#allocation3 + $0xc] sm:$0x3] }
 0xa1f   :  { %11112 = vmatpush3.bf16.msra.mxu0 %v17603_v60  ;;  %10981 = vmatprep.subr.bf16.mxu1 %v17604_v10  ;;  %v17618_v30 = vld [vmem:[#allocation29_spill] sm:$0xff]  ;;  %v17619_v55 = vld [vmem:[#allocation38_spill] sm:$0xff]  ;;  %v8389_v63 = vld [vmem:[#allocation3 + $0x5a] sm:$0x3] }
 0xa20   :  { %11113 = vmatprep.subr.bf16.mxu0 %v17605_v14  ;;  %v8391_v31 = vld [vmem:[#allocation3 + $0x5e] sm:$0x3]  ;;  %v17620_v61 = vld [vmem:[#allocation30_spill] sm:$0xff]  ;;  %v17621_v1 = vld [vmem:[#allocation39_spill] sm:$0xff] }
 0xa21   :  { %12406 = vrot.lane.b32.xlu1 %v12405_v43, %s12528_s19  ;;  %v12425_v22 = vpack.i.bf16 %v8389_v63, %v8391_v31  ;;  %v8393_v21 = vld [vmem:[#allocation3 + $0x62] sm:$0x3]  ;;  %v8395_v19 = vld [vmem:[#allocation3 + $0x66] sm:$0x3]  ;;  %v17622_v44 = vld [vmem:[#allocation31_spill] sm:$0xff] }
 0xa22   :  { %10982 = vmatpush3.bf16.msra.mxu1 %v17606_v57  ;;  %12411 = vrot.lane.b32.xlu0 %v12410_v2, %s12528_s19  ;;  %v12430_v58 = vpack.i.bf16 %v8393_v21, %v8395_v19  ;;  %v17623_v11 = vld [vmem:[#allocation40_spill] sm:$0xff]  ;;  %v17625_v10 = vld [vmem:[#allocation41_spill] sm:$0xff]  ;;  %v17627_v57 = vld [vmem:[#allocation42_spill] sm:$0xff] }
 0xa23   :  { %11114 = vmatpush3.bf16.msra.mxu0 %v17607_v17  ;;  %10983 = vmatprep.subr.bf16.mxu1 %v17608_v40  ;;  %v17624_v60 = vld [vmem:[#allocation32_spill] sm:$0xff]  ;;  %v17626_v14 = vld [vmem:[#allocation33_spill] sm:$0xff]  ;;  %v17628_v40 = vld [vmem:[#allocation34_spill] sm:$0xff] }
 0xa24   :  { %11115 = vmatprep.subr.bf16.mxu0 %v17609_v59  ;;  %v8368_v34 = vld [vmem:[#allocation3 + $0x30] sm:$0x3]  ;;  %v17632_v53 = vld [vmem:[#allocation36_spill] sm:$0xff]  ;;  %v8370_v43 = vld [vmem:[#allocation3 + $0x34] sm:$0x3] }
 0xa25   :  { %12416 = vrot.lane.b32.xlu1 %v12415_v49, %s12528_s19  ;;  %v17633_v3 = vld [vmem:[#allocation53_spill] sm:$0xff]  ;;  %v17635_v16 = vld [vmem:[#allocation54_spill] sm:$0xff]  ;;  %v17648_v63 = vld [vmem:[#allocation144_spill] sm:$0xff] }
 0xa26   :  { %10984 = vmatpush3.bf16.msra.mxu1 %v17610_v5  ;;  %12421 = vrot.lane.b32.xlu0 %v12420_v25, %s12528_s19  ;;  %v17629_v5 = vld [vmem:[#allocation43_spill] sm:$0xff]  ;;  %v17634_v49 = vld [vmem:[#allocation45_spill] sm:$0xff]  ;;  %v8397_v25 = vld [vmem:[#allocation3 + $0x6a] sm:$0x3] }
 0xa27   :  { %11116 = vmatpush3.bf16.msra.mxu0 %v17611_v18  ;;  %10985 = vmatprep.subr.bf16.mxu1 %v17612_v13  ;;  %v8348_v18 = vld [vmem:[#allocation3 + $0x8] sm:$0x3]  ;;  %v17653_v19 = vld [vmem:[#allocation50_spill] sm:$0xff]  ;;  %v12469_v6 = vld [vmem:[%s17246_s16 + $0x18] sm:$0xff]  }
 0xa28   :  { %11117 = vmatprep.subr.bf16.mxu0 %v17613_v56  ;;  %v8354_v56 = vld [vmem:[#allocation3 + $0x14] sm:$0x3]  ;;  %v17636_v47 = vld [vmem:[#allocation141_spill] sm:$0xff] }
 0xa29   :  { %12426 = vrot.lane.b32.xlu1 %v12425_v22, %s12528_s19  ;;  %v17649_v31 = vld [vmem:[#allocation49_spill] sm:$0xff]  ;;  %v17651_v22 = vld [vmem:[#allocation58_spill] sm:$0xff] }
 0xa2a   :  { %10986 = vmatpush3.bf16.msra.mxu1 %v17614_v12  ;;  %12431 = vrot.lane.b32.xlu0 %v12430_v58, %s12528_s19  ;;  %v17652_v21 = vld [vmem:[#allocation145_spill] sm:$0xff] }
 0xa2b   :  { %11118 = vmatpush3.bf16.msra.mxu0 %v17615_v4  ;;  %10993 = vmatprep.subr.bf16.mxu1 %v17616_v42  ;;  %v17630_v42 = vld [vmem:[#allocation35_spill] sm:$0xff] }
 0xa2c   :  { %11147 = vmatprep.subr.bf16.mxu0 %v17617_v39  ;;  %v17631_v39 = vld [vmem:[#allocation44_spill] sm:$0xff] }
 0xa84   :  { %v12372_v9 = vpop.permute.xlu0 %12371 }
 0xa85   :  { %v12374_v54 = vunpack.i.h.bf16 %v12372_v9  ;;  %v12373_v50 = vunpack.i.l.bf16 %v12372_v9  ;;  %v8399_v9 = vld [vmem:[#allocation3 + $0x6e] sm:$0x3] }
 0xa86   :  { %v16847_v17 = vpop.permute.xlu1 %12381 }
 0xa87   :  { %v8440_v26 = vsel %vm5211_vm3, %v8344_v37, %v12374_v54  ;;  %v8441_v38 = vsel %vm5211_vm3, %v8346_v7, %v12373_v50  ;;  %v12383_v13 = vunpack.i.l.bf16 %v16847_v17  ;;  %v17637_v37 = vld [vmem:[#allocation46_spill] sm:$0xff]  ;;  %v12435_v54 = vpack.i.bf16 %v8397_v25, %v8399_v9  ;;  %v17639_v50 = vld [vmem:[#allocation55_spill] sm:$0xff] }
 0xa88   :  { %v8569_v41 = vpack.c.bf16 %v8441_v38, %v8441_v38  ;;  %v8568_v62 = vpack.c.bf16 %v8440_v26, %v8440_v26  ;;  %v12377_v52 = vpop.permute.xlu0 %12376  ;;  %v17638_v7 = vld [vmem:[#allocation150_spill] sm:$0xff]  ;;  %v8401_v26 = vld [vmem:[#allocation3 + $0x72] sm:$0x3]  ;;  %v8403_v38 = vld [vmem:[#allocation3 + $0x76] sm:$0x3]  ;;  %v12384_v58 = vunpack.i.h.bf16 %v16847_v17 }
 0xa89   :  { %v12378_v24 = vunpack.i.l.bf16 %v12377_v52  ;;  %v12379_v59 = vunpack.i.h.bf16 %v12377_v52  ;;  %v8445_v23 = vsel %vm5211_vm3, %v8354_v56, %v12383_v13  ;;  %12436 = vrot.lane.b32.xlu1 %v12435_v54, %s12528_s19  ;;  %v17642_v52 = vld [vmem:[#allocation56_spill] sm:$0xff]  ;;  %v8378_v56 = vld [vmem:[#allocation3 + $0x44] sm:$0x3]  ;;  %v17669_v25 = vld [vmem:[#allocation62_spill] sm:$0xff] }
 0xa8a   :  { %8895 = vmatprep.mubr.bf16.mxu1 %v8569_v41  ;;  %v8573_v46 = vpack.c.bf16 %v8445_v23, %v8445_v23  ;;  %v12440_v41 = vpack.i.bf16 %v8401_v26, %v8403_v38  ;;  %v8376_v13 = vld [vmem:[#allocation3 + $0x40] sm:$0x3]  ;;  %v17670_v9 = vld [vmem:[#allocation182_spill] sm:$0xff]  ;;  %v17674_v26 = vld [vmem:[#allocation183_spill] sm:$0xff] }
 0xa8b   :  { %8896 = vmatmul.mubr.bf16.vlgmr.msra.gmra.mrb[140].mxu1 %v8568_v62  ;;  %v8443_v51 = vsel %vm5211_vm3, %v8350_v32, %v12378_v24  ;;  %v8442_v4 = vsel %vm5211_vm3, %v8348_v18, %v12379_v59  ;;  %v17640_v62 = vld [vmem:[#allocation142_spill] sm:$0xff]  ;;  %v17641_v32 = vld [vmem:[#allocation47_spill] sm:$0xff]  ;;  %v17659_v18 = vld [vmem:[#allocation60_spill] sm:$0xff] }
 0xa8c   :  { %10994 = vmatpush3.bf16.msra.mxu1 %v17618_v30  ;;  %v8571_v48 = vpack.c.bf16 %v8443_v51, %v8443_v51  ;;  %v16852_v12 = vpop.permute.xlu0 %12391  ;;  %v8570_v33 = vpack.c.bf16 %v8442_v4, %v8442_v4  ;;  %12441 = vrot.lane.b32.xlu0 %v12440_v41, %s12528_s19  ;;  %v17643_v24 = vld [vmem:[#allocation151_spill] sm:$0xff]  ;;  %v17645_v30 = vld [vmem:[#allocation48_spill] sm:$0xff]  ;;  %v17672_v54 = vld [vmem:[#allocation174_spill] sm:$0xff] }
 0xa8d   :  { %10995 = vmatprep.subr.bf16.mxu1 %v17619_v55  ;;  %v17644_v51 = vld [vmem:[#allocation143_spill] sm:$0xff]  ;;  %v17647_v55 = vld [vmem:[#allocation57_spill] sm:$0xff]  ;;  %v17675_v38 = vld [vmem:[#allocation72_spill] sm:$0xff] }
 0xa8e   :  { %8935 = vmatprep.mubr.bf16.mxu1 %v8571_v48  ;;  %v17646_v48 = vld [vmem:[#allocation152_spill] sm:$0xff]  ;;  %v17657_v59 = vld [vmem:[#allocation51_spill] sm:$0xff] }
 0xa8f   :  { %v17676_v41 = vld [vmem:[#allocation175_spill] sm:$0xff] }
 0xa90   :  { %10996 = vmatpush3.bf16.msra.mxu1 %v17620_v61  ;;  %v12402_v20 = vpop.permute.xlu0 %12401  ;;  %v17650_v61 = vld [vmem:[#allocation153_spill] sm:$0xff] }
 0xa91   :  { %10997 = vmatprep.subr.bf16.mxu1 %v17621_v1  ;;  %v12404_v15 = vunpack.i.h.bf16 %v12402_v20  ;;  %v12403_v27 = vunpack.i.l.bf16 %v12402_v20  ;;  %v16882_v1 = vpop.permute.xlu1 %12386  ;;  %v17661_v20 = vld [vmem:[#allocation52_spill] sm:$0xff] }
 0xa93   :  { %v8484_v0 = vsel %vm5211_vm3, %v8368_v34, %v12404_v15  ;;  %v8485_v2 = vsel %vm5211_vm3, %v8370_v43, %v12403_v27  ;;  %v17660_v34 = vld [vmem:[#allocation147_spill] sm:$0xff]  ;;  %v17662_v15 = vld [vmem:[#allocation156_spill] sm:$0xff]  ;;  %v17663_v27 = vld [vmem:[#allocation69_spill] sm:$0xff] }
 0xa94   :  { %10998 = vmatpush3.bf16.msra.mxu1 %v17622_v44  ;;  %v8581_v28 = vpack.c.bf16 %v8485_v2, %v8485_v2  ;;  %v8580_v29 = vpack.c.bf16 %v8484_v0, %v8484_v0  ;;  %v17654_v44 = vld [vmem:[#allocation154_spill] sm:$0xff]  ;;  %v12412_v4 = vpop.permute.xlu0 %12411  ;;  %v17664_v0 = vld [vmem:[#allocation148_spill] sm:$0xff]  ;;  %v17665_v2 = vld [vmem:[#allocation61_spill] sm:$0xff] }
 0xa95   :  { %10999 = vmatprep.subr.bf16.mxu1 %v17623_v11  ;;  %v17655_v11 = vld [vmem:[#allocation59_spill] sm:$0xff]  ;;  %v12413_v23 = vunpack.i.l.bf16 %v12412_v4 }
 0xa96   :  { %9135 = vmatprep.mubr.bf16.mxu0 %v8581_v28  ;;  %v17666_v28 = vld [vmem:[#allocation70_spill] sm:$0xff] }
 0xa97   :  { %9136 = vmatmul.mubr.bf16.vlgmr.msra.gmra.mrb[144].mxu0 %v8580_v29  ;;  %v17667_v29 = vld [vmem:[#allocation181_spill] sm:$0xff] }
 0xa98   :  { %11000 = vmatpush3.bf16.msra.mxu1 %v17624_v60  ;;  %11148 = vmatpush3.bf16.msra.mxu0 %v17636_v47  ;;  %v8352_v60 = vld [vmem:[#allocation3 + $0x10] sm:$0x3]  ;;  %v8407_v47 = vld [vmem:[#allocation3 + $0x7e] sm:$0x3] }
 0xa99   :  { %11001 = vmatprep.subr.bf16.mxu1 %v17625_v10  ;;  %11149 = vmatprep.subr.bf16.mxu0 %v17638_v7  ;;  %v12388_v10 = vunpack.i.l.bf16 %v16882_v1  ;;  %v17671_v7 = vld [vmem:[#allocation71_spill] sm:$0xff] }
 0xa9c   :  { %11002 = vmatpush3.bf16.msra.mxu1 %v17626_v14  ;;  %11150 = vmatpush3.bf16.msra.mxu0 %v17640_v62  ;;  %v8358_v14 = vld [vmem:[#allocation3 + $0x1c] sm:$0x3] }
 0xa9d   :  { %11003 = vmatprep.subr.bf16.mxu1 %v17627_v57  ;;  %11151 = vmatprep.subr.bf16.mxu0 %v17643_v24  ;;  %v17656_v57 = vld [vmem:[#allocation146_spill] sm:$0xff]  ;;  %v8447_v17 = vsel %vm5211_vm3, %v8358_v14, %v12388_v10  ;;  %v17677_v62 = vld [vmem:[#allocation64_spill] sm:$0xff]  ;;  %v17690_v10 = vld [vmem:[#allocation187_spill] sm:$0xff] }
 0xa9e   :  { %v17680_v24 = vld [vmem:[#allocation176_spill] sm:$0xff] }
 0xa9f   :  { %v17691_v14 = vld [vmem:[#allocation76_spill] sm:$0xff] }
 0xaa0   :  { %11004 = vmatpush3.bf16.msra.mxu1 %v17628_v40  ;;  %11152 = vmatpush3.bf16.msra.mxu0 %v17644_v51  ;;  %v8444_v40 = vsel %vm5211_vm3, %v8352_v60, %v12384_v58  ;;  %v17681_v51 = vld [vmem:[#allocation65_spill] sm:$0xff]  ;;  %v17689_v60 = vld [vmem:[#allocation67_spill] sm:$0xff] }
 0xaa1   :  { %11005 = vmatprep.subr.bf16.mxu1 %v17629_v5  ;;  %11153 = vmatprep.subr.bf16.mxu0 %v17646_v48  ;;  %v17658_v5 = vld [vmem:[#allocation155_spill] sm:$0xff]  ;;  %v17683_v48 = vld [vmem:[#allocation74_spill] sm:$0xff]  ;;  %v8362_v58 = vld [vmem:[#allocation3 + $0x24] sm:$0x3] }
 0xaa4   :  { %11006 = vmatpush3.bf16.msra.mxu1 %v17630_v42  ;;  %11154 = vmatpush3.bf16.msra.mxu0 %v17648_v63  ;;  %v8572_v42 = vpack.c.bf16 %v8444_v40, %v8444_v40  ;;  %v17685_v63 = vld [vmem:[#allocation66_spill] sm:$0xff]  ;;  %v8386_v40 = vld [vmem:[#allocation3 + $0x54] sm:$0x3] }
 0xaa5   :  { %11007 = vmatprep.subr.bf16.mxu1 %v17631_v39  ;;  %11155 = vmatprep.subr.bf16.mxu0 %v17650_v61  ;;  %v12414_v39 = vunpack.i.h.bf16 %v12412_v4  ;;  %v17686_v61 = vld [vmem:[#allocation186_spill] sm:$0xff] }
 0xaa8   :  { %11008 = vmatpush3.bf16.msra.mxu1 %v17632_v53  ;;  %11156 = vmatpush3.bf16.msra.mxu0 %v17652_v21  ;;  %v8520_v53 = vsel %vm5211_vm3, %v8376_v13, %v12414_v39  ;;  %v8356_v21 = vld [vmem:[#allocation3 + $0x18] sm:$0x3]  ;;  %v17695_v39 = vld [vmem:[#allocation85_spill] sm:$0xff] }
 0xaa9   :  { %11015 = vmatprep.subr.bf16.mxu1 %v17633_v3  ;;  %11157 = vmatprep.subr.bf16.mxu0 %v17654_v44  ;;  %v8584_v43 = vpack.c.bf16 %v8520_v53, %v8520_v53  ;;  %v17688_v44 = vld [vmem:[#allocation178_spill] sm:$0xff]  ;;  %v17692_v13 = vld [vmem:[#allocation179_spill] sm:$0xff] }
 0xaaa   :  { %v17698_v53 = vld [vmem:[#allocation86_spill] sm:$0xff] }
 0xaab   :  { %8936 = vmatmul.mubr.bf16.vlgmr.msra.gmra.mrb[144].mxu1 %v8570_v33  ;;  %v8575_v33 = vpack.c.bf16 %v8447_v17, %v8447_v17 }
 0xaac   :  { %11016 = vmatpush3.bf16.msra.mxu1 %v17634_v49  ;;  %8975 = vmatprep.mubr.bf16.mxu1 %v8573_v46  ;;  %v8521_v46 = vsel %vm5211_vm3, %v8378_v56, %v12413_v23  ;;  %v17668_v49 = vld [vmem:[#allocation173_spill] sm:$0xff]  ;;  %v17693_v56 = vld [vmem:[#allocation68_spill] sm:$0xff] }
 0xaad   :  { %11017 = vmatprep.subr.bf16.mxu1 %v17635_v16  ;;  %11158 = vmatpush3.bf16.msra.mxu0 %v17656_v57  ;;  %v8585_v3 = vpack.c.bf16 %v8521_v46, %v8521_v46  ;;  %v8405_v16 = vld [vmem:[#allocation3 + $0x7a] sm:$0x3]  ;;  %v8384_v57 = vld [vmem:[#allocation3 + $0x50] sm:$0x3]  ;;  %v17699_v46 = vld [vmem:[#allocation213_spill] sm:$0xff] }
 0xaae   :  { %11159 = vmatprep.subr.bf16.mxu0 %v17658_v5 }
 0xaaf   :  { %9215 = vmatprep.mubr.bf16.mxu0 %v8585_v3  ;;  %v17701_v3 = vld [vmem:[#allocation78_spill] sm:$0xff] }
 0xab0   :  { %11018 = vmatpush3.bf16.msra.mxu1 %v17637_v37  ;;  %v12445_v37 = vpack.i.bf16 %v8405_v16, %v8407_v47  ;;  %v17707_v16 = vld [vmem:[#allocation88_spill] sm:$0xff]  ;;  %v17708_v47 = vld [vmem:[#allocation207_spill] sm:$0xff] }
 0xab1   :  { %11019 = vmatprep.subr.bf16.mxu1 %v17639_v50  ;;  %11160 = vmatpush3.bf16.msra.mxu0 %v17660_v34  ;;  %v17673_v50 = vld [vmem:[#allocation63_spill] sm:$0xff] }
 0xab2   :  { %11161 = vmatprep.subr.bf16.mxu0 %v17662_v15  ;;  %12446 = vrot.lane.b32.xlu1 %v12445_v37, %s12528_s19  ;;  %v17696_v15 = vld [vmem:[#allocation180_spill] sm:$0xff]  ;;  %v17711_v37 = vld [vmem:[#allocation89_spill] sm:$0xff] }
 0xab4   :  { %11020 = vmatpush3.bf16.msra.mxu1 %v17641_v32  ;;  %v17678_v32 = vld [vmem:[#allocation184_spill] sm:$0xff] }
 0xab5   :  { %11021 = vmatprep.subr.bf16.mxu1 %v17642_v52  ;;  %11162 = vmatpush3.bf16.msra.mxu0 %v17664_v0  ;;  %v17679_v52 = vld [vmem:[#allocation73_spill] sm:$0xff]  ;;  %v17702_v0 = vld [vmem:[#allocation214_spill] sm:$0xff] }
 0xab6   :  { %11191 = vmatprep.subr.bf16.mxu0 %v17667_v29  ;;  %v17705_v29 = vld [vmem:[#allocation79_spill] sm:$0xff] }
 0xab8   :  { %11022 = vmatpush3.bf16.msra.mxu1 %v17645_v30  ;;  %9216 = vmatmul.mubr.bf16.vlgmr.msra.gmra.mrb[148].mxu0 %v8584_v43  ;;  %v17682_v30 = vld [vmem:[#allocation185_spill] sm:$0xff] }
 0xab9   :  { %11023 = vmatprep.subr.bf16.mxu1 %v17647_v55  ;;  %11192 = vmatpush3.bf16.msra.mxu0 %v17668_v49  ;;  %v17684_v55 = vld [vmem:[#allocation177_spill] sm:$0xff]  ;;  %v17706_v49 = vld [vmem:[#allocation215_spill] sm:$0xff] }
 0xaba   :  { %11193 = vmatprep.subr.bf16.mxu0 %v17670_v9  ;;  %v17700_v43 = vld [vmem:[#allocation205_spill] sm:$0xff]  ;;  %v17710_v9 = vld [vmem:[#allocation216_spill] sm:$0xff] }
 0xabc   :  { %11024 = vmatpush3.bf16.msra.mxu1 %v17649_v31  ;;  %v12389_v31 = vunpack.i.h.bf16 %v16882_v1 }
 0xabd   :  { %11025 = vmatprep.subr.bf16.mxu1 %v17651_v22  ;;  %11194 = vmatpush3.bf16.msra.mxu0 %v17672_v54  ;;  %v17687_v22 = vld [vmem:[#allocation75_spill] sm:$0xff]  ;;  %v17713_v54 = vld [vmem:[#allocation81_spill] sm:$0xff] }
 0xabe   :  { %11195 = vmatprep.subr.bf16.mxu0 %v17674_v26  ;;  %v17715_v26 = vld [vmem:[#allocation90_spill] sm:$0xff] }
 0xac0   :  { %11026 = vmatpush3.bf16.msra.mxu1 %v17653_v19  ;;  %v12393_v19 = vunpack.i.l.bf16 %v16852_v12 }
 0xac1   :  { %11027 = vmatprep.subr.bf16.mxu1 %v17655_v11  ;;  %11196 = vmatpush3.bf16.msra.mxu0 %v17676_v41  ;;  %v8446_v11 = vsel %vm5211_vm3, %v8356_v21, %v12389_v31  ;;  %v17716_v41 = vld [vmem:[#allocation209_spill] sm:$0xff]  ;;  %v17721_v31 = vld [vmem:[#allocation83_spill] sm:$0xff]  ;;  %v8392_v21 = vld [vmem:[#allocation3 + $0x60] sm:$0x3] }
 0xac2   :  { %11197 = vmatprep.subr.bf16.mxu0 %v17678_v32  ;;  %v8481_v1 = vsel %vm5211_vm3, %v8362_v58, %v12393_v19  ;;  %v8574_v5 = vpack.c.bf16 %v8446_v11, %v8446_v11  ;;  %v12394_v32 = vunpack.i.h.bf16 %v16852_v12  ;;  %v8394_v19 = vld [vmem:[#allocation3 + $0x64] sm:$0x3] }
 0xac3   :  { %v8577_v4 = vpack.c.bf16 %v8481_v1, %v8481_v1 }
 0xac4   :  { %11028 = vmatpush3.bf16.msra.mxu1 %v17657_v59  ;;  %v12422_v59 = vpop.permute.xlu0 %12421 }
 0xac5   :  { %11029 = vmatprep.subr.bf16.mxu1 %v17659_v18  ;;  %11198 = vmatpush3.bf16.msra.mxu0 %v17680_v24  ;;  %v12424_v18 = vunpack.i.h.bf16 %v12422_v59  ;;  %v12423_v17 = vunpack.i.l.bf16 %v12422_v59  ;;  %v17719_v24 = vld [vmem:[#allocation91_spill] sm:$0xff] }
 0xac6   :  { %11199 = vmatprep.subr.bf16.mxu0 %v17682_v30 }
 0xac7   :  { %v8524_v23 = vsel %vm5211_vm3, %v8384_v57, %v12424_v18  ;;  %v8525_v34 = vsel %vm5211_vm3, %v8386_v40, %v12423_v17  ;;  %v17726_v57 = vld [vmem:[#allocation220_spill] sm:$0xff]  ;;  %v17727_v40 = vld [vmem:[#allocation101_spill] sm:$0xff] }
 0xac8   :  { %11030 = vmatpush3.bf16.msra.mxu1 %v17661_v20  ;;  %v8588_v20 = vpack.c.bf16 %v8524_v23, %v8524_v23  ;;  %v12432_v58 = vpop.permute.xlu0 %12431  ;;  %v17733_v23 = vld [vmem:[#allocation94_spill] sm:$0xff] }
 0xac9   :  { %11037 = vmatprep.subr.bf16.mxu1 %v17663_v27  ;;  %11200 = vmatpush3.bf16.msra.mxu0 %v17684_v55  ;;  %v17697_v27 = vld [vmem:[#allocation77_spill] sm:$0xff]  ;;  %v17720_v55 = vld [vmem:[#allocation210_spill] sm:$0xff]  ;;  %v12434_v11 = vunpack.i.h.bf16 %v12432_v58 }
 0xaca   :  { %11201 = vmatprep.subr.bf16.mxu0 %v17686_v61  ;;  %v17722_v61 = vld [vmem:[#allocation219_spill] sm:$0xff] }
 0xacb   :  { %8976 = vmatmul.mubr.bf16.vlgmr.msra.gmra.mrb[148].mxu1 %v8572_v42  ;;  %v17694_v42 = vld [vmem:[#allocation188_spill] sm:$0xff]  ;;  %v8560_v59 = vsel %vm5211_vm3, %v8392_v21, %v12434_v11 }
 0xacc   :  { %11038 = vmatpush3.bf16.msra.mxu1 %v17665_v2  ;;  %9015 = vmatprep.mubr.bf16.mxu1 %v8575_v33  ;;  %v8589_v33 = vpack.c.bf16 %v8525_v34, %v8525_v34  ;;  %v17703_v2 = vld [vmem:[#allocation87_spill] sm:$0xff]  ;;  %v8592_v18 = vpack.c.bf16 %v8560_v59, %v8560_v59  ;;  %v17734_v34 = vld [vmem:[#allocation246_spill] sm:$0xff]  ;;  %v17758_v21 = vld [vmem:[#allocation252_spill] sm:$0xff] }
 0xacd   :  { %11039 = vmatprep.subr.bf16.mxu1 %v17666_v28  ;;  %11202 = vmatpush3.bf16.msra.mxu0 %v17688_v44  ;;  %v17704_v28 = vld [vmem:[#allocation206_spill] sm:$0xff]  ;;  %v17765_v59 = vld [vmem:[#allocation127_spill] sm:$0xff] }
 0xace   :  { %11203 = vmatprep.subr.bf16.mxu0 %v17690_v10  ;;  %9295 = vmatprep.mubr.bf16.mxu0 %v8589_v33  ;;  %v17724_v10 = vld [vmem:[#allocation211_spill] sm:$0xff]  ;;  %v17736_v33 = vld [vmem:[#allocation238_spill] sm:$0xff] }
 0xad0   :  { %11040 = vmatpush3.bf16.msra.mxu1 %v17669_v25  ;;  %v17709_v25 = vld [vmem:[#allocation80_spill] sm:$0xff] }
 0xad1   :  { %11041 = vmatprep.subr.bf16.mxu1 %v17671_v7  ;;  %11204 = vmatpush3.bf16.msra.mxu0 %v17692_v13  ;;  %v17712_v7 = vld [vmem:[#allocation208_spill] sm:$0xff] }
 0xad2   :  { %11205 = vmatprep.subr.bf16.mxu0 %v17694_v42  ;;  %v17728_v13 = vld [vmem:[#allocation212_spill] sm:$0xff]  ;;  %v17731_v42 = vld [vmem:[#allocation245_spill] sm:$0xff] }
 0xad4   :  { %11042 = vmatpush3.bf16.msra.mxu1 %v17673_v50  ;;  %v17714_v50 = vld [vmem:[#allocation217_spill] sm:$0xff] }
 0xad5   :  { %11043 = vmatprep.subr.bf16.mxu1 %v17675_v38  ;;  %11206 = vmatpush3.bf16.msra.mxu0 %v17696_v15  ;;  %v16961_v38 = vpop.permute.xlu1 %12396  ;;  %v17737_v15 = vld [vmem:[#allocation95_spill] sm:$0xff] }
 0xad6   :  { %11235 = vmatprep.subr.bf16.mxu0 %v17699_v46  ;;  %v12398_v30 = vunpack.i.l.bf16 %v16961_v38  ;;  %v17740_v46 = vld [vmem:[#allocation239_spill] sm:$0xff] }
 0xad8   :  { %11044 = vmatpush3.bf16.msra.mxu1 %v17677_v62  ;;  %9296 = vmatmul.mubr.bf16.vlgmr.msra.gmra.mrb[152].mxu0 %v8588_v20  ;;  %v17717_v62 = vld [vmem:[#allocation82_spill] sm:$0xff]  ;;  %v17735_v20 = vld [vmem:[#allocation103_spill] sm:$0xff] }
 0xad9   :  { %11045 = vmatprep.subr.bf16.mxu1 %v17679_v52  ;;  %11236 = vmatpush3.bf16.msra.mxu0 %v17700_v43  ;;  %v17718_v52 = vld [vmem:[#allocation218_spill] sm:$0xff]  ;;  %v17741_v43 = vld [vmem:[#allocation96_spill] sm:$0xff] }
 0xada   :  { %11237 = vmatprep.subr.bf16.mxu0 %v17702_v0  ;;  %v17743_v0 = vld [vmem:[#allocation105_spill] sm:$0xff] }
 0xadc   :  { %11046 = vmatpush3.bf16.msra.mxu1 %v17681_v51  ;;  %v8360_v51 = vld [vmem:[#allocation3 + $0x20] sm:$0x3] }
 0xadd   :  { %11047 = vmatprep.subr.bf16.mxu1 %v17683_v48  ;;  %11238 = vmatpush3.bf16.msra.mxu0 %v17704_v28  ;;  %v8366_v48 = vld [vmem:[#allocation3 + $0x2c] sm:$0x3]  ;;  %v17745_v28 = vld [vmem:[#allocation97_spill] sm:$0xff] }
 0xade   :  { %11239 = vmatprep.subr.bf16.mxu0 %v17706_v49  ;;  %v8483_v12 = vsel %vm5211_vm3, %v8366_v48, %v12398_v30  ;;  %v17747_v49 = vld [vmem:[#allocation106_spill] sm:$0xff]  ;;  %v8402_v30 = vld [vmem:[#allocation3 + $0x74] sm:$0x3] }
 0xadf   :  { %v8579_v1 = vpack.c.bf16 %v8483_v12, %v8483_v12 }
 0xae0   :  { %11048 = vmatpush3.bf16.msra.mxu1 %v17685_v63  ;;  %v8480_v63 = vsel %vm5211_vm3, %v8360_v51, %v12394_v32  ;;  %v17753_v32 = vld [vmem:[#allocation99_spill] sm:$0xff] }
 0xae1   :  { %11049 = vmatprep.subr.bf16.mxu1 %v17687_v22  ;;  %11240 = vmatpush3.bf16.msra.mxu0 %v17708_v47  ;;  %v17723_v22 = vld [vmem:[#allocation92_spill] sm:$0xff]  ;;  %v8576_v44 = vpack.c.bf16 %v8480_v63, %v8480_v63  ;;  %v17748_v47 = vld [vmem:[#allocation241_spill] sm:$0xff] }
 0xae2   :  { %11241 = vmatprep.subr.bf16.mxu0 %v17710_v9  ;;  %v12399_v9 = vunpack.i.h.bf16 %v16961_v38  ;;  %v8400_v38 = vld [vmem:[#allocation3 + $0x70] sm:$0x3] }
 0xae4   :  { %11050 = vmatpush3.bf16.msra.mxu1 %v17689_v60  ;;  %v12433_v60 = vunpack.i.l.bf16 %v12432_v58 }
 0xae5   :  { %11051 = vmatprep.subr.bf16.mxu1 %v17691_v14  ;;  %11242 = vmatpush3.bf16.msra.mxu0 %v17712_v7  ;;  %v17725_v14 = vld [vmem:[#allocation84_spill] sm:$0xff]  ;;  %v17751_v7 = vld [vmem:[#allocation107_spill] sm:$0xff] }
 0xae6   :  { %11243 = vmatprep.subr.bf16.mxu0 %v17714_v50 }
 0xae8   :  { %11052 = vmatpush3.bf16.msra.mxu1 %v17693_v56  ;;  %v17729_v56 = vld [vmem:[#allocation93_spill] sm:$0xff] }
 0xae9   :  { %11059 = vmatprep.subr.bf16.mxu1 %v17695_v39  ;;  %11244 = vmatpush3.bf16.msra.mxu0 %v17716_v41  ;;  %v17732_v39 = vld [vmem:[#allocation237_spill] sm:$0xff]  ;;  %v17752_v41 = vld [vmem:[#allocation242_spill] sm:$0xff] }
 0xaea   :  { %11245 = vmatprep.subr.bf16.mxu0 %v17718_v52  ;;  %v17754_v52 = vld [vmem:[#allocation251_spill] sm:$0xff] }
 0xaeb   :  { %9016 = vmatmul.mubr.bf16.vlgmr.msra.gmra.mrb[152].mxu1 %v8574_v5  ;;  %v8561_v5 = vsel %vm5211_vm3, %v8394_v19, %v12433_v60  ;;  %v17759_v19 = vld [vmem:[#allocation133_spill] sm:$0xff] }
 0xaec   :  { %11060 = vmatpush3.bf16.msra.mxu1 %v17697_v27  ;;  %9055 = vmatprep.mubr.bf16.mxu1 %v8577_v4  ;;  %v8593_v17 = vpack.c.bf16 %v8561_v5, %v8561_v5  ;;  %v17730_v4 = vld [vmem:[#allocation102_spill] sm:$0xff]  ;;  %v17738_v27 = vld [vmem:[#allocation247_spill] sm:$0xff]  ;;  %v17766_v5 = vld [vmem:[#allocation136_spill] sm:$0xff] }
 0xaed   :  { %11061 = vmatprep.subr.bf16.mxu1 %v17698_v53  ;;  %11246 = vmatpush3.bf16.msra.mxu0 %v17720_v55  ;;  %v17739_v53 = vld [vmem:[#allocation104_spill] sm:$0xff] }
 0xaee   :  { %11247 = vmatprep.subr.bf16.mxu0 %v17722_v61  ;;  %9375 = vmatprep.mubr.bf16.mxu0 %v8593_v17  ;;  %v17756_v61 = vld [vmem:[#allocation243_spill] sm:$0xff]  ;;  %v17768_v17 = vld [vmem:[#allocation137_spill] sm:$0xff] }
 0xaf0   :  { %11062 = vmatpush3.bf16.msra.mxu1 %v17701_v3  ;;  %v17742_v3 = vld [vmem:[#allocation248_spill] sm:$0xff] }
 0xaf1   :  { %11063 = vmatprep.subr.bf16.mxu1 %v17703_v2  ;;  %11248 = vmatpush3.bf16.msra.mxu0 %v17724_v10  ;;  %v17744_v2 = vld [vmem:[#allocation240_spill] sm:$0xff] }
 0xaf2   :  { %11249 = vmatprep.subr.bf16.mxu0 %v17726_v57  ;;  %v17760_v10 = vld [vmem:[#allocation244_spill] sm:$0xff]  ;;  %v17763_v57 = vld [vmem:[#allocation126_spill] sm:$0xff] }
 0xaf4   :  { %11064 = vmatpush3.bf16.msra.mxu1 %v17705_v29  ;;  %v17746_v29 = vld [vmem:[#allocation249_spill] sm:$0xff] }
 0xaf5   :  { %11065 = vmatprep.subr.bf16.mxu1 %v17707_v16  ;;  %11250 = vmatpush3.bf16.msra.mxu0 %v17728_v13  ;;  %v12407_v16 = vpop.permute.xlu1 %12406  ;;  %v17769_v13 = vld [vmem:[#allocation129_spill] sm:$0xff] }
 0xaf6   :  { %11279 = vmatprep.subr.bf16.mxu0 %v17731_v42  ;;  %v12408_v50 = vunpack.i.l.bf16 %v12407_v16  ;;  %v17771_v42 = vld [vmem:[#allocation130_spill] sm:$0xff] }
 0xaf8   :  { %11066 = vmatpush3.bf16.msra.mxu1 %v17709_v25  ;;  %9376 = vmatmul.mubr.bf16.vlgmr.msra.gmra.mrb[156].mxu0 %v8592_v18  ;;  %v17749_v25 = vld [vmem:[#allocation98_spill] sm:$0xff]  ;;  %v17767_v18 = vld [vmem:[#allocation128_spill] sm:$0xff] }
 0xaf9   :  { %11067 = vmatprep.subr.bf16.mxu1 %v17711_v37  ;;  %11280 = vmatpush3.bf16.msra.mxu0 %v17732_v39  ;;  %v17750_v37 = vld [vmem:[#allocation250_spill] sm:$0xff]  ;;  %v12409_v39 = vunpack.i.h.bf16 %v12407_v16  ;;  %v17780_v16 = vld [vmem:[#allocation167_spill] sm:$0xff] }
 0xafa   :  { %11281 = vmatprep.subr.bf16.mxu0 %v17734_v34  ;;  %v8372_v34 = vld [vmem:[#allocation3 + $0x38] sm:$0x3] }
 0xafc   :  { %11068 = vmatpush3.bf16.msra.mxu1 %v17713_v54  ;;  %v8364_v54 = vld [vmem:[#allocation3 + $0x28] sm:$0x3] }
 0xafd   :  { %11069 = vmatprep.subr.bf16.mxu1 %v17715_v26  ;;  %11282 = vmatpush3.bf16.msra.mxu0 %v17736_v33  ;;  %v8374_v26 = vld [vmem:[#allocation3 + $0x3c] sm:$0x3]  ;;  %v8382_v33 = vld [vmem:[#allocation3 + $0x4c] sm:$0x3] }
 0xafe   :  { %11283 = vmatprep.subr.bf16.mxu0 %v17738_v27  ;;  %v8487_v51 = vsel %vm5211_vm3, %v8374_v26, %v12408_v50  ;;  %v12442_v48 = vpop.permute.xlu0 %12441  ;;  %v17773_v27 = vld [vmem:[#allocation131_spill] sm:$0xff] }
 0xaff   :  { %v12444_v63 = vunpack.i.h.bf16 %v12442_v48  ;;  %v8583_v12 = vpack.c.bf16 %v8487_v51, %v8487_v51 }
 0xb00   :  { %11070 = vmatpush3.bf16.msra.mxu1 %v17717_v62  ;;  %v8482_v62 = vsel %vm5211_vm3, %v8364_v54, %v12399_v9  ;;  %v17783_v9 = vld [vmem:[#allocation160_spill] sm:$0xff]  ;;  %v17786_v54 = vld [vmem:[#allocation170_spill] sm:$0xff] }
 0xb01   :  { %11071 = vmatprep.subr.bf16.mxu1 %v17719_v24  ;;  %11284 = vmatpush3.bf16.msra.mxu0 %v17740_v46  ;;  %v17755_v24 = vld [vmem:[#allocation108_spill] sm:$0xff]  ;;  %v8578_v55 = vpack.c.bf16 %v8482_v62, %v8482_v62  ;;  %v8564_v58 = vsel %vm5211_vm3, %v8400_v38, %v12444_v63  ;;  %v17788_v38 = vld [vmem:[#allocation171_spill] sm:$0xff] }
 0xb02   :  { %11285 = vmatprep.subr.bf16.mxu0 %v17742_v3  ;;  %v8596_v11 = vpack.c.bf16 %v8564_v58, %v8564_v58  ;;  %v17775_v3 = vld [vmem:[#allocation132_spill] sm:$0xff]  ;;  %v17792_v58 = vld [vmem:[#allocation197_spill] sm:$0xff] }
 0xb04   :  { %11072 = vmatpush3.bf16.msra.mxu1 %v17721_v31  ;;  %v12443_v31 = vunpack.i.l.bf16 %v12442_v48 }
 0xb05   :  { %11073 = vmatprep.subr.bf16.mxu1 %v17723_v22  ;;  %11286 = vmatpush3.bf16.msra.mxu0 %v17744_v2  ;;  %v17757_v22 = vld [vmem:[#allocation100_spill] sm:$0xff]  ;;  %v17776_v2 = vld [vmem:[#allocation165_spill] sm:$0xff] }
 0xb06   :  { %11287 = vmatprep.subr.bf16.mxu0 %v17746_v29  ;;  %v17778_v29 = vld [vmem:[#allocation166_spill] sm:$0xff] }
 0xb08   :  { %11074 = vmatpush3.bf16.msra.mxu1 %v17725_v14  ;;  %v17761_v14 = vld [vmem:[#allocation125_spill] sm:$0xff] }
 0xb09   :  { %11081 = vmatprep.subr.bf16.mxu1 %v17727_v40  ;;  %11288 = vmatpush3.bf16.msra.mxu0 %v17748_v47  ;;  %v17764_v40 = vld [vmem:[#allocation135_spill] sm:$0xff] }
 0xb0a   :  { %11289 = vmatprep.subr.bf16.mxu0 %v17750_v37  ;;  %v17781_v47 = vld [vmem:[#allocation159_spill] sm:$0xff]  ;;  %v17784_v37 = vld [vmem:[#allocation169_spill] sm:$0xff] }
 0xb0b   :  { %9056 = vmatmul.mubr.bf16.vlgmr.msra.gmra.mrb[156].mxu1 %v8576_v44  ;;  %v8565_v44 = vsel %vm5211_vm3, %v8402_v30, %v12443_v31  ;;  %v8380_v30 = vld [vmem:[#allocation3 + $0x48] sm:$0x3]  ;;  %v17789_v31 = vld [vmem:[#allocation163_spill] sm:$0xff] }
 0xb0c   :  { %11082 = vmatpush3.bf16.msra.mxu1 %v17729_v56  ;;  %9095 = vmatprep.mubr.bf16.mxu1 %v8579_v1  ;;  %v8597_v60 = vpack.c.bf16 %v8565_v44, %v8565_v44  ;;  %v17762_v1 = vld [vmem:[#allocation134_spill] sm:$0xff]  ;;  %v17793_v44 = vld [vmem:[#allocation189_spill] sm:$0xff] }
 0xb0d   :  { %11083 = vmatprep.subr.bf16.mxu1 %v17730_v4  ;;  %11290 = vmatpush3.bf16.msra.mxu0 %v17752_v41  ;;  %v17770_v56 = vld [vmem:[#allocation138_spill] sm:$0xff]  ;;  %v12417_v4 = vpop.permute.xlu1 %12416 }
 0xb0e   :  { %11291 = vmatprep.subr.bf16.mxu0 %v17754_v52  ;;  %9455 = vmatprep.mubr.bf16.mxu0 %v8597_v60  ;;  %v17795_v60 = vld [vmem:[#allocation190_spill] sm:$0xff] }
 0xb10   :  { %11084 = vmatpush3.bf16.msra.mxu1 %v17733_v23  ;;  %v17772_v23 = vld [vmem:[#allocation139_spill] sm:$0xff] }
 0xb11   :  { %11085 = vmatprep.subr.bf16.mxu1 %v17735_v20  ;;  %11292 = vmatpush3.bf16.msra.mxu0 %v17756_v61  ;;  %v12418_v20 = vunpack.i.l.bf16 %v12417_v4  ;;  %v12427_v26 = vpop.permute.xlu1 %12426  ;;  %v17790_v61 = vld [vmem:[#allocation172_spill] sm:$0xff] }
 0xb12   :  { %11293 = vmatprep.subr.bf16.mxu0 %v17758_v21  ;;  %v12428_v48 = vunpack.i.l.bf16 %v12427_v26  ;;  %v17791_v21 = vld [vmem:[#allocation164_spill] sm:$0xff] }
 0xb13   :  { %v8523_v46 = vsel %vm5211_vm3, %v8382_v33, %v12418_v20  ;;  %v17804_v33 = vld [vmem:[#allocation203_spill] sm:$0xff] }
 0xb14   :  { %11086 = vmatpush3.bf16.msra.mxu1 %v17737_v15  ;;  %v8486_v15 = vsel %vm5211_vm3, %v8372_v34, %v12409_v39  ;;  %v12429_v34 = vunpack.i.h.bf16 %v12427_v26  ;;  %v17811_v26 = vld [vmem:[#allocation222_spill] sm:$0xff] }
 0xb15   :  { %11087 = vmatprep.subr.bf16.mxu1 %v17739_v53  ;;  %11294 = vmatpush3.bf16.msra.mxu0 %v17760_v10  ;;  %v17774_v53 = vld [vmem:[#allocation140_spill] sm:$0xff]  ;;  %v17796_v10 = vld [vmem:[#allocation199_spill] sm:$0xff] }
 0xb18   :  { %11088 = vmatpush3.bf16.msra.mxu1 %v17741_v43  ;;  %9456 = vmatmul.mubr.bf16.vlgmr.msra.gmra.mrb[160].mxu0 %v8596_v11  ;;  %v8582_v43 = vpack.c.bf16 %v8486_v15, %v8486_v15  ;;  %v17794_v11 = vld [vmem:[#allocation198_spill] sm:$0xff]  ;;  %v8388_v15 = vld [vmem:[#allocation3 + $0x58] sm:$0x3] }
 0xb19   :  { %11089 = vmatprep.subr.bf16.mxu1 %v17743_v0  ;;  %v8587_v0 = vpack.c.bf16 %v8523_v46, %v8523_v46 }
 0xb1c   :  { %11090 = vmatpush3.bf16.msra.mxu1 %v17745_v28  ;;  %v17777_v28 = vld [vmem:[#allocation157_spill] sm:$0xff] }
 0xb1d   :  { %11091 = vmatprep.subr.bf16.mxu1 %v17747_v49  ;;  %v17779_v49 = vld [vmem:[#allocation158_spill] sm:$0xff] }
 0xb20   :  { %11092 = vmatpush3.bf16.msra.mxu1 %v17749_v25  ;;  %v17782_v25 = vld [vmem:[#allocation168_spill] sm:$0xff] }
 0xb21   :  { %11093 = vmatprep.subr.bf16.mxu1 %v17751_v7  ;;  %v17785_v7 = vld [vmem:[#allocation161_spill] sm:$0xff] }
 0xb24   :  { %11094 = vmatpush3.bf16.msra.mxu1 %v17753_v32  ;;  %v17787_v32 = vld [vmem:[#allocation162_spill] sm:$0xff] }
 0xb25   :  { %11095 = vmatprep.subr.bf16.mxu1 %v17755_v24  ;;  %v12419_v24 = vunpack.i.h.bf16 %v12417_v4 }
 0xb27   :  { %v8522_v63 = vsel %vm5211_vm3, %v8380_v30, %v12419_v24  ;;  %v17816_v24 = vld [vmem:[#allocation233_spill] sm:$0xff] }
 0xb28   :  { %11096 = vmatpush3.bf16.msra.mxu1 %v17757_v22 }
 0xb29   :  { %11125 = vmatprep.subr.bf16.mxu1 %v17759_v19 }
 0xb2b   :  { %9096 = vmatmul.mubr.bf16.vlgmr.msra.gmra.mrb[160].mxu1 %v8578_v55  ;;  %v8390_v55 = vld [vmem:[#allocation3 + $0x5c] sm:$0x3] }
 0xb2c   :  { %11126 = vmatpush3.bf16.msra.mxu1 %v17761_v14  ;;  %9175 = vmatprep.mubr.bf16.mxu1 %v8583_v12  ;;  %v8527_v22 = vsel %vm5211_vm3, %v8390_v55, %v12428_v48  ;;  %v8586_v12 = vpack.c.bf16 %v8522_v63, %v8522_v63  ;;  %v17797_v14 = vld [vmem:[#allocation191_spill] sm:$0xff] }
 0xb2d   :  { %11127 = vmatprep.subr.bf16.mxu1 %v17762_v1  ;;  %v8591_v19 = vpack.c.bf16 %v8527_v22, %v8527_v22  ;;  %v17798_v1 = vld [vmem:[#allocation200_spill] sm:$0xff] }
 0xb30   :  { %11128 = vmatpush3.bf16.msra.mxu1 %v17763_v57  ;;  %v17799_v57 = vld [vmem:[#allocation192_spill] sm:$0xff] }
 0xb31   :  { %11129 = vmatprep.subr.bf16.mxu1 %v17764_v40  ;;  %v17800_v40 = vld [vmem:[#allocation201_spill] sm:$0xff] }
 0xb34   :  { %11130 = vmatpush3.bf16.msra.mxu1 %v17765_v59  ;;  %v17801_v59 = vld [vmem:[#allocation193_spill] sm:$0xff] }
 0xb35   :  { %11131 = vmatprep.subr.bf16.mxu1 %v17766_v5  ;;  %v10484_v5 = vld [vmem:[%s17247_s17 + $0x7] ss:$0 sm:$0xff] }
 0xb38   :  { %11132 = vmatpush3.bf16.msra.mxu1 %v17767_v18  ;;  %v17802_v18 = vld [vmem:[#allocation202_spill] sm:$0xff] }
 0xb39   :  { %11133 = vmatprep.subr.bf16.mxu1 %v17768_v17 }
 0xb3c   :  { %11134 = vmatpush3.bf16.msra.mxu1 %v17769_v13  ;;  %v12437_v13 = vpop.permute.xlu1 %12436 }
 0xb3d   :  { %11135 = vmatprep.subr.bf16.mxu1 %v17770_v56  ;;  %v12439_v22 = vunpack.i.h.bf16 %v12437_v13 }
 0xb40   :  { %11136 = vmatpush3.bf16.msra.mxu1 %v17771_v42  ;;  %v12447_v48 = vpop.permute.xlu1 %12446 }
 0xb41   :  { %11137 = vmatprep.subr.bf16.mxu1 %v17772_v23  ;;  %v17803_v23 = vld [vmem:[#allocation194_spill] sm:$0xff] }
 0xb44   :  { %11138 = vmatpush3.bf16.msra.mxu1 %v17773_v27  ;;  %v12438_v27 = vunpack.i.l.bf16 %v12437_v13  ;;  %v17823_v13 = vld [vmem:[#allocation228_spill] sm:$0xff] }
 0xb45   :  { %11139 = vmatprep.subr.bf16.mxu1 %v17774_v53 }
 0xb48   :  { %11140 = vmatpush3.bf16.msra.mxu1 %v17775_v3 }
 0xb49   :  { %11169 = vmatprep.subr.bf16.mxu1 %v17776_v2 }
 0xb4b   :  { %9176 = vmatmul.mubr.bf16.vlgmr.msra.gmra.mrb[164].mxu1 %v8582_v43  ;;  %v8398_v43 = vld [vmem:[#allocation3 + $0x6c] sm:$0x3] }
 0xb4c   :  { %11170 = vmatpush3.bf16.msra.mxu1 %v17777_v28  ;;  %9255 = vmatprep.mubr.bf16.mxu1 %v8587_v0  ;;  %v8526_v28 = vsel %vm5211_vm3, %v8388_v15, %v12429_v34  ;;  %v17828_v34 = vld [vmem:[#allocation263_spill] sm:$0xff]  ;;  %v17831_v15 = vld [vmem:[#allocation256_spill] sm:$0xff] }
 0xb4d   :  { %11171 = vmatprep.subr.bf16.mxu1 %v17778_v29  ;;  %v17805_v29 = vld [vmem:[#allocation195_spill] sm:$0xff] }
 0xb50   :  { %11172 = vmatpush3.bf16.msra.mxu1 %v17779_v49 }
 0xb51   :  { %11173 = vmatprep.subr.bf16.mxu1 %v17780_v16  ;;  %v17806_v16 = vld [vmem:[#allocation204_spill] sm:$0xff] }
 0xb54   :  { %11174 = vmatpush3.bf16.msra.mxu1 %v17781_v47  ;;  %v8563_v47 = vsel %vm5211_vm3, %v8398_v43, %v12438_v27  ;;  %v17832_v27 = vld [vmem:[#allocation265_spill] sm:$0xff] }
 0xb55   :  { %11175 = vmatprep.subr.bf16.mxu1 %v17782_v25  ;;  %v8590_v25 = vpack.c.bf16 %v8526_v28, %v8526_v28 }
 0xb58   :  { %11176 = vmatpush3.bf16.msra.mxu1 %v17783_v9  ;;  %v17807_v9 = vld [vmem:[#allocation196_spill] sm:$0xff] }
 0xb59   :  { %11177 = vmatprep.subr.bf16.mxu1 %v17784_v37  ;;  %v8595_v37 = vpack.c.bf16 %v8563_v47, %v8563_v47  ;;  %v17836_v47 = vld [vmem:[#allocation267_spill] sm:$0xff] }
 0xb5c   :  { %11178 = vmatpush3.bf16.msra.mxu1 %v17785_v7  ;;  %v17808_v7 = vld [vmem:[#allocation229_spill] sm:$0xff] }
 0xb5d   :  { %11179 = vmatprep.subr.bf16.mxu1 %v17786_v54  ;;  %v17809_v54 = vld [vmem:[#allocation221_spill] sm:$0xff] }
 0xb5e   :  { %v10987_v50 = vpop.f32.mrb[140].mxu1 }
 0xb5f   :  { %v10988_v41 = vpop.f32.mrb[141].mxu1 }
 0xb60   :  { %v10989_v62 = vadd.f32 %v10988_v41, %v10987_v50  ;;  %11180 = vmatpush3.bf16.msra.mxu1 %v17787_v32  ;;  %v10990_v52 = vpop.f32.mrb[142].mxu1  ;;  %v17810_v50 = vld [vmem:[#allocation230_spill] sm:$0xff]  ;;  %v17812_v41 = vld [vmem:[#allocation231_spill] sm:$0xff]  ;;  %v17814_v32 = vld [vmem:[#allocation232_spill] sm:$0xff] }
 0xb61   :  { %v10991_v51 = vpop.f32.mrb[143].mxu1  ;;  %11181 = vmatprep.subr.bf16.mxu1 %v17788_v38  ;;  %v17815_v52 = vld [vmem:[#allocation224_spill] sm:$0xff]  ;;  %v17818_v38 = vld [vmem:[#allocation234_spill] sm:$0xff] }
 0xb62   :  { %v8898_v4 = vadd.f32 %v10989_v62, %v10484_v5  ;;  %v17813_v62 = vld [vmem:[#allocation223_spill] sm:$0xff]  ;;  %v17817_v51 = vld [vmem:[#allocation225_spill] sm:$0xff]  ;;  %v17822_v5 = vld [vmem:[#allocation236_spill] sm:$0xff] }
 0xb64   :  { %11182 = vmatpush3.bf16.msra.mxu1 %v17789_v31 }
 0xb65   :  { %11183 = vmatprep.subr.bf16.mxu1 %v17790_v61  ;;  %v17819_v61 = vld [vmem:[#allocation226_spill] sm:$0xff] }
 0xb68   :  { %11184 = vmatpush3.bf16.msra.mxu1 %v17791_v21  ;;  %v17820_v21 = vld [vmem:[#allocation235_spill] sm:$0xff] }
 0xb69   :  { %11213 = vmatprep.subr.bf16.mxu1 %v17792_v58  ;;  %v12448_v58 = vunpack.i.l.bf16 %v12447_v48 }
 0xb6a   :  { %v11119_v53 = vpop.f32.mrb[144].mxu0 }
 0xb6b   :  { %9256 = vmatmul.mubr.bf16.vlgmr.msra.gmra.mrb[168].mxu1 %v8586_v12  ;;  %v11120_v3 = vpop.f32.mrb[145].mxu0 }
 0xb6c   :  { %11214 = vmatpush3.bf16.msra.mxu1 %v17793_v44  ;;  %9335 = vmatprep.mubr.bf16.mxu1 %v8591_v19  ;;  %v17070_v0 = vadd.f32 %v11120_v3, %v11119_v53  ;;  %v11122_v2 = vpop.f32.mrb[146].mxu0  ;;  %v8396_v19 = vld [vmem:[#allocation3 + $0x68] sm:$0x3] }
 0xb6d   :  { %11215 = vmatprep.subr.bf16.mxu1 %v17794_v11  ;;  %v11123_v49 = vpop.f32.mrb[147].mxu0  ;;  %v17833_v53 = vld [vmem:[#allocation257_spill] sm:$0xff] }
 0xb6e   :  { %v12449_v49 = vunpack.i.h.bf16 %v12447_v48 }
 0xb70   :  { %11216 = vmatpush3.bf16.msra.mxu1 %v17795_v60  ;;  %v8406_v60 = vld [vmem:[#allocation3 + $0x7c] sm:$0x3] }
 0xb71   :  { %11217 = vmatprep.subr.bf16.mxu1 %v17796_v10 }
 0xb74   :  { %11218 = vmatpush3.bf16.msra.mxu1 %v17797_v14 }
 0xb75   :  { %11219 = vmatprep.subr.bf16.mxu1 %v17798_v1 }
 0xb78   :  { %11220 = vmatpush3.bf16.msra.mxu1 %v17799_v57  ;;  %v8562_v57 = vsel %vm5211_vm3, %v8396_v19, %v12439_v22 }
 0xb79   :  { %11221 = vmatprep.subr.bf16.mxu1 %v17800_v40  ;;  %v17821_v40 = vld [vmem:[#allocation227_spill] sm:$0xff] }
 0xb7c   :  { %11222 = vmatpush3.bf16.msra.mxu1 %v17801_v59 }
 0xb7d   :  { %11223 = vmatprep.subr.bf16.mxu1 %v17802_v18  ;;  %v8567_v18 = vsel %vm5211_vm3, %v8406_v60, %v12448_v58 }
 0xb7e   :  { %v11009_v17 = vpop.f32.mrb[144].mxu1 }
 0xb7f   :  { %v11010_v56 = vpop.f32.mrb[145].mxu1 }
 0xb80   :  { %v11011_v42 = vadd.f32 %v11010_v56, %v11009_v17  ;;  %v11012_v39 = vpop.f32.mrb[146].mxu1  ;;  %11224 = vmatpush3.bf16.msra.mxu1 %v17803_v23  ;;  %v8594_v17 = vpack.c.bf16 %v8562_v57, %v8562_v57  ;;  %v8599_v56 = vpack.c.bf16 %v8567_v18, %v8567_v18  ;;  %v17827_v23 = vld [vmem:[#allocation254_spill] sm:$0xff]  ;;  %v12450_v18 = vld [vmem:[%s17245_s15 + $0x40] sm:$0xff]  }
 0xb81   :  { %v11013_v20 = vpop.f32.mrb[147].mxu1  ;;  %11225 = vmatprep.subr.bf16.mxu1 %v17804_v33  ;;  %v17826_v39 = vld [vmem:[#allocation262_spill] sm:$0xff]  ;;  %v17830_v33 = vld [vmem:[#allocation264_spill] sm:$0xff]  ;;  %11323 = vmatprep.subr.bf16.mxu0 %v12450_v18 }
 0xb82   :  { %v8938_v46 = vadd.f32 %v11011_v42, %v8898_v4  ;;  %v17824_v4 = vld [vmem:[#allocation261_spill] sm:$0xff]  ;;  %v17829_v20 = vld [vmem:[#allocation255_spill] sm:$0xff] }
 0xb83   :  { %v17825_v42 = vld [vmem:[#allocation253_spill] sm:$0xff] }
 0xb84   :  { %11226 = vmatpush3.bf16.msra.mxu1 %v17805_v29  ;;  %v17835_v29 = vld [vmem:[#allocation258_spill] sm:$0xff] }
 0xb85   :  { %11227 = vmatprep.subr.bf16.mxu1 %v17806_v16 }
 0xb88   :  { %11228 = vmatpush3.bf16.msra.mxu1 %v17807_v9 }
 0xb89   :  { %11257 = vmatprep.subr.bf16.mxu1 %v17808_v7 }
 0xb8b   :  { %9336 = vmatmul.mubr.bf16.vlgmr.msra.gmra.mrb[172].mxu1 %v8590_v25  ;;  %v11163_v44 = vpop.f32.mrb[148].mxu0  ;;  %v8404_v25 = vld [vmem:[#allocation3 + $0x78] sm:$0x3] }
 0xb8c   :  { %11258 = vmatpush3.bf16.msra.mxu1 %v17809_v54  ;;  %9415 = vmatprep.mubr.bf16.mxu1 %v8595_v37  ;;  %v11164_v10 = vpop.f32.mrb[149].mxu0 }
 0xb8d   :  { %11259 = vmatprep.subr.bf16.mxu1 %v17810_v50  ;;  %v17090_v14 = vadd.f32 %v11164_v10, %v11163_v44  ;;  %v11166_v1 = vpop.f32.mrb[150].mxu0 }
 0xb8e   :  { %v11167_v59 = vpop.f32.mrb[151].mxu0 }
 0xb90   :  { %11260 = vmatpush3.bf16.msra.mxu1 %v17811_v26  ;;  %v8566_v26 = vsel %vm5211_vm3, %v8404_v25, %v12449_v49  ;;  %v12464_v49 = vld [vmem:[%s17245_s15 + $0x78] sm:$0xff]   ;;  %v9505_v25 = vpack.c.bf16 %v8339_v45, %v8339_v45  ;;  %v12470_v45 = vld [vmem:[%s17246_s16 + $0x20] sm:$0xff]  }
 0xb91   :  { %11261 = vmatprep.subr.bf16.mxu1 %v17812_v41  ;;  %v17837_v41 = vld [vmem:[#allocation259_spill] sm:$0xff] }
 0xb92   :  { %9673 = vmatprep.mubr.bf16.mxu0 %v9505_v25 }
 0xb94   :  { %11262 = vmatpush3.bf16.msra.mxu1 %v17813_v62 }
 0xb95   :  { %11263 = vmatprep.subr.bf16.mxu1 %v17814_v32  ;;  %v17838_v32 = vld [vmem:[#allocation268_spill] sm:$0xff] }
 0xb98   :  { %11264 = vmatpush3.bf16.msra.mxu1 %v17815_v52  ;;  %v8598_v52 = vpack.c.bf16 %v8566_v26, %v8566_v26 }
 0xb99   :  { %11265 = vmatprep.subr.bf16.mxu1 %v17816_v24  ;;  %v17839_v24 = vld [vmem:[#allocation260_spill] sm:$0xff] }
 0xb9c   :  { %11266 = vmatpush3.bf16.msra.mxu1 %v17817_v51 }
 0xb9d   :  { %11267 = vmatprep.subr.bf16.mxu1 %v17818_v38 }
 0xb9e   :  { %v11031_v30 = vpop.f32.mrb[148].mxu1 }
 0xb9f   :  { %v11032_v55 = vpop.f32.mrb[149].mxu1 }
 0xba0   :  { %v11033_v63 = vadd.f32 %v11032_v55, %v11031_v30  ;;  %v11034_v31 = vpop.f32.mrb[150].mxu1  ;;  %11268 = vmatpush3.bf16.msra.mxu1 %v17819_v61 }
 0xba1   :  { %v11035_v12 = vpop.f32.mrb[151].mxu1  ;;  %11269 = vmatprep.subr.bf16.mxu1 %v17820_v21 }
 0xba2   :  { %v8978_v11 = vadd.f32 %v11033_v63, %v8938_v46  ;;  %v17834_v46 = vld [vmem:[#allocation266_spill] sm:$0xff] }
 0xba4   :  { %11270 = vmatpush3.bf16.msra.mxu1 %v17821_v40 }
 0xba5   :  { %11271 = vmatprep.subr.bf16.mxu1 %v17822_v5 }
 0xba8   :  { %11272 = vmatpush3.bf16.msra.mxu1 %v17823_v13  ;;  %v12452_v13 = vld [vmem:[%s17245_s15 + $0x48] sm:$0xff]  }
 0xba9   :  { %11301 = vmatprep.subr.bf16.mxu1 %v17824_v4  ;;  %v12453_v4 = vld [vmem:[%s17245_s15 + $0x8] sm:$0xff]  }
 0xbab   :  { %9416 = vmatmul.mubr.bf16.vlgmr.msra.gmra.mrb[176].mxu1 %v8594_v17  ;;  %v11207_v9 = vpop.f32.mrb[152].mxu0  ;;  %v12451_v17 = vld [vmem:[%s17245_s15] sm:$0xff]  }
 0xbac   :  { %11302 = vmatpush3.bf16.msra.mxu1 %v17825_v42  ;;  %9495 = vmatprep.mubr.bf16.mxu1 %v8599_v56  ;;  %v11208_v7 = vpop.f32.mrb[153].mxu0  ;;  %v12455_v42 = vld [vmem:[%s17245_s15 + $0x10] sm:$0xff]  }
 0xbad   :  { %11303 = vmatprep.subr.bf16.mxu1 %v17826_v39  ;;  %v17110_v54 = vadd.f32 %v11208_v7, %v11207_v9  ;;  %v11210_v50 = vpop.f32.mrb[154].mxu0  ;;  %11324 = vmatpush3.bf16.msra.mxu0 %v12451_v17  ;;  %v12456_v39 = vld [vmem:[%s17245_s15 + $0x58] sm:$0xff]   ;;  %v12466_v9 = vld [vmem:[%s17246_s16] sm:$0xff]   ;;  %v12471_v7 = vld [vmem:[%s17246_s16 + $0x28] sm:$0xff]  }
 0xbae   :  { %v11211_v62 = vpop.f32.mrb[155].mxu0  ;;  %11325 = vmatprep.subr.bf16.mxu0 %v12452_v13  ;;  %v10485_v13 = vld [vmem:[%s17247_s17 + $0xc] ss:$0 sm:$0xff] }
 0xbb0   :  { %11304 = vmatpush3.bf16.msra.mxu1 %v17827_v23  ;;  %v12457_v23 = vld [vmem:[%s17245_s15 + $0x18] sm:$0xff]  }
 0xbb1   :  { %11305 = vmatprep.subr.bf16.mxu1 %v17828_v34  ;;  %11326 = vmatpush3.bf16.msra.mxu0 %v12453_v4  ;;  %v12458_v34 = vld [vmem:[%s17245_s15 + $0x60] sm:$0xff]  }
 0xbb4   :  { %11306 = vmatpush3.bf16.msra.mxu1 %v17829_v20  ;;  %v12459_v20 = vld [vmem:[%s17245_s15 + $0x20] sm:$0xff]  }
 0xbb5   :  { %11307 = vmatprep.subr.bf16.mxu1 %v17830_v33  ;;  %v12460_v33 = vld [vmem:[%s17245_s15 + $0x68] sm:$0xff]  }
 0xbb8   :  { %11308 = vmatpush3.bf16.msra.mxu1 %v17831_v15  ;;  %v12461_v15 = vld [vmem:[%s17245_s15 + $0x28] sm:$0xff]  }
 0xbb9   :  { %11309 = vmatprep.subr.bf16.mxu1 %v17832_v27 }
 0xbbc   :  { %11310 = vmatpush3.bf16.msra.mxu1 %v17833_v53  ;;  %v12462_v53 = vld [vmem:[%s17245_s15 + $0x70] sm:$0xff]  }
 0xbbd   :  { %11311 = vmatprep.subr.bf16.mxu1 %v17834_v46 }
 0xbbe   :  { %v11053_v43 = vpop.f32.mrb[152].mxu1 }
 0xbbf   :  { %v11054_v3 = vpop.f32.mrb[153].mxu1 }
 0xbc0   :  { %v11055_v2 = vadd.f32 %v11054_v3, %v11053_v43  ;;  %v11056_v28 = vpop.f32.mrb[154].mxu1  ;;  %11312 = vmatpush3.bf16.msra.mxu1 %v17835_v29  ;;  %v12463_v43 = vld [vmem:[%s17245_s15 + $0x30] sm:$0xff]  }
 0xbc1   :  { %v11057_v16 = vpop.f32.mrb[155].mxu1  ;;  %11313 = vmatprep.subr.bf16.mxu1 %v17836_v47 }
 0xbc2   :  { %v9018_v37 = vadd.f32 %v11055_v2, %v8978_v11  ;;  %v12465_v16 = vld [vmem:[%s17245_s15 + $0x38] sm:$0xff]  }
 0xbc4   :  { %11314 = vmatpush3.bf16.msra.mxu1 %v17837_v41 }
 0xbc5   :  { %11315 = vmatprep.subr.bf16.mxu1 %v17838_v32 }
 0xbc8   :  { %11316 = vmatpush3.bf16.msra.mxu1 %v17839_v24 }
 0xbc9   :  { %11802 = vmatprep.subr.bf16.mxu1 %v12532_v36 }
 0xbcb   :  { %9496 = vmatmul.mubr.bf16.vlgmr.msra.gmra.mrb[180].mxu1 %v8598_v52  ;;  %v11251_v63 = vpop.f32.mrb[156].mxu0 }
 0xbcc   :  { %11818 = vmatprep.mubr.msk.bf16.mxu1 %vm12533_vm9, %v12532_v36  ;;  %v11252_v61 = vpop.f32.mrb[157].mxu0  ;;  %11803 = vmatpush3.bf16.msra.mxu1 %v12466_v9 }
 0xbcd   :  { %v17119_v22 = vadd.f32 %v11252_v61, %v11251_v63  ;;  %v11254_v12 = vpop.f32.mrb[158].mxu0  ;;  %11804 = vmatprep.subr.bf16.mxu1 %v12532_v36 }
 0xbce   :  { %v11255_v21 = vpop.f32.mrb[159].mxu0 }
 0xbde   :  { %v11075_v51 = vpop.f32.mrb[156].mxu1 }
 0xbdf   :  { %v11076_v38 = vpop.f32.mrb[157].mxu1 }
 0xbe0   :  { %v11077_v30 = vadd.f32 %v11076_v38, %v11075_v51  ;;  %v11078_v48 = vpop.f32.mrb[158].mxu1 }
 0xbe1   :  { %v11079_v55 = vpop.f32.mrb[159].mxu1 }
 0xbe2   :  { %v9058_v31 = vadd.f32 %v11077_v30, %v9018_v37  ;;  %v12467_v37 = vld [vmem:[%s17246_s16 + $0x8] sm:$0xff]  }
 0xbe3   :  { %11805 = vmatpush3.bf16.msra.mxu1 %v12467_v37 }
 0xbe4   :  { %11806 = vmatprep.subr.bf16.mxu1 %v12532_v36 }
 0xbeb   :  { %v11295_v10 = vpop.f32.mrb[160].mxu0 }
 0xbec   :  { %v11296_v57 = vpop.f32.mrb[161].mxu0 }
 0xbed   :  { %v17121_v40 = vadd.f32 %v11296_v57, %v11295_v10  ;;  %v11298_v59 = vpop.f32.mrb[162].mxu0 }
 0xbee   :  { %v11299_v56 = vpop.f32.mrb[163].mxu0 }
 0xbfe   :  { %v11097_v19 = vpop.f32.mrb[160].mxu1 }
 0xbff   :  { %v11098_v58 = vpop.f32.mrb[161].mxu1 }
 0xc00   :  { %v11099_v44 = vadd.f32 %v11098_v58, %v11097_v19  ;;  %v11100_v11 = vpop.f32.mrb[162].mxu1 }
 0xc01   :  { %v11101_v60 = vpop.f32.mrb[163].mxu1 }
 0xc02   :  { %v9098_v1 = vadd.f32 %v11099_v44, %v9058_v31 }
 0xc04   :  { %v9138_v5 = vadd.f32 %v17070_v0, %v9098_v1  ;;  %v12454_v0 = vld [vmem:[%s17245_s15 + $0x50] sm:$0xff]  }
 0xc05   :  { %11327 = vmatprep.subr.bf16.mxu0 %v12454_v0 }
 0xc06   :  { %11328 = vmatpush3.bf16.msra.mxu0 %v12455_v42 }
 0xc07   :  { %11329 = vmatprep.subr.bf16.mxu0 %v12456_v39 }
 0xc0a   :  { %11330 = vmatpush3.bf16.msra.mxu0 %v12457_v23 }
 0xc0b   :  { %11331 = vmatprep.subr.bf16.mxu0 %v12458_v34 }
 0xc0e   :  { %11332 = vmatpush3.bf16.msra.mxu0 %v12459_v20 }
 0xc0f   :  { %11333 = vmatprep.subr.bf16.mxu0 %v12460_v33 }
 0xc12   :  { %11334 = vmatpush3.bf16.msra.mxu0 %v12461_v15 }
 0xc13   :  { %11335 = vmatprep.subr.bf16.mxu0 %v12462_v53 }
 0xc16   :  { %11336 = vmatpush3.bf16.msra.mxu0 %v12463_v43 }
 0xc17   :  { %11337 = vmatprep.subr.bf16.mxu0 %v12464_v49 }
 0xc1a   :  { %11338 = vmatpush3.bf16.msra.mxu0 %v12465_v16 }
 0xc1e   :  { %v11141_v27 = vpop.f32.mrb[164].mxu1 }
 0xc1f   :  { %v11142_v46 = vpop.f32.mrb[165].mxu1 }
 0xc20   :  { %v11143_v3 = vadd.f32 %v11142_v46, %v11141_v27  ;;  %v11144_v2 = vpop.f32.mrb[166].mxu1 }
 0xc21   :  { %v11145_v28 = vpop.f32.mrb[167].mxu1 }
 0xc22   :  { %v9178_v29 = vadd.f32 %v11143_v3, %v9138_v5 }
 0xc24   :  { %v9218_v47 = vadd.f32 %v17090_v14, %v9178_v29  ;;  %v12468_v14 = vld [vmem:[%s17246_s16 + $0x10] sm:$0xff]  }
 0xc25   :  { %11807 = vmatpush3.bf16.msra.mxu1 %v12468_v14 }
 0xc26   :  { %11808 = vmatprep.subr.bf16.mxu1 %v12532_v36 }
 0xc29   :  { %11809 = vmatpush3.bf16.msra.mxu1 %v12469_v6 }
 0xc2a   :  { %11810 = vmatprep.subr.bf16.mxu1 %v12532_v36 }
 0xc2d   :  { %11811 = vmatpush3.bf16.msra.mxu1 %v12470_v45 }
 0xc2e   :  { %11812 = vmatprep.subr.bf16.mxu1 %v12532_v36 }
 0xc31   :  { %11813 = vmatpush3.bf16.msra.mxu1 %v12471_v7 }
 0xc32   :  { %11814 = vmatprep.subr.bf16.mxu1 %v12532_v36 }
 0xc3e   :  { %v11185_v50 = vpop.f32.mrb[168].mxu1 }
 0xc3f   :  { %v11186_v26 = vpop.f32.mrb[169].mxu1 }
 0xc40   :  { %v11187_v41 = vadd.f32 %v11186_v26, %v11185_v50  ;;  %v11188_v62 = vpop.f32.mrb[170].mxu1 }
 0xc41   :  { %v11189_v32 = vpop.f32.mrb[171].mxu1 }
 0xc42   :  { %v9258_v52 = vadd.f32 %v11187_v41, %v9218_v47 }
 0xc44   :  { %v9298_v24 = vadd.f32 %v17110_v54, %v9258_v52 }
 0xc5e   :  { %v11229_v51 = vpop.f32.mrb[172].mxu1 }
 0xc5f   :  { %v11230_v38 = vpop.f32.mrb[173].mxu1 }
 0xc60   :  { %v11231_v30 = vadd.f32 %v11230_v38, %v11229_v51  ;;  %v11232_v48 = vpop.f32.mrb[174].mxu1 }
 0xc61   :  { %v11233_v55 = vpop.f32.mrb[175].mxu1 }
 0xc62   :  { %v9338_v63 = vadd.f32 %v11231_v30, %v9298_v24 }
 0xc64   :  { %v9378_v31 = vadd.f32 %v17119_v22, %v9338_v63  ;;  %v12472_v22 = vld [vmem:[%s17246_s16 + $0x30] sm:$0xff]  }
 0xc65   :  { %11815 = vmatpush3.bf16.msra.mxu1 %v12472_v22 }
 0xc66   :  { %11816 = vmatprep.subr.bf16.mxu1 %v12532_v36  ;;  %v10502_v36 = vld [vmem:[%s17247_s17 + $0xd] ss:$0 sm:$0xff] }
 0xc7e   :  { %v11273_v61 = vpop.f32.mrb[176].mxu1 }
 0xc7f   :  { %v11274_v12 = vpop.f32.mrb[177].mxu1 }
 0xc80   :  { %v11275_v21 = vadd.f32 %v11274_v12, %v11273_v61  ;;  %v11276_v19 = vpop.f32.mrb[178].mxu1 }
 0xc81   :  { %v11277_v58 = vpop.f32.mrb[179].mxu1 }
 0xc82   :  { %v9418_v44 = vadd.f32 %v11275_v21, %v9378_v31 }
 0xc84   :  { %v9458_v11 = vadd.f32 %v17121_v40, %v9418_v44  ;;  %v12473_v40 = vld [vmem:[%s17246_s16 + $0x38] sm:$0xff]   ;;  %s12534_s16 = smov [#allocation8]  }
 0xc85   :  { %11817 = vmatpush3.bf16.msra.mxu1 %v12473_v40  ;;  %s9803_s14 = sshll.u32 %s12534_s16, 4  ;;  %s9804_s14 = int_to_ptr.vmem [resolvable:$true] %s9803_s14 }
 0xc86   :  { %s12496_s19 = scalar_lea.vmem %s9804_s14, 32  ;;  %p12501_p9 = scmp.lt.s32.totalorder %s9804_s14, %s9804_s14 }
 0xc87   :  { %p12497_p8 = scmp.ne.s32.totalorder %s9804_s14, %s12496_s19  ;;  %p12502_p10 = scmp.lt.s32.totalorder %s12496_s19, %s12496_s19 }
 0xc89   :  { %p12503_p11 = por %p12502_p10, %p12501_p9 }
 0xc8b   :  { %p12504_p12 = pnand %p12503_p11, %p12497_p8 }
 0xc9e   :  { %v11317_v60 = vpop.f32.mrb[180].mxu1 }
 0xc9f   :  { %v11318_v10 = vpop.f32.mrb[181].mxu1 }
 0xca0   :  { %v11319_v1 = vadd.f32 %v11318_v10, %v11317_v60  ;;  %v11320_v54 = vpop.f32.mrb[182].mxu1 }
 0xca1   :  { %v11321_v57 = vpop.f32.mrb[183].mxu1 }
 0xca2   :  { %v9498_v59 = vadd.f32 %v11319_v1, %v9458_v11 }
 0xca4   :  { %v9503_v5 = vmax.f32 %v9498_v59, 0.0 }
 0xca6   :  { %v9504_v18 = vpack.c.bf16 %v9503_v5, %v9503_v5 }
 0xca8   :  { %9674 = vmatmul.mubr.bf16.vlgmr.msra.gmra.mrb[164].mxu0 %v9504_v18 }
 0xd7b   :  { %v11339_v17 = vpop.f32.mrb[164].mxu0 }
 0xd7c   :  { %v11340_v56 = vpop.f32.mrb[165].mxu0 }
 0xd7d   :  { %v11341_v4 = vadd.f32 %v11340_v56, %v11339_v17  ;;  %v11342_v0 = vpop.f32.mrb[166].mxu0 }
 0xd7e   :  { %v11343_v42 = vpop.f32.mrb[167].mxu0 }
 0xd7f   :  { %v9676_v39 = vadd.f32 %v11341_v4, %v10485_v13 }
 0xd81   :  { %v9681_v23 = vmax.f32 %v9676_v39, 0.0 }
 0xd83   :  { %v9682_v34 = vpack.c.bf16 %v9681_v23, %v9681_v23 }
 0xd85   :  { %11819 = vmatmul.mubr.bf16.vlgmr.msra.gmra.mrb[184].mxu1 %v9682_v34 }
 0xe58   :  { %v9788_v20 = vpop.f32.mrb[184].mxu1 }
 0xe59   :  { %v9789_v33 = vadd.f32 %v10502_v36, %v9788_v20  ;;  %v11820_v15 = vpop.f32.mrb[185].mxu1 }
 0xe5a   :  { %v9791_v27 = vpop.f32.mrb[186].mxu1 }
 0xe5b   :  { %v9794_v53 = vmax.f32 %v9789_v33, 0.0  ;;  %v11821_v46 = vpop.f32.mrb[187].mxu1 }
 0xe5d   :  { %v9795_v43 = vadd.f32 %v9794_v53, %v7950_v8 }
 0xe5f   :  { %9796 = vst [vmem:[#allocation8] sm:$0x3] %v9795_v43 }
 0xe60   :  { %12507 = shalt.err (!%p12504_p12)
}
 0xe61   :  { %s12508_s23 = scalar_lea.hbm %s17248_s18, 32 }
 0xe62   :  { %p12509_p13 = scmp.ne.s32.totalorder %s17248_s18, %s12508_s23  ;;  %p12512_p0 = scmp.lt.u32.totalorder %s12508_s23, %s17248_s18 }
 0xe64   :  { %p12514_p1 = pnand %p12512_p0, %p12509_p13 }
 0xe66   :  { %12517 = shalt.err (!%p12514_p1)
}
 0xe67   :  { %9806 = dma.vmem_to_hbm [thread:$0]  %s9804_s14, 32, %s17248_s18, [#allocation7]  }
 0xe68   :  { %12522 = dma.done.wait [#allocation7], 32  }
 0xe69   :  { %12523 = vsyncadd [#allocation7], 4294967264 }
 0xe6a   :  { %9810 = vsyncpa [#allocation6], 1 }
 0xe6b   :  { %9811 = vsyncpa [#allocation7], 1 }
 0xe6c   :  { %9812 = vsyncmov [#allocation4] }
 0xe6f   :  { %s9813_s27 = vpop.sfrf %9812 }
 0xe70   :  { %p10511_p2 = scmp.ne.s32.totalorder %s9813_s27, 0 }
 0xe72   :  { %9817 = shalt.err (%p10511_p2)  }

</bundles_post_ra>
